<compile_context>
chip_gen: v6e
topology: v6e:2x2x1
jax: 0.10.0
libtpu: 0.0.40
codegen_flags: <defaults>
</compile_context>

<pallas_src>
import functools
import jax
import jax.numpy as jnp
from jax.experimental import pallas as pl
from jax.experimental.pallas import tpu as pltpu

BN_EPS = 1e-5


# --------------------------- Pallas kernels -------------------------------- #
def _conv_block_kernel(x_ref, w_ref, sc_ref, sh_ref, o_ref):
    """Single-step fused matmul: relu((x @ w) * scale + shift). No scratch."""
    acc = jnp.dot(x_ref[...], w_ref[...], preferred_element_type=jnp.float32)
    r = acc * sc_ref[...] + sh_ref[...]
    o_ref[...] = jnp.maximum(r, 0.0).astype(o_ref.dtype)


def _fc_fused_kernel(x_ref, w1_ref, sc1_ref, sh1_ref, w2_ref, b2_ref,
                     o_ref, acc_ref, *, tanh):
    """fc1 (K-tiled accumulate) + BN + ReLU + fc2 (+tanh), hidden stays in VMEM."""
    k = pl.program_id(0)

    @pl.when(k == 0)
    def _():
        acc_ref[...] = jnp.zeros_like(acc_ref)

    acc_ref[...] += jnp.dot(x_ref[...], w1_ref[...],
                            preferred_element_type=jnp.float32)

    @pl.when(k == pl.num_programs(0) - 1)
    def _():
        h = acc_ref[...] * sc1_ref[...] + sh1_ref[...]
        h = jnp.maximum(h, 0.0)
        out = jnp.dot(h.astype(jnp.bfloat16), w2_ref[...],
                      preferred_element_type=jnp.float32) + b2_ref[...]
        if tanh:
            out = jnp.tanh(out)
        o_ref[...] = out.astype(o_ref.dtype)


# ------------------------------ wrappers ------------------------------------ #
def _pick_tk(K, cap=2304):
    """Largest K-tile <= cap that divides K (128-multiple when tiling)."""
    if K <= cap:
        return K
    best = None
    for m in range(1, cap // 128 + 1):
        tk = 128 * m
        if K % tk == 0:
            best = tk
    return best if best is not None else K   # fallback: single full-K step


def conv_block_matmul(cols, w, scale, shift):
    """relu((cols @ w) * scale + shift) for one conv block (grid size 1)."""
    M, K = cols.shape
    K2, N = w.shape
    assert K == K2
    return pl.pallas_call(
        _conv_block_kernel,
        out_shape=jax.ShapeDtypeStruct((M, N), jnp.bfloat16),
        grid_spec=pltpu.PrefetchScalarGridSpec(
            num_scalar_prefetch=0,
            grid=(1,),
            in_specs=[
                pl.BlockSpec((M, K), lambda k: (0, 0)),
                pl.BlockSpec((K, N), lambda k: (0, 0)),
                pl.BlockSpec((1, N), lambda k: (0, 0)),
                pl.BlockSpec((1, N), lambda k: (0, 0)),
            ],
            out_specs=pl.BlockSpec((M, N), lambda k: (0, 0)),
        ),
        compiler_params=pltpu.CompilerParams(
            dimension_semantics=("arbitrary",)),
    )(cols, w, scale, shift)


def fc_head(flat, w1, scale1, shift1, w2, b2, *, tanh=False):
    """Fused fc1(+BN+ReLU)+fc2(+tanh). w1 streamed in bf16 over a K grid."""
    M, K = flat.shape
    K2, H = w1.shape
    assert K == K2
    H2, N = w2.shape
    assert H == H2
    tk = _pick_tk(K)
    grid = (K // tk,)
    kernel = functools.partial(_fc_fused_kernel, tanh=tanh)
    return pl.pallas_call(
        kernel,
        out_shape=jax.ShapeDtypeStruct((M, N), jnp.float32),
        grid_spec=pltpu.PrefetchScalarGridSpec(
            num_scalar_prefetch=0,
            grid=grid,
            in_specs=[
                pl.BlockSpec((M, tk), lambda k: (0, k)),
                pl.BlockSpec((tk, H), lambda k: (k, 0)),
                pl.BlockSpec((1, H), lambda k: (0, 0)),
                pl.BlockSpec((1, H), lambda k: (0, 0)),
                pl.BlockSpec((H, N), lambda k: (0, 0)),
                pl.BlockSpec((1, N), lambda k: (0, 0)),
            ],
            out_specs=pl.BlockSpec((M, N), lambda k: (0, 0)),
            scratch_shapes=[pltpu.VMEM((M, H), jnp.float32)],
        ),
        compiler_params=pltpu.CompilerParams(
            dimension_semantics=("arbitrary",)),
    )(flat, w1, scale1, shift1, w2, b2)


# ------------------------------ JAX glue ------------------------------------ #
def im2col_nhwc(x, k, stride, pad):
    """x: (B, H, W, C) -> (B*Ho*Wo, k*k*C), patch-major / channel-minor."""
    B, H, W, C = x.shape
    xp = jnp.pad(x, ((0, 0), (pad, pad), (pad, pad), (0, 0)))
    Ho = (H + 2 * pad - k) // stride + 1
    Wo = (W + 2 * pad - k) // stride + 1
    cols = []
    for di in range(k):
        for dj in range(k):
            cols.append(xp[:, di:di + stride * Ho:stride,
                           dj:dj + stride * Wo:stride, :])
    cols = jnp.concatenate(cols, axis=-1)           # (B, Ho, Wo, k*k*C)
    return cols.reshape(B * Ho * Wo, k * k * C), Ho, Wo


def prepare_params(params):
    """Fold BN (eval mode) + biases into per-channel (scale, shift) and cast
    all matmul weights to bf16 once, outside the jitted forward."""
    blocks = []
    for (w, b, gamma, beta, mean, var) in params["blocks"]:
        cout, cin, k, _ = w.shape
        # (Cout, Cin, kh, kw) -> (kh, kw, Cin, Cout) -> (k*k*Cin, Cout)
        w_mat = jnp.transpose(w, (2, 3, 1, 0)).reshape(k * k * cin, cout)
        scale = gamma / jnp.sqrt(var + BN_EPS)
        shift = beta + scale * (b - mean)
        blocks.append((w_mat.astype(jnp.bfloat16),
                       scale.reshape(1, cout).astype(jnp.float32),
                       shift.reshape(1, cout).astype(jnp.float32)))

    w1, b1, g1, be1, m1, v1 = params["fc1"]
    scale1 = g1 / jnp.sqrt(v1 + BN_EPS)
    shift1 = be1 + scale1 * (b1 - m1)
    w2, b2 = params["fc2"]
    fc = (w1.astype(jnp.bfloat16),
          scale1.reshape(1, -1).astype(jnp.float32),
          shift1.reshape(1, -1).astype(jnp.float32),
          w2.astype(jnp.bfloat16),
          b2.reshape(1, -1).astype(jnp.float32))
    return {"blocks": blocks, "fc": fc}


def audio_encoder_forward(x_nchw, prepared, if_tanh=False):
    x = jnp.transpose(x_nchw, (0, 2, 3, 1)).astype(jnp.bfloat16)  # NCHW->NHWC
    strides = [1, 2, 1, 1, 2]
    for (w_mat, scale, shift), s in zip(prepared["blocks"], strides):
        B = x.shape[0]
        cols, Ho, Wo = im2col_nhwc(x, 3, s, 1)
        out = conv_block_matmul(cols, w_mat, scale, shift)
        x = out.reshape(B, Ho, Wo, w_mat.shape[1])
    B = x.shape[0]
    # PyTorch flattens the NCHW tensor: go back to NCHW before reshaping.
    flat = jnp.transpose(x, (0, 3, 1, 2)).reshape(B, -1)   # (B, 6912) bf16

    w1, scale1, shift1, w2, b2 = prepared["fc"]
    return fc_head(flat, w1, scale1, shift1, w2, b2, tanh=if_tanh)


# --------------------------- deterministic init ----------------------------- #
def init_params(key, num_output_length):
    keys = iter(jax.random.split(key, 64))
    blocks = []
    for cin, cout in [(1, 16), (16, 32), (32, 64), (64, 128), (128, 256)]:
        w = 0.05 * jax.random.normal(next(keys), (cout, cin, 3, 3), jnp.float32)
        b = 0.01 * jax.random.normal(next(keys), (cout,), jnp.float32)
        gamma = 1.0 + 0.1 * jax.random.normal(next(keys), (cout,), jnp.float32)
        beta = 0.1 * jax.random.normal(next(keys), (cout,), jnp.float32)
        mean = 0.1 * jax.random.normal(next(keys), (cout,), jnp.float32)
        var = 1.0 + 0.1 * jax.random.uniform(next(keys), (cout,), jnp.float32)
        blocks.append((w, b, gamma, beta, mean, var))

    w1 = 0.02 * jax.random.normal(next(keys), (6912, 512), jnp.float32)
    b1 = 0.01 * jax.random.normal(next(keys), (512,), jnp.float32)
    g1 = 1.0 + 0.1 * jax.random.normal(next(keys), (512,), jnp.float32)
    be1 = 0.1 * jax.random.normal(next(keys), (512,), jnp.float32)
    m1 = 0.1 * jax.random.normal(next(keys), (512,), jnp.float32)
    v1 = 1.0 + 0.1 * jax.random.uniform(next(keys), (512,), jnp.float32)

    w2 = 0.05 * jax.random.normal(next(keys), (512, num_output_length),
                                  jnp.float32)
    b2 = 0.01 * jax.random.normal(next(keys), (num_output_length,),
                                  jnp.float32)
    return {"blocks": blocks, "fc1": (w1, b1, g1, be1, m1, v1),
            "fc2": (w2, b2)}


# ---------------------------------- main ------------------------------------ #
if __name__ == "__main__":
    key = jax.random.PRNGKey(0)
    pkey, xkey = jax.random.split(key)

    num_output_length = 32
    params = init_params(pkey, num_output_length)
    prepared = prepare_params(params)   # weights folded + cast to bf16 once

    # NCHW like PyTorch; (12, 35) is the spatial size implied by fc1's 6912
    # ( -> 256 channels * 3 * 9 after the two stride-2 blocks ).
    x = jax.random.normal(xkey, (2, 1, 12, 35), jnp.float32)

    fwd = jax.jit(functools.partial(audio_encoder_forward, if_tanh=False))
    out = jax.block_until_ready(fwd(x, prepared))

    assert out.shape == (2, num_output_length), out.shape
    assert bool(jnp.all(jnp.isfinite(out)))
    print("KERNEL_OK")
</pallas_src>

<mosaic_0001>
module attributes {stable_mosaic.version = 11 : i64} {
  func.func @_conv_block_kernel(%arg0: i32, %arg1: memref<840x9xbf16, #tpu.memory_space<vmem>>, %arg2: memref<9x16xbf16, #tpu.memory_space<vmem>>, %arg3: memref<1x16xf32, #tpu.memory_space<vmem>>, %arg4: memref<1x16xf32, #tpu.memory_space<vmem>>, %arg5: memref<840x16xbf16, #tpu.memory_space<vmem>>) attributes {dimension_semantics = [#tpu.dimension_semantics<arbitrary>], iteration_bounds = array<i64: 1>, scalar_prefetch = 0 : i64, scratch_operands = 0 : i64, tpu.core_type = #tpu.core_type<tc>, window_params = [{pipeline_mode = #tpu.pipeline_mode<synchronous>, transform_indices = @transform_0, window_bounds = array<i64: 840, 9>}, {pipeline_mode = #tpu.pipeline_mode<synchronous>, transform_indices = @transform_1, window_bounds = array<i64: 9, 16>}, {pipeline_mode = #tpu.pipeline_mode<synchronous>, transform_indices = @transform_2, window_bounds = array<i64: 1, 16>}, {pipeline_mode = #tpu.pipeline_mode<synchronous>, transform_indices = @transform_3, window_bounds = array<i64: 1, 16>}, {pipeline_mode = #tpu.pipeline_mode<synchronous>, transform_indices = @transform_4, window_bounds = array<i64: 840, 16>}]} {
    %c0 = arith.constant 0 : index
    %c0_0 = arith.constant 0 : index
    %0 = vector.load %arg1[%c0, %c0_0] : memref<840x9xbf16, #tpu.memory_space<vmem>>, vector<840x9xbf16>
    %c0_1 = arith.constant 0 : index
    %c0_2 = arith.constant 0 : index
    %1 = vector.load %arg2[%c0_1, %c0_2] : memref<9x16xbf16, #tpu.memory_space<vmem>>, vector<9x16xbf16>
    %cst = arith.constant dense<0.000000e+00> : vector<840x16xf32>
    %2 = tpu.matmul %0, %1, %cst {dimension_numbers = #tpu.dot_dimension_numbers<[1], [0], [0], [1], [0, 0, 1, 1], [], []>} : vector<840x9xbf16>, vector<9x16xbf16>, vector<840x16xf32> -> vector<840x16xf32>
    %c0_3 = arith.constant 0 : index
    %c0_4 = arith.constant 0 : index
    %3 = vector.load %arg3[%c0_3, %c0_4] : memref<1x16xf32, #tpu.memory_space<vmem>>, vector<1x16xf32>
    %4 = vector.broadcast %3 : vector<1x16xf32> to vector<840x16xf32>
    %5 = arith.mulf %2, %4 : vector<840x16xf32>
    %c0_5 = arith.constant 0 : index
    %c0_6 = arith.constant 0 : index
    %6 = vector.load %arg4[%c0_5, %c0_6] : memref<1x16xf32, #tpu.memory_space<vmem>>, vector<1x16xf32>
    %7 = vector.broadcast %6 : vector<1x16xf32> to vector<840x16xf32>
    %8 = arith.addf %5, %7 : vector<840x16xf32>
    %cst_7 = arith.constant 0.000000e+00 : f32
    %9 = vector.broadcast %cst_7 : f32 to vector<840x16xf32>
    %10 = arith.maximumf %8, %9 : vector<840x16xf32>
    %11 = arith.truncf %10 : vector<840x16xf32> to vector<840x16xbf16>
    %c0_8 = arith.constant 0 : index
    %c0_9 = arith.constant 0 : index
    %12 = vector.load %arg5[%c0_8, %c0_9] : memref<840x16xbf16, #tpu.memory_space<vmem>>, vector<840x16xbf16>
    tpu.vector_store %arg5[%c0_8, %c0_9], %11 {strides = array<i32>} : memref<840x16xbf16, #tpu.memory_space<vmem>>, vector<840x16xbf16>,
    return
  }
  func.func @transform_0(%arg0: i32) -> (i32, i32) {
    %c0_i32 = arith.constant 0 : i32
    %c0_i32_0 = arith.constant 0 : i32
    %c0_i32_1 = arith.constant 0 : i32
    return %c0_i32, %c0_i32_0 : i32, i32
  }
  func.func @transform_1(%arg0: i32) -> (i32, i32) {
    %c0_i32 = arith.constant 0 : i32
    %c0_i32_0 = arith.constant 0 : i32
    %c0_i32_1 = arith.constant 0 : i32
    return %c0_i32, %c0_i32_0 : i32, i32
  }
  func.func @transform_2(%arg0: i32) -> (i32, i32) {
    %c0_i32 = arith.constant 0 : i32
    %c0_i32_0 = arith.constant 0 : i32
    %c0_i32_1 = arith.constant 0 : i32
    return %c0_i32, %c0_i32_0 : i32, i32
  }
  func.func @transform_3(%arg0: i32) -> (i32, i32) {
    %c0_i32 = arith.constant 0 : i32
    %c0_i32_0 = arith.constant 0 : i32
    %c0_i32_1 = arith.constant 0 : i32
    return %c0_i32, %c0_i32_0 : i32, i32
  }
  func.func @transform_4(%arg0: i32) -> (i32, i32) {
    %c0_i32 = arith.constant 0 : i32
    %c0_i32_0 = arith.constant 0 : i32
    %c0_i32_1 = arith.constant 0 : i32
    return %c0_i32, %c0_i32_0 : i32, i32
  }
}

module attributes {stable_mosaic.version = 11 : i64} {
  func.func @_conv_block_kernel(%arg0: i32, %arg1: memref<216x144xbf16, #tpu.memory_space<vmem>>, %arg2: memref<144x32xbf16, #tpu.memory_space<vmem>>, %arg3: memref<1x32xf32, #tpu.memory_space<vmem>>, %arg4: memref<1x32xf32, #tpu.memory_space<vmem>>, %arg5: memref<216x32xbf16, #tpu.memory_space<vmem>>) attributes {dimension_semantics = [#tpu.dimension_semantics<arbitrary>], iteration_bounds = array<i64: 1>, scalar_prefetch = 0 : i64, scratch_operands = 0 : i64, tpu.core_type = #tpu.core_type<tc>, window_params = [{pipeline_mode = #tpu.pipeline_mode<synchronous>, transform_indices = @transform_0, window_bounds = array<i64: 216, 144>}, {pipeline_mode = #tpu.pipeline_mode<synchronous>, transform_indices = @transform_1, window_bounds = array<i64: 144, 32>}, {pipeline_mode = #tpu.pipeline_mode<synchronous>, transform_indices = @transform_2, window_bounds = array<i64: 1, 32>}, {pipeline_mode = #tpu.pipeline_mode<synchronous>, transform_indices = @transform_3, window_bounds = array<i64: 1, 32>}, {pipeline_mode = #tpu.pipeline_mode<synchronous>, transform_indices = @transform_4, window_bounds = array<i64: 216, 32>}]} {
    %c0 = arith.constant 0 : index
    %c0_0 = arith.constant 0 : index
    %0 = vector.load %arg1[%c0, %c0_0] : memref<216x144xbf16, #tpu.memory_space<vmem>>, vector<216x144xbf16>
    %c0_1 = arith.constant 0 : index
    %c0_2 = arith.constant 0 : index
    %1 = vector.load %arg2[%c0_1, %c0_2] : memref<144x32xbf16, #tpu.memory_space<vmem>>, vector<144x32xbf16>
    %cst = arith.constant dense<0.000000e+00> : vector<216x32xf32>
    %2 = tpu.matmul %0, %1, %cst {dimension_numbers = #tpu.dot_dimension_numbers<[1], [0], [0], [1], [0, 0, 1, 1], [], []>} : vector<216x144xbf16>, vector<144x32xbf16>, vector<216x32xf32> -> vector<216x32xf32>
    %c0_3 = arith.constant 0 : index
    %c0_4 = arith.constant 0 : index
    %3 = vector.load %arg3[%c0_3, %c0_4] : memref<1x32xf32, #tpu.memory_space<vmem>>, vector<1x32xf32>
    %4 = vector.broadcast %3 : vector<1x32xf32> to vector<216x32xf32>
    %5 = arith.mulf %2, %4 : vector<216x32xf32>
    %c0_5 = arith.constant 0 : index
    %c0_6 = arith.constant 0 : index
    %6 = vector.load %arg4[%c0_5, %c0_6] : memref<1x32xf32, #tpu.memory_space<vmem>>, vector<1x32xf32>
    %7 = vector.broadcast %6 : vector<1x32xf32> to vector<216x32xf32>
    %8 = arith.addf %5, %7 : vector<216x32xf32>
    %cst_7 = arith.constant 0.000000e+00 : f32
    %9 = vector.broadcast %cst_7 : f32 to vector<216x32xf32>
    %10 = arith.maximumf %8, %9 : vector<216x32xf32>
    %11 = arith.truncf %10 : vector<216x32xf32> to vector<216x32xbf16>
    %c0_8 = arith.constant 0 : index
    %c0_9 = arith.constant 0 : index
    %12 = vector.load %arg5[%c0_8, %c0_9] : memref<216x32xbf16, #tpu.memory_space<vmem>>, vector<216x32xbf16>
    tpu.vector_store %arg5[%c0_8, %c0_9], %11 {strides = array<i32>} : memref<216x32xbf16, #tpu.memory_space<vmem>>, vector<216x32xbf16>,
    return
  }
  func.func @transform_0(%arg0: i32) -> (i32, i32) {
    %c0_i32 = arith.constant 0 : i32
    %c0_i32_0 = arith.constant 0 : i32
    %c0_i32_1 = arith.constant 0 : i32
    return %c0_i32, %c0_i32_0 : i32, i32
  }
  func.func @transform_1(%arg0: i32) -> (i32, i32) {
    %c0_i32 = arith.constant 0 : i32
    %c0_i32_0 = arith.constant 0 : i32
    %c0_i32_1 = arith.constant 0 : i32
    return %c0_i32, %c0_i32_0 : i32, i32
  }
  func.func @transform_2(%arg0: i32) -> (i32, i32) {
    %c0_i32 = arith.constant 0 : i32
    %c0_i32_0 = arith.constant 0 : i32
    %c0_i32_1 = arith.constant 0 : i32
    return %c0_i32, %c0_i32_0 : i32, i32
  }
  func.func @transform_3(%arg0: i32) -> (i32, i32) {
    %c0_i32 = arith.constant 0 : i32
    %c0_i32_0 = arith.constant 0 : i32
    %c0_i32_1 = arith.constant 0 : i32
    return %c0_i32, %c0_i32_0 : i32, i32
  }
  func.func @transform_4(%arg0: i32) -> (i32, i32) {
    %c0_i32 = arith.constant 0 : i32
    %c0_i32_0 = arith.constant 0 : i32
    %c0_i32_1 = arith.constant 0 : i32
    return %c0_i32, %c0_i32_0 : i32, i32
  }
}

module attributes {stable_mosaic.version = 11 : i64} {
  func.func @_conv_block_kernel(%arg0: i32, %arg1: memref<216x288xbf16, #tpu.memory_space<vmem>>, %arg2: memref<288x64xbf16, #tpu.memory_space<vmem>>, %arg3: memref<1x64xf32, #tpu.memory_space<vmem>>, %arg4: memref<1x64xf32, #tpu.memory_space<vmem>>, %arg5: memref<216x64xbf16, #tpu.memory_space<vmem>>) attributes {dimension_semantics = [#tpu.dimension_semantics<arbitrary>], iteration_bounds = array<i64: 1>, scalar_prefetch = 0 : i64, scratch_operands = 0 : i64, tpu.core_type = #tpu.core_type<tc>, window_params = [{pipeline_mode = #tpu.pipeline_mode<synchronous>, transform_indices = @transform_0, window_bounds = array<i64: 216, 288>}, {pipeline_mode = #tpu.pipeline_mode<synchronous>, transform_indices = @transform_1, window_bounds = array<i64: 288, 64>}, {pipeline_mode = #tpu.pipeline_mode<synchronous>, transform_indices = @transform_2, window_bounds = array<i64: 1, 64>}, {pipeline_mode = #tpu.pipeline_mode<synchronous>, transform_indices = @transform_3, window_bounds = array<i64: 1, 64>}, {pipeline_mode = #tpu.pipeline_mode<synchronous>, transform_indices = @transform_4, window_bounds = array<i64: 216, 64>}]} {
    %c0 = arith.constant 0 : index
    %c0_0 = arith.constant 0 : index
    %0 = vector.load %arg1[%c0, %c0_0] : memref<216x288xbf16, #tpu.memory_space<vmem>>, vector<216x288xbf16>
    %c0_1 = arith.constant 0 : index
    %c0_2 = arith.constant 0 : index
    %1 = vector.load %arg2[%c0_1, %c0_2] : memref<288x64xbf16, #tpu.memory_space<vmem>>, vector<288x64xbf16>
    %cst = arith.constant dense<0.000000e+00> : vector<216x64xf32>
    %2 = tpu.matmul %0, %1, %cst {dimension_numbers = #tpu.dot_dimension_numbers<[1], [0], [0], [1], [0, 0, 1, 1], [], []>} : vector<216x288xbf16>, vector<288x64xbf16>, vector<216x64xf32> -> vector<216x64xf32>
    %c0_3 = arith.constant 0 : index
    %c0_4 = arith.constant 0 : index
    %3 = vector.load %arg3[%c0_3, %c0_4] : memref<1x64xf32, #tpu.memory_space<vmem>>, vector<1x64xf32>
    %4 = vector.broadcast %3 : vector<1x64xf32> to vector<216x64xf32>
    %5 = arith.mulf %2, %4 : vector<216x64xf32>
    %c0_5 = arith.constant 0 : index
    %c0_6 = arith.constant 0 : index
    %6 = vector.load %arg4[%c0_5, %c0_6] : memref<1x64xf32, #tpu.memory_space<vmem>>, vector<1x64xf32>
    %7 = vector.broadcast %6 : vector<1x64xf32> to vector<216x64xf32>
    %8 = arith.addf %5, %7 : vector<216x64xf32>
    %cst_7 = arith.constant 0.000000e+00 : f32
    %9 = vector.broadcast %cst_7 : f32 to vector<216x64xf32>
    %10 = arith.maximumf %8, %9 : vector<216x64xf32>
    %11 = arith.truncf %10 : vector<216x64xf32> to vector<216x64xbf16>
    %c0_8 = arith.constant 0 : index
    %c0_9 = arith.constant 0 : index
    %12 = vector.load %arg5[%c0_8, %c0_9] : memref<216x64xbf16, #tpu.memory_space<vmem>>, vector<216x64xbf16>
    tpu.vector_store %arg5[%c0_8, %c0_9], %11 {strides = array<i32>} : memref<216x64xbf16, #tpu.memory_space<vmem>>, vector<216x64xbf16>,
    return
  }
  func.func @transform_0(%arg0: i32) -> (i32, i32) {
    %c0_i32 = arith.constant 0 : i32
    %c0_i32_0 = arith.constant 0 : i32
    %c0_i32_1 = arith.constant 0 : i32
    return %c0_i32, %c0_i32_0 : i32, i32
  }
  func.func @transform_1(%arg0: i32) -> (i32, i32) {
    %c0_i32 = arith.constant 0 : i32
    %c0_i32_0 = arith.constant 0 : i32
    %c0_i32_1 = arith.constant 0 : i32
    return %c0_i32, %c0_i32_0 : i32, i32
  }
  func.func @transform_2(%arg0: i32) -> (i32, i32) {
    %c0_i32 = arith.constant 0 : i32
    %c0_i32_0 = arith.constant 0 : i32
    %c0_i32_1 = arith.constant 0 : i32
    return %c0_i32, %c0_i32_0 : i32, i32
  }
  func.func @transform_3(%arg0: i32) -> (i32, i32) {
    %c0_i32 = arith.constant 0 : i32
    %c0_i32_0 = arith.constant 0 : i32
    %c0_i32_1 = arith.constant 0 : i32
    return %c0_i32, %c0_i32_0 : i32, i32
  }
  func.func @transform_4(%arg0: i32) -> (i32, i32) {
    %c0_i32 = arith.constant 0 : i32
    %c0_i32_0 = arith.constant 0 : i32
    %c0_i32_1 = arith.constant 0 : i32
    return %c0_i32, %c0_i32_0 : i32, i32
  }
}

module attributes {stable_mosaic.version = 11 : i64} {
  func.func @_conv_block_kernel(%arg0: i32, %arg1: memref<216x576xbf16, #tpu.memory_space<vmem>>, %arg2: memref<576x128xbf16, #tpu.memory_space<vmem>>, %arg3: memref<1x128xf32, #tpu.memory_space<vmem>>, %arg4: memref<1x128xf32, #tpu.memory_space<vmem>>, %arg5: memref<216x128xbf16, #tpu.memory_space<vmem>>) attributes {dimension_semantics = [#tpu.dimension_semantics<arbitrary>], iteration_bounds = array<i64: 1>, scalar_prefetch = 0 : i64, scratch_operands = 0 : i64, tpu.core_type = #tpu.core_type<tc>, window_params = [{pipeline_mode = #tpu.pipeline_mode<synchronous>, transform_indices = @transform_0, window_bounds = array<i64: 216, 576>}, {pipeline_mode = #tpu.pipeline_mode<synchronous>, transform_indices = @transform_1, window_bounds = array<i64: 576, 128>}, {pipeline_mode = #tpu.pipeline_mode<synchronous>, transform_indices = @transform_2, window_bounds = array<i64: 1, 128>}, {pipeline_mode = #tpu.pipeline_mode<synchronous>, transform_indices = @transform_3, window_bounds = array<i64: 1, 128>}, {pipeline_mode = #tpu.pipeline_mode<synchronous>, transform_indices = @transform_4, window_bounds = array<i64: 216, 128>}]} {
    %c0 = arith.constant 0 : index
    %c0_0 = arith.constant 0 : index
    %0 = vector.load %arg1[%c0, %c0_0] : memref<216x576xbf16, #tpu.memory_space<vmem>>, vector<216x576xbf16>
    %c0_1 = arith.constant 0 : index
    %c0_2 = arith.constant 0 : index
    %1 = vector.load %arg2[%c0_1, %c0_2] : memref<576x128xbf16, #tpu.memory_space<vmem>>, vector<576x128xbf16>
    %cst = arith.constant dense<0.000000e+00> : vector<216x128xf32>
    %2 = tpu.matmul %0, %1, %cst {dimension_numbers = #tpu.dot_dimension_numbers<[1], [0], [0], [1], [0, 0, 1, 1], [], []>} : vector<216x576xbf16>, vector<576x128xbf16>, vector<216x128xf32> -> vector<216x128xf32>
    %c0_3 = arith.constant 0 : index
    %c0_4 = arith.constant 0 : index
    %3 = vector.load %arg3[%c0_3, %c0_4] : memref<1x128xf32, #tpu.memory_space<vmem>>, vector<1x128xf32>
    %4 = vector.broadcast %3 : vector<1x128xf32> to vector<216x128xf32>
    %5 = arith.mulf %2, %4 : vector<216x128xf32>
    %c0_5 = arith.constant 0 : index
    %c0_6 = arith.constant 0 : index
    %6 = vector.load %arg4[%c0_5, %c0_6] : memref<1x128xf32, #tpu.memory_space<vmem>>, vector<1x128xf32>
    %7 = vector.broadcast %6 : vector<1x128xf32> to vector<216x128xf32>
    %8 = arith.addf %5, %7 : vector<216x128xf32>
    %cst_7 = arith.constant 0.000000e+00 : f32
    %9 = vector.broadcast %cst_7 : f32 to vector<216x128xf32>
    %10 = arith.maximumf %8, %9 : vector<216x128xf32>
    %11 = arith.truncf %10 : vector<216x128xf32> to vector<216x128xbf16>
    %c0_8 = arith.constant 0 : index
    %c0_9 = arith.constant 0 : index
    %12 = vector.load %arg5[%c0_8, %c0_9] : memref<216x128xbf16, #tpu.memory_space<vmem>>, vector<216x128xbf16>
    tpu.vector_store %arg5[%c0_8, %c0_9], %11 {strides = array<i32>} : memref<216x128xbf16, #tpu.memory_space<vmem>>, vector<216x128xbf16>,
    return
  }
  func.func @transform_0(%arg0: i32) -> (i32, i32) {
    %c0_i32 = arith.constant 0 : i32
    %c0_i32_0 = arith.constant 0 : i32
    %c0_i32_1 = arith.constant 0 : i32
    return %c0_i32, %c0_i32_0 : i32, i32
  }
  func.func @transform_1(%arg0: i32) -> (i32, i32) {
    %c0_i32 = arith.constant 0 : i32
    %c0_i32_0 = arith.constant 0 : i32
    %c0_i32_1 = arith.constant 0 : i32
    return %c0_i32, %c0_i32_0 : i32, i32
  }
  func.func @transform_2(%arg0: i32) -> (i32, i32) {
    %c0_i32 = arith.constant 0 : i32
    %c0_i32_0 = arith.constant 0 : i32
    %c0_i32_1 = arith.constant 0 : i32
    return %c0_i32, %c0_i32_0 : i32, i32
  }
  func.func @transform_3(%arg0: i32) -> (i32, i32) {
    %c0_i32 = arith.constant 0 : i32
    %c0_i32_0 = arith.constant 0 : i32
    %c0_i32_1 = arith.constant 0 : i32
    return %c0_i32, %c0_i32_0 : i32, i32
  }
  func.func @transform_4(%arg0: i32) -> (i32, i32) {
    %c0_i32 = arith.constant 0 : i32
    %c0_i32_0 = arith.constant 0 : i32
    %c0_i32_1 = arith.constant 0 : i32
    return %c0_i32, %c0_i32_0 : i32, i32
  }
}

module attributes {stable_mosaic.version = 11 : i64} {
  func.func @_conv_block_kernel(%arg0: i32, %arg1: memref<54x1152xbf16, #tpu.memory_space<vmem>>, %arg2: memref<1152x256xbf16, #tpu.memory_space<vmem>>, %arg3: memref<1x256xf32, #tpu.memory_space<vmem>>, %arg4: memref<1x256xf32, #tpu.memory_space<vmem>>, %arg5: memref<54x256xbf16, #tpu.memory_space<vmem>>) attributes {dimension_semantics = [#tpu.dimension_semantics<arbitrary>], iteration_bounds = array<i64: 1>, scalar_prefetch = 0 : i64, scratch_operands = 0 : i64, tpu.core_type = #tpu.core_type<tc>, window_params = [{pipeline_mode = #tpu.pipeline_mode<synchronous>, transform_indices = @transform_0, window_bounds = array<i64: 54, 1152>}, {pipeline_mode = #tpu.pipeline_mode<synchronous>, transform_indices = @transform_1, window_bounds = array<i64: 1152, 256>}, {pipeline_mode = #tpu.pipeline_mode<synchronous>, transform_indices = @transform_2, window_bounds = array<i64: 1, 256>}, {pipeline_mode = #tpu.pipeline_mode<synchronous>, transform_indices = @transform_3, window_bounds = array<i64: 1, 256>}, {pipeline_mode = #tpu.pipeline_mode<synchronous>, transform_indices = @transform_4, window_bounds = array<i64: 54, 256>}]} {
    %c0 = arith.constant 0 : index
    %c0_0 = arith.constant 0 : index
    %0 = vector.load %arg1[%c0, %c0_0] : memref<54x1152xbf16, #tpu.memory_space<vmem>>, vector<54x1152xbf16>
    %c0_1 = arith.constant 0 : index
    %c0_2 = arith.constant 0 : index
    %1 = vector.load %arg2[%c0_1, %c0_2] : memref<1152x256xbf16, #tpu.memory_space<vmem>>, vector<1152x256xbf16>
    %cst = arith.constant dense<0.000000e+00> : vector<54x256xf32>
    %2 = tpu.matmul %0, %1, %cst {dimension_numbers = #tpu.dot_dimension_numbers<[1], [0], [0], [1], [0, 0, 1, 1], [], []>} : vector<54x1152xbf16>, vector<1152x256xbf16>, vector<54x256xf32> -> vector<54x256xf32>
    %c0_3 = arith.constant 0 : index
    %c0_4 = arith.constant 0 : index
    %3 = vector.load %arg3[%c0_3, %c0_4] : memref<1x256xf32, #tpu.memory_space<vmem>>, vector<1x256xf32>
    %4 = vector.broadcast %3 : vector<1x256xf32> to vector<54x256xf32>
    %5 = arith.mulf %2, %4 : vector<54x256xf32>
    %c0_5 = arith.constant 0 : index
    %c0_6 = arith.constant 0 : index
    %6 = vector.load %arg4[%c0_5, %c0_6] : memref<1x256xf32, #tpu.memory_space<vmem>>, vector<1x256xf32>
    %7 = vector.broadcast %6 : vector<1x256xf32> to vector<54x256xf32>
    %8 = arith.addf %5, %7 : vector<54x256xf32>
    %cst_7 = arith.constant 0.000000e+00 : f32
    %9 = vector.broadcast %cst_7 : f32 to vector<54x256xf32>
    %10 = arith.maximumf %8, %9 : vector<54x256xf32>
    %11 = arith.truncf %10 : vector<54x256xf32> to vector<54x256xbf16>
    %c0_8 = arith.constant 0 : index
    %c0_9 = arith.constant 0 : index
    %12 = vector.load %arg5[%c0_8, %c0_9] : memref<54x256xbf16, #tpu.memory_space<vmem>>, vector<54x256xbf16>
    tpu.vector_store %arg5[%c0_8, %c0_9], %11 {strides = array<i32>} : memref<54x256xbf16, #tpu.memory_space<vmem>>, vector<54x256xbf16>,
    return
  }
  func.func @transform_0(%arg0: i32) -> (i32, i32) {
    %c0_i32 = arith.constant 0 : i32
    %c0_i32_0 = arith.constant 0 : i32
    %c0_i32_1 = arith.constant 0 : i32
    return %c0_i32, %c0_i32_0 : i32, i32
  }
  func.func @transform_1(%arg0: i32) -> (i32, i32) {
    %c0_i32 = arith.constant 0 : i32
    %c0_i32_0 = arith.constant 0 : i32
    %c0_i32_1 = arith.constant 0 : i32
    return %c0_i32, %c0_i32_0 : i32, i32
  }
  func.func @transform_2(%arg0: i32) -> (i32, i32) {
    %c0_i32 = arith.constant 0 : i32
    %c0_i32_0 = arith.constant 0 : i32
    %c0_i32_1 = arith.constant 0 : i32
    return %c0_i32, %c0_i32_0 : i32, i32
  }
  func.func @transform_3(%arg0: i32) -> (i32, i32) {
    %c0_i32 = arith.constant 0 : i32
    %c0_i32_0 = arith.constant 0 : i32
    %c0_i32_1 = arith.constant 0 : i32
    return %c0_i32, %c0_i32_0 : i32, i32
  }
  func.func @transform_4(%arg0: i32) -> (i32, i32) {
    %c0_i32 = arith.constant 0 : i32
    %c0_i32_0 = arith.constant 0 : i32
    %c0_i32_1 = arith.constant 0 : i32
    return %c0_i32, %c0_i32_0 : i32, i32
  }
}

module attributes {stable_mosaic.version = 11 : i64} {
  func.func @_fc_fused_kernel(%arg0: i32, %arg1: memref<2x2304xbf16, #tpu.memory_space<vmem>>, %arg2: memref<2304x512xbf16, #tpu.memory_space<vmem>>, %arg3: memref<1x512xf32, #tpu.memory_space<vmem>>, %arg4: memref<1x512xf32, #tpu.memory_space<vmem>>, %arg5: memref<512x32xbf16, #tpu.memory_space<vmem>>, %arg6: memref<1x32xf32, #tpu.memory_space<vmem>>, %arg7: memref<2x32xf32, #tpu.memory_space<vmem>>, %arg8: memref<2x512xf32, #tpu.memory_space<vmem>>) attributes {dimension_semantics = [#tpu.dimension_semantics<arbitrary>], iteration_bounds = array<i64: 3>, scalar_prefetch = 0 : i64, scratch_operands = 1 : i64, tpu.core_type = #tpu.core_type<tc>, window_params = [{transform_indices = @transform_0, window_bounds = array<i64: 2, 2304>}, {transform_indices = @transform_1, window_bounds = array<i64: 2304, 512>}, {pipeline_mode = #tpu.pipeline_mode<synchronous>, transform_indices = @transform_2, window_bounds = array<i64: 1, 512>}, {pipeline_mode = #tpu.pipeline_mode<synchronous>, transform_indices = @transform_3, window_bounds = array<i64: 1, 512>}, {pipeline_mode = #tpu.pipeline_mode<synchronous>, transform_indices = @transform_4, window_bounds = array<i64: 512, 32>}, {pipeline_mode = #tpu.pipeline_mode<synchronous>, transform_indices = @transform_5, window_bounds = array<i64: 1, 32>}, {pipeline_mode = #tpu.pipeline_mode<synchronous>, transform_indices = @transform_6, window_bounds = array<i64: 2, 32>}]} {
    %c0_i32 = arith.constant 0 : i32
    %0 = arith.cmpi eq, %arg0, %c0_i32 : i32
    %1 = arith.extui %0 : i1 to i32
    %c0_i32_0 = arith.constant 0 : i32
    %2 = arith.cmpi ne, %1, %c0_i32_0 : i32
    scf.if %2 {
      %cst_9 = arith.constant 0.000000e+00 : f32
      %12 = vector.broadcast %cst_9 : f32 to vector<2x512xf32>
      %c0_10 = arith.constant 0 : index
      %c0_11 = arith.constant 0 : index
      %13 = vector.load %arg8[%c0_10, %c0_11] : memref<2x512xf32, #tpu.memory_space<vmem>>, vector<2x512xf32>
      tpu.vector_store %arg8[%c0_10, %c0_11], %12 {strides = array<i32>} : memref<2x512xf32, #tpu.memory_space<vmem>>, vector<2x512xf32>,
    } else {
    }
    %c0 = arith.constant 0 : index
    %c0_1 = arith.constant 0 : index
    %3 = vector.load %arg8[%c0, %c0_1] : memref<2x512xf32, #tpu.memory_space<vmem>>, vector<2x512xf32>
    %c0_2 = arith.constant 0 : index
    %c0_3 = arith.constant 0 : index
    %4 = vector.load %arg1[%c0_2, %c0_3] : memref<2x2304xbf16, #tpu.memory_space<vmem>>, vector<2x2304xbf16>
    %c0_4 = arith.constant 0 : index
    %c0_5 = arith.constant 0 : index
    %5 = vector.load %arg2[%c0_4, %c0_5] : memref<2304x512xbf16, #tpu.memory_space<vmem>>, vector<2304x512xbf16>
    %cst = arith.constant dense<0.000000e+00> : vector<2x512xf32>
    %6 = tpu.matmul %4, %5, %cst {dimension_numbers = #tpu.dot_dimension_numbers<[1], [0], [0], [1], [0, 0, 1, 1], [], []>} : vector<2x2304xbf16>, vector<2304x512xbf16>, vector<2x512xf32> -> vector<2x512xf32>
    %7 = arith.addf %3, %6 : vector<2x512xf32>
    %c0_6 = arith.constant 0 : index
    %c0_7 = arith.constant 0 : index
    %8 = vector.load %arg8[%c0_6, %c0_7] : memref<2x512xf32, #tpu.memory_space<vmem>>, vector<2x512xf32>
    tpu.vector_store %arg8[%c0_6, %c0_7], %7 {strides = array<i32>} : memref<2x512xf32, #tpu.memory_space<vmem>>, vector<2x512xf32>,
    %c2_i32 = arith.constant 2 : i32
    %9 = arith.cmpi eq, %arg0, %c2_i32 : i32
    %10 = arith.extui %9 : i1 to i32
    %c0_i32_8 = arith.constant 0 : i32
    %11 = arith.cmpi ne, %10, %c0_i32_8 : i32
    scf.if %11 {
      %c0_9 = arith.constant 0 : index
      %c0_10 = arith.constant 0 : index
      %12 = vector.load %arg8[%c0_9, %c0_10] : memref<2x512xf32, #tpu.memory_space<vmem>>, vector<2x512xf32>
      %c0_11 = arith.constant 0 : index
      %c0_12 = arith.constant 0 : index
      %13 = vector.load %arg3[%c0_11, %c0_12] : memref<1x512xf32, #tpu.memory_space<vmem>>, vector<1x512xf32>
      %14 = vector.broadcast %13 : vector<1x512xf32> to vector<2x512xf32>
      %15 = arith.mulf %12, %14 : vector<2x512xf32>
      %c0_13 = arith.constant 0 : index
      %c0_14 = arith.constant 0 : index
      %16 = vector.load %arg4[%c0_13, %c0_14] : memref<1x512xf32, #tpu.memory_space<vmem>>, vector<1x512xf32>
      %17 = vector.broadcast %16 : vector<1x512xf32> to vector<2x512xf32>
      %18 = arith.addf %15, %17 : vector<2x512xf32>
      %cst_15 = arith.constant 0.000000e+00 : f32
      %19 = vector.broadcast %cst_15 : f32 to vector<2x512xf32>
      %20 = arith.maximumf %18, %19 : vector<2x512xf32>
      %21 = arith.truncf %20 : vector<2x512xf32> to vector<2x512xbf16>
      %c0_16 = arith.constant 0 : index
      %c0_17 = arith.constant 0 : index
      %22 = vector.load %arg5[%c0_16, %c0_17] : memref<512x32xbf16, #tpu.memory_space<vmem>>, vector<512x32xbf16>
      %cst_18 = arith.constant dense<0.000000e+00> : vector<2x32xf32>
      %23 = tpu.matmul %21, %22, %cst_18 {dimension_numbers = #tpu.dot_dimension_numbers<[1], [0], [0], [1], [0, 0, 1, 1], [], []>} : vector<2x512xbf16>, vector<512x32xbf16>, vector<2x32xf32> -> vector<2x32xf32>
      %c0_19 = arith.constant 0 : index
      %c0_20 = arith.constant 0 : index
      %24 = vector.load %arg6[%c0_19, %c0_20] : memref<1x32xf32, #tpu.memory_space<vmem>>, vector<1x32xf32>
      %25 = vector.broadcast %24 : vector<1x32xf32> to vector<2x32xf32>
      %26 = arith.addf %23, %25 : vector<2x32xf32>
      %c0_21 = arith.constant 0 : index
      %c0_22 = arith.constant 0 : index
      %27 = vector.load %arg7[%c0_21, %c0_22] : memref<2x32xf32, #tpu.memory_space<vmem>>, vector<2x32xf32>
      tpu.vector_store %arg7[%c0_21, %c0_22], %26 {strides = array<i32>} : memref<2x32xf32, #tpu.memory_space<vmem>>, vector<2x32xf32>,
    } else {
    }
    return
  }
  func.func @transform_0(%arg0: i32) -> (i32, i32) {
    %c0_i32 = arith.constant 0 : i32
    %c0_i32_0 = arith.constant 0 : i32
    return %c0_i32, %arg0 : i32, i32
  }
  func.func @transform_1(%arg0: i32) -> (i32, i32) {
    %c0_i32 = arith.constant 0 : i32
    %c0_i32_0 = arith.constant 0 : i32
    return %arg0, %c0_i32 : i32, i32
  }
  func.func @transform_2(%arg0: i32) -> (i32, i32) {
    %c0_i32 = arith.constant 0 : i32
    %c0_i32_0 = arith.constant 0 : i32
    %c0_i32_1 = arith.constant 0 : i32
    return %c0_i32, %c0_i32_0 : i32, i32
  }
  func.func @transform_3(%arg0: i32) -> (i32, i32) {
    %c0_i32 = arith.constant 0 : i32
    %c0_i32_0 = arith.constant 0 : i32
    %c0_i32_1 = arith.constant 0 : i32
    return %c0_i32, %c0_i32_0 : i32, i32
  }
  func.func @transform_4(%arg0: i32) -> (i32, i32) {
    %c0_i32 = arith.constant 0 : i32
    %c0_i32_0 = arith.constant 0 : i32
    %c0_i32_1 = arith.constant 0 : i32
    return %c0_i32, %c0_i32_0 : i32, i32
  }
  func.func @transform_5(%arg0: i32) -> (i32, i32) {
    %c0_i32 = arith.constant 0 : i32
    %c0_i32_0 = arith.constant 0 : i32
    %c0_i32_1 = arith.constant 0 : i32
    return %c0_i32, %c0_i32_0 : i32, i32
  }
  func.func @transform_6(%arg0: i32) -> (i32, i32) {
    %c0_i32 = arith.constant 0 : i32
    %c0_i32_0 = arith.constant 0 : i32
    %c0_i32_1 = arith.constant 0 : i32
    return %c0_i32, %c0_i32_0 : i32, i32
  }
}

</mosaic_0001>

<bundles_post_ra>
// kernel: audio_encoder_forward.6
= control target key start
LH: loop header
LB: loop body
LE: loop exit
PB: predicated region body
PF: predicated region fallthrough
CT: control target
= control target key end

     0   :  { %9 = vsyncpa [#allocation3], 0  ;;  %s3632_s0 = inlined_call_operand.vmem [shape: bf16[840,9], index: 0, kind: input, shape index: {}]   ;;  %s3633_s1 = inlined_call_operand.hbm [shape: bf16[9,16], index: 1, kind: input, shape index: {}]   ;;  %s3634_s2 = inlined_call_operand.hbm [shape: f32[1,16], index: 2, kind: input, shape index: {}]   ;;  %s3635_s3 = inlined_call_operand.hbm [shape: f32[1,16], index: 3, kind: input, shape index: {}]   ;;  %s3636_s4 = inlined_call_operand.vmem [shape: bf16[840,16], index: 4, kind: output, shape index: {}]  }
   0x1   :  { %10 = vsyncpa [#allocation5], 0  ;;  %s2632_s15 = smov [#allocation4]   ;;  %s2633_s17 = smov [#allocation2]  }
   0x2   :  { %s31_s16 = sshll.u32 %s2632_s15, 4  ;;  %s18_s18 = sshll.u32 %s2633_s17, 4  ;;  %s32_s16 = int_to_ptr.vmem [resolvable:$true] %s31_s16  ;;  %s19_s18 = int_to_ptr.vmem [resolvable:$true] %s18_s18 }
   0x3   :  { %s2576_s19 = scalar_lea.vmem %s32_s16, 16  ;;  %s2580_s20 = scalar_lea.vmem %s32_s16, 32 }
   0x4   :  { %p2577_p0 = scmp.ne.s32.totalorder %s32_s16, %s2576_s19  ;;  %p2581_p1 = scmp.lt.s32.totalorder %s32_s16, %s32_s16 }
   0x5   :  { %p2582_p2 = scmp.lt.s32.totalorder %s2580_s20, %s2576_s19 }
   0x7   :  { %p2583_p3 = por %p2582_p2, %p2581_p1 }
   0x9   :  { %p2584_p4 = pnand %p2583_p3, %p2577_p0 }
   0xb   :  { %2587 = shalt.err (!%p2584_p4)
}
   0xc   :  { %34 = dma.hbm_to_vmem [thread:$0]  %s3634_s2, 16, %s32_s16, [#allocation5]  }
   0xd   :  { %s2596_s23 = scalar_lea.vmem %s19_s18, 128  ;;  %p2601_p6 = scmp.lt.s32.totalorder %s19_s18, %s19_s18 }
   0xe   :  { %p2597_p5 = scmp.ne.s32.totalorder %s19_s18, %s2596_s23  ;;  %p2602_p7 = scmp.lt.s32.totalorder %s2596_s23, %s2596_s23 }
  0x10   :  { %p2603_p8 = por %p2602_p7, %p2601_p6 }
  0x12   :  { %p2604_p9 = pnand %p2603_p8, %p2597_p5 }
  0x14   :  { %2607 = shalt.err (!%p2604_p9)
}
  0x15   :  { %s2634_s24 = smov 64   ;;  %s2635_s25 = smov 4  }
  0x16   :  { %24 = dma.hbm_to_vmem [thread:$0]  %s3633_s1, 128, %s19_s18, [#allocation3], %s2634_s24, %s2634_s24, %s2635_s25  }
  0x17   :  { %s2636_s28 = smov [#allocation6]  }
  0x18   :  { %s41_s29 = sshll.u32 %s2636_s28, 4  ;;  %s42_s29 = int_to_ptr.vmem [resolvable:$true] %s41_s29 }
  0x19   :  { %s2616_s30 = scalar_lea.vmem %s42_s29, 16  ;;  %s2620_s5 = scalar_lea.vmem %s42_s29, 32 }
  0x1a   :  { %p2617_p10 = scmp.ne.s32.totalorder %s42_s29, %s2616_s30  ;;  %p2621_p11 = scmp.lt.s32.totalorder %s42_s29, %s42_s29 }
  0x1b   :  { %p2622_p12 = scmp.lt.s32.totalorder %s2620_s5, %s2616_s30 }
  0x1d   :  { %p2623_p13 = por %p2622_p12, %p2621_p11 }
  0x1f   :  { %p2624_p0 = pnand %p2623_p13, %p2617_p10 }
  0x21   :  { %2627 = shalt.err (!%p2624_p0)
}
  0x22   :  { %44 = dma.hbm_to_vmem [thread:$0]  %s3635_s3, 16, %s42_s29, [#allocation5]  }
  0x23   :  { %2628 = dma.done.wait [#allocation3], 128  }
  0x24   :  { %2629 = vsyncadd [#allocation3], 4294967168 }
  0x25   :  { %2630 = dma.done.wait [#allocation5], 32  }
  0x26   :  { %2631 = vsyncadd [#allocation5], 4294967264  ;;  %vm590_vm0 = vcmask 1043456   ;;  %v2637_v0 = vmov 0.0   ;;  %vm2638_vm1 = vmmov 0   ;;  %vm591_vm2 = vcmask 1044480  }
  0x27   :  { %2288 = vmatprep.subr.bf16.mxu0 %v2637_v0  ;;  %2502 = vmatprep.subr.bf16.mxu1 %v2637_v0  ;;  %v2639_v1 = vmov 65535   ;;  %v2512_v4 = vld [vmem:[#allocation2] sm:$0x1f]   ;;  %v2514_v7 = vld [vmem:[%s3632_s0 + $0xd8] sm:$0xff]   ;;  %vm430_vm3 = vcmask 72704   ;;  %v2515_v8 = vld [vmem:[%s3632_s0 + $0x8] sm:$0xff]  }
  0x28   :  { %2290 = vmatprep.mubr.msk.bf16.mxu0 %vm2638_vm1, %v2637_v0  ;;  %2398 = vmatprep.mubr.msk.bf16.mxu1 %vm2638_vm1, %v2637_v0  ;;  %v592_v2 = vsel %vm590_vm0, 4294967295, %v2639_v1  ;;  %v2513_v6 = vld [vmem:[%s3632_s0] sm:$0xff]   ;;  %v2517_v10 = vld [vmem:[%s3632_s0 + $0x10] sm:$0xff]   ;;  %v2518_v11 = vld [vmem:[%s3632_s0 + $0xe8] sm:$0xff]   ;;  %vm1803_vm4 = vcmask 125952  }
  0x29   :  { %v593_v3 = vsel %vm591_vm2, %v592_v2, 0  ;;  %v2516_v9 = vld [vmem:[%s3632_s0 + $0xe0] sm:$0xff]   ;;  %v2519_v12 = vld [vmem:[%s3632_s0 + $0x18] sm:$0xff]   ;;  %v2520_v13 = vld [vmem:[%s3632_s0 + $0xf0] sm:$0xff]  }
  0x2a   :  { %v595_v5 = vand.u32 %v2512_v4, %v593_v3  ;;  %v2521_v14 = vld [vmem:[%s3632_s0 + $0x20] sm:$0xff]   ;;  %v2522_v15 = vld [vmem:[%s3632_s0 + $0xf8] sm:$0xff]   ;;  %v2523_v16 = vld [vmem:[%s3632_s0 + $0x28] sm:$0xff]  }
  0x2b   :  { %v2524_v17 = vld [vmem:[%s3632_s0 + $0x100] sm:$0xff]   ;;  %v2525_v18 = vld [vmem:[%s3632_s0 + $0x30] sm:$0xff]   ;;  %v2526_v19 = vld [vmem:[%s3632_s0 + $0x108] sm:$0xff]  }
  0x2c   :  { %2289 = vmatpush3.bf16.msra.mxu0 %v595_v5  ;;  %2503 = vmatpush3.bf16.msra.mxu1 %v595_v5  ;;  %v2527_v20 = vld [vmem:[%s3632_s0 + $0x38] sm:$0xff]   ;;  %v2528_v21 = vld [vmem:[%s3632_s0 + $0x110] sm:$0xff]   ;;  %v2529_v22 = vld [vmem:[%s3632_s0 + $0x40] sm:$0xff]  }
  0x2d   :  { %v2530_v23 = vld [vmem:[%s3632_s0 + $0x118] sm:$0xff]   ;;  %v2531_v24 = vld [vmem:[%s3632_s0 + $0x48] sm:$0xff]   ;;  %v2532_v25 = vld [vmem:[%s3632_s0 + $0x120] sm:$0xff]  }
  0x2e   :  { %v2533_v26 = vld [vmem:[%s3632_s0 + $0x50] sm:$0xff]   ;;  %v2534_v27 = vld [vmem:[%s3632_s0 + $0x128] sm:$0xff]   ;;  %v2535_v28 = vld [vmem:[%s3632_s0 + $0x58] sm:$0xff]  }
  0x2f   :  { %2291 = vmatmul.mubr.msk.bf16.vlgmr.msra.gmra.mxu0 %vm430_vm3, %v2513_v6  ;;  %2399 = vmatmul.mubr.msk.bf16.vlgmr.msra.gmra.mxu1 %vm430_vm3, %v2514_v7  ;;  %v2536_v29 = vld [vmem:[%s3632_s0 + $0x130] sm:$0xff]   ;;  %v2537_v30 = vld [vmem:[%s3632_s0 + $0x60] sm:$0xff]   ;;  %v2538_v31 = vld [vmem:[%s3632_s0 + $0x138] sm:$0xff]  }
  0x30   :  { %2294 = vmatprep.mubr.msk.bf16.mxu0 %vm2638_vm1, %v2637_v0  ;;  %2402 = vmatprep.mubr.msk.bf16.mxu1 %vm2638_vm1, %v2637_v0  ;;  %v2539_v32 = vld [vmem:[%s3632_s0 + $0x68] sm:$0xff]   ;;  %v2540_v33 = vld [vmem:[%s3632_s0 + $0x140] sm:$0xff]   ;;  %v2541_v34 = vld [vmem:[%s3632_s0 + $0x70] sm:$0xff]  }
  0x31   :  { %v2542_v35 = vld [vmem:[%s3632_s0 + $0x148] sm:$0xff]   ;;  %v2543_v36 = vld [vmem:[%s3632_s0 + $0x78] sm:$0xff]   ;;  %v2544_v37 = vld [vmem:[%s3632_s0 + $0x150] sm:$0xff]  }
  0x32   :  { %v2545_v38 = vld [vmem:[%s3632_s0 + $0x80] sm:$0xff]   ;;  %v2546_v39 = vld [vmem:[%s3632_s0 + $0x158] sm:$0xff]   ;;  %v2547_v40 = vld [vmem:[%s3632_s0 + $0x88] sm:$0xff]  }
  0x33   :  { %v2548_v41 = vld [vmem:[%s3632_s0 + $0x160] sm:$0xff]   ;;  %v2549_v42 = vld [vmem:[%s3632_s0 + $0x90] sm:$0xff]   ;;  %v2550_v43 = vld [vmem:[%s3632_s0 + $0x168] sm:$0xff]  }
  0x34   :  { %v2551_v44 = vld [vmem:[%s3632_s0 + $0x98] sm:$0xff]   ;;  %v2552_v45 = vld [vmem:[%s3632_s0 + $0x170] sm:$0xff]   ;;  %v2553_v46 = vld [vmem:[%s3632_s0 + $0xa0] sm:$0xff]  }
  0x35   :  { %v2554_v47 = vld [vmem:[%s3632_s0 + $0x178] sm:$0xff]   ;;  %v2555_v48 = vld [vmem:[%s3632_s0 + $0xa8] sm:$0xff]   ;;  %v2556_v49 = vld [vmem:[%s3632_s0 + $0x180] sm:$0xff]  }
  0x36   :  { %v2557_v50 = vld [vmem:[%s3632_s0 + $0xb0] sm:$0xff]   ;;  %v2558_v51 = vld [vmem:[%s3632_s0 + $0x188] sm:$0xff]   ;;  %v2559_v52 = vld [vmem:[%s3632_s0 + $0xb8] sm:$0xff]  }
  0x37   :  { %2295 = vmatmul.mubr.msk.bf16.gmra.mxu0 %vm430_vm3, %v2515_v8  ;;  %2403 = vmatmul.mubr.msk.bf16.gmra.mxu1 %vm430_vm3, %v2516_v9  ;;  %v2560_v53 = vld [vmem:[%s3632_s0 + $0x190] sm:$0xff]   ;;  %v2561_v54 = vld [vmem:[%s3632_s0 + $0xc0] sm:$0xff]   ;;  %v2562_v55 = vld [vmem:[%s3632_s0 + $0x198] sm:$0xff]  }
  0x38   :  { %2298 = vmatprep.mubr.msk.bf16.mxu0 %vm2638_vm1, %v2637_v0  ;;  %2406 = vmatprep.mubr.msk.bf16.mxu1 %vm2638_vm1, %v2637_v0  ;;  %v2974_v56 = vld [vmem:[#allocation4] ss:$0 sm:$0xff]  ;;  %v2976_v58 = vld [vmem:[#allocation6] ss:$0 sm:$0xff]  ;;  %v2564_v6 = vld [vmem:[%s3632_s0 + $0x1a0] ss:$0 sps:$4 sm:$0xff]  }
  0x39   :  { %v2563_v4 = vld [vmem:[%s3632_s0 + $0xc8] sm:$0xff]  }
  0x3f   :  { %2299 = vmatmul.mubr.msk.bf16.gmra.mxu0 %vm430_vm3, %v2517_v10  ;;  %2407 = vmatmul.mubr.msk.bf16.gmra.mxu1 %vm430_vm3, %v2518_v11 }
  0x40   :  { %2302 = vmatprep.mubr.msk.bf16.mxu0 %vm2638_vm1, %v2637_v0  ;;  %2410 = vmatprep.mubr.msk.bf16.mxu1 %vm2638_vm1, %v2637_v0 }
  0x47   :  { %2303 = vmatmul.mubr.msk.bf16.gmra.mxu0 %vm430_vm3, %v2519_v12  ;;  %2411 = vmatmul.mubr.msk.bf16.gmra.mxu1 %vm430_vm3, %v2520_v13 }
  0x48   :  { %2306 = vmatprep.mubr.msk.bf16.mxu0 %vm2638_vm1, %v2637_v0  ;;  %2414 = vmatprep.mubr.msk.bf16.mxu1 %vm2638_vm1, %v2637_v0 }
  0x4f   :  { %2307 = vmatmul.mubr.msk.bf16.gmra.mxu0 %vm430_vm3, %v2521_v14  ;;  %2415 = vmatmul.mubr.msk.bf16.gmra.mxu1 %vm430_vm3, %v2522_v15 }
  0x50   :  { %2310 = vmatprep.mubr.msk.bf16.mxu0 %vm2638_vm1, %v2637_v0  ;;  %2418 = vmatprep.mubr.msk.bf16.mxu1 %vm2638_vm1, %v2637_v0 }
  0x57   :  { %2311 = vmatmul.mubr.msk.bf16.gmra.mxu0 %vm430_vm3, %v2523_v16  ;;  %2419 = vmatmul.mubr.msk.bf16.gmra.mxu1 %vm430_vm3, %v2524_v17 }
  0x58   :  { %2314 = vmatprep.mubr.msk.bf16.mxu0 %vm2638_vm1, %v2637_v0  ;;  %2422 = vmatprep.mubr.msk.bf16.mxu1 %vm2638_vm1, %v2637_v0 }
  0x5f   :  { %2315 = vmatmul.mubr.msk.bf16.gmra.mxu0 %vm430_vm3, %v2525_v18  ;;  %2423 = vmatmul.mubr.msk.bf16.gmra.mxu1 %vm430_vm3, %v2526_v19 }
  0x60   :  { %2318 = vmatprep.mubr.msk.bf16.mxu0 %vm2638_vm1, %v2637_v0  ;;  %2426 = vmatprep.mubr.msk.bf16.mxu1 %vm2638_vm1, %v2637_v0 }
  0x67   :  { %2319 = vmatmul.mubr.msk.bf16.gmra.mxu0 %vm430_vm3, %v2527_v20  ;;  %2427 = vmatmul.mubr.msk.bf16.gmra.mxu1 %vm430_vm3, %v2528_v21 }
  0x68   :  { %2322 = vmatprep.mubr.msk.bf16.mxu0 %vm2638_vm1, %v2637_v0  ;;  %2430 = vmatprep.mubr.msk.bf16.mxu1 %vm2638_vm1, %v2637_v0 }
  0x6f   :  { %2323 = vmatmul.mubr.msk.bf16.gmra.mxu0 %vm430_vm3, %v2529_v22  ;;  %2431 = vmatmul.mubr.msk.bf16.gmra.mxu1 %vm430_vm3, %v2530_v23 }
  0x70   :  { %2326 = vmatprep.mubr.msk.bf16.mxu0 %vm2638_vm1, %v2637_v0  ;;  %2434 = vmatprep.mubr.msk.bf16.mxu1 %vm2638_vm1, %v2637_v0 }
  0x77   :  { %2327 = vmatmul.mubr.msk.bf16.gmra.mxu0 %vm430_vm3, %v2531_v24  ;;  %2435 = vmatmul.mubr.msk.bf16.gmra.mxu1 %vm430_vm3, %v2532_v25 }
  0x78   :  { %2330 = vmatprep.mubr.msk.bf16.mxu0 %vm2638_vm1, %v2637_v0  ;;  %2438 = vmatprep.mubr.msk.bf16.mxu1 %vm2638_vm1, %v2637_v0 }
  0x7f   :  { %2331 = vmatmul.mubr.msk.bf16.gmra.mxu0 %vm430_vm3, %v2533_v26  ;;  %2439 = vmatmul.mubr.msk.bf16.gmra.mxu1 %vm430_vm3, %v2534_v27 }
  0x80   :  { %2334 = vmatprep.mubr.msk.bf16.mxu0 %vm2638_vm1, %v2637_v0  ;;  %2442 = vmatprep.mubr.msk.bf16.mxu1 %vm2638_vm1, %v2637_v0 }
  0x87   :  { %2335 = vmatmul.mubr.msk.bf16.gmra.mxu0 %vm430_vm3, %v2535_v28  ;;  %2443 = vmatmul.mubr.msk.bf16.gmra.mxu1 %vm430_vm3, %v2536_v29 }
  0x88   :  { %2338 = vmatprep.mubr.msk.bf16.mxu0 %vm2638_vm1, %v2637_v0  ;;  %2446 = vmatprep.mubr.msk.bf16.mxu1 %vm2638_vm1, %v2637_v0 }
  0x8f   :  { %2339 = vmatmul.mubr.msk.bf16.gmra.mxu0 %vm430_vm3, %v2537_v30  ;;  %2447 = vmatmul.mubr.msk.bf16.gmra.mxu1 %vm430_vm3, %v2538_v31  ;;  %v2565_v30 = vld [vmem:[%s3632_s0 + $0xd0] sm:$0xff]  }
  0x90   :  { %2342 = vmatprep.mubr.msk.bf16.mxu0 %vm2638_vm1, %v2637_v0  ;;  %2450 = vmatprep.mubr.msk.bf16.mxu1 %vm2638_vm1, %v2637_v0 }
  0x97   :  { %2343 = vmatmul.mubr.msk.bf16.gmra.mxu0 %vm430_vm3, %v2539_v32  ;;  %2451 = vmatmul.mubr.msk.bf16.gmra.mxu1 %vm430_vm3, %v2540_v33 }
  0x98   :  { %2346 = vmatprep.mubr.msk.bf16.mxu0 %vm2638_vm1, %v2637_v0  ;;  %2454 = vmatprep.mubr.msk.bf16.mxu1 %vm2638_vm1, %v2637_v0 }
  0x9f   :  { %2347 = vmatmul.mubr.msk.bf16.gmra.mxu0 %vm430_vm3, %v2541_v34  ;;  %2455 = vmatmul.mubr.msk.bf16.gmra.mxu1 %vm430_vm3, %v2542_v35 }
  0xa0   :  { %2350 = vmatprep.mubr.msk.bf16.mxu0 %vm2638_vm1, %v2637_v0  ;;  %2458 = vmatprep.mubr.msk.bf16.mxu1 %vm2638_vm1, %v2637_v0 }
  0xa7   :  { %2351 = vmatmul.mubr.msk.bf16.gmra.mxu0 %vm430_vm3, %v2543_v36  ;;  %2459 = vmatmul.mubr.msk.bf16.gmra.mxu1 %vm430_vm3, %v2544_v37 }
  0xa8   :  { %2354 = vmatprep.mubr.msk.bf16.mxu0 %vm2638_vm1, %v2637_v0  ;;  %2462 = vmatprep.mubr.msk.bf16.mxu1 %vm2638_vm1, %v2637_v0 }
  0xaf   :  { %2355 = vmatmul.mubr.msk.bf16.gmra.mxu0 %vm430_vm3, %v2545_v38  ;;  %2463 = vmatmul.mubr.msk.bf16.gmra.mxu1 %vm430_vm3, %v2546_v39 }
  0xb0   :  { %2358 = vmatprep.mubr.msk.bf16.mxu0 %vm2638_vm1, %v2637_v0  ;;  %2466 = vmatprep.mubr.msk.bf16.mxu1 %vm2638_vm1, %v2637_v0 }
  0xb7   :  { %2359 = vmatmul.mubr.msk.bf16.gmra.mxu0 %vm430_vm3, %v2547_v40  ;;  %2467 = vmatmul.mubr.msk.bf16.gmra.mxu1 %vm430_vm3, %v2548_v41 }
  0xb8   :  { %2362 = vmatprep.mubr.msk.bf16.mxu0 %vm2638_vm1, %v2637_v0  ;;  %2470 = vmatprep.mubr.msk.bf16.mxu1 %vm2638_vm1, %v2637_v0 }
  0xbf   :  { %2363 = vmatmul.mubr.msk.bf16.gmra.mxu0 %vm430_vm3, %v2549_v42  ;;  %2471 = vmatmul.mubr.msk.bf16.gmra.mxu1 %vm430_vm3, %v2550_v43 }
  0xc0   :  { %2366 = vmatprep.mubr.msk.bf16.mxu0 %vm2638_vm1, %v2637_v0  ;;  %2474 = vmatprep.mubr.msk.bf16.mxu1 %vm2638_vm1, %v2637_v0 }
  0xc7   :  { %2367 = vmatmul.mubr.msk.bf16.gmra.mxu0 %vm430_vm3, %v2551_v44  ;;  %2475 = vmatmul.mubr.msk.bf16.gmra.mxu1 %vm430_vm3, %v2552_v45 }
  0xc8   :  { %2370 = vmatprep.mubr.msk.bf16.mxu0 %vm2638_vm1, %v2637_v0  ;;  %2478 = vmatprep.mubr.msk.bf16.mxu1 %vm2638_vm1, %v2637_v0 }
  0xcf   :  { %2371 = vmatmul.mubr.msk.bf16.gmra.mxu0 %vm430_vm3, %v2553_v46  ;;  %2479 = vmatmul.mubr.msk.bf16.gmra.mxu1 %vm430_vm3, %v2554_v47 }
  0xd0   :  { %2374 = vmatprep.mubr.msk.bf16.mxu0 %vm2638_vm1, %v2637_v0  ;;  %2482 = vmatprep.mubr.msk.bf16.mxu1 %vm2638_vm1, %v2637_v0 }
  0xd7   :  { %2375 = vmatmul.mubr.msk.bf16.gmra.mxu0 %vm430_vm3, %v2555_v48  ;;  %2483 = vmatmul.mubr.msk.bf16.gmra.mxu1 %vm430_vm3, %v2556_v49 }
  0xd8   :  { %2378 = vmatprep.mubr.msk.bf16.mxu0 %vm2638_vm1, %v2637_v0  ;;  %2486 = vmatprep.mubr.msk.bf16.mxu1 %vm2638_vm1, %v2637_v0 }
  0xdf   :  { %2379 = vmatmul.mubr.msk.bf16.gmra.mxu0 %vm430_vm3, %v2557_v50  ;;  %2487 = vmatmul.mubr.msk.bf16.gmra.mxu1 %vm430_vm3, %v2558_v51 }
  0xe0   :  { %2382 = vmatprep.mubr.msk.bf16.mxu0 %vm2638_vm1, %v2637_v0  ;;  %2490 = vmatprep.mubr.msk.bf16.mxu1 %vm2638_vm1, %v2637_v0 }
  0xe7   :  { %2383 = vmatmul.mubr.msk.bf16.gmra.mxu0 %vm430_vm3, %v2559_v52  ;;  %2491 = vmatmul.mubr.msk.bf16.gmra.mxu1 %vm430_vm3, %v2560_v53 }
  0xe8   :  { %2386 = vmatprep.mubr.msk.bf16.mxu0 %vm2638_vm1, %v2637_v0  ;;  %2494 = vmatprep.mubr.msk.bf16.mxu1 %vm2638_vm1, %v2637_v0 }
  0xef   :  { %v631_v57 = vpop.f32.mrf.mxu0  ;;  %2387 = vmatmul.mubr.msk.bf16.gmra.mxu0 %vm430_vm3, %v2561_v54  ;;  %v847_v59 = vpop.f32.mrf.mxu1  ;;  %2495 = vmatmul.mubr.msk.bf16.gmra.mxu1 %vm430_vm3, %v2562_v55 }
  0xf0   :  { %v1060_v60 = vmul.f32 %v2974_v56, %v631_v57  ;;  %v1114_v61 = vmul.f32 %v2974_v56, %v847_v59  ;;  %2390 = vmatprep.mubr.msk.bf16.mxu0 %vm2638_vm1, %v2637_v0  ;;  %2498 = vmatprep.mubr.msk.bf16.mxu1 %vm2638_vm1, %v2637_v0 }
  0xf1   :  { %v2292_v62 = vpop.f32.mrf.mxu0  ;;  %v2400_v63 = vpop.f32.mrf.mxu1 }
  0xf2   :  { %v1172_v1 = vadd.f32 %v2976_v58, %v1060_v60  ;;  %v1226_v2 = vadd.f32 %v2976_v58, %v1114_v61 }
  0xf3   :  { %v634_v3 = vpop.f32.mrf.mxu0  ;;  %v850_v5 = vpop.f32.mrf.mxu1 }
  0xf4   :  { %v1277_v7 = vmax.f32 %v1172_v1, 0.0  ;;  %v1061_v8 = vmul.f32 %v2974_v56, %v634_v3  ;;  %v1331_v9 = vmax.f32 %v1226_v2, 0.0  ;;  %v1115_v10 = vmul.f32 %v2974_v56, %v850_v5 }
  0xf5   :  { %v2293_v11 = vpop.f32.mrf.mxu0  ;;  %v2401_v12 = vpop.f32.mrf.mxu1 }
  0xf6   :  { %v2129_v13 = vpack.c.bf16 %v1277_v7, %v1277_v7  ;;  %v1173_v14 = vadd.f32 %v2976_v58, %v1061_v8  ;;  %v2183_v15 = vpack.c.bf16 %v1331_v9, %v1331_v9  ;;  %v1227_v16 = vadd.f32 %v2976_v58, %v1115_v10 }
  0xf7   :  { %v639_v17 = vpop.f32.mrf.mxu0  ;;  %2391 = vmatmul.mubr.msk.bf16.gmra.mxu0 %vm430_vm3, %v2563_v4  ;;  %v855_v18 = vpop.f32.mrf.mxu1  ;;  %2499 = vmatmul.mubr.msk.bf16.gmra.mxu1 %vm430_vm3, %v2564_v6 }
  0xf8   :  { %1804 = vst.msk [vmem:[%s3636_s4] sm:$0xf] %vm1803_vm4, %v2129_v13  ;;  %v1278_v19 = vmax.f32 %v1173_v14, 0.0  ;;  %1858 = vst.msk [vmem:[%s3636_s4 + $0xd8] sm:$0xf] %vm1803_vm4, %v2183_v15  ;;  %v1062_v20 = vmul.f32 %v2974_v56, %v639_v17  ;;  %v1332_v21 = vmax.f32 %v1227_v16, 0.0  ;;  %v1116_v22 = vmul.f32 %v2974_v56, %v855_v18  ;;  %2394 = vmatprep.mubr.msk.bf16.mxu0 %vm2638_vm1, %v2637_v0 }
  0xf9   :  { %v2296_v23 = vpop.f32.mrf.mxu0  ;;  %v2404_v24 = vpop.f32.mrf.mxu1 }
  0xfa   :  { %v2130_v25 = vpack.c.bf16 %v1278_v19, %v1278_v19  ;;  %v1174_v26 = vadd.f32 %v2976_v58, %v1062_v20  ;;  %v2184_v27 = vpack.c.bf16 %v1332_v21, %v1332_v21  ;;  %v1228_v28 = vadd.f32 %v2976_v58, %v1116_v22 }
  0xfb   :  { %v642_v29 = vpop.f32.mrf.mxu0  ;;  %v858_v31 = vpop.f32.mrf.mxu1 }
  0xfc   :  { %1805 = vst.msk [vmem:[%s3636_s4 + $0x4] sm:$0xf] %vm1803_vm4, %v2130_v25  ;;  %v1279_v0 = vmax.f32 %v1174_v26, 0.0  ;;  %1859 = vst.msk [vmem:[%s3636_s4 + $0xdc] sm:$0xf] %vm1803_vm4, %v2184_v27  ;;  %v1063_v32 = vmul.f32 %v2974_v56, %v642_v29  ;;  %v1333_v33 = vmax.f32 %v1228_v28, 0.0  ;;  %v1117_v34 = vmul.f32 %v2974_v56, %v858_v31 }
  0xfd   :  { %v2297_v35 = vpop.f32.mrf.mxu0  ;;  %v2405_v36 = vpop.f32.mrf.mxu1 }
  0xfe   :  { %v2131_v37 = vpack.c.bf16 %v1279_v0, %v1279_v0  ;;  %v1175_v38 = vadd.f32 %v2976_v58, %v1063_v32  ;;  %v2185_v39 = vpack.c.bf16 %v1333_v33, %v1333_v33  ;;  %v1229_v40 = vadd.f32 %v2976_v58, %v1117_v34 }
  0xff   :  { %v647_v41 = vpop.f32.mrf.mxu0  ;;  %2395 = vmatmul.mubr.msk.bf16.gmra.mxu0 %vm430_vm3, %v2565_v30  ;;  %v863_v42 = vpop.f32.mrf.mxu1 }
 0x100   :  { %1806 = vst.msk [vmem:[%s3636_s4 + $0x8] sm:$0xf] %vm1803_vm4, %v2131_v37  ;;  %v1280_v43 = vmax.f32 %v1175_v38, 0.0  ;;  %1860 = vst.msk [vmem:[%s3636_s4 + $0xe0] sm:$0xf] %vm1803_vm4, %v2185_v39  ;;  %v1064_v44 = vmul.f32 %v2974_v56, %v647_v41  ;;  %v1334_v45 = vmax.f32 %v1229_v40, 0.0  ;;  %v1118_v46 = vmul.f32 %v2974_v56, %v863_v42 }
 0x101   :  { %v2300_v47 = vpop.f32.mrf.mxu0  ;;  %v2408_v48 = vpop.f32.mrf.mxu1 }
 0x102   :  { %v2132_v49 = vpack.c.bf16 %v1280_v43, %v1280_v43  ;;  %v1176_v50 = vadd.f32 %v2976_v58, %v1064_v44  ;;  %v2186_v51 = vpack.c.bf16 %v1334_v45, %v1334_v45  ;;  %v1230_v52 = vadd.f32 %v2976_v58, %v1118_v46 }
 0x103   :  { %v650_v53 = vpop.f32.mrf.mxu0  ;;  %v866_v54 = vpop.f32.mrf.mxu1 }
 0x104   :  { %1807 = vst.msk [vmem:[%s3636_s4 + $0xc] sm:$0xf] %vm1803_vm4, %v2132_v49  ;;  %v1281_v55 = vmax.f32 %v1176_v50, 0.0  ;;  %1861 = vst.msk [vmem:[%s3636_s4 + $0xe4] sm:$0xf] %vm1803_vm4, %v2186_v51  ;;  %v1065_v57 = vmul.f32 %v2974_v56, %v650_v53  ;;  %v1335_v59 = vmax.f32 %v1230_v52, 0.0  ;;  %v1119_v60 = vmul.f32 %v2974_v56, %v866_v54 }
 0x105   :  { %v2301_v61 = vpop.f32.mrf.mxu0  ;;  %v2409_v62 = vpop.f32.mrf.mxu1 }
 0x106   :  { %v2133_v63 = vpack.c.bf16 %v1281_v55, %v1281_v55  ;;  %v1177_v1 = vadd.f32 %v2976_v58, %v1065_v57  ;;  %v2187_v2 = vpack.c.bf16 %v1335_v59, %v1335_v59  ;;  %v1231_v3 = vadd.f32 %v2976_v58, %v1119_v60 }
 0x107   :  { %v655_v4 = vpop.f32.mrf.mxu0  ;;  %v871_v5 = vpop.f32.mrf.mxu1 }
 0x108   :  { %1808 = vst.msk [vmem:[%s3636_s4 + $0x10] sm:$0xf] %vm1803_vm4, %v2133_v63  ;;  %v1282_v6 = vmax.f32 %v1177_v1, 0.0  ;;  %1862 = vst.msk [vmem:[%s3636_s4 + $0xe8] sm:$0xf] %vm1803_vm4, %v2187_v2  ;;  %v1066_v7 = vmul.f32 %v2974_v56, %v655_v4  ;;  %v1336_v8 = vmax.f32 %v1231_v3, 0.0  ;;  %v1120_v9 = vmul.f32 %v2974_v56, %v871_v5 }
 0x109   :  { %v2304_v10 = vpop.f32.mrf.mxu0  ;;  %v2412_v11 = vpop.f32.mrf.mxu1 }
 0x10a   :  { %v2134_v12 = vpack.c.bf16 %v1282_v6, %v1282_v6  ;;  %v1178_v13 = vadd.f32 %v2976_v58, %v1066_v7  ;;  %v2188_v14 = vpack.c.bf16 %v1336_v8, %v1336_v8  ;;  %v1232_v15 = vadd.f32 %v2976_v58, %v1120_v9 }
 0x10b   :  { %v658_v16 = vpop.f32.mrf.mxu0  ;;  %v874_v17 = vpop.f32.mrf.mxu1 }
 0x10c   :  { %1809 = vst.msk [vmem:[%s3636_s4 + $0x14] sm:$0xf] %vm1803_vm4, %v2134_v12  ;;  %v1283_v18 = vmax.f32 %v1178_v13, 0.0  ;;  %1863 = vst.msk [vmem:[%s3636_s4 + $0xec] sm:$0xf] %vm1803_vm4, %v2188_v14  ;;  %v1067_v19 = vmul.f32 %v2974_v56, %v658_v16  ;;  %v1337_v20 = vmax.f32 %v1232_v15, 0.0  ;;  %v1121_v21 = vmul.f32 %v2974_v56, %v874_v17 }
 0x10d   :  { %v2305_v22 = vpop.f32.mrf.mxu0  ;;  %v2413_v23 = vpop.f32.mrf.mxu1 }
 0x10e   :  { %v2135_v24 = vpack.c.bf16 %v1283_v18, %v1283_v18  ;;  %v1179_v25 = vadd.f32 %v2976_v58, %v1067_v19  ;;  %v2189_v26 = vpack.c.bf16 %v1337_v20, %v1337_v20  ;;  %v1233_v27 = vadd.f32 %v2976_v58, %v1121_v21 }
 0x10f   :  { %v663_v28 = vpop.f32.mrf.mxu0  ;;  %v879_v29 = vpop.f32.mrf.mxu1 }
 0x110   :  { %1810 = vst.msk [vmem:[%s3636_s4 + $0x18] sm:$0xf] %vm1803_vm4, %v2135_v24  ;;  %v1284_v30 = vmax.f32 %v1179_v25, 0.0  ;;  %1864 = vst.msk [vmem:[%s3636_s4 + $0xf0] sm:$0xf] %vm1803_vm4, %v2189_v26  ;;  %v1068_v31 = vmul.f32 %v2974_v56, %v663_v28  ;;  %v1338_v0 = vmax.f32 %v1233_v27, 0.0  ;;  %v1122_v32 = vmul.f32 %v2974_v56, %v879_v29 }
 0x111   :  { %v2308_v33 = vpop.f32.mrf.mxu0  ;;  %v2416_v34 = vpop.f32.mrf.mxu1 }
 0x112   :  { %v2136_v35 = vpack.c.bf16 %v1284_v30, %v1284_v30  ;;  %v1180_v36 = vadd.f32 %v2976_v58, %v1068_v31  ;;  %v2190_v37 = vpack.c.bf16 %v1338_v0, %v1338_v0  ;;  %v1234_v38 = vadd.f32 %v2976_v58, %v1122_v32 }
 0x113   :  { %v666_v39 = vpop.f32.mrf.mxu0  ;;  %v882_v40 = vpop.f32.mrf.mxu1 }
 0x114   :  { %1811 = vst.msk [vmem:[%s3636_s4 + $0x1c] sm:$0xf] %vm1803_vm4, %v2136_v35  ;;  %v1285_v41 = vmax.f32 %v1180_v36, 0.0  ;;  %1865 = vst.msk [vmem:[%s3636_s4 + $0xf4] sm:$0xf] %vm1803_vm4, %v2190_v37  ;;  %v1069_v42 = vmul.f32 %v2974_v56, %v666_v39  ;;  %v1339_v43 = vmax.f32 %v1234_v38, 0.0  ;;  %v1123_v44 = vmul.f32 %v2974_v56, %v882_v40 }
 0x115   :  { %v2309_v45 = vpop.f32.mrf.mxu0  ;;  %v2417_v46 = vpop.f32.mrf.mxu1 }
 0x116   :  { %v2137_v47 = vpack.c.bf16 %v1285_v41, %v1285_v41  ;;  %v1181_v48 = vadd.f32 %v2976_v58, %v1069_v42  ;;  %v2191_v49 = vpack.c.bf16 %v1339_v43, %v1339_v43  ;;  %v1235_v50 = vadd.f32 %v2976_v58, %v1123_v44 }
 0x117   :  { %v671_v51 = vpop.f32.mrf.mxu0  ;;  %v887_v52 = vpop.f32.mrf.mxu1 }
 0x118   :  { %1812 = vst.msk [vmem:[%s3636_s4 + $0x20] sm:$0xf] %vm1803_vm4, %v2137_v47  ;;  %v1286_v53 = vmax.f32 %v1181_v48, 0.0  ;;  %1866 = vst.msk [vmem:[%s3636_s4 + $0xf8] sm:$0xf] %vm1803_vm4, %v2191_v49  ;;  %v1070_v54 = vmul.f32 %v2974_v56, %v671_v51  ;;  %v1340_v55 = vmax.f32 %v1235_v50, 0.0  ;;  %v1124_v57 = vmul.f32 %v2974_v56, %v887_v52 }
 0x119   :  { %v2312_v59 = vpop.f32.mrf.mxu0  ;;  %v2420_v60 = vpop.f32.mrf.mxu1 }
 0x11a   :  { %v2138_v61 = vpack.c.bf16 %v1286_v53, %v1286_v53  ;;  %v1182_v62 = vadd.f32 %v2976_v58, %v1070_v54  ;;  %v2192_v63 = vpack.c.bf16 %v1340_v55, %v1340_v55  ;;  %v1236_v1 = vadd.f32 %v2976_v58, %v1124_v57 }
 0x11b   :  { %v674_v2 = vpop.f32.mrf.mxu0  ;;  %v890_v3 = vpop.f32.mrf.mxu1 }
 0x11c   :  { %1813 = vst.msk [vmem:[%s3636_s4 + $0x24] sm:$0xf] %vm1803_vm4, %v2138_v61  ;;  %v1287_v4 = vmax.f32 %v1182_v62, 0.0  ;;  %1867 = vst.msk [vmem:[%s3636_s4 + $0xfc] sm:$0xf] %vm1803_vm4, %v2192_v63  ;;  %v1071_v5 = vmul.f32 %v2974_v56, %v674_v2  ;;  %v1341_v6 = vmax.f32 %v1236_v1, 0.0  ;;  %v1125_v7 = vmul.f32 %v2974_v56, %v890_v3 }
 0x11d   :  { %v2313_v8 = vpop.f32.mrf.mxu0  ;;  %v2421_v9 = vpop.f32.mrf.mxu1 }
 0x11e   :  { %v2139_v10 = vpack.c.bf16 %v1287_v4, %v1287_v4  ;;  %v1183_v11 = vadd.f32 %v2976_v58, %v1071_v5  ;;  %v2193_v12 = vpack.c.bf16 %v1341_v6, %v1341_v6  ;;  %v1237_v13 = vadd.f32 %v2976_v58, %v1125_v7 }
 0x11f   :  { %v679_v14 = vpop.f32.mrf.mxu0  ;;  %v895_v15 = vpop.f32.mrf.mxu1 }
 0x120   :  { %1814 = vst.msk [vmem:[%s3636_s4 + $0x28] sm:$0xf] %vm1803_vm4, %v2139_v10  ;;  %v1288_v16 = vmax.f32 %v1183_v11, 0.0  ;;  %1868 = vst.msk [vmem:[%s3636_s4 + $0x100] sm:$0xf] %vm1803_vm4, %v2193_v12  ;;  %v1072_v17 = vmul.f32 %v2974_v56, %v679_v14  ;;  %v1342_v18 = vmax.f32 %v1237_v13, 0.0  ;;  %v1126_v19 = vmul.f32 %v2974_v56, %v895_v15 }
 0x121   :  { %v2316_v20 = vpop.f32.mrf.mxu0  ;;  %v2424_v21 = vpop.f32.mrf.mxu1 }
 0x122   :  { %v2140_v22 = vpack.c.bf16 %v1288_v16, %v1288_v16  ;;  %v1184_v23 = vadd.f32 %v2976_v58, %v1072_v17  ;;  %v2194_v24 = vpack.c.bf16 %v1342_v18, %v1342_v18  ;;  %v1238_v25 = vadd.f32 %v2976_v58, %v1126_v19 }
 0x123   :  { %v682_v26 = vpop.f32.mrf.mxu0  ;;  %v898_v27 = vpop.f32.mrf.mxu1 }
 0x124   :  { %1815 = vst.msk [vmem:[%s3636_s4 + $0x2c] sm:$0xf] %vm1803_vm4, %v2140_v22  ;;  %v1289_v28 = vmax.f32 %v1184_v23, 0.0  ;;  %1869 = vst.msk [vmem:[%s3636_s4 + $0x104] sm:$0xf] %vm1803_vm4, %v2194_v24  ;;  %v1073_v29 = vmul.f32 %v2974_v56, %v682_v26  ;;  %v1343_v30 = vmax.f32 %v1238_v25, 0.0  ;;  %v1127_v31 = vmul.f32 %v2974_v56, %v898_v27 }
 0x125   :  { %v2317_v0 = vpop.f32.mrf.mxu0  ;;  %v2425_v32 = vpop.f32.mrf.mxu1 }
 0x126   :  { %v2141_v33 = vpack.c.bf16 %v1289_v28, %v1289_v28  ;;  %v1185_v34 = vadd.f32 %v2976_v58, %v1073_v29  ;;  %v2195_v35 = vpack.c.bf16 %v1343_v30, %v1343_v30  ;;  %v1239_v36 = vadd.f32 %v2976_v58, %v1127_v31 }
 0x127   :  { %v687_v37 = vpop.f32.mrf.mxu0  ;;  %v903_v38 = vpop.f32.mrf.mxu1 }
 0x128   :  { %1816 = vst.msk [vmem:[%s3636_s4 + $0x30] sm:$0xf] %vm1803_vm4, %v2141_v33  ;;  %v1290_v39 = vmax.f32 %v1185_v34, 0.0  ;;  %1870 = vst.msk [vmem:[%s3636_s4 + $0x108] sm:$0xf] %vm1803_vm4, %v2195_v35  ;;  %v1074_v40 = vmul.f32 %v2974_v56, %v687_v37  ;;  %v1344_v41 = vmax.f32 %v1239_v36, 0.0  ;;  %v1128_v42 = vmul.f32 %v2974_v56, %v903_v38 }
 0x129   :  { %v2320_v43 = vpop.f32.mrf.mxu0  ;;  %v2428_v44 = vpop.f32.mrf.mxu1 }
 0x12a   :  { %v2142_v45 = vpack.c.bf16 %v1290_v39, %v1290_v39  ;;  %v1186_v46 = vadd.f32 %v2976_v58, %v1074_v40  ;;  %v2196_v47 = vpack.c.bf16 %v1344_v41, %v1344_v41  ;;  %v1240_v48 = vadd.f32 %v2976_v58, %v1128_v42 }
 0x12b   :  { %v690_v49 = vpop.f32.mrf.mxu0  ;;  %v906_v50 = vpop.f32.mrf.mxu1 }
 0x12c   :  { %1817 = vst.msk [vmem:[%s3636_s4 + $0x34] sm:$0xf] %vm1803_vm4, %v2142_v45  ;;  %v1291_v51 = vmax.f32 %v1186_v46, 0.0  ;;  %1871 = vst.msk [vmem:[%s3636_s4 + $0x10c] sm:$0xf] %vm1803_vm4, %v2196_v47  ;;  %v1075_v52 = vmul.f32 %v2974_v56, %v690_v49  ;;  %v1345_v53 = vmax.f32 %v1240_v48, 0.0  ;;  %v1129_v54 = vmul.f32 %v2974_v56, %v906_v50 }
 0x12d   :  { %v2321_v55 = vpop.f32.mrf.mxu0  ;;  %v2429_v57 = vpop.f32.mrf.mxu1 }
 0x12e   :  { %v2143_v59 = vpack.c.bf16 %v1291_v51, %v1291_v51  ;;  %v1187_v60 = vadd.f32 %v2976_v58, %v1075_v52  ;;  %v2197_v61 = vpack.c.bf16 %v1345_v53, %v1345_v53  ;;  %v1241_v62 = vadd.f32 %v2976_v58, %v1129_v54 }
 0x12f   :  { %v695_v63 = vpop.f32.mrf.mxu0  ;;  %v911_v1 = vpop.f32.mrf.mxu1 }
 0x130   :  { %1818 = vst.msk [vmem:[%s3636_s4 + $0x38] sm:$0xf] %vm1803_vm4, %v2143_v59  ;;  %v1292_v2 = vmax.f32 %v1187_v60, 0.0  ;;  %1872 = vst.msk [vmem:[%s3636_s4 + $0x110] sm:$0xf] %vm1803_vm4, %v2197_v61  ;;  %v1076_v3 = vmul.f32 %v2974_v56, %v695_v63  ;;  %v1346_v4 = vmax.f32 %v1241_v62, 0.0  ;;  %v1130_v5 = vmul.f32 %v2974_v56, %v911_v1 }
 0x131   :  { %v2324_v6 = vpop.f32.mrf.mxu0  ;;  %v2432_v7 = vpop.f32.mrf.mxu1 }
 0x132   :  { %v2144_v8 = vpack.c.bf16 %v1292_v2, %v1292_v2  ;;  %v1188_v9 = vadd.f32 %v2976_v58, %v1076_v3  ;;  %v2198_v10 = vpack.c.bf16 %v1346_v4, %v1346_v4  ;;  %v1242_v11 = vadd.f32 %v2976_v58, %v1130_v5 }
 0x133   :  { %v698_v12 = vpop.f32.mrf.mxu0  ;;  %v914_v13 = vpop.f32.mrf.mxu1 }
 0x134   :  { %1819 = vst.msk [vmem:[%s3636_s4 + $0x3c] sm:$0xf] %vm1803_vm4, %v2144_v8  ;;  %v1293_v14 = vmax.f32 %v1188_v9, 0.0  ;;  %1873 = vst.msk [vmem:[%s3636_s4 + $0x114] sm:$0xf] %vm1803_vm4, %v2198_v10  ;;  %v1077_v15 = vmul.f32 %v2974_v56, %v698_v12  ;;  %v1347_v16 = vmax.f32 %v1242_v11, 0.0  ;;  %v1131_v17 = vmul.f32 %v2974_v56, %v914_v13 }
 0x135   :  { %v2325_v18 = vpop.f32.mrf.mxu0  ;;  %v2433_v19 = vpop.f32.mrf.mxu1 }
 0x136   :  { %v2145_v20 = vpack.c.bf16 %v1293_v14, %v1293_v14  ;;  %v1189_v21 = vadd.f32 %v2976_v58, %v1077_v15  ;;  %v2199_v22 = vpack.c.bf16 %v1347_v16, %v1347_v16  ;;  %v1243_v23 = vadd.f32 %v2976_v58, %v1131_v17 }
 0x137   :  { %v703_v24 = vpop.f32.mrf.mxu0  ;;  %v919_v25 = vpop.f32.mrf.mxu1 }
 0x138   :  { %1820 = vst.msk [vmem:[%s3636_s4 + $0x40] sm:$0xf] %vm1803_vm4, %v2145_v20  ;;  %v1294_v26 = vmax.f32 %v1189_v21, 0.0  ;;  %1874 = vst.msk [vmem:[%s3636_s4 + $0x118] sm:$0xf] %vm1803_vm4, %v2199_v22  ;;  %v1078_v27 = vmul.f32 %v2974_v56, %v703_v24  ;;  %v1348_v28 = vmax.f32 %v1243_v23, 0.0  ;;  %v1132_v29 = vmul.f32 %v2974_v56, %v919_v25 }
 0x139   :  { %v2328_v30 = vpop.f32.mrf.mxu0  ;;  %v2436_v31 = vpop.f32.mrf.mxu1 }
 0x13a   :  { %v2146_v0 = vpack.c.bf16 %v1294_v26, %v1294_v26  ;;  %v1190_v32 = vadd.f32 %v2976_v58, %v1078_v27  ;;  %v2200_v33 = vpack.c.bf16 %v1348_v28, %v1348_v28  ;;  %v1244_v34 = vadd.f32 %v2976_v58, %v1132_v29 }
 0x13b   :  { %v706_v35 = vpop.f32.mrf.mxu0  ;;  %v922_v36 = vpop.f32.mrf.mxu1 }
 0x13c   :  { %1821 = vst.msk [vmem:[%s3636_s4 + $0x44] sm:$0xf] %vm1803_vm4, %v2146_v0  ;;  %v1295_v37 = vmax.f32 %v1190_v32, 0.0  ;;  %1875 = vst.msk [vmem:[%s3636_s4 + $0x11c] sm:$0xf] %vm1803_vm4, %v2200_v33  ;;  %v1079_v38 = vmul.f32 %v2974_v56, %v706_v35  ;;  %v1349_v39 = vmax.f32 %v1244_v34, 0.0  ;;  %v1133_v40 = vmul.f32 %v2974_v56, %v922_v36 }
 0x13d   :  { %v2329_v41 = vpop.f32.mrf.mxu0  ;;  %v2437_v42 = vpop.f32.mrf.mxu1 }
 0x13e   :  { %v2147_v43 = vpack.c.bf16 %v1295_v37, %v1295_v37  ;;  %v1191_v44 = vadd.f32 %v2976_v58, %v1079_v38  ;;  %v2201_v45 = vpack.c.bf16 %v1349_v39, %v1349_v39  ;;  %v1245_v46 = vadd.f32 %v2976_v58, %v1133_v40 }
 0x13f   :  { %v711_v47 = vpop.f32.mrf.mxu0  ;;  %v927_v48 = vpop.f32.mrf.mxu1 }
 0x140   :  { %1822 = vst.msk [vmem:[%s3636_s4 + $0x48] sm:$0xf] %vm1803_vm4, %v2147_v43  ;;  %v1296_v49 = vmax.f32 %v1191_v44, 0.0  ;;  %1876 = vst.msk [vmem:[%s3636_s4 + $0x120] sm:$0xf] %vm1803_vm4, %v2201_v45  ;;  %v1080_v50 = vmul.f32 %v2974_v56, %v711_v47  ;;  %v1350_v51 = vmax.f32 %v1245_v46, 0.0  ;;  %v1134_v52 = vmul.f32 %v2974_v56, %v927_v48 }
 0x141   :  { %v2332_v53 = vpop.f32.mrf.mxu0  ;;  %v2440_v54 = vpop.f32.mrf.mxu1 }
 0x142   :  { %v2148_v55 = vpack.c.bf16 %v1296_v49, %v1296_v49  ;;  %v1192_v57 = vadd.f32 %v2976_v58, %v1080_v50  ;;  %v2202_v59 = vpack.c.bf16 %v1350_v51, %v1350_v51  ;;  %v1246_v60 = vadd.f32 %v2976_v58, %v1134_v52 }
 0x143   :  { %v714_v61 = vpop.f32.mrf.mxu0  ;;  %v930_v62 = vpop.f32.mrf.mxu1 }
 0x144   :  { %1823 = vst.msk [vmem:[%s3636_s4 + $0x4c] sm:$0xf] %vm1803_vm4, %v2148_v55  ;;  %v1297_v63 = vmax.f32 %v1192_v57, 0.0  ;;  %1877 = vst.msk [vmem:[%s3636_s4 + $0x124] sm:$0xf] %vm1803_vm4, %v2202_v59  ;;  %v1081_v1 = vmul.f32 %v2974_v56, %v714_v61  ;;  %v1351_v2 = vmax.f32 %v1246_v60, 0.0  ;;  %v1135_v3 = vmul.f32 %v2974_v56, %v930_v62 }
 0x145   :  { %v2333_v4 = vpop.f32.mrf.mxu0  ;;  %v2441_v5 = vpop.f32.mrf.mxu1 }
 0x146   :  { %v2149_v6 = vpack.c.bf16 %v1297_v63, %v1297_v63  ;;  %v1193_v7 = vadd.f32 %v2976_v58, %v1081_v1  ;;  %v2203_v8 = vpack.c.bf16 %v1351_v2, %v1351_v2  ;;  %v1247_v9 = vadd.f32 %v2976_v58, %v1135_v3 }
 0x147   :  { %v719_v10 = vpop.f32.mrf.mxu0  ;;  %v935_v11 = vpop.f32.mrf.mxu1 }
 0x148   :  { %1824 = vst.msk [vmem:[%s3636_s4 + $0x50] sm:$0xf] %vm1803_vm4, %v2149_v6  ;;  %v1298_v12 = vmax.f32 %v1193_v7, 0.0  ;;  %1878 = vst.msk [vmem:[%s3636_s4 + $0x128] sm:$0xf] %vm1803_vm4, %v2203_v8  ;;  %v1082_v13 = vmul.f32 %v2974_v56, %v719_v10  ;;  %v1352_v14 = vmax.f32 %v1247_v9, 0.0  ;;  %v1136_v15 = vmul.f32 %v2974_v56, %v935_v11 }
 0x149   :  { %v2336_v16 = vpop.f32.mrf.mxu0  ;;  %v2444_v17 = vpop.f32.mrf.mxu1 }
 0x14a   :  { %v2150_v18 = vpack.c.bf16 %v1298_v12, %v1298_v12  ;;  %v1194_v19 = vadd.f32 %v2976_v58, %v1082_v13  ;;  %v2204_v20 = vpack.c.bf16 %v1352_v14, %v1352_v14  ;;  %v1248_v21 = vadd.f32 %v2976_v58, %v1136_v15 }
 0x14b   :  { %v722_v22 = vpop.f32.mrf.mxu0  ;;  %v938_v23 = vpop.f32.mrf.mxu1 }
 0x14c   :  { %1825 = vst.msk [vmem:[%s3636_s4 + $0x54] sm:$0xf] %vm1803_vm4, %v2150_v18  ;;  %v1299_v24 = vmax.f32 %v1194_v19, 0.0  ;;  %1879 = vst.msk [vmem:[%s3636_s4 + $0x12c] sm:$0xf] %vm1803_vm4, %v2204_v20  ;;  %v1083_v25 = vmul.f32 %v2974_v56, %v722_v22  ;;  %v1353_v26 = vmax.f32 %v1248_v21, 0.0  ;;  %v1137_v27 = vmul.f32 %v2974_v56, %v938_v23 }
 0x14d   :  { %v2337_v28 = vpop.f32.mrf.mxu0  ;;  %v2445_v29 = vpop.f32.mrf.mxu1 }
 0x14e   :  { %v2151_v30 = vpack.c.bf16 %v1299_v24, %v1299_v24  ;;  %v1195_v31 = vadd.f32 %v2976_v58, %v1083_v25  ;;  %v2205_v0 = vpack.c.bf16 %v1353_v26, %v1353_v26  ;;  %v1249_v32 = vadd.f32 %v2976_v58, %v1137_v27 }
 0x14f   :  { %v727_v33 = vpop.f32.mrf.mxu0  ;;  %v943_v34 = vpop.f32.mrf.mxu1 }
 0x150   :  { %1826 = vst.msk [vmem:[%s3636_s4 + $0x58] sm:$0xf] %vm1803_vm4, %v2151_v30  ;;  %v1300_v35 = vmax.f32 %v1195_v31, 0.0  ;;  %1880 = vst.msk [vmem:[%s3636_s4 + $0x130] sm:$0xf] %vm1803_vm4, %v2205_v0  ;;  %v1084_v36 = vmul.f32 %v2974_v56, %v727_v33  ;;  %v1354_v37 = vmax.f32 %v1249_v32, 0.0  ;;  %v1138_v38 = vmul.f32 %v2974_v56, %v943_v34 }
 0x151   :  { %v2340_v39 = vpop.f32.mrf.mxu0  ;;  %v2448_v40 = vpop.f32.mrf.mxu1 }
 0x152   :  { %v2152_v41 = vpack.c.bf16 %v1300_v35, %v1300_v35  ;;  %v1196_v42 = vadd.f32 %v2976_v58, %v1084_v36  ;;  %v2206_v43 = vpack.c.bf16 %v1354_v37, %v1354_v37  ;;  %v1250_v44 = vadd.f32 %v2976_v58, %v1138_v38 }
 0x153   :  { %v730_v45 = vpop.f32.mrf.mxu0  ;;  %v946_v46 = vpop.f32.mrf.mxu1 }
 0x154   :  { %1827 = vst.msk [vmem:[%s3636_s4 + $0x5c] sm:$0xf] %vm1803_vm4, %v2152_v41  ;;  %v1301_v47 = vmax.f32 %v1196_v42, 0.0  ;;  %1881 = vst.msk [vmem:[%s3636_s4 + $0x134] sm:$0xf] %vm1803_vm4, %v2206_v43  ;;  %v1085_v48 = vmul.f32 %v2974_v56, %v730_v45  ;;  %v1355_v49 = vmax.f32 %v1250_v44, 0.0  ;;  %v1139_v50 = vmul.f32 %v2974_v56, %v946_v46 }
 0x155   :  { %v2341_v51 = vpop.f32.mrf.mxu0  ;;  %v2449_v52 = vpop.f32.mrf.mxu1 }
 0x156   :  { %v2153_v53 = vpack.c.bf16 %v1301_v47, %v1301_v47  ;;  %v1197_v54 = vadd.f32 %v2976_v58, %v1085_v48  ;;  %v2207_v55 = vpack.c.bf16 %v1355_v49, %v1355_v49  ;;  %v1251_v57 = vadd.f32 %v2976_v58, %v1139_v50 }
 0x157   :  { %v735_v59 = vpop.f32.mrf.mxu0  ;;  %v951_v60 = vpop.f32.mrf.mxu1 }
 0x158   :  { %1828 = vst.msk [vmem:[%s3636_s4 + $0x60] sm:$0xf] %vm1803_vm4, %v2153_v53  ;;  %v1302_v61 = vmax.f32 %v1197_v54, 0.0  ;;  %1882 = vst.msk [vmem:[%s3636_s4 + $0x138] sm:$0xf] %vm1803_vm4, %v2207_v55  ;;  %v1086_v62 = vmul.f32 %v2974_v56, %v735_v59  ;;  %v1356_v63 = vmax.f32 %v1251_v57, 0.0  ;;  %v1140_v1 = vmul.f32 %v2974_v56, %v951_v60 }
 0x159   :  { %v2344_v2 = vpop.f32.mrf.mxu0  ;;  %v2452_v3 = vpop.f32.mrf.mxu1 }
 0x15a   :  { %v2154_v4 = vpack.c.bf16 %v1302_v61, %v1302_v61  ;;  %v1198_v5 = vadd.f32 %v2976_v58, %v1086_v62  ;;  %v2208_v6 = vpack.c.bf16 %v1356_v63, %v1356_v63  ;;  %v1252_v7 = vadd.f32 %v2976_v58, %v1140_v1 }
 0x15b   :  { %v738_v8 = vpop.f32.mrf.mxu0  ;;  %v954_v9 = vpop.f32.mrf.mxu1 }
 0x15c   :  { %1829 = vst.msk [vmem:[%s3636_s4 + $0x64] sm:$0xf] %vm1803_vm4, %v2154_v4  ;;  %v1303_v10 = vmax.f32 %v1198_v5, 0.0  ;;  %1883 = vst.msk [vmem:[%s3636_s4 + $0x13c] sm:$0xf] %vm1803_vm4, %v2208_v6  ;;  %v1087_v11 = vmul.f32 %v2974_v56, %v738_v8  ;;  %v1357_v12 = vmax.f32 %v1252_v7, 0.0  ;;  %v1141_v13 = vmul.f32 %v2974_v56, %v954_v9 }
 0x15d   :  { %v2345_v14 = vpop.f32.mrf.mxu0  ;;  %v2453_v15 = vpop.f32.mrf.mxu1 }
 0x15e   :  { %v2155_v16 = vpack.c.bf16 %v1303_v10, %v1303_v10  ;;  %v1199_v17 = vadd.f32 %v2976_v58, %v1087_v11  ;;  %v2209_v18 = vpack.c.bf16 %v1357_v12, %v1357_v12  ;;  %v1253_v19 = vadd.f32 %v2976_v58, %v1141_v13 }
 0x15f   :  { %v743_v20 = vpop.f32.mrf.mxu0  ;;  %v959_v21 = vpop.f32.mrf.mxu1 }
 0x160   :  { %1830 = vst.msk [vmem:[%s3636_s4 + $0x68] sm:$0xf] %vm1803_vm4, %v2155_v16  ;;  %v1304_v22 = vmax.f32 %v1199_v17, 0.0  ;;  %1884 = vst.msk [vmem:[%s3636_s4 + $0x140] sm:$0xf] %vm1803_vm4, %v2209_v18  ;;  %v1088_v23 = vmul.f32 %v2974_v56, %v743_v20  ;;  %v1358_v24 = vmax.f32 %v1253_v19, 0.0  ;;  %v1142_v25 = vmul.f32 %v2974_v56, %v959_v21 }
 0x161   :  { %v2348_v26 = vpop.f32.mrf.mxu0  ;;  %v2456_v27 = vpop.f32.mrf.mxu1 }
 0x162   :  { %v2156_v28 = vpack.c.bf16 %v1304_v22, %v1304_v22  ;;  %v1200_v29 = vadd.f32 %v2976_v58, %v1088_v23  ;;  %v2210_v30 = vpack.c.bf16 %v1358_v24, %v1358_v24  ;;  %v1254_v31 = vadd.f32 %v2976_v58, %v1142_v25 }
 0x163   :  { %v746_v0 = vpop.f32.mrf.mxu0  ;;  %v962_v32 = vpop.f32.mrf.mxu1 }
 0x164   :  { %1831 = vst.msk [vmem:[%s3636_s4 + $0x6c] sm:$0xf] %vm1803_vm4, %v2156_v28  ;;  %v1305_v33 = vmax.f32 %v1200_v29, 0.0  ;;  %1885 = vst.msk [vmem:[%s3636_s4 + $0x144] sm:$0xf] %vm1803_vm4, %v2210_v30  ;;  %v1089_v34 = vmul.f32 %v2974_v56, %v746_v0  ;;  %v1359_v35 = vmax.f32 %v1254_v31, 0.0  ;;  %v1143_v36 = vmul.f32 %v2974_v56, %v962_v32 }
 0x165   :  { %v2349_v37 = vpop.f32.mrf.mxu0  ;;  %v2457_v38 = vpop.f32.mrf.mxu1 }
 0x166   :  { %v2157_v39 = vpack.c.bf16 %v1305_v33, %v1305_v33  ;;  %v1201_v40 = vadd.f32 %v2976_v58, %v1089_v34  ;;  %v2211_v41 = vpack.c.bf16 %v1359_v35, %v1359_v35  ;;  %v1255_v42 = vadd.f32 %v2976_v58, %v1143_v36 }
 0x167   :  { %v751_v43 = vpop.f32.mrf.mxu0  ;;  %v967_v44 = vpop.f32.mrf.mxu1 }
 0x168   :  { %1832 = vst.msk [vmem:[%s3636_s4 + $0x70] sm:$0xf] %vm1803_vm4, %v2157_v39  ;;  %v1306_v45 = vmax.f32 %v1201_v40, 0.0  ;;  %1886 = vst.msk [vmem:[%s3636_s4 + $0x148] sm:$0xf] %vm1803_vm4, %v2211_v41  ;;  %v1090_v46 = vmul.f32 %v2974_v56, %v751_v43  ;;  %v1360_v47 = vmax.f32 %v1255_v42, 0.0  ;;  %v1144_v48 = vmul.f32 %v2974_v56, %v967_v44 }
 0x169   :  { %v2352_v49 = vpop.f32.mrf.mxu0  ;;  %v2460_v50 = vpop.f32.mrf.mxu1 }
 0x16a   :  { %v2158_v51 = vpack.c.bf16 %v1306_v45, %v1306_v45  ;;  %v1202_v52 = vadd.f32 %v2976_v58, %v1090_v46  ;;  %v2212_v53 = vpack.c.bf16 %v1360_v47, %v1360_v47  ;;  %v1256_v54 = vadd.f32 %v2976_v58, %v1144_v48 }
 0x16b   :  { %v754_v55 = vpop.f32.mrf.mxu0  ;;  %v970_v57 = vpop.f32.mrf.mxu1 }
 0x16c   :  { %1833 = vst.msk [vmem:[%s3636_s4 + $0x74] sm:$0xf] %vm1803_vm4, %v2158_v51  ;;  %v1307_v59 = vmax.f32 %v1202_v52, 0.0  ;;  %1887 = vst.msk [vmem:[%s3636_s4 + $0x14c] sm:$0xf] %vm1803_vm4, %v2212_v53  ;;  %v1091_v60 = vmul.f32 %v2974_v56, %v754_v55  ;;  %v1361_v61 = vmax.f32 %v1256_v54, 0.0  ;;  %v1145_v62 = vmul.f32 %v2974_v56, %v970_v57 }
 0x16d   :  { %v2353_v63 = vpop.f32.mrf.mxu0  ;;  %v2461_v1 = vpop.f32.mrf.mxu1 }
 0x16e   :  { %v2159_v2 = vpack.c.bf16 %v1307_v59, %v1307_v59  ;;  %v1203_v3 = vadd.f32 %v2976_v58, %v1091_v60  ;;  %v2213_v4 = vpack.c.bf16 %v1361_v61, %v1361_v61  ;;  %v1257_v5 = vadd.f32 %v2976_v58, %v1145_v62  ;;  %v3426_v63 = vld [vmem:[#allocation6] ss:$0 sm:$0xff] }
 0x16f   :  { %v759_v6 = vpop.f32.mrf.mxu0  ;;  %v975_v7 = vpop.f32.mrf.mxu1 }
 0x170   :  { %1834 = vst.msk [vmem:[%s3636_s4 + $0x78] sm:$0xf] %vm1803_vm4, %v2159_v2  ;;  %v1308_v8 = vmax.f32 %v1203_v3, 0.0  ;;  %1888 = vst.msk [vmem:[%s3636_s4 + $0x150] sm:$0xf] %vm1803_vm4, %v2213_v4  ;;  %v1092_v9 = vmul.f32 %v2974_v56, %v759_v6  ;;  %v1362_v10 = vmax.f32 %v1257_v5, 0.0  ;;  %v1146_v11 = vmul.f32 %v2974_v56, %v975_v7 }
 0x171   :  { %v2356_v12 = vpop.f32.mrf.mxu0  ;;  %v2464_v13 = vpop.f32.mrf.mxu1 }
 0x172   :  { %v2160_v14 = vpack.c.bf16 %v1308_v8, %v1308_v8  ;;  %v1204_v15 = vadd.f32 %v2976_v58, %v1092_v9  ;;  %v2214_v16 = vpack.c.bf16 %v1362_v10, %v1362_v10  ;;  %v1258_v17 = vadd.f32 %v2976_v58, %v1146_v11 }
 0x173   :  { %v762_v18 = vpop.f32.mrf.mxu0  ;;  %v978_v19 = vpop.f32.mrf.mxu1 }
 0x174   :  { %1835 = vst.msk [vmem:[%s3636_s4 + $0x7c] sm:$0xf] %vm1803_vm4, %v2160_v14  ;;  %v1309_v20 = vmax.f32 %v1204_v15, 0.0  ;;  %1889 = vst.msk [vmem:[%s3636_s4 + $0x154] sm:$0xf] %vm1803_vm4, %v2214_v16  ;;  %v1093_v21 = vmul.f32 %v2974_v56, %v762_v18  ;;  %v1363_v22 = vmax.f32 %v1258_v17, 0.0  ;;  %v1147_v23 = vmul.f32 %v2974_v56, %v978_v19 }
 0x175   :  { %v2357_v24 = vpop.f32.mrf.mxu0  ;;  %v2465_v25 = vpop.f32.mrf.mxu1 }
 0x176   :  { %v2161_v26 = vpack.c.bf16 %v1309_v20, %v1309_v20  ;;  %v1205_v27 = vadd.f32 %v2976_v58, %v1093_v21  ;;  %v2215_v28 = vpack.c.bf16 %v1363_v22, %v1363_v22  ;;  %v1259_v29 = vadd.f32 %v2976_v58, %v1147_v23 }
 0x177   :  { %v767_v30 = vpop.f32.mrf.mxu0  ;;  %v983_v31 = vpop.f32.mrf.mxu1 }
 0x178   :  { %1836 = vst.msk [vmem:[%s3636_s4 + $0x80] sm:$0xf] %vm1803_vm4, %v2161_v26  ;;  %v1310_v0 = vmax.f32 %v1205_v27, 0.0  ;;  %1890 = vst.msk [vmem:[%s3636_s4 + $0x158] sm:$0xf] %vm1803_vm4, %v2215_v28  ;;  %v1094_v32 = vmul.f32 %v2974_v56, %v767_v30  ;;  %v1364_v33 = vmax.f32 %v1259_v29, 0.0  ;;  %v1148_v34 = vmul.f32 %v2974_v56, %v983_v31 }
 0x179   :  { %v2360_v35 = vpop.f32.mrf.mxu0  ;;  %v2468_v36 = vpop.f32.mrf.mxu1 }
 0x17a   :  { %v2162_v37 = vpack.c.bf16 %v1310_v0, %v1310_v0  ;;  %v1206_v38 = vadd.f32 %v2976_v58, %v1094_v32  ;;  %v2216_v39 = vpack.c.bf16 %v1364_v33, %v1364_v33  ;;  %v1260_v40 = vadd.f32 %v2976_v58, %v1148_v34 }
 0x17b   :  { %v770_v41 = vpop.f32.mrf.mxu0  ;;  %v986_v42 = vpop.f32.mrf.mxu1 }
 0x17c   :  { %1837 = vst.msk [vmem:[%s3636_s4 + $0x84] sm:$0xf] %vm1803_vm4, %v2162_v37  ;;  %v1311_v43 = vmax.f32 %v1206_v38, 0.0  ;;  %1891 = vst.msk [vmem:[%s3636_s4 + $0x15c] sm:$0xf] %vm1803_vm4, %v2216_v39  ;;  %v1095_v44 = vmul.f32 %v2974_v56, %v770_v41  ;;  %v1365_v45 = vmax.f32 %v1260_v40, 0.0  ;;  %v1149_v46 = vmul.f32 %v2974_v56, %v986_v42 }
 0x17d   :  { %v2361_v47 = vpop.f32.mrf.mxu0  ;;  %v2469_v48 = vpop.f32.mrf.mxu1  ;;  %v3422_v56 = vld [vmem:[#allocation4] ss:$0 sm:$0xff] }
 0x17e   :  { %v2163_v49 = vpack.c.bf16 %v1311_v43, %v1311_v43  ;;  %v1207_v50 = vadd.f32 %v2976_v58, %v1095_v44  ;;  %v2217_v51 = vpack.c.bf16 %v1365_v45, %v1365_v45  ;;  %v1261_v52 = vadd.f32 %v2976_v58, %v1149_v46 }
 0x17f   :  { %v775_v53 = vpop.f32.mrf.mxu0  ;;  %v991_v54 = vpop.f32.mrf.mxu1 }
 0x180   :  { %1838 = vst.msk [vmem:[%s3636_s4 + $0x88] sm:$0xf] %vm1803_vm4, %v2163_v49  ;;  %v1312_v55 = vmax.f32 %v1207_v50, 0.0  ;;  %1892 = vst.msk [vmem:[%s3636_s4 + $0x160] sm:$0xf] %vm1803_vm4, %v2217_v51  ;;  %v1096_v57 = vmul.f32 %v3422_v56, %v775_v53  ;;  %v1366_v59 = vmax.f32 %v1261_v52, 0.0  ;;  %v1150_v58 = vmul.f32 %v3422_v56, %v991_v54 }
 0x181   :  { %v2364_v60 = vpop.f32.mrf.mxu0  ;;  %v2472_v61 = vpop.f32.mrf.mxu1 }
 0x182   :  { %v2164_v62 = vpack.c.bf16 %v1312_v55, %v1312_v55  ;;  %v1208_v1 = vadd.f32 %v3426_v63, %v1096_v57  ;;  %v2218_v2 = vpack.c.bf16 %v1366_v59, %v1366_v59  ;;  %v1262_v3 = vadd.f32 %v3426_v63, %v1150_v58 }
 0x183   :  { %v778_v4 = vpop.f32.mrf.mxu0  ;;  %v994_v5 = vpop.f32.mrf.mxu1 }
 0x184   :  { %1839 = vst.msk [vmem:[%s3636_s4 + $0x8c] sm:$0xf] %vm1803_vm4, %v2164_v62  ;;  %v1313_v6 = vmax.f32 %v1208_v1, 0.0  ;;  %1893 = vst.msk [vmem:[%s3636_s4 + $0x164] sm:$0xf] %vm1803_vm4, %v2218_v2  ;;  %v1097_v7 = vmul.f32 %v3422_v56, %v778_v4  ;;  %v1367_v8 = vmax.f32 %v1262_v3, 0.0  ;;  %v1151_v9 = vmul.f32 %v3422_v56, %v994_v5 }
 0x185   :  { %v2365_v10 = vpop.f32.mrf.mxu0  ;;  %v2473_v11 = vpop.f32.mrf.mxu1 }
 0x186   :  { %v2165_v12 = vpack.c.bf16 %v1313_v6, %v1313_v6  ;;  %v1209_v13 = vadd.f32 %v3426_v63, %v1097_v7  ;;  %v2219_v14 = vpack.c.bf16 %v1367_v8, %v1367_v8  ;;  %v1263_v15 = vadd.f32 %v3426_v63, %v1151_v9 }
 0x187   :  { %v783_v16 = vpop.f32.mrf.mxu0  ;;  %v999_v17 = vpop.f32.mrf.mxu1 }
 0x188   :  { %1840 = vst.msk [vmem:[%s3636_s4 + $0x90] sm:$0xf] %vm1803_vm4, %v2165_v12  ;;  %v1314_v18 = vmax.f32 %v1209_v13, 0.0  ;;  %1894 = vst.msk [vmem:[%s3636_s4 + $0x168] sm:$0xf] %vm1803_vm4, %v2219_v14  ;;  %v1098_v19 = vmul.f32 %v3422_v56, %v783_v16  ;;  %v1368_v20 = vmax.f32 %v1263_v15, 0.0  ;;  %v1152_v21 = vmul.f32 %v3422_v56, %v999_v17 }
 0x189   :  { %v2368_v22 = vpop.f32.mrf.mxu0  ;;  %v2476_v23 = vpop.f32.mrf.mxu1 }
 0x18a   :  { %v2166_v24 = vpack.c.bf16 %v1314_v18, %v1314_v18  ;;  %v1210_v25 = vadd.f32 %v3426_v63, %v1098_v19  ;;  %v2220_v26 = vpack.c.bf16 %v1368_v20, %v1368_v20  ;;  %v1264_v27 = vadd.f32 %v3426_v63, %v1152_v21 }
 0x18b   :  { %v786_v28 = vpop.f32.mrf.mxu0  ;;  %v1002_v29 = vpop.f32.mrf.mxu1 }
 0x18c   :  { %1841 = vst.msk [vmem:[%s3636_s4 + $0x94] sm:$0xf] %vm1803_vm4, %v2166_v24  ;;  %v1315_v30 = vmax.f32 %v1210_v25, 0.0  ;;  %1895 = vst.msk [vmem:[%s3636_s4 + $0x16c] sm:$0xf] %vm1803_vm4, %v2220_v26  ;;  %v1099_v31 = vmul.f32 %v3422_v56, %v786_v28  ;;  %v1369_v0 = vmax.f32 %v1264_v27, 0.0  ;;  %v1153_v32 = vmul.f32 %v3422_v56, %v1002_v29 }
 0x18d   :  { %v2369_v33 = vpop.f32.mrf.mxu0  ;;  %v2477_v34 = vpop.f32.mrf.mxu1 }
 0x18e   :  { %v2167_v35 = vpack.c.bf16 %v1315_v30, %v1315_v30  ;;  %v1211_v36 = vadd.f32 %v3426_v63, %v1099_v31  ;;  %v2221_v37 = vpack.c.bf16 %v1369_v0, %v1369_v0  ;;  %v1265_v38 = vadd.f32 %v3426_v63, %v1153_v32 }
 0x18f   :  { %v791_v39 = vpop.f32.mrf.mxu0  ;;  %v1007_v40 = vpop.f32.mrf.mxu1 }
 0x190   :  { %1842 = vst.msk [vmem:[%s3636_s4 + $0x98] sm:$0xf] %vm1803_vm4, %v2167_v35  ;;  %v1316_v41 = vmax.f32 %v1211_v36, 0.0  ;;  %1896 = vst.msk [vmem:[%s3636_s4 + $0x170] sm:$0xf] %vm1803_vm4, %v2221_v37  ;;  %v1100_v42 = vmul.f32 %v3422_v56, %v791_v39  ;;  %v1370_v43 = vmax.f32 %v1265_v38, 0.0  ;;  %v1154_v44 = vmul.f32 %v3422_v56, %v1007_v40 }
 0x191   :  { %v2372_v45 = vpop.f32.mrf.mxu0  ;;  %v2480_v46 = vpop.f32.mrf.mxu1 }
 0x192   :  { %v2168_v47 = vpack.c.bf16 %v1316_v41, %v1316_v41  ;;  %v1212_v48 = vadd.f32 %v3426_v63, %v1100_v42  ;;  %v2222_v49 = vpack.c.bf16 %v1370_v43, %v1370_v43  ;;  %v1266_v50 = vadd.f32 %v3426_v63, %v1154_v44 }
 0x193   :  { %v794_v51 = vpop.f32.mrf.mxu0  ;;  %v1010_v52 = vpop.f32.mrf.mxu1 }
 0x194   :  { %1843 = vst.msk [vmem:[%s3636_s4 + $0x9c] sm:$0xf] %vm1803_vm4, %v2168_v47  ;;  %v1317_v53 = vmax.f32 %v1212_v48, 0.0  ;;  %1897 = vst.msk [vmem:[%s3636_s4 + $0x174] sm:$0xf] %vm1803_vm4, %v2222_v49  ;;  %v1101_v54 = vmul.f32 %v3422_v56, %v794_v51  ;;  %v1371_v55 = vmax.f32 %v1266_v50, 0.0  ;;  %v1155_v57 = vmul.f32 %v3422_v56, %v1010_v52 }
 0x195   :  { %v2373_v59 = vpop.f32.mrf.mxu0  ;;  %v2481_v58 = vpop.f32.mrf.mxu1 }
 0x196   :  { %v2169_v60 = vpack.c.bf16 %v1317_v53, %v1317_v53  ;;  %v1213_v61 = vadd.f32 %v3426_v63, %v1101_v54  ;;  %v2223_v62 = vpack.c.bf16 %v1371_v55, %v1371_v55  ;;  %v1267_v1 = vadd.f32 %v3426_v63, %v1155_v57 }
 0x197   :  { %v799_v2 = vpop.f32.mrf.mxu0  ;;  %v1015_v3 = vpop.f32.mrf.mxu1 }
 0x198   :  { %1844 = vst.msk [vmem:[%s3636_s4 + $0xa0] sm:$0xf] %vm1803_vm4, %v2169_v60  ;;  %v1318_v4 = vmax.f32 %v1213_v61, 0.0  ;;  %1898 = vst.msk [vmem:[%s3636_s4 + $0x178] sm:$0xf] %vm1803_vm4, %v2223_v62  ;;  %v1102_v5 = vmul.f32 %v3422_v56, %v799_v2  ;;  %v1372_v6 = vmax.f32 %v1267_v1, 0.0  ;;  %v1156_v7 = vmul.f32 %v3422_v56, %v1015_v3 }
 0x199   :  { %v2376_v8 = vpop.f32.mrf.mxu0  ;;  %v2484_v9 = vpop.f32.mrf.mxu1 }
 0x19a   :  { %v2170_v10 = vpack.c.bf16 %v1318_v4, %v1318_v4  ;;  %v1214_v11 = vadd.f32 %v3426_v63, %v1102_v5  ;;  %v2224_v12 = vpack.c.bf16 %v1372_v6, %v1372_v6  ;;  %v1268_v13 = vadd.f32 %v3426_v63, %v1156_v7 }
 0x19b   :  { %v802_v14 = vpop.f32.mrf.mxu0  ;;  %v1018_v15 = vpop.f32.mrf.mxu1 }
 0x19c   :  { %1845 = vst.msk [vmem:[%s3636_s4 + $0xa4] sm:$0xf] %vm1803_vm4, %v2170_v10  ;;  %v1319_v16 = vmax.f32 %v1214_v11, 0.0  ;;  %1899 = vst.msk [vmem:[%s3636_s4 + $0x17c] sm:$0xf] %vm1803_vm4, %v2224_v12  ;;  %v1103_v17 = vmul.f32 %v3422_v56, %v802_v14  ;;  %v1373_v18 = vmax.f32 %v1268_v13, 0.0  ;;  %v1157_v19 = vmul.f32 %v3422_v56, %v1018_v15 }
 0x19d   :  { %v2377_v20 = vpop.f32.mrf.mxu0  ;;  %v2485_v21 = vpop.f32.mrf.mxu1 }
 0x19e   :  { %v2171_v22 = vpack.c.bf16 %v1319_v16, %v1319_v16  ;;  %v1215_v23 = vadd.f32 %v3426_v63, %v1103_v17  ;;  %v2225_v24 = vpack.c.bf16 %v1373_v18, %v1373_v18  ;;  %v1269_v25 = vadd.f32 %v3426_v63, %v1157_v19 }
 0x19f   :  { %v807_v26 = vpop.f32.mrf.mxu0  ;;  %v1023_v27 = vpop.f32.mrf.mxu1 }
 0x1a0   :  { %1846 = vst.msk [vmem:[%s3636_s4 + $0xa8] sm:$0xf] %vm1803_vm4, %v2171_v22  ;;  %v1320_v28 = vmax.f32 %v1215_v23, 0.0  ;;  %1900 = vst.msk [vmem:[%s3636_s4 + $0x180] sm:$0xf] %vm1803_vm4, %v2225_v24  ;;  %v1104_v29 = vmul.f32 %v3422_v56, %v807_v26  ;;  %v1374_v30 = vmax.f32 %v1269_v25, 0.0  ;;  %v1158_v31 = vmul.f32 %v3422_v56, %v1023_v27 }
 0x1a1   :  { %v2380_v0 = vpop.f32.mrf.mxu0  ;;  %v2488_v32 = vpop.f32.mrf.mxu1 }
 0x1a2   :  { %v2172_v33 = vpack.c.bf16 %v1320_v28, %v1320_v28  ;;  %v1216_v34 = vadd.f32 %v3426_v63, %v1104_v29  ;;  %v2226_v35 = vpack.c.bf16 %v1374_v30, %v1374_v30  ;;  %v1270_v36 = vadd.f32 %v3426_v63, %v1158_v31 }
 0x1a3   :  { %v810_v37 = vpop.f32.mrf.mxu0  ;;  %v1026_v38 = vpop.f32.mrf.mxu1 }
 0x1a4   :  { %1847 = vst.msk [vmem:[%s3636_s4 + $0xac] sm:$0xf] %vm1803_vm4, %v2172_v33  ;;  %v1321_v39 = vmax.f32 %v1216_v34, 0.0  ;;  %1901 = vst.msk [vmem:[%s3636_s4 + $0x184] sm:$0xf] %vm1803_vm4, %v2226_v35  ;;  %v1105_v40 = vmul.f32 %v3422_v56, %v810_v37  ;;  %v1375_v41 = vmax.f32 %v1270_v36, 0.0  ;;  %v1159_v42 = vmul.f32 %v3422_v56, %v1026_v38 }
 0x1a5   :  { %v2381_v43 = vpop.f32.mrf.mxu0  ;;  %v2489_v44 = vpop.f32.mrf.mxu1 }
 0x1a6   :  { %v2173_v45 = vpack.c.bf16 %v1321_v39, %v1321_v39  ;;  %v1217_v46 = vadd.f32 %v3426_v63, %v1105_v40  ;;  %v2227_v47 = vpack.c.bf16 %v1375_v41, %v1375_v41  ;;  %v1271_v48 = vadd.f32 %v3426_v63, %v1159_v42 }
 0x1a7   :  { %v815_v49 = vpop.f32.mrf.mxu0  ;;  %v1031_v50 = vpop.f32.mrf.mxu1 }
 0x1a8   :  { %1848 = vst.msk [vmem:[%s3636_s4 + $0xb0] sm:$0xf] %vm1803_vm4, %v2173_v45  ;;  %v1322_v51 = vmax.f32 %v1217_v46, 0.0  ;;  %1902 = vst.msk [vmem:[%s3636_s4 + $0x188] sm:$0xf] %vm1803_vm4, %v2227_v47  ;;  %v1106_v52 = vmul.f32 %v3422_v56, %v815_v49  ;;  %v1376_v53 = vmax.f32 %v1271_v48, 0.0  ;;  %v1160_v54 = vmul.f32 %v3422_v56, %v1031_v50 }
 0x1a9   :  { %v2384_v55 = vpop.f32.mrf.mxu0  ;;  %v2492_v57 = vpop.f32.mrf.mxu1 }
 0x1aa   :  { %v2174_v59 = vpack.c.bf16 %v1322_v51, %v1322_v51  ;;  %v1218_v58 = vadd.f32 %v3426_v63, %v1106_v52  ;;  %v2228_v60 = vpack.c.bf16 %v1376_v53, %v1376_v53  ;;  %v1272_v61 = vadd.f32 %v3426_v63, %v1160_v54 }
 0x1ab   :  { %v818_v62 = vpop.f32.mrf.mxu0  ;;  %v1034_v1 = vpop.f32.mrf.mxu1 }
 0x1ac   :  { %1849 = vst.msk [vmem:[%s3636_s4 + $0xb4] sm:$0xf] %vm1803_vm4, %v2174_v59  ;;  %v1323_v2 = vmax.f32 %v1218_v58, 0.0  ;;  %1903 = vst.msk [vmem:[%s3636_s4 + $0x18c] sm:$0xf] %vm1803_vm4, %v2228_v60  ;;  %v1107_v3 = vmul.f32 %v3422_v56, %v818_v62  ;;  %v1377_v4 = vmax.f32 %v1272_v61, 0.0  ;;  %v1161_v5 = vmul.f32 %v3422_v56, %v1034_v1 }
 0x1ad   :  { %v2385_v6 = vpop.f32.mrf.mxu0  ;;  %v2493_v7 = vpop.f32.mrf.mxu1 }
 0x1ae   :  { %v2175_v8 = vpack.c.bf16 %v1323_v2, %v1323_v2  ;;  %v1219_v9 = vadd.f32 %v3426_v63, %v1107_v3  ;;  %v2229_v10 = vpack.c.bf16 %v1377_v4, %v1377_v4  ;;  %v1273_v11 = vadd.f32 %v3426_v63, %v1161_v5 }
 0x1af   :  { %v823_v12 = vpop.f32.mrf.mxu0  ;;  %v1039_v13 = vpop.f32.mrf.mxu1 }
 0x1b0   :  { %1850 = vst.msk [vmem:[%s3636_s4 + $0xb8] sm:$0xf] %vm1803_vm4, %v2175_v8  ;;  %v1324_v14 = vmax.f32 %v1219_v9, 0.0  ;;  %1904 = vst.msk [vmem:[%s3636_s4 + $0x190] sm:$0xf] %vm1803_vm4, %v2229_v10  ;;  %v1108_v15 = vmul.f32 %v3422_v56, %v823_v12  ;;  %v1378_v16 = vmax.f32 %v1273_v11, 0.0  ;;  %v1162_v17 = vmul.f32 %v3422_v56, %v1039_v13 }
 0x1b1   :  { %v2388_v18 = vpop.f32.mrf.mxu0  ;;  %v2496_v19 = vpop.f32.mrf.mxu1 }
 0x1b2   :  { %v2176_v20 = vpack.c.bf16 %v1324_v14, %v1324_v14  ;;  %v1220_v21 = vadd.f32 %v3426_v63, %v1108_v15  ;;  %v2230_v22 = vpack.c.bf16 %v1378_v16, %v1378_v16  ;;  %v1274_v23 = vadd.f32 %v3426_v63, %v1162_v17 }
 0x1b3   :  { %v826_v24 = vpop.f32.mrf.mxu0  ;;  %v1042_v25 = vpop.f32.mrf.mxu1 }
 0x1b4   :  { %1851 = vst.msk [vmem:[%s3636_s4 + $0xbc] sm:$0xf] %vm1803_vm4, %v2176_v20  ;;  %v1325_v26 = vmax.f32 %v1220_v21, 0.0  ;;  %1905 = vst.msk [vmem:[%s3636_s4 + $0x194] sm:$0xf] %vm1803_vm4, %v2230_v22  ;;  %v1109_v27 = vmul.f32 %v3422_v56, %v826_v24  ;;  %v1379_v28 = vmax.f32 %v1274_v23, 0.0  ;;  %v1163_v29 = vmul.f32 %v3422_v56, %v1042_v25 }
 0x1b5   :  { %v2389_v30 = vpop.f32.mrf.mxu0  ;;  %v2497_v31 = vpop.f32.mrf.mxu1 }
 0x1b6   :  { %v2177_v0 = vpack.c.bf16 %v1325_v26, %v1325_v26  ;;  %v1221_v32 = vadd.f32 %v3426_v63, %v1109_v27  ;;  %v2231_v33 = vpack.c.bf16 %v1379_v28, %v1379_v28  ;;  %v1275_v34 = vadd.f32 %v3426_v63, %v1163_v29 }
 0x1b7   :  { %v831_v35 = vpop.f32.mrf.mxu0  ;;  %v1047_v36 = vpop.f32.mrf.mxu1 }
 0x1b8   :  { %1852 = vst.msk [vmem:[%s3636_s4 + $0xc0] sm:$0xf] %vm1803_vm4, %v2177_v0  ;;  %v1326_v37 = vmax.f32 %v1221_v32, 0.0  ;;  %1906 = vst.msk [vmem:[%s3636_s4 + $0x198] sm:$0xf] %vm1803_vm4, %v2231_v33  ;;  %v1110_v38 = vmul.f32 %v3422_v56, %v831_v35  ;;  %v1380_v39 = vmax.f32 %v1275_v34, 0.0  ;;  %v1164_v40 = vmul.f32 %v3422_v56, %v1047_v36 }
 0x1b9   :  { %v2392_v41 = vpop.f32.mrf.mxu0  ;;  %v2500_v42 = vpop.f32.mrf.mxu1 }
 0x1ba   :  { %v2178_v43 = vpack.c.bf16 %v1326_v37, %v1326_v37  ;;  %v1222_v44 = vadd.f32 %v3426_v63, %v1110_v38  ;;  %v2232_v45 = vpack.c.bf16 %v1380_v39, %v1380_v39  ;;  %v1276_v46 = vadd.f32 %v3426_v63, %v1164_v40 }
 0x1bb   :  { %v834_v47 = vpop.f32.mrf.mxu0  ;;  %v1050_v48 = vpop.f32.mrf.mxu1 }
 0x1bc   :  { %1853 = vst.msk [vmem:[%s3636_s4 + $0xc4] sm:$0xf] %vm1803_vm4, %v2178_v43  ;;  %v1327_v49 = vmax.f32 %v1222_v44, 0.0  ;;  %1907 = vst.msk [vmem:[%s3636_s4 + $0x19c] sm:$0xf] %vm1803_vm4, %v2232_v45  ;;  %v1111_v50 = vmul.f32 %v3422_v56, %v834_v47  ;;  %v1381_v51 = vmax.f32 %v1276_v46, 0.0 }
 0x1bd   :  { %v2393_v52 = vpop.f32.mrf.mxu0  ;;  %v2501_v53 = vpop.f32.mrf.mxu1 }
 0x1be   :  { %v2179_v54 = vpack.c.bf16 %v1327_v49, %v1327_v49  ;;  %v1223_v55 = vadd.f32 %v3426_v63, %v1111_v50  ;;  %v2233_v57 = vpack.c.bf16 %v1381_v51, %v1381_v51 }
 0x1bf   :  { %v839_v59 = vpop.f32.mrf.mxu0 }
 0x1c0   :  { %1854 = vst.msk [vmem:[%s3636_s4 + $0xc8] sm:$0xf] %vm1803_vm4, %v2179_v54  ;;  %v1328_v58 = vmax.f32 %v1223_v55, 0.0  ;;  %1908 = vst.msk [vmem:[%s3636_s4 + $0x1a0] sm:$0xf] %vm1803_vm4, %v2233_v57  ;;  %v1112_v60 = vmul.f32 %v3422_v56, %v839_v59 }
 0x1c1   :  { %v2396_v61 = vpop.f32.mrf.mxu0 }
 0x1c2   :  { %v2180_v62 = vpack.c.bf16 %v1328_v58, %v1328_v58  ;;  %v1224_v1 = vadd.f32 %v3426_v63, %v1112_v60 }
 0x1c3   :  { %v842_v2 = vpop.f32.mrf.mxu0 }
 0x1c4   :  { %1855 = vst.msk [vmem:[%s3636_s4 + $0xcc] sm:$0xf] %vm1803_vm4, %v2180_v62  ;;  %v1329_v3 = vmax.f32 %v1224_v1, 0.0  ;;  %v1113_v4 = vmul.f32 %v3422_v56, %v842_v2 }
 0x1c5   :  { %v2397_v5 = vpop.f32.mrf.mxu0 }
 0x1c6   :  { %v2181_v6 = vpack.c.bf16 %v1329_v3, %v1329_v3  ;;  %v1225_v7 = vadd.f32 %v3426_v63, %v1113_v4 }
 0x1c8   :  { %1856 = vst.msk [vmem:[%s3636_s4 + $0xd0] sm:$0xf] %vm1803_vm4, %v2181_v6  ;;  %v1330_v8 = vmax.f32 %v1225_v7, 0.0 }
 0x1ca   :  { %v2182_v9 = vpack.c.bf16 %v1330_v8, %v1330_v8 }
 0x1cc   :  { %1857 = vst.msk [vmem:[%s3636_s4 + $0xd4] sm:$0xf] %vm1803_vm4, %v2182_v9 }
 0x1cd   :  { %1913 = vsyncpa [#allocation3], 1 }
 0x1ce   :  { %1914 = vsyncpa [#allocation5], 1 }

// kernel: audio_encoder_forward.7
= control target key start
LH: loop header
LB: loop body
LE: loop exit
PB: predicated region body
PF: predicated region fallthrough
CT: control target
= control target key end

     0   :  { %9 = vsyncpa [#allocation3], 0  ;;  %s1233_s0 = inlined_call_operand.vmem [shape: bf16[216,144], index: 0, kind: input, shape index: {}]   ;;  %s1234_s1 = inlined_call_operand.vmem [shape: bf16[144,32], index: 1, kind: input, shape index: {}]   ;;  %s1235_s2 = inlined_call_operand.hbm [shape: f32[1,32], index: 2, kind: input, shape index: {}]   ;;  %s1236_s3 = inlined_call_operand.hbm [shape: f32[1,32], index: 3, kind: input, shape index: {}]   ;;  %s1237_s4 = inlined_call_operand.vmem [shape: bf16[216,32], index: 4, kind: output, shape index: {}]  }
   0x1   :  { %10 = vsyncpa [#allocation5], 0  ;;  %s911_s15 = smov [#allocation2]   ;;  %s912_s17 = smov [#allocation4]  }
   0x2   :  { %s21_s16 = sshll.u32 %s911_s15, 4  ;;  %s31_s18 = sshll.u32 %s912_s17, 4  ;;  %s22_s16 = int_to_ptr.vmem [resolvable:$true] %s21_s16  ;;  %s32_s18 = int_to_ptr.vmem [resolvable:$true] %s31_s18 }
   0x3   :  { %s875_s19 = scalar_lea.vmem %s22_s16, 16  ;;  %s879_s20 = scalar_lea.vmem %s22_s16, 32 }
   0x4   :  { %p876_p0 = scmp.ne.s32.totalorder %s22_s16, %s875_s19  ;;  %p880_p1 = scmp.lt.s32.totalorder %s22_s16, %s22_s16 }
   0x5   :  { %p881_p2 = scmp.lt.s32.totalorder %s879_s20, %s875_s19 }
   0x7   :  { %p882_p3 = por %p881_p2, %p880_p1 }
   0x9   :  { %p883_p4 = pnand %p882_p3, %p876_p0 }
   0xb   :  { %886 = shalt.err (!%p883_p4)
}
   0xc   :  { %24 = dma.hbm_to_vmem [thread:$0]  %s1235_s2, 16, %s22_s16, [#allocation3]  }
   0xd   :  { %s895_s23 = scalar_lea.vmem %s32_s18, 16  ;;  %s899_s24 = scalar_lea.vmem %s32_s18, 32 }
   0xe   :  { %p896_p5 = scmp.ne.s32.totalorder %s32_s18, %s895_s23  ;;  %p900_p6 = scmp.lt.s32.totalorder %s32_s18, %s32_s18 }
   0xf   :  { %p901_p7 = scmp.lt.s32.totalorder %s899_s24, %s895_s23 }
  0x11   :  { %p902_p8 = por %p901_p7, %p900_p6 }
  0x13   :  { %p903_p9 = pnand %p902_p8, %p896_p5 }
  0x15   :  { %906 = shalt.err (!%p903_p9)
}
  0x16   :  { %34 = dma.hbm_to_vmem [thread:$0]  %s1236_s3, 16, %s32_s18, [#allocation5]  }
  0x17   :  { %907 = dma.done.wait [#allocation3], 16  }
  0x18   :  { %908 = vsyncadd [#allocation3], 4294967280 }
  0x19   :  { %909 = dma.done.wait [#allocation5], 16  }
  0x1a   :  { %910 = vsyncadd [#allocation5], 4294967280  ;;  %v913_v0 = vmov 0   ;;  %v817_v1 = vld [vmem:[%s1234_s1 + $0x38] sm:$0xff]   ;;  %v818_v2 = vld [vmem:[%s1234_s1 + $0x30] sm:$0xff]   ;;  %vm264_vm0 = vcmask 130048  }
  0x1b   :  { %307 = vmatprep.subr.bf16.mxu0 %v913_v0  ;;  %796 = vmatprep.subr.bf16.mxu1 %v913_v0  ;;  %v819_v3 = vld [vmem:[%s1234_s1 + $0x28] sm:$0xff]   ;;  %v820_v4 = vld [vmem:[%s1234_s1 + $0x20] sm:$0xff]   ;;  %v831_v6 = vld [vmem:[%s1233_s0 + $0x74] ss:$8 sps:$4 sm:$0xff]   ;;  %vm655_vm1 = vcmask 257024  }
  0x1c   :  { %308 = vmatpush1.bf16.msra.mxu0 %v817_v1  ;;  %805 = vmatpush1.bf16.msra.mxu1 %v817_v1  ;;  %v828_v5 = vld [vmem:[%s1233_s0 + $0x4] ss:$8 sps:$4 sm:$0xff]   ;;  %v821_v7 = vld [vmem:[%s1234_s1 + $0x18] sm:$0xff]   ;;  %v822_v8 = vld [vmem:[%s1234_s1 + $0x10] sm:$0xff]  }
  0x1d   :  { %309 = vmatprep.subr.bf16.mxu0 %v913_v0  ;;  %797 = vmatprep.subr.bf16.mxu1 %v913_v0  ;;  %v823_v9 = vld [vmem:[%s1234_s1 + $0x8] sm:$0xff]   ;;  %v824_v10 = vld [vmem:[%s1234_s1] sm:$0xff]   ;;  %v829_v13 = vld [vmem:[%s1233_s0 + $0x70] ss:$8 sps:$4 sm:$0xff]  }
  0x1e   :  { %726 = vmatprep.mubr.msk.bf16.mxu0 %vm264_vm0, %v828_v5  ;;  %733 = vmatprep.mubr.msk.bf16.mxu1 %vm264_vm0, %v831_v6  ;;  %v825_v11 = vld [vmem:[%s1234_s1 + $0x40] sm:$0xff]   ;;  %v832_v14 = vld [vmem:[%s1233_s0 + $0x14] ss:$8 sps:$4 sm:$0xff]   ;;  %v836_v16 = vld [vmem:[%s1233_s0 + $0x10] ss:$8 sps:$4 sm:$0xff]  }
  0x1f   :  { %v826_v12 = vld [vmem:[%s1233_s0] ss:$8 sps:$4 sm:$0xff]   ;;  %v834_v15 = vld [vmem:[%s1233_s0 + $0x84] ss:$8 sps:$4 sm:$0xff]   ;;  %v840_v19 = vld [vmem:[%s1233_s0 + $0x94] ss:$8 sps:$4 sm:$0xff]  }
  0x20   :  { %310 = vmatpush1.bf16.msra.mxu0 %v818_v2  ;;  %806 = vmatpush1.bf16.msra.mxu1 %v818_v2  ;;  %v837_v17 = vld [vmem:[%s1233_s0 + $0x80] ss:$8 sps:$4 sm:$0xff]   ;;  %v838_v18 = vld [vmem:[%s1233_s0 + $0x24] ss:$8 sps:$4 sm:$0xff]   ;;  %v843_v21 = vld [vmem:[%s1233_s0 + $0x90] ss:$8 sps:$4 sm:$0xff]  }
  0x21   :  { %311 = vmatprep.subr.bf16.mxu0 %v913_v0  ;;  %798 = vmatprep.subr.bf16.mxu1 %v913_v0  ;;  %v842_v20 = vld [vmem:[%s1233_s0 + $0x20] ss:$8 sps:$4 sm:$0xff]   ;;  %v844_v22 = vld [vmem:[%s1233_s0 + $0x34] ss:$8 sps:$4 sm:$0xff]   ;;  %v846_v23 = vld [vmem:[%s1233_s0 + $0xa4] ss:$8 sps:$4 sm:$0xff]  }
  0x22   :  { %v848_v24 = vld [vmem:[%s1233_s0 + $0x30] ss:$8 sps:$4 sm:$0xff]   ;;  %v849_v25 = vld [vmem:[%s1233_s0 + $0xa0] ss:$8 sps:$4 sm:$0xff]   ;;  %v850_v26 = vld [vmem:[%s1233_s0 + $0x44] ss:$8 sps:$4 sm:$0xff]  }
  0x23   :  { %v852_v27 = vld [vmem:[%s1233_s0 + $0xb4] ss:$8 sps:$4 sm:$0xff]   ;;  %v854_v28 = vld [vmem:[%s1233_s0 + $0x40] ss:$8 sps:$4 sm:$0xff]   ;;  %v855_v29 = vld [vmem:[%s1233_s0 + $0xb0] ss:$8 sps:$4 sm:$0xff]  }
  0x24   :  { %312 = vmatpush1.bf16.msra.mxu0 %v819_v3  ;;  %807 = vmatpush1.bf16.msra.mxu1 %v819_v3  ;;  %v856_v30 = vld [vmem:[%s1233_s0 + $0x54] ss:$8 sps:$4 sm:$0xff]   ;;  %v858_v31 = vld [vmem:[%s1233_s0 + $0xc4] ss:$8 sps:$4 sm:$0xff]   ;;  %v860_v33 = vld [vmem:[%s1233_s0 + $0x50] ss:$8 sps:$4 sm:$0xff]  }
  0x25   :  { %313 = vmatprep.subr.bf16.mxu0 %v913_v0  ;;  %799 = vmatprep.subr.bf16.mxu1 %v913_v0  ;;  %v68_v32 = vld [vmem:[%s1233_s0 + $0xd0] sm:$0xff]  ;;  %v861_v34 = vld [vmem:[%s1233_s0 + $0xc0] ss:$8 sps:$4 sm:$0xff]   ;;  %v862_v35 = vld [vmem:[%s1233_s0 + $0x64] ss:$8 sps:$4 sm:$0xff]  }
  0x26   :  { %v716_v36 = vcombine.high %v68_v32, %v68_v32  ;;  %v865_v37 = vld [vmem:[%s1233_s0 + $0x60] ss:$8 sps:$4 sm:$0xff]   ;;  %v715_v38 = vcombine.low %v68_v32, %v68_v32 }
  0x27   :  { %v1067_v39 = vld [vmem:[#allocation2] ss:$0 sm:$0xff]  ;;  %v1069_v41 = vld [vmem:[#allocation4] ss:$0 sm:$0xff] }
  0x28   :  { %314 = vmatpush1.bf16.msra.mxu0 %v820_v4  ;;  %808 = vmatpush1.bf16.msra.mxu1 %v820_v4 }
  0x29   :  { %315 = vmatprep.subr.bf16.mxu0 %v913_v0  ;;  %800 = vmatprep.subr.bf16.mxu1 %v913_v0 }
  0x2c   :  { %316 = vmatpush1.bf16.msra.mxu0 %v821_v7  ;;  %809 = vmatpush1.bf16.msra.mxu1 %v821_v7 }
  0x2d   :  { %317 = vmatprep.subr.bf16.mxu0 %v913_v0  ;;  %801 = vmatprep.subr.bf16.mxu1 %v913_v0 }
  0x30   :  { %318 = vmatpush1.bf16.msra.mxu0 %v822_v8  ;;  %810 = vmatpush1.bf16.msra.mxu1 %v822_v8 }
  0x31   :  { %319 = vmatprep.subr.bf16.mxu0 %v913_v0  ;;  %802 = vmatprep.subr.bf16.mxu1 %v913_v0 }
  0x34   :  { %320 = vmatpush1.bf16.msra.mxu0 %v823_v9  ;;  %811 = vmatpush1.bf16.msra.mxu1 %v823_v9 }
  0x35   :  { %321 = vmatprep.subr.bf16.mxu0 %v913_v0  ;;  %803 = vmatprep.subr.bf16.mxu1 %v913_v0 }
  0x38   :  { %322 = vmatpush1.bf16.msra.mxu0 %v824_v10  ;;  %812 = vmatpush1.bf16.msra.mxu1 %v824_v10 }
  0x39   :  { %337 = vmatprep.subr.bf16.mxu0 %v913_v0  ;;  %804 = vmatprep.subr.bf16.mxu1 %v913_v0 }
  0x3c   :  { %338 = vmatpush2.bf16.msra.mxu0 %v825_v11  ;;  %813 = vmatpush2.bf16.msra.mxu1 %v825_v11 }
  0x3f   :  { %340 = vmatmul.mubr.bf16.vlgmr.msra.gmra.mxu0 %v826_v12  ;;  %396 = vmatmul.mubr.bf16.vlgmr.msra.gmra.mxu1 %v829_v13 }
  0x40   :  { %727 = vmatprep.mubr.msk.bf16.mxu0 %vm264_vm0, %v832_v14  ;;  %734 = vmatprep.mubr.msk.bf16.mxu1 %vm264_vm0, %v834_v15 }
  0x47   :  { %348 = vmatmul.mubr.bf16.gmra.mxu0 %v836_v16  ;;  %404 = vmatmul.mubr.bf16.gmra.mxu1 %v837_v17 }
  0x48   :  { %728 = vmatprep.mubr.msk.bf16.mxu0 %vm264_vm0, %v838_v18  ;;  %735 = vmatprep.mubr.msk.bf16.mxu1 %vm264_vm0, %v840_v19 }
  0x4f   :  { %356 = vmatmul.mubr.bf16.gmra.mxu0 %v842_v20  ;;  %412 = vmatmul.mubr.bf16.gmra.mxu1 %v843_v21 }
  0x50   :  { %729 = vmatprep.mubr.msk.bf16.mxu0 %vm264_vm0, %v844_v22  ;;  %736 = vmatprep.mubr.msk.bf16.mxu1 %vm264_vm0, %v846_v23 }
  0x57   :  { %364 = vmatmul.mubr.bf16.gmra.mxu0 %v848_v24  ;;  %420 = vmatmul.mubr.bf16.gmra.mxu1 %v849_v25 }
  0x58   :  { %730 = vmatprep.mubr.msk.bf16.mxu0 %vm264_vm0, %v850_v26  ;;  %737 = vmatprep.mubr.msk.bf16.mxu1 %vm264_vm0, %v852_v27 }
  0x5f   :  { %372 = vmatmul.mubr.bf16.gmra.mxu0 %v854_v28  ;;  %428 = vmatmul.mubr.bf16.gmra.mxu1 %v855_v29 }
  0x60   :  { %731 = vmatprep.mubr.msk.bf16.mxu0 %vm264_vm0, %v856_v30  ;;  %738 = vmatprep.mubr.msk.bf16.mxu1 %vm264_vm0, %v858_v31 }
  0x67   :  { %380 = vmatmul.mubr.bf16.gmra.mxu0 %v860_v33  ;;  %436 = vmatmul.mubr.bf16.gmra.mxu1 %v861_v34 }
  0x68   :  { %732 = vmatprep.mubr.msk.bf16.mxu0 %vm264_vm0, %v862_v35  ;;  %739 = vmatprep.mubr.msk.bf16.mxu1 %vm264_vm0, %v716_v36 }
  0x6f   :  { %388 = vmatmul.mubr.bf16.gmra.mxu0 %v865_v37  ;;  %444 = vmatmul.mubr.bf16.gmra.mxu1 %v715_v38 }
  0xff   :  { %v341_v40 = vpop.f32.mrf.mxu0  ;;  %v397_v42 = vpop.f32.mrf.mxu1 }
 0x100   :  { %v458_v43 = vmul.f32 %v1067_v39, %v341_v40  ;;  %v472_v44 = vmul.f32 %v1067_v39, %v397_v42 }
 0x101   :  { %v343_v45 = vpop.f32.mrf.mxu0  ;;  %v399_v46 = vpop.f32.mrf.mxu1 }
 0x102   :  { %v492_v47 = vadd.f32 %v1069_v41, %v458_v43  ;;  %v506_v48 = vadd.f32 %v1069_v41, %v472_v44 }
 0x103   :  { %v344_v49 = vpop.f32.mrf.mxu0  ;;  %v400_v50 = vpop.f32.mrf.mxu1 }
 0x104   :  { %v519_v51 = vmax.f32 %v492_v47, 0.0  ;;  %v533_v52 = vmax.f32 %v506_v48, 0.0  ;;  %v459_v53 = vmul.f32 %v1067_v39, %v344_v49  ;;  %v473_v54 = vmul.f32 %v1067_v39, %v400_v50 }
 0x105   :  { %v346_v55 = vpop.f32.mrf.mxu0  ;;  %v402_v56 = vpop.f32.mrf.mxu1 }
 0x106   :  { %v769_v57 = vpack.c.bf16 %v519_v51, %v519_v51  ;;  %v783_v58 = vpack.c.bf16 %v533_v52, %v533_v52  ;;  %v493_v59 = vadd.f32 %v1069_v41, %v459_v53  ;;  %v507_v60 = vadd.f32 %v1069_v41, %v473_v54 }
 0x107   :  { %v349_v61 = vpop.f32.mrf.mxu0  ;;  %v405_v62 = vpop.f32.mrf.mxu1 }
 0x108   :  { %656 = vst.msk [vmem:[%s1237_s4] sm:$0xf] %vm655_vm1, %v769_v57  ;;  %670 = vst.msk [vmem:[%s1237_s4 + $0x38] sm:$0xf] %vm655_vm1, %v783_v58  ;;  %v520_v63 = vmax.f32 %v493_v59, 0.0  ;;  %v534_v0 = vmax.f32 %v507_v60, 0.0  ;;  %v460_v1 = vmul.f32 %v1067_v39, %v349_v61  ;;  %v474_v2 = vmul.f32 %v1067_v39, %v405_v62 }
 0x109   :  { %v351_v3 = vpop.f32.mrf.mxu0  ;;  %v407_v4 = vpop.f32.mrf.mxu1 }
 0x10a   :  { %v770_v5 = vpack.c.bf16 %v520_v63, %v520_v63  ;;  %v784_v6 = vpack.c.bf16 %v534_v0, %v534_v0  ;;  %v494_v7 = vadd.f32 %v1069_v41, %v460_v1  ;;  %v508_v8 = vadd.f32 %v1069_v41, %v474_v2 }
 0x10b   :  { %v352_v9 = vpop.f32.mrf.mxu0  ;;  %v408_v10 = vpop.f32.mrf.mxu1 }
 0x10c   :  { %657 = vst.msk [vmem:[%s1237_s4 + $0x4] sm:$0xf] %vm655_vm1, %v770_v5  ;;  %671 = vst.msk [vmem:[%s1237_s4 + $0x3c] sm:$0xf] %vm655_vm1, %v784_v6  ;;  %v521_v11 = vmax.f32 %v494_v7, 0.0  ;;  %v535_v12 = vmax.f32 %v508_v8, 0.0  ;;  %v461_v13 = vmul.f32 %v1067_v39, %v352_v9  ;;  %v475_v14 = vmul.f32 %v1067_v39, %v408_v10 }
 0x10d   :  { %v354_v15 = vpop.f32.mrf.mxu0  ;;  %v410_v16 = vpop.f32.mrf.mxu1 }
 0x10e   :  { %v771_v17 = vpack.c.bf16 %v521_v11, %v521_v11  ;;  %v785_v18 = vpack.c.bf16 %v535_v12, %v535_v12  ;;  %v495_v19 = vadd.f32 %v1069_v41, %v461_v13  ;;  %v509_v20 = vadd.f32 %v1069_v41, %v475_v14 }
 0x10f   :  { %v357_v21 = vpop.f32.mrf.mxu0  ;;  %v413_v22 = vpop.f32.mrf.mxu1 }
 0x110   :  { %658 = vst.msk [vmem:[%s1237_s4 + $0x8] sm:$0xf] %vm655_vm1, %v771_v17  ;;  %672 = vst.msk [vmem:[%s1237_s4 + $0x40] sm:$0xf] %vm655_vm1, %v785_v18  ;;  %v522_v23 = vmax.f32 %v495_v19, 0.0  ;;  %v536_v24 = vmax.f32 %v509_v20, 0.0  ;;  %v462_v25 = vmul.f32 %v1067_v39, %v357_v21  ;;  %v476_v26 = vmul.f32 %v1067_v39, %v413_v22 }
 0x111   :  { %v359_v27 = vpop.f32.mrf.mxu0  ;;  %v415_v28 = vpop.f32.mrf.mxu1 }
 0x112   :  { %v772_v29 = vpack.c.bf16 %v522_v23, %v522_v23  ;;  %v786_v30 = vpack.c.bf16 %v536_v24, %v536_v24  ;;  %v496_v31 = vadd.f32 %v1069_v41, %v462_v25  ;;  %v510_v32 = vadd.f32 %v1069_v41, %v476_v26 }
 0x113   :  { %v360_v33 = vpop.f32.mrf.mxu0  ;;  %v416_v34 = vpop.f32.mrf.mxu1 }
 0x114   :  { %659 = vst.msk [vmem:[%s1237_s4 + $0xc] sm:$0xf] %vm655_vm1, %v772_v29  ;;  %673 = vst.msk [vmem:[%s1237_s4 + $0x44] sm:$0xf] %vm655_vm1, %v786_v30  ;;  %v523_v35 = vmax.f32 %v496_v31, 0.0  ;;  %v537_v36 = vmax.f32 %v510_v32, 0.0  ;;  %v463_v37 = vmul.f32 %v1067_v39, %v360_v33  ;;  %v477_v38 = vmul.f32 %v1067_v39, %v416_v34 }
 0x115   :  { %v362_v40 = vpop.f32.mrf.mxu0  ;;  %v418_v42 = vpop.f32.mrf.mxu1 }
 0x116   :  { %v773_v43 = vpack.c.bf16 %v523_v35, %v523_v35  ;;  %v787_v44 = vpack.c.bf16 %v537_v36, %v537_v36  ;;  %v497_v45 = vadd.f32 %v1069_v41, %v463_v37  ;;  %v511_v46 = vadd.f32 %v1069_v41, %v477_v38 }
 0x117   :  { %v365_v47 = vpop.f32.mrf.mxu0  ;;  %v421_v48 = vpop.f32.mrf.mxu1 }
 0x118   :  { %660 = vst.msk [vmem:[%s1237_s4 + $0x10] sm:$0xf] %vm655_vm1, %v773_v43  ;;  %674 = vst.msk [vmem:[%s1237_s4 + $0x48] sm:$0xf] %vm655_vm1, %v787_v44  ;;  %v524_v49 = vmax.f32 %v497_v45, 0.0  ;;  %v538_v50 = vmax.f32 %v511_v46, 0.0  ;;  %v464_v51 = vmul.f32 %v1067_v39, %v365_v47  ;;  %v478_v52 = vmul.f32 %v1067_v39, %v421_v48 }
 0x119   :  { %v367_v53 = vpop.f32.mrf.mxu0  ;;  %v423_v54 = vpop.f32.mrf.mxu1 }
 0x11a   :  { %v774_v55 = vpack.c.bf16 %v524_v49, %v524_v49  ;;  %v788_v56 = vpack.c.bf16 %v538_v50, %v538_v50  ;;  %v498_v57 = vadd.f32 %v1069_v41, %v464_v51  ;;  %v512_v58 = vadd.f32 %v1069_v41, %v478_v52 }
 0x11b   :  { %v368_v59 = vpop.f32.mrf.mxu0  ;;  %v424_v60 = vpop.f32.mrf.mxu1 }
 0x11c   :  { %661 = vst.msk [vmem:[%s1237_s4 + $0x14] sm:$0xf] %vm655_vm1, %v774_v55  ;;  %675 = vst.msk [vmem:[%s1237_s4 + $0x4c] sm:$0xf] %vm655_vm1, %v788_v56  ;;  %v525_v61 = vmax.f32 %v498_v57, 0.0  ;;  %v539_v62 = vmax.f32 %v512_v58, 0.0  ;;  %v465_v63 = vmul.f32 %v1067_v39, %v368_v59  ;;  %v479_v0 = vmul.f32 %v1067_v39, %v424_v60 }
 0x11d   :  { %v370_v1 = vpop.f32.mrf.mxu0  ;;  %v426_v2 = vpop.f32.mrf.mxu1 }
 0x11e   :  { %v775_v3 = vpack.c.bf16 %v525_v61, %v525_v61  ;;  %v789_v4 = vpack.c.bf16 %v539_v62, %v539_v62  ;;  %v499_v5 = vadd.f32 %v1069_v41, %v465_v63  ;;  %v513_v6 = vadd.f32 %v1069_v41, %v479_v0 }
 0x11f   :  { %v373_v7 = vpop.f32.mrf.mxu0  ;;  %v429_v8 = vpop.f32.mrf.mxu1 }
 0x120   :  { %662 = vst.msk [vmem:[%s1237_s4 + $0x18] sm:$0xf] %vm655_vm1, %v775_v3  ;;  %676 = vst.msk [vmem:[%s1237_s4 + $0x50] sm:$0xf] %vm655_vm1, %v789_v4  ;;  %v526_v9 = vmax.f32 %v499_v5, 0.0  ;;  %v540_v10 = vmax.f32 %v513_v6, 0.0  ;;  %v466_v11 = vmul.f32 %v1067_v39, %v373_v7  ;;  %v480_v12 = vmul.f32 %v1067_v39, %v429_v8 }
 0x121   :  { %v375_v13 = vpop.f32.mrf.mxu0  ;;  %v431_v14 = vpop.f32.mrf.mxu1 }
 0x122   :  { %v776_v15 = vpack.c.bf16 %v526_v9, %v526_v9  ;;  %v790_v16 = vpack.c.bf16 %v540_v10, %v540_v10  ;;  %v500_v17 = vadd.f32 %v1069_v41, %v466_v11  ;;  %v514_v18 = vadd.f32 %v1069_v41, %v480_v12 }
 0x123   :  { %v376_v19 = vpop.f32.mrf.mxu0  ;;  %v432_v20 = vpop.f32.mrf.mxu1 }
 0x124   :  { %663 = vst.msk [vmem:[%s1237_s4 + $0x1c] sm:$0xf] %vm655_vm1, %v776_v15  ;;  %677 = vst.msk [vmem:[%s1237_s4 + $0x54] sm:$0xf] %vm655_vm1, %v790_v16  ;;  %v527_v21 = vmax.f32 %v500_v17, 0.0  ;;  %v541_v22 = vmax.f32 %v514_v18, 0.0  ;;  %v467_v23 = vmul.f32 %v1067_v39, %v376_v19  ;;  %v481_v24 = vmul.f32 %v1067_v39, %v432_v20 }
 0x125   :  { %v378_v25 = vpop.f32.mrf.mxu0  ;;  %v434_v26 = vpop.f32.mrf.mxu1 }
 0x126   :  { %v777_v27 = vpack.c.bf16 %v527_v21, %v527_v21  ;;  %v791_v28 = vpack.c.bf16 %v541_v22, %v541_v22  ;;  %v501_v29 = vadd.f32 %v1069_v41, %v467_v23  ;;  %v515_v30 = vadd.f32 %v1069_v41, %v481_v24 }
 0x127   :  { %v381_v31 = vpop.f32.mrf.mxu0  ;;  %v437_v32 = vpop.f32.mrf.mxu1 }
 0x128   :  { %664 = vst.msk [vmem:[%s1237_s4 + $0x20] sm:$0xf] %vm655_vm1, %v777_v27  ;;  %678 = vst.msk [vmem:[%s1237_s4 + $0x58] sm:$0xf] %vm655_vm1, %v791_v28  ;;  %v528_v33 = vmax.f32 %v501_v29, 0.0  ;;  %v542_v34 = vmax.f32 %v515_v30, 0.0  ;;  %v468_v35 = vmul.f32 %v1067_v39, %v381_v31  ;;  %v482_v36 = vmul.f32 %v1067_v39, %v437_v32 }
 0x129   :  { %v383_v37 = vpop.f32.mrf.mxu0  ;;  %v439_v38 = vpop.f32.mrf.mxu1 }
 0x12a   :  { %v778_v40 = vpack.c.bf16 %v528_v33, %v528_v33  ;;  %v792_v42 = vpack.c.bf16 %v542_v34, %v542_v34  ;;  %v502_v43 = vadd.f32 %v1069_v41, %v468_v35  ;;  %v516_v44 = vadd.f32 %v1069_v41, %v482_v36 }
 0x12b   :  { %v384_v45 = vpop.f32.mrf.mxu0  ;;  %v440_v46 = vpop.f32.mrf.mxu1 }
 0x12c   :  { %665 = vst.msk [vmem:[%s1237_s4 + $0x24] sm:$0xf] %vm655_vm1, %v778_v40  ;;  %679 = vst.msk [vmem:[%s1237_s4 + $0x5c] sm:$0xf] %vm655_vm1, %v792_v42  ;;  %v529_v47 = vmax.f32 %v502_v43, 0.0  ;;  %v543_v48 = vmax.f32 %v516_v44, 0.0  ;;  %v469_v49 = vmul.f32 %v1067_v39, %v384_v45  ;;  %v483_v50 = vmul.f32 %v1067_v39, %v440_v46 }
 0x12d   :  { %v386_v51 = vpop.f32.mrf.mxu0  ;;  %v442_v52 = vpop.f32.mrf.mxu1 }
 0x12e   :  { %v779_v53 = vpack.c.bf16 %v529_v47, %v529_v47  ;;  %v793_v54 = vpack.c.bf16 %v543_v48, %v543_v48  ;;  %v503_v55 = vadd.f32 %v1069_v41, %v469_v49  ;;  %v517_v56 = vadd.f32 %v1069_v41, %v483_v50 }
 0x12f   :  { %v389_v57 = vpop.f32.mrf.mxu0  ;;  %v445_v58 = vpop.f32.mrf.mxu1 }
 0x130   :  { %666 = vst.msk [vmem:[%s1237_s4 + $0x28] sm:$0xf] %vm655_vm1, %v779_v53  ;;  %680 = vst.msk [vmem:[%s1237_s4 + $0x60] sm:$0xf] %vm655_vm1, %v793_v54  ;;  %v530_v59 = vmax.f32 %v503_v55, 0.0  ;;  %v544_v60 = vmax.f32 %v517_v56, 0.0  ;;  %v470_v61 = vmul.f32 %v1067_v39, %v389_v57  ;;  %v484_v62 = vmul.f32 %v1067_v39, %v445_v58 }
 0x131   :  { %v391_v63 = vpop.f32.mrf.mxu0  ;;  %v447_v0 = vpop.f32.mrf.mxu1 }
 0x132   :  { %v780_v1 = vpack.c.bf16 %v530_v59, %v530_v59  ;;  %v794_v2 = vpack.c.bf16 %v544_v60, %v544_v60  ;;  %v504_v3 = vadd.f32 %v1069_v41, %v470_v61  ;;  %v518_v4 = vadd.f32 %v1069_v41, %v484_v62 }
 0x133   :  { %v392_v5 = vpop.f32.mrf.mxu0  ;;  %v448_v6 = vpop.f32.mrf.mxu1 }
 0x134   :  { %667 = vst.msk [vmem:[%s1237_s4 + $0x2c] sm:$0xf] %vm655_vm1, %v780_v1  ;;  %681 = vst.msk [vmem:[%s1237_s4 + $0x64] sm:$0xf] %vm655_vm1, %v794_v2  ;;  %v531_v7 = vmax.f32 %v504_v3, 0.0  ;;  %v545_v8 = vmax.f32 %v518_v4, 0.0  ;;  %v471_v9 = vmul.f32 %v1067_v39, %v392_v5 }
 0x135   :  { %v394_v10 = vpop.f32.mrf.mxu0  ;;  %v449_v11 = vpop.f32.mrf.mxu1 }
 0x136   :  { %v781_v12 = vpack.c.bf16 %v531_v7, %v531_v7  ;;  %v795_v13 = vpack.c.bf16 %v545_v8, %v545_v8  ;;  %v505_v14 = vadd.f32 %v1069_v41, %v471_v9 }
 0x138   :  { %668 = vst.msk [vmem:[%s1237_s4 + $0x30] sm:$0xf] %vm655_vm1, %v781_v12  ;;  %682 = vst.msk [vmem:[%s1237_s4 + $0x68] sm:$0xf] %vm655_vm1, %v795_v13  ;;  %v532_v15 = vmax.f32 %v505_v14, 0.0 }
 0x13a   :  { %v782_v16 = vpack.c.bf16 %v532_v15, %v532_v15 }
 0x13c   :  { %669 = vst.msk [vmem:[%s1237_s4 + $0x34] sm:$0xf] %vm655_vm1, %v782_v16 }
 0x13d   :  { %687 = vsyncpa [#allocation3], 1 }
 0x13e   :  { %688 = vsyncpa [#allocation5], 1 }

// kernel: audio_encoder_forward.8
= control target key start
LH: loop header
LB: loop body
LE: loop exit
PB: predicated region body
PF: predicated region fallthrough
CT: control target
= control target key end

     0   :  { %vm421_vm0 = vcmask 261120   ;;  %vm956_vm1 = vcmask 519168   ;;  %s1785_s1 = inlined_call_operand.vmem [shape: bf16[288,64], index: 1, kind: input, shape index: {}]   ;;  %s1786_s0 = inlined_call_operand.vmem [shape: bf16[216,288], index: 0, kind: input, shape index: {}]   ;;  %s1787_s2 = inlined_call_operand.vmem [shape: f32[1,64], index: 2, kind: input, shape index: {}]   ;;  %s1788_s3 = inlined_call_operand.vmem [shape: f32[1,64], index: 3, kind: input, shape index: {}]   ;;  %s1789_s4 = inlined_call_operand.vmem [shape: bf16[216,64], index: 4, kind: output, shape index: {}]  }
   0x1   :  { %v1282_v0 = vld [vmem:[%s1785_s1 + $0x78] sm:$0xff]   ;;  %v1284_v2 = vld [vmem:[%s1785_s1 + $0x70] sm:$0xff]   ;;  %v1286_v4 = vld [vmem:[%s1785_s1 + $0x68] sm:$0xff]  }
   0x2   :  { %v1283_v1 = vld [vmem:[%s1785_s1 + $0x38] sm:$0xff]   ;;  %1118 = vmatprep.subr.bf16.mxu0 %v1282_v0  ;;  %1266 = vmatprep.subr.bf16.mxu1 %v1282_v0  ;;  %v1285_v3 = vld [vmem:[%s1785_s1 + $0x30] sm:$0xff]   ;;  %v1287_v5 = vld [vmem:[%s1785_s1 + $0x28] sm:$0xff]  }
   0x3   :  { %1119 = vmatpush3.bf16.msra.mxu0 %v1283_v1  ;;  %1274 = vmatpush3.bf16.msra.mxu1 %v1283_v1  ;;  %v1288_v6 = vld [vmem:[%s1785_s1 + $0x60] sm:$0xff]   ;;  %v1290_v8 = vld [vmem:[%s1785_s1 + $0x58] sm:$0xff]   ;;  %v1292_v10 = vld [vmem:[%s1785_s1 + $0x50] sm:$0xff]  }
   0x4   :  { %1120 = vmatprep.subr.bf16.mxu0 %v1284_v2  ;;  %1267 = vmatprep.subr.bf16.mxu1 %v1284_v2  ;;  %v1289_v7 = vld [vmem:[%s1785_s1 + $0x20] sm:$0xff]   ;;  %v1291_v9 = vld [vmem:[%s1785_s1 + $0x18] sm:$0xff]   ;;  %v1293_v13 = vld [vmem:[%s1785_s1 + $0x10] sm:$0xff]  }
   0x5   :  { %v1300_v11 = vld [vmem:[%s1786_s0 + $0x4] ss:$12 sps:$4 sm:$0xff]   ;;  %v1303_v12 = vld [vmem:[%s1786_s0 + $0x10c] ss:$12 sps:$4 sm:$0xff]   ;;  %v1301_v20 = vld [vmem:[%s1786_s0 + $0x108] ss:$12 sps:$4 sm:$0xff]  }
   0x6   :  { %v1294_v14 = vld [vmem:[%s1785_s1 + $0x48] sm:$0xff]   ;;  %496 = vmatprep.mubr.bf16.mxu0 %v1300_v11  ;;  %584 = vmatprep.mubr.bf16.mxu1 %v1303_v12  ;;  %v1296_v16 = vld [vmem:[%s1785_s1 + $0x40] sm:$0xff]   ;;  %v70_v24 = vld [vmem:[%s1786_s0 + $0x138] sm:$0xff] }
   0x7   :  { %1121 = vmatpush3.bf16.msra.mxu0 %v1285_v3  ;;  %1275 = vmatpush3.bf16.msra.mxu1 %v1285_v3  ;;  %v1295_v15 = vld [vmem:[%s1785_s1 + $0x8] sm:$0xff]   ;;  %v1297_v17 = vld [vmem:[%s1785_s1] sm:$0xff]   ;;  %v1028_v28 = vcombine.high %v70_v24, %v70_v24  ;;  %v1314_v29 = vld [vmem:[%s1786_s0 + $0x30] ss:$12 sps:$4 sm:$0xff]   ;;  %v1027_v30 = vcombine.low %v70_v24, %v70_v24 }
   0x8   :  { %1122 = vmatprep.subr.bf16.mxu0 %v1286_v4  ;;  %1268 = vmatprep.subr.bf16.mxu1 %v1286_v4  ;;  %v1310_v18 = vld [vmem:[%s1785_s1 + $0x88] sm:$0xff]   ;;  %v1306_v22 = vld [vmem:[%s1786_s0 + $0x124] ss:$12 sps:$4 sm:$0xff]   ;;  %v1311_v27 = vld [vmem:[%s1786_s0 + $0x34] ss:$12 sps:$4 sm:$0xff]  }
   0x9   :  { %v1298_v19 = vld [vmem:[%s1786_s0] ss:$12 sps:$4 sm:$0xff]   ;;  %v1304_v21 = vld [vmem:[%s1786_s0 + $0x1c] ss:$12 sps:$4 sm:$0xff]   ;;  %v1308_v25 = vld [vmem:[%s1786_s0 + $0x18] ss:$12 sps:$4 sm:$0xff]  }
   0xa   :  { %v1316_v23 = vld [vmem:[%s1785_s1 + $0x80] sm:$0xff]   ;;  %v1317_v31 = vld [vmem:[%s1786_s0 + $0x4c] ss:$12 sps:$4 sm:$0xff]   ;;  %v1319_v32 = vld [vmem:[%s1786_s0 + $0x8] ss:$12 sps:$4 sm:$0xff]  }
   0xb   :  { %1123 = vmatpush3.bf16.msra.mxu0 %v1287_v5  ;;  %1276 = vmatpush3.bf16.msra.mxu1 %v1287_v5  ;;  %v1309_v26 = vld [vmem:[%s1786_s0 + $0x120] ss:$12 sps:$4 sm:$0xff]   ;;  %v1320_v33 = vld [vmem:[%s1786_s0 + $0x48] ss:$12 sps:$4 sm:$0xff]   ;;  %v1322_v35 = vld [vmem:[%s1786_s0 + $0x64] ss:$12 sps:$4 sm:$0xff]  }
   0xc   :  { %1124 = vmatprep.subr.bf16.mxu0 %v1288_v6  ;;  %1269 = vmatprep.subr.bf16.mxu1 %v1288_v6  ;;  %v1321_v34 = vld [vmem:[%s1786_s0 + $0x20] ss:$12 sps:$4 sm:$0xff]   ;;  %v1324_v36 = vld [vmem:[%s1786_s0 + $0x38] ss:$12 sps:$4 sm:$0xff]   ;;  %v1326_v38 = vld [vmem:[%s1786_s0 + $0x50] ss:$12 sps:$4 sm:$0xff]  }
   0xd   :  { %v1325_v37 = vld [vmem:[%s1786_s0 + $0x60] ss:$12 sps:$4 sm:$0xff]   ;;  %v1327_v39 = vld [vmem:[%s1786_s0 + $0x7c] ss:$12 sps:$4 sm:$0xff]   ;;  %v1330_v41 = vld [vmem:[%s1786_s0 + $0x78] ss:$12 sps:$4 sm:$0xff]  }
   0xe   :  { %v1329_v40 = vld [vmem:[%s1786_s0 + $0x68] ss:$12 sps:$4 sm:$0xff]   ;;  %v1331_v42 = vld [vmem:[%s1786_s0 + $0x80] ss:$12 sps:$4 sm:$0xff]   ;;  %v1334_v44 = vld [vmem:[%s1786_s0 + $0x98] ss:$12 sps:$4 sm:$0xff]  }
   0xf   :  { %1125 = vmatpush3.bf16.msra.mxu0 %v1289_v7  ;;  %1277 = vmatpush3.bf16.msra.mxu1 %v1289_v7  ;;  %v1332_v43 = vld [vmem:[%s1786_s0 + $0x94] ss:$12 sps:$4 sm:$0xff]   ;;  %v1335_v45 = vld [vmem:[%s1786_s0 + $0x90] ss:$12 sps:$4 sm:$0xff]   ;;  %v1337_v47 = vld [vmem:[%s1786_s0 + $0xac] ss:$12 sps:$4 sm:$0xff]  }
  0x10   :  { %1126 = vmatprep.subr.bf16.mxu0 %v1290_v8  ;;  %1270 = vmatprep.subr.bf16.mxu1 %v1290_v8  ;;  %v1336_v46 = vld [vmem:[%s1786_s0 + $0xb0] ss:$12 sps:$4 sm:$0xff]   ;;  %v1339_v48 = vld [vmem:[%s1786_s0 + $0xc8] ss:$12 sps:$4 sm:$0xff]   ;;  %v1341_v50 = vld [vmem:[%s1786_s0 + $0xe0] ss:$12 sps:$4 sm:$0xff]  }
  0x11   :  { %v1340_v49 = vld [vmem:[%s1786_s0 + $0xa8] ss:$12 sps:$4 sm:$0xff]   ;;  %v1342_v51 = vld [vmem:[%s1786_s0 + $0xc4] ss:$12 sps:$4 sm:$0xff]   ;;  %v1345_v53 = vld [vmem:[%s1786_s0 + $0xc0] ss:$12 sps:$4 sm:$0xff]  }
  0x12   :  { %v1344_v52 = vld [vmem:[%s1786_s0 + $0xf8] ss:$12 sps:$4 sm:$0xff]   ;;  %v1346_v54 = vld [vmem:[%s1786_s0 + $0x110] ss:$12 sps:$4 sm:$0xff]   ;;  %v1349_v56 = vld [vmem:[%s1786_s0 + $0x128] ss:$12 sps:$4 sm:$0xff]  }
  0x13   :  { %1127 = vmatpush3.bf16.msra.mxu0 %v1291_v9  ;;  %1278 = vmatpush3.bf16.msra.mxu1 %v1291_v9  ;;  %v1347_v55 = vld [vmem:[%s1786_s0 + $0xdc] ss:$12 sps:$4 sm:$0xff]   ;;  %v1350_v57 = vld [vmem:[%s1786_s0 + $0xd8] ss:$12 sps:$4 sm:$0xff]   ;;  %v1351_v58 = vld [vmem:[%s1786_s0 + $0x140] ss:$0 sps:$4 sm:$0xff]  }
  0x14   :  { %1128 = vmatprep.subr.bf16.mxu0 %v1292_v10  ;;  %1271 = vmatprep.subr.bf16.mxu1 %v1292_v10  ;;  %v1352_v59 = vld [vmem:[%s1786_s0 + $0xf4] ss:$12 sps:$4 sm:$0xff]   ;;  %v1354_v60 = vld [vmem:[%s1786_s0 + $0xf0] ss:$12 sps:$4 sm:$0xff]  }
  0x15   :  { %v1594_v24 = vld [vmem:[%s1787_s2] ss:$0 sm:$0xff] }
  0x17   :  { %1129 = vmatpush3.bf16.msra.mxu0 %v1293_v13  ;;  %1279 = vmatpush3.bf16.msra.mxu1 %v1293_v13 }
  0x18   :  { %1130 = vmatprep.subr.bf16.mxu0 %v1294_v14  ;;  %1272 = vmatprep.subr.bf16.mxu1 %v1294_v14 }
  0x1b   :  { %1131 = vmatpush3.bf16.msra.mxu0 %v1295_v15  ;;  %1280 = vmatpush3.bf16.msra.mxu1 %v1295_v15 }
  0x1c   :  { %1132 = vmatprep.subr.bf16.mxu0 %v1296_v16  ;;  %1273 = vmatprep.subr.bf16.mxu1 %v1296_v16 }
  0x1f   :  { %1133 = vmatpush3.bf16.msra.mxu0 %v1297_v17  ;;  %1281 = vmatpush3.bf16.msra.mxu1 %v1297_v17 }
  0x20   :  { %1234 = vmatprep.subr.bf16.mxu1 %v1310_v18 }
  0x22   :  { %497 = vmatmul.mubr.bf16.vlgmr.msra.gmra.mxu0 %v1298_v19  ;;  %585 = vmatmul.mubr.bf16.vlgmr.msra.gmra.mxu1 %v1301_v20 }
  0x23   :  { %504 = vmatprep.mubr.bf16.mxu0 %v1304_v21  ;;  %592 = vmatprep.mubr.bf16.mxu1 %v1306_v22 }
  0x24   :  { %1235 = vmatpush3.bf16.msra.mxu1 %v1310_v18 }
  0x25   :  { %1236 = vmatprep.subr.bf16.mxu1 %v1316_v23 }
  0x28   :  { %1237 = vmatpush3.bf16.msra.mxu1 %v1316_v23 }
  0x2a   :  { %505 = vmatmul.mubr.bf16.gmra.mxu0 %v1308_v25  ;;  %593 = vmatmul.mubr.bf16.gmra.mxu1 %v1309_v26 }
  0x2b   :  { %512 = vmatprep.mubr.bf16.mxu0 %v1311_v27  ;;  %600 = vmatprep.mubr.bf16.mxu1 %v1028_v28  ;;  %v1599_v27 = vld [vmem:[%s1788_s3] ss:$0 sm:$0xff] }
  0x32   :  { %513 = vmatmul.mubr.bf16.gmra.mxu0 %v1314_v29  ;;  %601 = vmatmul.mubr.bf16.gmra.mxu1 %v1027_v30 }
  0x33   :  { %520 = vmatprep.mubr.bf16.mxu0 %v1317_v31  ;;  %1238 = vmatprep.mubr.msk.bf16.mxu1 %vm421_vm0, %v1319_v32 }
  0x3a   :  { %521 = vmatmul.mubr.bf16.gmra.mxu0 %v1320_v33  ;;  %1239 = vmatmul.mubr.msk.bf16.vlgmr.msra.gmra.mxu1 %vm421_vm0, %v1321_v34 }
  0x3b   :  { %528 = vmatprep.mubr.bf16.mxu0 %v1322_v35  ;;  %1242 = vmatprep.mubr.msk.bf16.mxu1 %vm421_vm0, %v1324_v36 }
  0x42   :  { %529 = vmatmul.mubr.bf16.gmra.mxu0 %v1325_v37  ;;  %1243 = vmatmul.mubr.msk.bf16.gmra.mxu1 %vm421_vm0, %v1326_v38 }
  0x43   :  { %536 = vmatprep.mubr.bf16.mxu0 %v1327_v39  ;;  %1246 = vmatprep.mubr.msk.bf16.mxu1 %vm421_vm0, %v1329_v40 }
  0x4a   :  { %537 = vmatmul.mubr.bf16.gmra.mxu0 %v1330_v41  ;;  %1247 = vmatmul.mubr.msk.bf16.gmra.mxu1 %vm421_vm0, %v1331_v42 }
  0x4b   :  { %544 = vmatprep.mubr.bf16.mxu0 %v1332_v43  ;;  %1250 = vmatprep.mubr.msk.bf16.mxu1 %vm421_vm0, %v1334_v44 }
  0x52   :  { %545 = vmatmul.mubr.bf16.gmra.mxu0 %v1335_v45  ;;  %1251 = vmatmul.mubr.msk.bf16.gmra.mxu1 %vm421_vm0, %v1336_v46 }
  0x53   :  { %552 = vmatprep.mubr.bf16.mxu0 %v1337_v47  ;;  %1254 = vmatprep.mubr.msk.bf16.mxu1 %vm421_vm0, %v1339_v48 }
  0x5a   :  { %553 = vmatmul.mubr.bf16.gmra.mxu0 %v1340_v49  ;;  %1255 = vmatmul.mubr.msk.bf16.gmra.mxu1 %vm421_vm0, %v1341_v50 }
  0x5b   :  { %560 = vmatprep.mubr.bf16.mxu0 %v1342_v51  ;;  %1258 = vmatprep.mubr.msk.bf16.mxu1 %vm421_vm0, %v1344_v52 }
  0x62   :  { %561 = vmatmul.mubr.bf16.gmra.mxu0 %v1345_v53  ;;  %1259 = vmatmul.mubr.msk.bf16.gmra.mxu1 %vm421_vm0, %v1346_v54 }
  0x63   :  { %568 = vmatprep.mubr.bf16.mxu0 %v1347_v55  ;;  %1262 = vmatprep.mubr.msk.bf16.mxu1 %vm421_vm0, %v1349_v56 }
  0x6a   :  { %569 = vmatmul.mubr.bf16.gmra.mxu0 %v1350_v57  ;;  %1263 = vmatmul.mubr.msk.bf16.gmra.mxu1 %vm421_vm0, %v1351_v58 }
  0x6b   :  { %576 = vmatprep.mubr.bf16.mxu0 %v1352_v59 }
  0x72   :  { %577 = vmatmul.mubr.bf16.gmra.mxu0 %v1354_v60 }
  0xe2   :  { %v1134_v61 = vpop.f32.mrf.mxu0  ;;  %v1571_v62 = vpop.f32.mrf.mxu1 }
  0xe4   :  { %v1135_v63 = vpop.f32.mrf.mxu0  ;;  %v1573_v0 = vpop.f32.mrf.mxu1 }
  0xe5   :  { %v1136_v25 = vadd.f32 %v1135_v63, %v1134_v61 }
  0xe6   :  { %v1137_v1 = vpop.f32.mrf.mxu0  ;;  %v1575_v2 = vpop.f32.mrf.mxu1 }
  0xe8   :  { %v1138_v3 = vpop.f32.mrf.mxu0  ;;  %v1577_v4 = vpop.f32.mrf.mxu1 }
  0xe9   :  { %v1139_v38 = vadd.f32 %v1138_v3, %v1137_v1 }
  0xea   :  { %v1140_v5 = vpop.f32.mrf.mxu0  ;;  %v1579_v6 = vpop.f32.mrf.mxu1 }
  0xec   :  { %v1141_v7 = vpop.f32.mrf.mxu0  ;;  %v1581_v8 = vpop.f32.mrf.mxu1 }
  0xed   :  { %v1142_v21 = vadd.f32 %v1141_v7, %v1140_v5 }
  0xee   :  { %v1143_v9 = vpop.f32.mrf.mxu0  ;;  %v1583_v10 = vpop.f32.mrf.mxu1 }
  0xf0   :  { %v1144_v11 = vpop.f32.mrf.mxu0  ;;  %v1585_v12 = vpop.f32.mrf.mxu1 }
  0xf1   :  { %v1145_v30 = vadd.f32 %v1144_v11, %v1143_v9 }
  0xf2   :  { %v1146_v13 = vpop.f32.mrf.mxu0  ;;  %v1587_v14 = vpop.f32.mrf.mxu1 }
  0xf4   :  { %v1147_v15 = vpop.f32.mrf.mxu0  ;;  %v1589_v16 = vpop.f32.mrf.mxu1 }
  0xf5   :  { %v1148_v52 = vadd.f32 %v1147_v15, %v1146_v13 }
  0xf6   :  { %v1149_v17 = vpop.f32.mrf.mxu0  ;;  %v1215_v18 = vpop.f32.mrf.mxu1 }
  0xf8   :  { %v1150_v19 = vpop.f32.mrf.mxu0  ;;  %v1216_v20 = vpop.f32.mrf.mxu1 }
  0xf9   :  { %v1151_v3 = vadd.f32 %v1150_v19, %v1149_v17 }
  0xfa   :  { %v1152_v22 = vpop.f32.mrf.mxu0  ;;  %v1240_v23 = vpop.f32.mrf.mxu1 }
  0xfb   :  { %v651_v26 = vadd.f32 %v1240_v23, %v1142_v21 }
  0xfc   :  { %v1153_v28 = vpop.f32.mrf.mxu0  ;;  %v642_v29 = vpop.f32.mrf.mxu1 }
  0xfd   :  { %v761_v31 = vmul.f32 %v1594_v24, %v651_v26  ;;  %v643_v32 = vadd.f32 %v1136_v25, %v642_v29  ;;  %v1154_v42 = vadd.f32 %v1153_v28, %v1152_v22 }
  0xfe   :  { %v1155_v33 = vpop.f32.mrf.mxu0  ;;  %v1241_v34 = vpop.f32.mrf.mxu1 }
  0xff   :  { %v795_v35 = vadd.f32 %v1599_v27, %v761_v31  ;;  %v759_v36 = vmul.f32 %v1594_v24, %v643_v32  ;;  %v654_v37 = vadd.f32 %v1241_v34, %v1145_v30 }
 0x100   :  { %v1156_v39 = vpop.f32.mrf.mxu0  ;;  %v645_v40 = vpop.f32.mrf.mxu1 }
 0x101   :  { %v822_v41 = vmax.f32 %v795_v35, 0.0  ;;  %v793_v43 = vadd.f32 %v1599_v27, %v759_v36  ;;  %v762_v44 = vmul.f32 %v1594_v24, %v654_v37  ;;  %v646_v45 = vadd.f32 %v1139_v38, %v645_v40 }
 0x102   :  { %v1158_v46 = vpop.f32.mrf.mxu0  ;;  %v1244_v47 = vpop.f32.mrf.mxu1  ;;  %v1157_v58 = vadd.f32 %v1156_v39, %v1155_v33 }
 0x103   :  { %v1093_v48 = vpack.c.bf16 %v822_v41, %v822_v41  ;;  %v820_v49 = vmax.f32 %v793_v43, 0.0  ;;  %v796_v50 = vadd.f32 %v1599_v27, %v762_v44  ;;  %v667_v51 = vadd.f32 %v1244_v47, %v1154_v42 }
 0x104   :  { %v760_v53 = vmul.f32 %v1594_v24, %v646_v45  ;;  %v1159_v54 = vpop.f32.mrf.mxu0  ;;  %v658_v55 = vpop.f32.mrf.mxu1 }
 0x105   :  { %959 = vst.msk [vmem:[%s1789_s4 + $0x8] sm:$0xf] %vm956_vm1, %v1093_v48  ;;  %v1091_v56 = vpack.c.bf16 %v820_v49, %v820_v49  ;;  %v823_v57 = vmax.f32 %v796_v50, 0.0  ;;  %v765_v59 = vmul.f32 %v1594_v24, %v667_v51  ;;  %v659_v61 = vadd.f32 %v1148_v52, %v658_v55 }
 0x106   :  { %v794_v60 = vadd.f32 %v1599_v27, %v760_v53  ;;  %v1161_v63 = vpop.f32.mrf.mxu0  ;;  %v1245_v1 = vpop.f32.mrf.mxu1  ;;  %v1160_v28 = vadd.f32 %v1159_v54, %v1158_v46 }
 0x107   :  { %957 = vst.msk [vmem:[%s1789_s4] sm:$0xf] %vm956_vm1, %v1091_v56  ;;  %v1094_v5 = vpack.c.bf16 %v823_v57, %v823_v57  ;;  %v799_v7 = vadd.f32 %v1599_v27, %v765_v59  ;;  %v670_v9 = vadd.f32 %v1245_v1, %v1157_v58  ;;  %v763_v13 = vmul.f32 %v1594_v24, %v659_v61 }
 0x108   :  { %v821_v11 = vmax.f32 %v794_v60, 0.0  ;;  %v1162_v15 = vpop.f32.mrf.mxu0  ;;  %v661_v18 = vpop.f32.mrf.mxu1 }
 0x109   :  { %960 = vst.msk [vmem:[%s1789_s4 + $0xc] sm:$0xf] %vm956_vm1, %v1094_v5  ;;  %v826_v17 = vmax.f32 %v799_v7, 0.0  ;;  %v766_v19 = vmul.f32 %v1594_v24, %v670_v9  ;;  %v662_v20 = vadd.f32 %v1151_v3, %v661_v18  ;;  %v797_v22 = vadd.f32 %v1599_v27, %v763_v13 }
 0x10a   :  { %v1092_v21 = vpack.c.bf16 %v821_v11, %v821_v11  ;;  %v1164_v23 = vpop.f32.mrf.mxu0  ;;  %v1248_v25 = vpop.f32.mrf.mxu1  ;;  %v1163_v45 = vadd.f32 %v1162_v15, %v1161_v63 }
 0x10b   :  { %v1097_v26 = vpack.c.bf16 %v826_v17, %v826_v17  ;;  %v800_v29 = vadd.f32 %v1599_v27, %v766_v19  ;;  %v764_v30 = vmul.f32 %v1594_v24, %v662_v20  ;;  %v824_v31 = vmax.f32 %v797_v22, 0.0 }
 0x10c   :  { %958 = vst.msk [vmem:[%s1789_s4 + $0x4] sm:$0xf] %vm956_vm1, %v1092_v21  ;;  %v1165_v32 = vpop.f32.mrf.mxu0  ;;  %v674_v33 = vpop.f32.mrf.mxu1 }
 0x10d   :  { %963 = vst.msk [vmem:[%s1789_s4 + $0x18] sm:$0xf] %vm956_vm1, %v1097_v26  ;;  %v827_v34 = vmax.f32 %v800_v29, 0.0  ;;  %v798_v35 = vadd.f32 %v1599_v27, %v764_v30  ;;  %v1166_v36 = vadd.f32 %v1165_v32, %v1164_v23  ;;  %v675_v37 = vadd.f32 %v1160_v28, %v674_v33 }
 0x10e   :  { %v1095_v38 = vpack.c.bf16 %v824_v31, %v824_v31  ;;  %v1167_v39 = vpop.f32.mrf.mxu0  ;;  %v1249_v40 = vpop.f32.mrf.mxu1 }
 0x10f   :  { %v1098_v41 = vpack.c.bf16 %v827_v34, %v827_v34  ;;  %v825_v42 = vmax.f32 %v798_v35, 0.0  ;;  %v683_v43 = vadd.f32 %v1248_v25, %v1166_v36  ;;  %v767_v44 = vmul.f32 %v1594_v24, %v675_v37 }
 0x110   :  { %961 = vst.msk [vmem:[%s1789_s4 + $0x10] sm:$0xf] %vm956_vm1, %v1095_v38  ;;  %v1168_v46 = vpop.f32.mrf.mxu0  ;;  %v677_v47 = vpop.f32.mrf.mxu1 }
 0x111   :  { %964 = vst.msk [vmem:[%s1789_s4 + $0x1c] sm:$0xf] %vm956_vm1, %v1098_v41  ;;  %v1096_v48 = vpack.c.bf16 %v825_v42, %v825_v42  ;;  %v769_v49 = vmul.f32 %v1594_v24, %v683_v43  ;;  %v801_v50 = vadd.f32 %v1599_v27, %v767_v44  ;;  %v1169_v51 = vadd.f32 %v1168_v46, %v1167_v39 }
 0x112   :  { %v678_v52 = vadd.f32 %v1163_v45, %v677_v47  ;;  %v1170_v53 = vpop.f32.mrf.mxu0  ;;  %v1252_v54 = vpop.f32.mrf.mxu1  ;;  %v1202_v43 = vadd.f32 %v1573_v0, %v1571_v62 }
 0x113   :  { %962 = vst.msk [vmem:[%s1789_s4 + $0x14] sm:$0xf] %vm956_vm1, %v1096_v48  ;;  %v803_v55 = vadd.f32 %v1599_v27, %v769_v49  ;;  %v828_v56 = vmax.f32 %v801_v50, 0.0  ;;  %v686_v57 = vadd.f32 %v1249_v40, %v1169_v51 }
 0x114   :  { %v768_v58 = vmul.f32 %v1594_v24, %v678_v52  ;;  %v1171_v59 = vpop.f32.mrf.mxu0  ;;  %v690_v60 = vpop.f32.mrf.mxu1 }
 0x115   :  { %v830_v61 = vmax.f32 %v803_v55, 0.0  ;;  %v1099_v63 = vpack.c.bf16 %v828_v56, %v828_v56  ;;  %v770_v1 = vmul.f32 %v1594_v24, %v686_v57  ;;  %v1172_v3 = vadd.f32 %v1171_v59, %v1170_v53 }
 0x116   :  { %v802_v5 = vadd.f32 %v1599_v27, %v768_v58  ;;  %v1173_v7 = vpop.f32.mrf.mxu0  ;;  %v1253_v9 = vpop.f32.mrf.mxu1  ;;  %v1205_v57 = vadd.f32 %v1577_v4, %v1575_v2 }
 0x117   :  { %v1101_v11 = vpack.c.bf16 %v830_v61, %v830_v61  ;;  %965 = vst.msk [vmem:[%s1789_s4 + $0x20] sm:$0xf] %vm956_vm1, %v1099_v63  ;;  %v804_v13 = vadd.f32 %v1599_v27, %v770_v1  ;;  %v691_v15 = vadd.f32 %v1172_v3, %v690_v60 }
 0x118   :  { %v829_v18 = vmax.f32 %v802_v5, 0.0  ;;  %v1174_v17 = vpop.f32.mrf.mxu0  ;;  %v693_v19 = vpop.f32.mrf.mxu1 }
 0x119   :  { %967 = vst.msk [vmem:[%s1789_s4 + $0x28] sm:$0xf] %vm956_vm1, %v1101_v11  ;;  %v831_v20 = vmax.f32 %v804_v13, 0.0  ;;  %v771_v21 = vmul.f32 %v1594_v24, %v691_v15  ;;  %v1175_v22 = vadd.f32 %v1174_v17, %v1173_v7  ;;  %v1208_v13 = vadd.f32 %v1581_v8, %v1579_v6 }
 0x11a   :  { %v1100_v23 = vpack.c.bf16 %v829_v18, %v829_v18  ;;  %v1176_v25 = vpop.f32.mrf.mxu0  ;;  %v1666_v26 = vpop.f32.mrf.mxu1  ;;  %v1214_v15 = vadd.f32 %v1589_v16, %v1587_v14 }
 0x11b   :  { %v1102_v28 = vpack.c.bf16 %v831_v20, %v831_v20  ;;  %v805_v29 = vadd.f32 %v1599_v27, %v771_v21  ;;  %v694_v30 = vadd.f32 %v1175_v22, %v693_v19 }
 0x11c   :  { %966 = vst.msk [vmem:[%s1789_s4 + $0x24] sm:$0xf] %vm956_vm1, %v1100_v23  ;;  %v1177_v31 = vpop.f32.mrf.mxu0  ;;  %v706_v32 = vpop.f32.mrf.mxu1 }
 0x11d   :  { %968 = vst.msk [vmem:[%s1789_s4 + $0x2c] sm:$0xf] %vm956_vm1, %v1102_v28  ;;  %v832_v33 = vmax.f32 %v805_v29, 0.0  ;;  %v772_v34 = vmul.f32 %v1594_v24, %v694_v30  ;;  %v1178_v35 = vadd.f32 %v1177_v31, %v1176_v25 }
 0x11e   :  { %v1179_v36 = vpop.f32.mrf.mxu0  ;;  %v1678_v37 = vpop.f32.mrf.mxu1 }
 0x11f   :  { %v1103_v38 = vpack.c.bf16 %v832_v33, %v832_v33  ;;  %v806_v39 = vadd.f32 %v1599_v27, %v772_v34  ;;  %v699_v40 = vadd.f32 %v1252_v54, %v1178_v35 }
 0x120   :  { %v1180_v41 = vpop.f32.mrf.mxu0  ;;  %v709_v42 = vpop.f32.mrf.mxu1 }
 0x121   :  { %969 = vst.msk [vmem:[%s1789_s4 + $0x30] sm:$0xf] %vm956_vm1, %v1103_v38  ;;  %v833_v44 = vmax.f32 %v806_v39, 0.0  ;;  %v773_v45 = vmul.f32 %v1594_v24, %v699_v40  ;;  %v1181_v46 = vadd.f32 %v1180_v41, %v1179_v36  ;;  %v1211_v40 = vadd.f32 %v1585_v12, %v1583_v10 }
 0x122   :  { %v1182_v47 = vpop.f32.mrf.mxu0  ;;  %v1260_v48 = vpop.f32.mrf.mxu1 }
 0x123   :  { %v1104_v49 = vpack.c.bf16 %v833_v44, %v833_v44  ;;  %v807_v50 = vadd.f32 %v1599_v27, %v773_v45  ;;  %v702_v51 = vadd.f32 %v1253_v9, %v1181_v46  ;;  %v731_v52 = vadd.f32 %v1260_v48, %v1202_v43 }
 0x124   :  { %v1183_v53 = vpop.f32.mrf.mxu0  ;;  %v1689_v54 = vpop.f32.mrf.mxu1 }
 0x125   :  { %970 = vst.msk [vmem:[%s1789_s4 + $0x34] sm:$0xf] %vm956_vm1, %v1104_v49  ;;  %v834_v62 = vmax.f32 %v807_v50, 0.0  ;;  %v774_v0 = vmul.f32 %v1594_v24, %v702_v51  ;;  %v781_v55 = vmul.f32 %v1594_v24, %v731_v52  ;;  %v1184_v56 = vadd.f32 %v1183_v53, %v1182_v47 }
 0x126   :  { %v1185_v58 = vpop.f32.mrf.mxu0  ;;  %v1261_v59 = vpop.f32.mrf.mxu1 }
 0x127   :  { %v1105_v60 = vpack.c.bf16 %v834_v62, %v834_v62  ;;  %v808_v61 = vadd.f32 %v1599_v27, %v774_v0  ;;  %v815_v63 = vadd.f32 %v1599_v27, %v781_v55  ;;  %v707_v1 = vadd.f32 %v1184_v56, %v706_v32 }
 0x128   :  { %v734_v3 = vadd.f32 %v1261_v59, %v1205_v57  ;;  %v1186_v5 = vpop.f32.mrf.mxu0  ;;  %v1701_v7 = vpop.f32.mrf.mxu1 }
 0x129   :  { %971 = vst.msk [vmem:[%s1789_s4 + $0x38] sm:$0xf] %vm956_vm1, %v1105_v60  ;;  %v835_v9 = vmax.f32 %v808_v61, 0.0  ;;  %v842_v11 = vmax.f32 %v815_v63, 0.0  ;;  %v775_v2 = vmul.f32 %v1594_v24, %v707_v1  ;;  %v1187_v4 = vadd.f32 %v1186_v5, %v1185_v58 }
 0x12a   :  { %v782_v18 = vmul.f32 %v1594_v24, %v734_v3  ;;  %v1188_v17 = vpop.f32.mrf.mxu0  ;;  %v1264_v19 = vpop.f32.mrf.mxu1 }
 0x12b   :  { %v1106_v20 = vpack.c.bf16 %v835_v9, %v835_v9  ;;  %v1113_v21 = vpack.c.bf16 %v842_v11, %v842_v11  ;;  %v809_v22 = vadd.f32 %v1599_v27, %v775_v2  ;;  %v710_v23 = vadd.f32 %v1187_v4, %v709_v42 }
 0x12c   :  { %v816_v25 = vadd.f32 %v1599_v27, %v782_v18  ;;  %v747_v28 = vadd.f32 %v1264_v19, %v1214_v15  ;;  %v1189_v29 = vpop.f32.mrf.mxu0  ;;  %v738_v30 = vpop.f32.mrf.mxu1 }
 0x12d   :  { %972 = vst.msk [vmem:[%s1789_s4 + $0x3c] sm:$0xf] %vm956_vm1, %v1106_v20  ;;  %979 = vst.msk [vmem:[%s1789_s4 + $0x58] sm:$0xf] %vm956_vm1, %v1113_v21  ;;  %v836_v6 = vmax.f32 %v809_v22, 0.0  ;;  %v776_v8 = vmul.f32 %v1594_v24, %v710_v23  ;;  %v1190_v14 = vadd.f32 %v1189_v29, %v1188_v17  ;;  %v739_v16 = vadd.f32 %v1208_v13, %v738_v30 }
 0x12e   :  { %v843_v31 = vmax.f32 %v816_v25, 0.0  ;;  %v785_v32 = vmul.f32 %v1594_v24, %v747_v28  ;;  %v1191_v33 = vpop.f32.mrf.mxu0  ;;  %v1265_v34 = vpop.f32.mrf.mxu1 }
 0x12f   :  { %v1107_v35 = vpack.c.bf16 %v836_v6, %v836_v6  ;;  %v810_v36 = vadd.f32 %v1599_v27, %v776_v8  ;;  %v715_v38 = vadd.f32 %v1666_v26, %v1190_v14  ;;  %v783_v39 = vmul.f32 %v1594_v24, %v739_v16 }
 0x130   :  { %v1114_v41 = vpack.c.bf16 %v843_v31, %v843_v31  ;;  %v819_v42 = vadd.f32 %v1599_v27, %v785_v32  ;;  %v1192_v43 = vpop.f32.mrf.mxu0  ;;  %v741_v44 = vpop.f32.mrf.mxu1 }
 0x131   :  { %973 = vst.msk [vmem:[%s1789_s4 + $0x40] sm:$0xf] %vm956_vm1, %v1107_v35  ;;  %v837_v45 = vmax.f32 %v810_v36, 0.0  ;;  %v777_v46 = vmul.f32 %v1594_v24, %v715_v38  ;;  %v817_v26 = vadd.f32 %v1599_v27, %v783_v39  ;;  %v1193_v47 = vadd.f32 %v1192_v43, %v1191_v33 }
 0x132   :  { %980 = vst.msk [vmem:[%s1789_s4 + $0x5c] sm:$0xf] %vm956_vm1, %v1114_v41  ;;  %v846_v10 = vmax.f32 %v819_v42, 0.0  ;;  %v742_v12 = vadd.f32 %v1211_v40, %v741_v44  ;;  %v1194_v48 = vpop.f32.mrf.mxu0 }
 0x133   :  { %v1108_v49 = vpack.c.bf16 %v837_v45, %v837_v45  ;;  %v811_v50 = vadd.f32 %v1599_v27, %v777_v46  ;;  %v844_v51 = vmax.f32 %v817_v26, 0.0  ;;  %v718_v52 = vadd.f32 %v1678_v37, %v1193_v47 }
 0x134   :  { %v1117_v53 = vpack.c.bf16 %v846_v10, %v846_v10  ;;  %v784_v62 = vmul.f32 %v1594_v24, %v742_v12  ;;  %v1195_v0 = vpop.f32.mrf.mxu0 }
 0x135   :  { %974 = vst.msk [vmem:[%s1789_s4 + $0x44] sm:$0xf] %vm956_vm1, %v1108_v49  ;;  %v838_v55 = vmax.f32 %v811_v50, 0.0  ;;  %v1115_v56 = vpack.c.bf16 %v844_v51, %v844_v51  ;;  %v778_v57 = vmul.f32 %v1594_v24, %v718_v52  ;;  %v1196_v58 = vadd.f32 %v1195_v0, %v1194_v48 }
 0x136   :  { %983 = vst.msk [vmem:[%s1789_s4 + $0x68] sm:$0xf] %vm956_vm1, %v1117_v53  ;;  %v818_v37 = vadd.f32 %v1599_v27, %v784_v62  ;;  %v1197_v59 = vpop.f32.mrf.mxu0 }
 0x137   :  { %v1109_v60 = vpack.c.bf16 %v838_v55, %v838_v55  ;;  %981 = vst.msk [vmem:[%s1789_s4 + $0x60] sm:$0xf] %vm956_vm1, %v1115_v56  ;;  %v812_v61 = vadd.f32 %v1599_v27, %v778_v57  ;;  %v723_v63 = vadd.f32 %v1196_v58, %v1689_v54 }
 0x138   :  { %v845_v1 = vmax.f32 %v818_v37, 0.0  ;;  %v1198_v3 = vpop.f32.mrf.mxu0 }
 0x139   :  { %975 = vst.msk [vmem:[%s1789_s4 + $0x48] sm:$0xf] %vm956_vm1, %v1109_v60  ;;  %v839_v5 = vmax.f32 %v812_v61, 0.0  ;;  %v779_v9 = vmul.f32 %v1594_v24, %v723_v63  ;;  %v1199_v11 = vadd.f32 %v1198_v3, %v1197_v59 }
 0x13a   :  { %v1116_v2 = vpack.c.bf16 %v845_v1, %v845_v1 }
 0x13b   :  { %v1110_v4 = vpack.c.bf16 %v839_v5, %v839_v5  ;;  %v813_v13 = vadd.f32 %v1599_v27, %v779_v9  ;;  %v726_v15 = vadd.f32 %v1199_v11, %v1701_v7 }
 0x13c   :  { %982 = vst.msk [vmem:[%s1789_s4 + $0x64] sm:$0xf] %vm956_vm1, %v1116_v2 }
 0x13d   :  { %976 = vst.msk [vmem:[%s1789_s4 + $0x4c] sm:$0xf] %vm956_vm1, %v1110_v4  ;;  %v840_v54 = vmax.f32 %v813_v13, 0.0  ;;  %v780_v18 = vmul.f32 %v1594_v24, %v726_v15 }
 0x13f   :  { %v1111_v17 = vpack.c.bf16 %v840_v54, %v840_v54  ;;  %v814_v19 = vadd.f32 %v1599_v27, %v780_v18 }
 0x141   :  { %977 = vst.msk [vmem:[%s1789_s4 + $0x50] sm:$0xf] %vm956_vm1, %v1111_v17  ;;  %v841_v7 = vmax.f32 %v814_v19, 0.0 }
 0x143   :  { %v1112_v20 = vpack.c.bf16 %v841_v7, %v841_v7 }
 0x145   :  { %978 = vst.msk [vmem:[%s1789_s4 + $0x54] sm:$0xf] %vm956_vm1, %v1112_v20 }

// kernel: audio_encoder_forward.9
= control target key start
LH: loop header
LB: loop body
LE: loop exit
PB: predicated region body
PF: predicated region fallthrough
CT: control target
= control target key end

     0   :  { %vm729_vm0 = vcmask 523264   ;;  %s2609_s1 = inlined_call_operand.vmem [shape: bf16[576,128], index: 1, kind: input, shape index: {}]   ;;  %s2610_s0 = inlined_call_operand.vmem [shape: bf16[216,576], index: 0, kind: input, shape index: {}]   ;;  %s2611_s2 = inlined_call_operand.vmem [shape: f32[1,128], index: 2, kind: input, shape index: {}]   ;;  %s2612_s3 = inlined_call_operand.vmem [shape: f32[1,128], index: 3, kind: input, shape index: {}]   ;;  %s2613_s4 = inlined_call_operand.vmem [shape: bf16[216,128], index: 4, kind: output, shape index: {}]  }
   0x1   :  { %v1954_v0 = vld [vmem:[%s2609_s1 + $0x78] sm:$0xff]   ;;  %v1958_v4 = vld [vmem:[%s2609_s1 + $0x70] sm:$0xff]   ;;  %v1962_v8 = vld [vmem:[%s2609_s1 + $0x68] sm:$0xff]  }
   0x2   :  { %v1955_v1 = vld [vmem:[%s2609_s1 + $0xf8] sm:$0xff]   ;;  %1692 = vmatprep.subr.bf16.mxu0 %v1954_v0  ;;  %v1959_v5 = vld [vmem:[%s2609_s1 + $0xf0] sm:$0xff]   ;;  %v1963_v9 = vld [vmem:[%s2609_s1 + $0xe8] sm:$0xff]  }
   0x3   :  { %v1956_v2 = vld [vmem:[%s2609_s1 + $0x38] sm:$0xff]   ;;  %1792 = vmatprep.subr.bf16.mxu1 %v1955_v1  ;;  %v1960_v6 = vld [vmem:[%s2609_s1 + $0x30] sm:$0xff]   ;;  %v1964_v10 = vld [vmem:[%s2609_s1 + $0x28] sm:$0xff]  }
   0x4   :  { %v1957_v3 = vld [vmem:[%s2609_s1 + $0xb8] sm:$0xff]   ;;  %1693 = vmatpush3.bf16.msra.mxu0 %v1956_v2  ;;  %v1961_v7 = vld [vmem:[%s2609_s1 + $0xb0] sm:$0xff]   ;;  %v1965_v11 = vld [vmem:[%s2609_s1 + $0xa8] sm:$0xff]  }
   0x5   :  { %1793 = vmatpush3.bf16.msra.mxu1 %v1957_v3  ;;  %1694 = vmatprep.subr.bf16.mxu0 %v1958_v4  ;;  %v1966_v12 = vld [vmem:[%s2609_s1 + $0x60] sm:$0xff]   ;;  %v1970_v16 = vld [vmem:[%s2609_s1 + $0x58] sm:$0xff]   ;;  %v1974_v20 = vld [vmem:[%s2609_s1 + $0x50] sm:$0xff]  }
   0x6   :  { %1794 = vmatprep.subr.bf16.mxu1 %v1959_v5  ;;  %v1967_v13 = vld [vmem:[%s2609_s1 + $0xe0] sm:$0xff]   ;;  %v1971_v17 = vld [vmem:[%s2609_s1 + $0xd8] sm:$0xff]   ;;  %v1975_v21 = vld [vmem:[%s2609_s1 + $0xd0] sm:$0xff]  }
   0x7   :  { %v1968_v14 = vld [vmem:[%s2609_s1 + $0x20] sm:$0xff]   ;;  %v1972_v18 = vld [vmem:[%s2609_s1 + $0x18] sm:$0xff]   ;;  %v1976_v22 = vld [vmem:[%s2609_s1 + $0x10] sm:$0xff]  }
   0x8   :  { %1695 = vmatpush3.bf16.msra.mxu0 %v1960_v6  ;;  %v1969_v15 = vld [vmem:[%s2609_s1 + $0xa0] sm:$0xff]   ;;  %v1973_v19 = vld [vmem:[%s2609_s1 + $0x98] sm:$0xff]   ;;  %v1977_v23 = vld [vmem:[%s2609_s1 + $0x90] sm:$0xff]  }
   0x9   :  { %1795 = vmatpush3.bf16.msra.mxu1 %v1961_v7  ;;  %1696 = vmatprep.subr.bf16.mxu0 %v1962_v8  ;;  %v1978_v24 = vld [vmem:[%s2609_s1 + $0x48] sm:$0xff]   ;;  %v1982_v28 = vld [vmem:[%s2609_s1 + $0x40] sm:$0xff]   ;;  %v1992_v36 = vld [vmem:[%s2609_s1 + $0x118] sm:$0xff]  }
   0xa   :  { %1796 = vmatprep.subr.bf16.mxu1 %v1963_v9  ;;  %v1979_v25 = vld [vmem:[%s2609_s1 + $0xc8] sm:$0xff]   ;;  %v1983_v29 = vld [vmem:[%s2609_s1 + $0xc0] sm:$0xff]   ;;  %v2001_v42 = vld [vmem:[%s2610_s0 + $0x5c] ss:$20 sps:$4 sm:$0xff]  }
   0xb   :  { %v1980_v26 = vld [vmem:[%s2609_s1 + $0x8] sm:$0xff]   ;;  %v1984_v30 = vld [vmem:[%s2609_s1] sm:$0xff]   ;;  %v2011_v43 = vld [vmem:[%s2609_s1 + $0x110] sm:$0xff]  }
   0xc   :  { %1697 = vmatpush3.bf16.msra.mxu0 %v1964_v10  ;;  %v1981_v27 = vld [vmem:[%s2609_s1 + $0x88] sm:$0xff]   ;;  %v1985_v31 = vld [vmem:[%s2609_s1 + $0x80] sm:$0xff]   ;;  %v2005_v46 = vld [vmem:[%s2610_s0 + $0x7c] ss:$20 sps:$4 sm:$0xff]  }
   0xd   :  { %1797 = vmatpush3.bf16.msra.mxu1 %v1965_v11  ;;  %1698 = vmatprep.subr.bf16.mxu0 %v1966_v12  ;;  %v1986_v32 = vld [vmem:[%s2610_s0] ss:$20 sps:$4 sm:$0xff]   ;;  %v1988_v33 = vld [vmem:[%s2610_s0 + $0x4] ss:$20 sps:$4 sm:$0xff]   ;;  %v1989_v34 = vld [vmem:[%s2610_s0 + $0x8] ss:$20 sps:$4 sm:$0xff]  }
   0xe   :  { %1798 = vmatprep.subr.bf16.mxu1 %v1967_v13  ;;  %v1991_v35 = vld [vmem:[%s2610_s0 + $0xc] ss:$20 sps:$4 sm:$0xff]   ;;  %804 = vmatprep.mubr.bf16.mxu0 %v1988_v33  ;;  %v1995_v38 = vld [vmem:[%s2610_s0 + $0x34] ss:$20 sps:$4 sm:$0xff]   ;;  %v1998_v40 = vld [vmem:[%s2610_s0 + $0x30] ss:$20 sps:$4 sm:$0xff]  }
   0xf   :  { %948 = vmatprep.mubr.bf16.mxu1 %v1991_v35  ;;  %v1993_v37 = vld [vmem:[%s2610_s0 + $0x2c] ss:$20 sps:$4 sm:$0xff]   ;;  %v1997_v39 = vld [vmem:[%s2610_s0 + $0x28] ss:$20 sps:$4 sm:$0xff]   ;;  %v2003_v44 = vld [vmem:[%s2610_s0 + $0x50] ss:$20 sps:$4 sm:$0xff]  }
  0x10   :  { %1699 = vmatpush3.bf16.msra.mxu0 %v1968_v14  ;;  %v1999_v41 = vld [vmem:[%s2610_s0 + $0x54] ss:$20 sps:$4 sm:$0xff]   ;;  %v2004_v45 = vld [vmem:[%s2610_s0 + $0x58] ss:$20 sps:$4 sm:$0xff]   ;;  %v2055_v56 = vld [vmem:[%s2609_s1 + $0x100] sm:$0xff]  }
  0x11   :  { %1799 = vmatpush3.bf16.msra.mxu1 %v1969_v15  ;;  %1700 = vmatprep.subr.bf16.mxu0 %v1970_v16  ;;  %v2007_v47 = vld [vmem:[%s2610_s0 + $0x84] ss:$20 sps:$4 sm:$0xff]   ;;  %v2010_v49 = vld [vmem:[%s2610_s0 + $0x80] ss:$20 sps:$4 sm:$0xff]   ;;  %v2036_v50 = vld [vmem:[%s2609_s1 + $0x108] sm:$0xff]  }
  0x12   :  { %1800 = vmatprep.subr.bf16.mxu1 %v1971_v17  ;;  %v2009_v48 = vld [vmem:[%s2610_s0 + $0x78] ss:$20 sps:$4 sm:$0xff]   ;;  %v2016_v53 = vld [vmem:[%s2610_s0 + $0xa0] ss:$20 sps:$4 sm:$0xff]   ;;  %v2017_v54 = vld [vmem:[%s2610_s0 + $0xa8] ss:$20 sps:$4 sm:$0xff]  }
  0x13   :  { %v2012_v51 = vld [vmem:[%s2610_s0 + $0xa4] ss:$20 sps:$4 sm:$0xff]   ;;  %v2014_v52 = vld [vmem:[%s2610_s0 + $0xac] ss:$20 sps:$4 sm:$0xff]   ;;  %v2020_v57 = vld [vmem:[%s2610_s0 + $0xd4] ss:$20 sps:$4 sm:$0xff]  }
  0x14   :  { %1701 = vmatpush3.bf16.msra.mxu0 %v1972_v18  ;;  %v2018_v55 = vld [vmem:[%s2610_s0 + $0xcc] ss:$20 sps:$4 sm:$0xff]   ;;  %v2022_v58 = vld [vmem:[%s2610_s0 + $0xc8] ss:$20 sps:$4 sm:$0xff]   ;;  %v2023_v59 = vld [vmem:[%s2610_s0 + $0xd0] ss:$20 sps:$4 sm:$0xff]  }
  0x15   :  { %1801 = vmatpush3.bf16.msra.mxu1 %v1973_v19  ;;  %1702 = vmatprep.subr.bf16.mxu0 %v1974_v20  ;;  %v2024_v60 = vld [vmem:[%s2610_s0 + $0xf4] ss:$20 sps:$4 sm:$0xff]   ;;  %v2026_v61 = vld [vmem:[%s2610_s0 + $0xfc] ss:$20 sps:$4 sm:$0xff]   ;;  %v2029_v63 = vld [vmem:[%s2610_s0 + $0xf8] ss:$20 sps:$4 sm:$0xff]  }
  0x16   :  { %1802 = vmatprep.subr.bf16.mxu1 %v1975_v21  ;;  %v2028_v62 = vld [vmem:[%s2610_s0 + $0xf0] ss:$20 sps:$4 sm:$0xff]   ;;  %v2034_v2 = vld [vmem:[%s2610_s0 + $0x118] ss:$20 sps:$4 sm:$0xff]   ;;  %v2035_v3 = vld [vmem:[%s2610_s0 + $0x120] ss:$20 sps:$4 sm:$0xff]  }
  0x17   :  { %v2030_v0 = vld [vmem:[%s2610_s0 + $0x11c] ss:$20 sps:$4 sm:$0xff]   ;;  %v2032_v1 = vld [vmem:[%s2610_s0 + $0x124] ss:$20 sps:$4 sm:$0xff]   ;;  %v2039_v5 = vld [vmem:[%s2610_s0 + $0x14c] ss:$20 sps:$4 sm:$0xff]  }
  0x18   :  { %1703 = vmatpush3.bf16.msra.mxu0 %v1976_v22  ;;  %v2037_v4 = vld [vmem:[%s2610_s0 + $0x144] ss:$20 sps:$4 sm:$0xff]   ;;  %v2041_v6 = vld [vmem:[%s2610_s0 + $0x140] ss:$20 sps:$4 sm:$0xff]   ;;  %v2042_v7 = vld [vmem:[%s2610_s0 + $0x148] ss:$20 sps:$4 sm:$0xff]  }
  0x19   :  { %1803 = vmatpush3.bf16.msra.mxu1 %v1977_v23  ;;  %1704 = vmatprep.subr.bf16.mxu0 %v1978_v24  ;;  %v2043_v8 = vld [vmem:[%s2610_s0 + $0x16c] ss:$20 sps:$4 sm:$0xff]   ;;  %v2045_v9 = vld [vmem:[%s2610_s0 + $0x174] ss:$20 sps:$4 sm:$0xff]   ;;  %v2048_v11 = vld [vmem:[%s2610_s0 + $0x170] ss:$20 sps:$4 sm:$0xff]  }
  0x1a   :  { %1804 = vmatprep.subr.bf16.mxu1 %v1979_v25  ;;  %v2047_v10 = vld [vmem:[%s2610_s0 + $0x168] ss:$20 sps:$4 sm:$0xff]   ;;  %v2053_v14 = vld [vmem:[%s2610_s0 + $0x190] ss:$20 sps:$4 sm:$0xff]   ;;  %v2054_v15 = vld [vmem:[%s2610_s0 + $0x198] ss:$20 sps:$4 sm:$0xff]  }
  0x1b   :  { %v2049_v12 = vld [vmem:[%s2610_s0 + $0x194] ss:$20 sps:$4 sm:$0xff]   ;;  %v2051_v13 = vld [vmem:[%s2610_s0 + $0x19c] ss:$20 sps:$4 sm:$0xff]   ;;  %v2058_v17 = vld [vmem:[%s2610_s0 + $0x1c4] ss:$20 sps:$4 sm:$0xff]  }
  0x1c   :  { %1705 = vmatpush3.bf16.msra.mxu0 %v1980_v26  ;;  %v2056_v16 = vld [vmem:[%s2610_s0 + $0x1bc] ss:$20 sps:$4 sm:$0xff]   ;;  %v2060_v18 = vld [vmem:[%s2610_s0 + $0x1b8] ss:$20 sps:$4 sm:$0xff]   ;;  %v2061_v19 = vld [vmem:[%s2610_s0 + $0x1c0] ss:$20 sps:$4 sm:$0xff]  }
  0x1d   :  { %1805 = vmatpush3.bf16.msra.mxu1 %v1981_v27  ;;  %1706 = vmatprep.subr.bf16.mxu0 %v1982_v28  ;;  %v2062_v20 = vld [vmem:[%s2610_s0 + $0x1e4] ss:$20 sps:$4 sm:$0xff]   ;;  %v2064_v21 = vld [vmem:[%s2610_s0 + $0x1ec] ss:$20 sps:$4 sm:$0xff]   ;;  %v97_v23 = vld [vmem:[%s2610_s0 + $0x210] sm:$0xff] }
  0x1e   :  { %1806 = vmatprep.subr.bf16.mxu1 %v1983_v29  ;;  %v96_v22 = vld [vmem:[%s2610_s0 + $0x208] sm:$0xff]  ;;  %v2066_v24 = vld [vmem:[%s2610_s0 + $0x1e0] ss:$20 sps:$4 sm:$0xff]   ;;  %v1507_v27 = vcombine.high %v97_v23, %v97_v23  ;;  %v1506_v29 = vcombine.low %v97_v23, %v97_v23 }
  0x1f   :  { %v2067_v25 = vld [vmem:[%s2610_s0 + $0x1e8] ss:$20 sps:$4 sm:$0xff]   ;;  %v1505_v26 = vcombine.high %v96_v22, %v96_v22  ;;  %v1504_v28 = vcombine.low %v96_v22, %v96_v22  ;;  %v2075_v33 = vld [vmem:[%s2610_s0 + $0x178] ss:$20 sps:$4 sm:$0xff]   ;;  %v2077_v35 = vld [vmem:[%s2610_s0 + $0x1a0] ss:$20 sps:$4 sm:$0xff]  }
  0x20   :  { %1707 = vmatpush3.bf16.msra.mxu0 %v1984_v30  ;;  %v2072_v30 = vld [vmem:[%s2610_s0 + $0x10] ss:$20 sps:$4 sm:$0xff]  }
  0x21   :  { %1807 = vmatpush3.bf16.msra.mxu1 %v1985_v31  ;;  %1910 = vmatprep.subr.bf16.mxu0 %v1992_v36  ;;  %v2073_v31 = vld [vmem:[%s2610_s0 + $0x150] ss:$20 sps:$4 sm:$0xff]  }
  0x22   :  { %1946 = vmatprep.subr.bf16.mxu1 %v1992_v36 }
  0x23   :  { %805 = vmatmul.mubr.bf16.vlgmr.msra.gmra.mxu0 %v1986_v32  ;;  %v2074_v32 = vld [vmem:[%s2610_s0 + $0x38] ss:$20 sps:$4 sm:$0xff]  }
  0x24   :  { %949 = vmatmul.mubr.bf16.vlgmr.msra.gmra.mxu1 %v1989_v34  ;;  %1911 = vmatpush3.bf16.msra.mxu0 %v1992_v36  ;;  %v2076_v34 = vld [vmem:[%s2610_s0 + $0x60] ss:$20 sps:$4 sm:$0xff]  }
  0x25   :  { %812 = vmatprep.mubr.bf16.mxu0 %v1993_v37  ;;  %956 = vmatprep.mubr.bf16.mxu1 %v1995_v38  ;;  %v2079_v37 = vld [vmem:[%s2610_s0 + $0x1c8] ss:$20 sps:$4 sm:$0xff]   ;;  %v2080_v38 = vld [vmem:[%s2610_s0 + $0xb0] ss:$20 sps:$4 sm:$0xff]  }
  0x26   :  { %1950 = vmatpush3.bf16.msra.mxu1 %v1992_v36  ;;  %1912 = vmatprep.subr.bf16.mxu0 %v2011_v43  ;;  %v2078_v36 = vld [vmem:[%s2610_s0 + $0x88] ss:$20 sps:$4 sm:$0xff]  }
  0x27   :  { %1947 = vmatprep.subr.bf16.mxu1 %v2011_v43 }
  0x28   :  { %1913 = vmatpush3.bf16.msra.mxu0 %v2011_v43 }
  0x29   :  { %1914 = vmatprep.subr.bf16.mxu0 %v2036_v50 }
  0x2a   :  { %1951 = vmatpush3.bf16.msra.mxu1 %v2011_v43  ;;  %v2085_v43 = vld [vmem:[%s2610_s0 + $0x128] ss:$20 sps:$4 sm:$0xff]  }
  0x2b   :  { %813 = vmatmul.mubr.bf16.gmra.mxu0 %v1997_v39  ;;  %1948 = vmatprep.subr.bf16.mxu1 %v2036_v50  ;;  %v2081_v39 = vld [vmem:[%s2610_s0 + $0x1f0] ss:$20 sps:$4 sm:$0xff]  }
  0x2c   :  { %957 = vmatmul.mubr.bf16.gmra.mxu1 %v1998_v40  ;;  %820 = vmatprep.mubr.bf16.mxu0 %v1999_v41  ;;  %v2082_v40 = vld [vmem:[%s2610_s0 + $0xd8] ss:$20 sps:$4 sm:$0xff]  }
  0x2d   :  { %964 = vmatprep.mubr.bf16.mxu1 %v2001_v42  ;;  %1915 = vmatpush3.bf16.msra.mxu0 %v2036_v50  ;;  %v2083_v41 = vld [vmem:[%s2610_s0 + $0x218] ss:$0 sps:$4 sm:$0xff]   ;;  %v2084_v42 = vld [vmem:[%s2610_s0 + $0x100] ss:$20 sps:$4 sm:$0xff]  }
  0x2e   :  { %1952 = vmatpush3.bf16.msra.mxu1 %v2036_v50  ;;  %1916 = vmatprep.subr.bf16.mxu0 %v2055_v56 }
  0x2f   :  { %1949 = vmatprep.subr.bf16.mxu1 %v2055_v56 }
  0x31   :  { %1917 = vmatpush3.bf16.msra.mxu0 %v2055_v56 }
  0x32   :  { %1953 = vmatpush3.bf16.msra.mxu1 %v2055_v56 }
  0x33   :  { %821 = vmatmul.mubr.bf16.gmra.mxu0 %v2003_v44 }
  0x34   :  { %965 = vmatmul.mubr.bf16.gmra.mxu1 %v2004_v45  ;;  %828 = vmatprep.mubr.bf16.mxu0 %v2005_v46 }
  0x35   :  { %972 = vmatprep.mubr.bf16.mxu1 %v2007_v47 }
  0x3b   :  { %829 = vmatmul.mubr.bf16.gmra.mxu0 %v2009_v48 }
  0x3c   :  { %973 = vmatmul.mubr.bf16.gmra.mxu1 %v2010_v49  ;;  %836 = vmatprep.mubr.bf16.mxu0 %v2012_v51 }
  0x3d   :  { %980 = vmatprep.mubr.bf16.mxu1 %v2014_v52 }
  0x43   :  { %837 = vmatmul.mubr.bf16.gmra.mxu0 %v2016_v53 }
  0x44   :  { %981 = vmatmul.mubr.bf16.gmra.mxu1 %v2017_v54  ;;  %844 = vmatprep.mubr.bf16.mxu0 %v2018_v55 }
  0x45   :  { %988 = vmatprep.mubr.bf16.mxu1 %v2020_v57 }
  0x4b   :  { %845 = vmatmul.mubr.bf16.gmra.mxu0 %v2022_v58 }
  0x4c   :  { %989 = vmatmul.mubr.bf16.gmra.mxu1 %v2023_v59  ;;  %852 = vmatprep.mubr.bf16.mxu0 %v2024_v60 }
  0x4d   :  { %996 = vmatprep.mubr.bf16.mxu1 %v2026_v61 }
  0x53   :  { %853 = vmatmul.mubr.bf16.gmra.mxu0 %v2028_v62 }
  0x54   :  { %997 = vmatmul.mubr.bf16.gmra.mxu1 %v2029_v63  ;;  %860 = vmatprep.mubr.bf16.mxu0 %v2030_v0 }
  0x55   :  { %1004 = vmatprep.mubr.bf16.mxu1 %v2032_v1 }
  0x5b   :  { %861 = vmatmul.mubr.bf16.gmra.mxu0 %v2034_v2 }
  0x5c   :  { %1005 = vmatmul.mubr.bf16.gmra.mxu1 %v2035_v3  ;;  %868 = vmatprep.mubr.bf16.mxu0 %v2037_v4 }
  0x5d   :  { %1012 = vmatprep.mubr.bf16.mxu1 %v2039_v5 }
  0x63   :  { %869 = vmatmul.mubr.bf16.gmra.mxu0 %v2041_v6 }
  0x64   :  { %1013 = vmatmul.mubr.bf16.gmra.mxu1 %v2042_v7  ;;  %876 = vmatprep.mubr.bf16.mxu0 %v2043_v8 }
  0x65   :  { %1020 = vmatprep.mubr.bf16.mxu1 %v2045_v9 }
  0x6b   :  { %877 = vmatmul.mubr.bf16.gmra.mxu0 %v2047_v10 }
  0x6c   :  { %1021 = vmatmul.mubr.bf16.gmra.mxu1 %v2048_v11  ;;  %884 = vmatprep.mubr.bf16.mxu0 %v2049_v12 }
  0x6d   :  { %1028 = vmatprep.mubr.bf16.mxu1 %v2051_v13 }
  0x73   :  { %885 = vmatmul.mubr.bf16.gmra.mxu0 %v2053_v14 }
  0x74   :  { %1029 = vmatmul.mubr.bf16.gmra.mxu1 %v2054_v15  ;;  %892 = vmatprep.mubr.bf16.mxu0 %v2056_v16 }
  0x75   :  { %1036 = vmatprep.mubr.bf16.mxu1 %v2058_v17 }
  0x7b   :  { %893 = vmatmul.mubr.bf16.gmra.mxu0 %v2060_v18 }
  0x7c   :  { %1037 = vmatmul.mubr.bf16.gmra.mxu1 %v2061_v19  ;;  %900 = vmatprep.mubr.bf16.mxu0 %v2062_v20 }
  0x7d   :  { %1044 = vmatprep.mubr.bf16.mxu1 %v2064_v21 }
  0x83   :  { %901 = vmatmul.mubr.bf16.gmra.mxu0 %v2066_v24 }
  0x84   :  { %1045 = vmatmul.mubr.bf16.gmra.mxu1 %v2067_v25  ;;  %908 = vmatprep.mubr.bf16.mxu0 %v1505_v26 }
  0x85   :  { %1052 = vmatprep.mubr.bf16.mxu1 %v1507_v27 }
  0x8b   :  { %909 = vmatmul.mubr.bf16.gmra.mxu0 %v1504_v28 }
  0x8c   :  { %1053 = vmatmul.mubr.bf16.gmra.mxu1 %v1506_v29  ;;  %1918 = vmatprep.mubr.msk.bf16.mxu0 %vm729_vm0, %v2072_v30 }
  0x8d   :  { %1934 = vmatprep.mubr.msk.bf16.mxu1 %vm729_vm0, %v2073_v31 }
  0x93   :  { %1919 = vmatmul.mubr.msk.bf16.vlgmr.msra.gmra.mxu0 %vm729_vm0, %v2074_v32 }
  0x94   :  { %1935 = vmatmul.mubr.msk.bf16.vlgmr.msra.gmra.mxu1 %vm729_vm0, %v2075_v33  ;;  %1922 = vmatprep.mubr.msk.bf16.mxu0 %vm729_vm0, %v2076_v34 }
  0x95   :  { %1938 = vmatprep.mubr.msk.bf16.mxu1 %vm729_vm0, %v2077_v35 }
  0x9b   :  { %1923 = vmatmul.mubr.msk.bf16.gmra.mxu0 %vm729_vm0, %v2078_v36 }
  0x9c   :  { %1939 = vmatmul.mubr.msk.bf16.gmra.mxu1 %vm729_vm0, %v2079_v37  ;;  %1926 = vmatprep.mubr.msk.bf16.mxu0 %vm729_vm0, %v2080_v38 }
  0x9d   :  { %1942 = vmatprep.mubr.msk.bf16.mxu1 %vm729_vm0, %v2081_v39 }
  0xa3   :  { %1927 = vmatmul.mubr.msk.bf16.gmra.mxu0 %vm729_vm0, %v2082_v40 }
  0xa4   :  { %1943 = vmatmul.mubr.msk.bf16.gmra.mxu1 %vm729_vm0, %v2083_v41  ;;  %1930 = vmatprep.mubr.msk.bf16.mxu0 %vm729_vm0, %v2084_v42 }
  0xab   :  { %1931 = vmatmul.mubr.msk.bf16.gmra.mxu0 %vm729_vm0, %v2085_v43 }
  0xe3   :  { %v1708_v44 = vpop.f32.mrf.mxu0 }
  0xe4   :  { %v1808_v45 = vpop.f32.mrf.mxu1 }
  0xe5   :  { %v1709_v46 = vpop.f32.mrf.mxu0 }
  0xe6   :  { %v1710_v47 = vadd.f32 %v1709_v46, %v1708_v44  ;;  %v1809_v48 = vpop.f32.mrf.mxu1 }
  0xe7   :  { %v1810_v49 = vadd.f32 %v1809_v48, %v1808_v45  ;;  %v1711_v50 = vpop.f32.mrf.mxu0 }
  0xe8   :  { %v1811_v51 = vpop.f32.mrf.mxu1 }
  0xe9   :  { %v1712_v52 = vpop.f32.mrf.mxu0  ;;  %v2437_v53 = vadd.f32 %v1810_v49, %v1710_v47 }
  0xea   :  { %v1713_v54 = vadd.f32 %v1712_v52, %v1711_v50  ;;  %v1812_v55 = vpop.f32.mrf.mxu1 }
  0xeb   :  { %v1813_v56 = vadd.f32 %v1812_v55, %v1811_v51  ;;  %v1714_v57 = vpop.f32.mrf.mxu0 }
  0xec   :  { %v1814_v58 = vpop.f32.mrf.mxu1 }
  0xed   :  { %v1715_v59 = vpop.f32.mrf.mxu0  ;;  %v2439_v60 = vadd.f32 %v1813_v56, %v1713_v54 }
  0xee   :  { %v1716_v61 = vadd.f32 %v1715_v59, %v1714_v57  ;;  %v1815_v62 = vpop.f32.mrf.mxu1 }
  0xef   :  { %v1816_v63 = vadd.f32 %v1815_v62, %v1814_v58  ;;  %v1717_v0 = vpop.f32.mrf.mxu0 }
  0xf0   :  { %v1817_v1 = vpop.f32.mrf.mxu1 }
  0xf1   :  { %v1718_v2 = vpop.f32.mrf.mxu0  ;;  %v2441_v3 = vadd.f32 %v1816_v63, %v1716_v61 }
  0xf2   :  { %v1719_v4 = vadd.f32 %v1718_v2, %v1717_v0  ;;  %v1818_v5 = vpop.f32.mrf.mxu1 }
  0xf3   :  { %v1819_v6 = vadd.f32 %v1818_v5, %v1817_v1  ;;  %v1720_v7 = vpop.f32.mrf.mxu0 }
  0xf4   :  { %v1820_v8 = vpop.f32.mrf.mxu1 }
  0xf5   :  { %v1721_v9 = vpop.f32.mrf.mxu0  ;;  %v2443_v10 = vadd.f32 %v1819_v6, %v1719_v4 }
  0xf6   :  { %v1722_v11 = vadd.f32 %v1721_v9, %v1720_v7  ;;  %v1821_v12 = vpop.f32.mrf.mxu1 }
  0xf7   :  { %v1822_v13 = vadd.f32 %v1821_v12, %v1820_v8  ;;  %v1723_v14 = vpop.f32.mrf.mxu0 }
  0xf8   :  { %v1823_v15 = vpop.f32.mrf.mxu1 }
  0xf9   :  { %v1724_v16 = vpop.f32.mrf.mxu0  ;;  %v2445_v17 = vadd.f32 %v1822_v13, %v1722_v11 }
  0xfa   :  { %v1725_v18 = vadd.f32 %v1724_v16, %v1723_v14  ;;  %v1824_v19 = vpop.f32.mrf.mxu1 }
  0xfb   :  { %2614 = vst [vmem:[#allocation2_spill] sm:$0xff] %v2445_v17  ;;  %v1825_v20 = vadd.f32 %v1824_v19, %v1823_v15  ;;  %v1726_v21 = vpop.f32.mrf.mxu0 }
  0xfc   :  { %v1826_v22 = vpop.f32.mrf.mxu1 }
  0xfd   :  { %v1727_v23 = vpop.f32.mrf.mxu0  ;;  %v2447_v24 = vadd.f32 %v1825_v20, %v1725_v18 }
  0xfe   :  { %v1728_v25 = vadd.f32 %v1727_v23, %v1726_v21  ;;  %v1827_v26 = vpop.f32.mrf.mxu1 }
  0xff   :  { %2615 = vst [vmem:[#allocation3_spill] sm:$0xff] %v2447_v24  ;;  %v1828_v27 = vadd.f32 %v1827_v26, %v1826_v22  ;;  %v1729_v28 = vpop.f32.mrf.mxu0 }
 0x100   :  { %v1829_v29 = vpop.f32.mrf.mxu1 }
 0x101   :  { %v1730_v30 = vpop.f32.mrf.mxu0  ;;  %v2449_v31 = vadd.f32 %v1828_v27, %v1728_v25 }
 0x102   :  { %v1731_v32 = vadd.f32 %v1730_v30, %v1729_v28  ;;  %v1830_v33 = vpop.f32.mrf.mxu1 }
 0x103   :  { %2616 = vst [vmem:[#allocation4_spill] sm:$0xff] %v2449_v31  ;;  %v1831_v34 = vadd.f32 %v1830_v33, %v1829_v29  ;;  %v1732_v35 = vpop.f32.mrf.mxu0 }
 0x104   :  { %v1832_v36 = vpop.f32.mrf.mxu1 }
 0x105   :  { %v1733_v37 = vpop.f32.mrf.mxu0  ;;  %v2451_v38 = vadd.f32 %v1831_v34, %v1731_v32 }
 0x106   :  { %v1734_v39 = vadd.f32 %v1733_v37, %v1732_v35  ;;  %v1833_v40 = vpop.f32.mrf.mxu1 }
 0x107   :  { %2617 = vst [vmem:[#allocation5_spill] sm:$0xff] %v2451_v38  ;;  %v1834_v41 = vadd.f32 %v1833_v40, %v1832_v36  ;;  %v1735_v42 = vpop.f32.mrf.mxu0 }
 0x108   :  { %v1835_v43 = vpop.f32.mrf.mxu1 }
 0x109   :  { %v1736_v44 = vpop.f32.mrf.mxu0  ;;  %v2453_v45 = vadd.f32 %v1834_v41, %v1734_v39 }
 0x10a   :  { %v1737_v46 = vadd.f32 %v1736_v44, %v1735_v42  ;;  %v1836_v47 = vpop.f32.mrf.mxu1 }
 0x10b   :  { %2618 = vst [vmem:[#allocation6_spill] sm:$0xff] %v2453_v45  ;;  %v1837_v48 = vadd.f32 %v1836_v47, %v1835_v43  ;;  %v1738_v49 = vpop.f32.mrf.mxu0 }
 0x10c   :  { %v1838_v50 = vpop.f32.mrf.mxu1 }
 0x10d   :  { %v1739_v51 = vpop.f32.mrf.mxu0  ;;  %v2455_v52 = vadd.f32 %v1837_v48, %v1737_v46 }
 0x10e   :  { %v1740_v54 = vadd.f32 %v1739_v51, %v1738_v49  ;;  %v1839_v55 = vpop.f32.mrf.mxu1 }
 0x10f   :  { %2619 = vst [vmem:[#allocation7_spill] sm:$0xff] %v2455_v52  ;;  %v1840_v56 = vadd.f32 %v1839_v55, %v1838_v50  ;;  %v1741_v57 = vpop.f32.mrf.mxu0 }
 0x110   :  { %v1841_v58 = vpop.f32.mrf.mxu1 }
 0x111   :  { %v1742_v59 = vpop.f32.mrf.mxu0  ;;  %v2457_v61 = vadd.f32 %v1840_v56, %v1740_v54 }
 0x112   :  { %v1743_v62 = vadd.f32 %v1742_v59, %v1741_v57  ;;  %v1842_v63 = vpop.f32.mrf.mxu1 }
 0x113   :  { %2620 = vst [vmem:[#allocation8_spill] sm:$0xff] %v2457_v61  ;;  %v1843_v0 = vadd.f32 %v1842_v63, %v1841_v58  ;;  %v1744_v1 = vpop.f32.mrf.mxu0 }
 0x114   :  { %v1844_v2 = vpop.f32.mrf.mxu1 }
 0x115   :  { %v1745_v4 = vpop.f32.mrf.mxu0  ;;  %v2459_v5 = vadd.f32 %v1843_v0, %v1743_v62 }
 0x116   :  { %v1746_v6 = vadd.f32 %v1745_v4, %v1744_v1  ;;  %v1845_v7 = vpop.f32.mrf.mxu1 }
 0x117   :  { %2621 = vst [vmem:[#allocation9_spill] sm:$0xff] %v2459_v5  ;;  %v1846_v8 = vadd.f32 %v1845_v7, %v1844_v2  ;;  %v1747_v9 = vpop.f32.mrf.mxu0 }
 0x118   :  { %v1847_v11 = vpop.f32.mrf.mxu1 }
 0x119   :  { %v1748_v12 = vpop.f32.mrf.mxu0  ;;  %v2461_v13 = vadd.f32 %v1846_v8, %v1746_v6 }
 0x11a   :  { %v1749_v14 = vadd.f32 %v1748_v12, %v1747_v9  ;;  %v1848_v15 = vpop.f32.mrf.mxu1 }
 0x11b   :  { %2622 = vst [vmem:[#allocation10_spill] sm:$0xff] %v2461_v13  ;;  %v1849_v16 = vadd.f32 %v1848_v15, %v1847_v11  ;;  %v1750_v18 = vpop.f32.mrf.mxu0 }
 0x11c   :  { %v1850_v19 = vpop.f32.mrf.mxu1 }
 0x11d   :  { %v1751_v20 = vpop.f32.mrf.mxu0  ;;  %v2463_v21 = vadd.f32 %v1849_v16, %v1749_v14 }
 0x11e   :  { %v1752_v22 = vadd.f32 %v1751_v20, %v1750_v18  ;;  %v1851_v23 = vpop.f32.mrf.mxu1 }
 0x11f   :  { %2623 = vst [vmem:[#allocation11_spill] sm:$0xff] %v2463_v21  ;;  %v1852_v25 = vadd.f32 %v1851_v23, %v1850_v19  ;;  %v1753_v26 = vpop.f32.mrf.mxu0 }
 0x120   :  { %v1853_v27 = vpop.f32.mrf.mxu1 }
 0x121   :  { %v1754_v28 = vpop.f32.mrf.mxu0  ;;  %v2465_v29 = vadd.f32 %v1852_v25, %v1752_v22 }
 0x122   :  { %v1755_v30 = vadd.f32 %v1754_v28, %v1753_v26  ;;  %v1854_v32 = vpop.f32.mrf.mxu1 }
 0x123   :  { %2624 = vst [vmem:[#allocation12_spill] sm:$0xff] %v2465_v29  ;;  %v1855_v33 = vadd.f32 %v1854_v32, %v1853_v27  ;;  %v1756_v34 = vpop.f32.mrf.mxu0 }
 0x124   :  { %v1856_v35 = vpop.f32.mrf.mxu1 }
 0x125   :  { %v1757_v36 = vpop.f32.mrf.mxu0  ;;  %v2467_v37 = vadd.f32 %v1855_v33, %v1755_v30 }
 0x126   :  { %v1857_v39 = vpop.f32.mrf.mxu1  ;;  %v1758_v32 = vadd.f32 %v1757_v36, %v1756_v34 }
 0x127   :  { %2625 = vst [vmem:[#allocation13_spill] sm:$0xff] %v2467_v37  ;;  %v1759_v40 = vpop.f32.mrf.mxu0  ;;  %v1858_v21 = vadd.f32 %v1857_v39, %v1856_v35 }
 0x128   :  { %v1859_v41 = vpop.f32.mrf.mxu1 }
 0x129   :  { %v1760_v42 = vpop.f32.mrf.mxu0 }
 0x12a   :  { %v1860_v43 = vpop.f32.mrf.mxu1  ;;  %v1761_v37 = vadd.f32 %v1760_v42, %v1759_v40  ;;  %v1015_v40 = vadd.f32 %v1858_v21, %v1758_v32 }
 0x12b   :  { %v1762_v44 = vpop.f32.mrf.mxu0  ;;  %v1861_v13 = vadd.f32 %v1860_v43, %v1859_v41 }
 0x12c   :  { %v1862_v46 = vpop.f32.mrf.mxu1 }
 0x12d   :  { %v1763_v47 = vpop.f32.mrf.mxu0 }
 0x12e   :  { %v1863_v48 = vpop.f32.mrf.mxu1  ;;  %v1764_v25 = vadd.f32 %v1763_v47, %v1762_v44 }
 0x12f   :  { %v1765_v49 = vpop.f32.mrf.mxu0  ;;  %v1864_v26 = vadd.f32 %v1863_v48, %v1862_v46 }
 0x130   :  { %v1865_v50 = vpop.f32.mrf.mxu1 }
 0x131   :  { %v1766_v51 = vpop.f32.mrf.mxu0  ;;  %v1023_v52 = vadd.f32 %v1864_v26, %v1764_v25 }
 0x132   :  { %v1866_v54 = vpop.f32.mrf.mxu1  ;;  %v1767_v5 = vadd.f32 %v1766_v51, %v1765_v49  ;;  %v1018_v49 = vadd.f32 %v1861_v13, %v1761_v37 }
 0x133   :  { %v1768_v55 = vpop.f32.mrf.mxu0  ;;  %v1867_v45 = vadd.f32 %v1866_v54, %v1865_v50 }
 0x134   :  { %v1868_v56 = vpop.f32.mrf.mxu1 }
 0x135   :  { %v1769_v57 = vpop.f32.mrf.mxu0  ;;  %v1026_v43 = vadd.f32 %v1867_v45, %v1767_v5 }
 0x136   :  { %v1869_v58 = vpop.f32.mrf.mxu1  ;;  %v1770_v61 = vadd.f32 %v1769_v57, %v1768_v55 }
 0x137   :  { %v1771_v59 = vpop.f32.mrf.mxu0  ;;  %v1870_v24 = vadd.f32 %v1869_v58, %v1868_v56 }
 0x138   :  { %v1871_v62 = vpop.f32.mrf.mxu1 }
 0x139   :  { %v1772_v63 = vpop.f32.mrf.mxu0  ;;  %v1031_v50 = vadd.f32 %v1870_v24, %v1770_v61 }
 0x13a   :  { %v1872_v0 = vpop.f32.mrf.mxu1 }
 0x13b   :  { %v1774_v1 = vpop.f32.mrf.mxu0 }
 0x13c   :  { %v1874_v2 = vpop.f32.mrf.mxu1 }
 0x13d   :  { %v1775_v4 = vpop.f32.mrf.mxu0 }
 0x13e   :  { %v1875_v6 = vpop.f32.mrf.mxu1  ;;  %v1776_v17 = vadd.f32 %v1775_v4, %v1774_v1 }
 0x13f   :  { %v1777_v7 = vpop.f32.mrf.mxu0  ;;  %v1876_v44 = vadd.f32 %v1875_v6, %v1874_v2 }
 0x140   :  { %v1877_v8 = vpop.f32.mrf.mxu1 }
 0x141   :  { %v1778_v9 = vpop.f32.mrf.mxu0  ;;  %v1039_v56 = vadd.f32 %v1876_v44, %v1776_v17 }
 0x142   :  { %v1878_v11 = vpop.f32.mrf.mxu1  ;;  %v1779_v47 = vadd.f32 %v1778_v9, %v1777_v7 }
 0x143   :  { %v1780_v12 = vpop.f32.mrf.mxu0  ;;  %v1879_v48 = vadd.f32 %v1878_v11, %v1877_v8 }
 0x144   :  { %v1880_v14 = vpop.f32.mrf.mxu1 }
 0x145   :  { %v1781_v15 = vpop.f32.mrf.mxu0 }
 0x146   :  { %v1881_v16 = vpop.f32.mrf.mxu1  ;;  %v1782_v31 = vadd.f32 %v1781_v15, %v1780_v12  ;;  %v2628_v15 = vld [vmem:[#allocation4_spill] sm:$0xff] }
 0x147   :  { %v1783_v18 = vpop.f32.mrf.mxu0  ;;  %v1882_v34 = vadd.f32 %v1881_v16, %v1880_v14 }
 0x148   :  { %v2469_v19 = vpop.f32.mrf.mxu1 }
 0x149   :  { %2626 = vst [vmem:[#allocation14_spill] sm:$0xff] %v2469_v19  ;;  %v1784_v20 = vpop.f32.mrf.mxu0  ;;  %v1773_v19 = vadd.f32 %v1772_v63, %v1771_v59  ;;  %v2489_v59 = vadd.f32 %v1879_v48, %v1779_v47 }
 0x14a   :  { %v2471_v22 = vpop.f32.mrf.mxu1 }
 0x14b   :  { %2627 = vst [vmem:[#allocation15_spill] sm:$0xff] %v2471_v22  ;;  %v1786_v23 = vpop.f32.mrf.mxu0  ;;  %v1873_v22 = vadd.f32 %v1872_v0, %v1871_v62  ;;  %v2491_v62 = vadd.f32 %v1882_v34, %v1782_v31 }
 0x14c   :  { %v1886_v27 = vpop.f32.mrf.mxu1 }
 0x14d   :  { %v1787_v28 = vpop.f32.mrf.mxu0  ;;  %v2486_v57 = vadd.f32 %v1873_v22, %v1773_v19 }
 0x14e   :  { %v1887_v30 = vpop.f32.mrf.mxu1  ;;  %v1788_v17 = vadd.f32 %v1787_v28, %v1786_v23  ;;  %v2629_v28 = vld [vmem:[#allocation2_spill] sm:$0xff] }
 0x14f   :  { %v1789_v33 = vpop.f32.mrf.mxu0  ;;  %v1888_v0 = vadd.f32 %v1887_v30, %v1886_v27 }
 0x150   :  { %v1889_v29 = vpop.f32.mrf.mxu1 }
 0x151   :  { %v1790_v38 = vpop.f32.mrf.mxu0  ;;  %v2476_v29 = vld [vmem:[%s2611_s2] ss:$0 sm:$0xff] }
 0x152   :  { %v1890_v46 = vpop.f32.mrf.mxu1  ;;  %v2482_v38 = vld [vmem:[%s2612_s3] ss:$0 sm:$0xff] }
 0x153   :  { %v1920_v36 = vpop.f32.mrf.mxu0 }
 0x154   :  { %v1103_v35 = vadd.f32 %v1920_v36, %v2441_v3  ;;  %v1936_v39 = vpop.f32.mrf.mxu1 }
 0x155   :  { %v1167_v41 = vadd.f32 %v1936_v39, %v1023_v52  ;;  %v1094_v42 = vpop.f32.mrf.mxu0  ;;  %v2493_v52 = vadd.f32 %v1784_v20, %v1783_v18 }
 0x156   :  { %v1213_v51 = vmul.f32 %v2476_v29, %v1103_v35  ;;  %v1095_v54 = vadd.f32 %v1094_v42, %v2437_v53  ;;  %v1158_v55 = vpop.f32.mrf.mxu1 }
 0x157   :  { %v1229_v3 = vmul.f32 %v2476_v29, %v1167_v41  ;;  %v1159_v21 = vadd.f32 %v1158_v55, %v1015_v40  ;;  %v1921_v58 = vpop.f32.mrf.mxu0  ;;  %v2631_v55 = vld [vmem:[#allocation15_spill] sm:$0xff] }
 0x158   :  { %v1247_v24 = vadd.f32 %v2482_v38, %v1213_v51  ;;  %v1211_v45 = vmul.f32 %v2476_v29, %v1095_v54  ;;  %v1106_v53 = vadd.f32 %v1921_v58, %v2443_v10  ;;  %v1937_v61 = vpop.f32.mrf.mxu1  ;;  %v2630_v54 = vld [vmem:[#allocation14_spill] sm:$0xff] }
 0x159   :  { %v1263_v5 = vadd.f32 %v2482_v38, %v1229_v3  ;;  %v1227_v13 = vmul.f32 %v2476_v29, %v1159_v21  ;;  %v1170_v37 = vadd.f32 %v1937_v61, %v1026_v43  ;;  %v1097_v63 = vpop.f32.mrf.mxu0  ;;  %v2632_v3 = vld [vmem:[#allocation5_spill] sm:$0xff] }
 0x15a   :  { %v1245_v31 = vadd.f32 %v2482_v38, %v1211_v45  ;;  %v1214_v1 = vmul.f32 %v2476_v29, %v1106_v53  ;;  %v1098_v2 = vadd.f32 %v1097_v63, %v2439_v60  ;;  %v1161_v4 = vpop.f32.mrf.mxu1  ;;  %v1274_v6 = vmax.f32 %v1247_v24, 0.0 }
 0x15b   :  { %v1290_v7 = vmax.f32 %v1263_v5, 0.0  ;;  %v1230_v10 = vmul.f32 %v2476_v29, %v1170_v37  ;;  %v1162_v8 = vadd.f32 %v1161_v4, %v1018_v49  ;;  %v1924_v9 = vpop.f32.mrf.mxu0  ;;  %v1261_v11 = vadd.f32 %v2482_v38, %v1227_v13  ;;  %v2634_v4 = vld [vmem:[#allocation8_spill] sm:$0xff] }
 0x15c   :  { %v1248_v12 = vadd.f32 %v2482_v38, %v1214_v1  ;;  %v1212_v14 = vmul.f32 %v2476_v29, %v1098_v2  ;;  %v1119_v16 = vadd.f32 %v1924_v9, %v2628_v15  ;;  %v1940_v18 = vpop.f32.mrf.mxu1  ;;  %v1272_v19 = vmax.f32 %v1245_v31, 0.0 }
 0x15d   :  { %v1264_v20 = vadd.f32 %v2482_v38, %v1230_v10  ;;  %v1228_v60 = vmul.f32 %v2476_v29, %v1162_v8  ;;  %v1183_v22 = vadd.f32 %v1940_v18, %v1039_v56  ;;  %v1110_v23 = vpop.f32.mrf.mxu0  ;;  %v1288_v41 = vmax.f32 %v1261_v11, 0.0 }
 0x15e   :  { %v1275_v25 = vmax.f32 %v1248_v12, 0.0  ;;  %v1246_v26 = vadd.f32 %v2482_v38, %v1212_v14  ;;  %v1217_v27 = vmul.f32 %v2476_v29, %v1119_v16  ;;  %v1111_v30 = vadd.f32 %v1110_v23, %v2629_v28  ;;  %v1174_v32 = vpop.f32.mrf.mxu1 }
 0x15f   :  { %v1291_v33 = vmax.f32 %v1264_v20, 0.0  ;;  %v1262_v44 = vadd.f32 %v2482_v38, %v1228_v60  ;;  %v1233_v46 = vmul.f32 %v2476_v29, %v1183_v22  ;;  %v1175_v47 = vadd.f32 %v1174_v32, %v1031_v50  ;;  %v1925_v48 = vpop.f32.mrf.mxu0 }
 0x160   :  { %v1623_v34 = vpack.c.bf16 %v1275_v25, %v1274_v6  ;;  %v1273_v36 = vmax.f32 %v1246_v26, 0.0  ;;  %v1251_v35 = vadd.f32 %v2482_v38, %v1217_v27  ;;  %v1215_v39 = vmul.f32 %v2476_v29, %v1111_v30  ;;  %v1941_v40 = vpop.f32.mrf.mxu1 }
 0x161   :  { %v1663_v42 = vpack.c.bf16 %v1291_v33, %v1290_v7  ;;  %v1289_v43 = vmax.f32 %v1262_v44, 0.0  ;;  %v1231_v49 = vmul.f32 %v2476_v29, %v1175_v47  ;;  %v1113_v51 = vpop.f32.mrf.mxu0  ;;  %v1885_v56 = vadd.f32 %v2631_v55, %v2630_v54  ;;  %v2637_v55 = vld [vmem:[#allocation7_spill] sm:$0xff] }
 0x162   :  { %1680 = vst [vmem:[%s2613_s4 + $0x8] sm:$0xff] %v1623_v34   ;;  %v1618_v50 = vpack.c.bf16 %v1273_v36, %v1272_v19  ;;  %v1122_v21 = vadd.f32 %v1925_v48, %v2632_v3  ;;  %v1177_v58 = vpop.f32.mrf.mxu1  ;;  %v1055_v24 = vadd.f32 %v1888_v0, %v1788_v17  ;;  %v1278_v53 = vmax.f32 %v1251_v35, 0.0  ;;  %v2633_v17 = vld [vmem:[#allocation3_spill] sm:$0xff] }
 0x163   :  { %1688 = vst [vmem:[%s2613_s4 + $0x48] sm:$0xff] %v1663_v42   ;;  %v1658_v45 = vpack.c.bf16 %v1289_v43, %v1288_v41  ;;  %v1267_v61 = vadd.f32 %v2482_v38, %v1233_v46  ;;  %v1186_v5 = vadd.f32 %v1941_v40, %v2489_v59  ;;  %v1928_v13 = vpop.f32.mrf.mxu0  ;;  %v1249_v37 = vadd.f32 %v2482_v38, %v1215_v39  ;;  %v2636_v43 = vld [vmem:[#allocation9_spill] sm:$0xff] }
 0x164   :  { %1619 = vst [vmem:[%s2613_s4] sm:$0xff] %v1618_v50   ;;  %v1218_v63 = vmul.f32 %v2476_v29, %v1122_v21  ;;  %v1114_v0 = vadd.f32 %v1113_v51, %v2633_v17  ;;  %v1178_v31 = vadd.f32 %v1177_v58, %v2486_v57  ;;  %v1944_v1 = vpop.f32.mrf.mxu1  ;;  %v1265_v59 = vadd.f32 %v2482_v38, %v1231_v49  ;;  %v2635_v57 = vld [vmem:[#allocation6_spill] sm:$0xff]  ;;  %v2638_v58 = vld [vmem:[#allocation12_spill] sm:$0xff] }
 0x165   :  { %1687 = vst [vmem:[%s2613_s4 + $0x40] sm:$0xff] %v1658_v45   ;;  %v1234_v2 = vmul.f32 %v2476_v29, %v1186_v5  ;;  %v1135_v6 = vadd.f32 %v1928_v13, %v2634_v4  ;;  %v1199_v7 = vadd.f32 %v1944_v1, %v1055_v24  ;;  %v1126_v10 = vpop.f32.mrf.mxu0  ;;  %v1294_v15 = vmax.f32 %v1267_v61, 0.0  ;;  %v2639_v45 = vld [vmem:[#allocation10_spill] sm:$0xff] }
 0x166   :  { %v1252_v8 = vadd.f32 %v2482_v38, %v1218_v63  ;;  %v1216_v9 = vmul.f32 %v2476_v29, %v1114_v0  ;;  %v1232_v11 = vmul.f32 %v2476_v29, %v1178_v31  ;;  %v1127_v12 = vadd.f32 %v1126_v10, %v2635_v57  ;;  %v1190_v14 = vpop.f32.mrf.mxu1  ;;  %v2640_v0 = vld [vmem:[#allocation13_spill] sm:$0xff] }
 0x167   :  { %v1268_v16 = vadd.f32 %v2482_v38, %v1234_v2  ;;  %v1237_v18 = vmul.f32 %v2476_v29, %v1199_v7  ;;  %v1191_v19 = vadd.f32 %v1190_v14, %v2491_v62  ;;  %v1929_v20 = vpop.f32.mrf.mxu0  ;;  %v1276_v60 = vmax.f32 %v1249_v37, 0.0  ;;  %v2641_v14 = vld [vmem:[#allocation11_spill] sm:$0xff] }
 0x168   :  { %v1279_v22 = vmax.f32 %v1252_v8, 0.0  ;;  %v1250_v23 = vadd.f32 %v2482_v38, %v1216_v9  ;;  %v1266_v25 = vadd.f32 %v2482_v38, %v1232_v11  ;;  %v1945_v26 = vpop.f32.mrf.mxu1  ;;  %v1292_v27 = vmax.f32 %v1265_v59, 0.0 }
 0x169   :  { %v1295_v28 = vmax.f32 %v1268_v16, 0.0  ;;  %v1221_v30 = vmul.f32 %v2476_v29, %v1135_v6  ;;  %v1271_v32 = vadd.f32 %v2482_v38, %v1237_v18  ;;  %v1129_v33 = vpop.f32.mrf.mxu0  ;;  %v1219_v62 = vmul.f32 %v2476_v29, %v1127_v12 }
 0x16a   :  { %v1633_v44 = vpack.c.bf16 %v1279_v22, %v1278_v53  ;;  %v1277_v46 = vmax.f32 %v1250_v23, 0.0  ;;  %v1293_v47 = vmax.f32 %v1266_v25, 0.0  ;;  %v1193_v48 = vpop.f32.mrf.mxu1  ;;  %v1235_v35 = vmul.f32 %v2476_v29, %v1191_v19 }
 0x16b   :  { %v1673_v34 = vpack.c.bf16 %v1295_v28, %v1294_v15  ;;  %v1298_v36 = vmax.f32 %v1271_v32, 0.0  ;;  %v1050_v39 = vadd.f32 %v1885_v56, %v2493_v52  ;;  %v1932_v40 = vpop.f32.mrf.mxu0  ;;  %v1138_v49 = vadd.f32 %v1929_v20, %v2636_v43 }
 0x16c   :  { %1682 = vst [vmem:[%s2613_s4 + $0x18] sm:$0xff] %v1633_v44   ;;  %v1628_v41 = vpack.c.bf16 %v1277_v46, %v1276_v60  ;;  %v1668_v42 = vpack.c.bf16 %v1293_v47, %v1292_v27  ;;  %v1255_v51 = vadd.f32 %v2482_v38, %v1221_v30  ;;  %v1130_v50 = vadd.f32 %v1129_v33, %v2637_v55 }
 0x16d   :  { %1690 = vst [vmem:[%s2613_s4 + $0x58] sm:$0xff] %v1673_v34   ;;  %v1614_v54 = vpack.c.bf16 %v1298_v36, %v1298_v36  ;;  %v1194_v3 = vadd.f32 %v1193_v48, %v1050_v39  ;;  %v1142_v52 = vpop.f32.mrf.mxu0  ;;  %v1253_v56 = vadd.f32 %v2482_v38, %v1219_v62  ;;  %v1222_v21 = vmul.f32 %v2476_v29, %v1138_v49 }
 0x16e   :  { %1681 = vst [vmem:[%s2613_s4 + $0x10] sm:$0xff] %v1628_v41   ;;  %1689 = vst [vmem:[%s2613_s4 + $0x50] sm:$0xff] %v1668_v42   ;;  %v1151_v24 = vadd.f32 %v1932_v40, %v2638_v58  ;;  %v1143_v53 = vadd.f32 %v1142_v52, %v2639_v45  ;;  %v1269_v61 = vadd.f32 %v2482_v38, %v1235_v35  ;;  %v1282_v1 = vmax.f32 %v1255_v51, 0.0 }
 0x16f   :  { %1434 = vst [vmem:[%s2613_s4 + $0x68] sm:$0xf] %v1614_v54  ;;  %v1220_v5 = vmul.f32 %v2476_v29, %v1130_v50  ;;  %v1236_v13 = vmul.f32 %v2476_v29, %v1194_v3  ;;  %v1933_v37 = vpop.f32.mrf.mxu0  ;;  %v1256_v63 = vadd.f32 %v2482_v38, %v1222_v21  ;;  %v1280_v7 = vmax.f32 %v1253_v56, 0.0 }
 0x170   :  { %v1225_v17 = vmul.f32 %v2476_v29, %v1151_v24  ;;  %v1154_v31 = vadd.f32 %v1933_v37, %v2640_v0  ;;  %v1223_v4 = vmul.f32 %v2476_v29, %v1143_v53  ;;  %v1296_v11 = vmax.f32 %v1269_v61, 0.0 }
 0x171   :  { %v1254_v59 = vadd.f32 %v2482_v38, %v1220_v5  ;;  %v1270_v2 = vadd.f32 %v2482_v38, %v1236_v13  ;;  %v1145_v6 = vpop.f32.mrf.mxu0  ;;  %v1283_v10 = vmax.f32 %v1256_v63, 0.0 }
 0x172   :  { %v1259_v8 = vadd.f32 %v2482_v38, %v1225_v17  ;;  %v1226_v9 = vmul.f32 %v2476_v29, %v1154_v31  ;;  %v1146_v15 = vadd.f32 %v1145_v6, %v2641_v14  ;;  %v1257_v60 = vadd.f32 %v2482_v38, %v1223_v4 }
 0x173   :  { %v1281_v57 = vmax.f32 %v1254_v59, 0.0  ;;  %v1297_v12 = vmax.f32 %v1270_v2, 0.0  ;;  %v1643_v16 = vpack.c.bf16 %v1283_v10, %v1282_v1 }
 0x174   :  { %v1260_v18 = vadd.f32 %v2482_v38, %v1226_v9  ;;  %v1224_v22 = vmul.f32 %v2476_v29, %v1146_v15  ;;  %v1286_v23 = vmax.f32 %v1259_v8, 0.0  ;;  %v1284_v28 = vmax.f32 %v1257_v60, 0.0 }
 0x175   :  { %v1638_v19 = vpack.c.bf16 %v1281_v57, %v1280_v7  ;;  %v1678_v20 = vpack.c.bf16 %v1297_v12, %v1296_v11  ;;  %1684 = vst [vmem:[%s2613_s4 + $0x28] sm:$0xff] %v1643_v16  }
 0x176   :  { %v1287_v25 = vmax.f32 %v1260_v18, 0.0  ;;  %v1258_v26 = vadd.f32 %v2482_v38, %v1224_v22 }
 0x177   :  { %1683 = vst [vmem:[%s2613_s4 + $0x20] sm:$0xff] %v1638_v19   ;;  %1691 = vst [vmem:[%s2613_s4 + $0x60] sm:$0xff] %v1678_v20  }
 0x178   :  { %v1653_v27 = vpack.c.bf16 %v1287_v25, %v1286_v23  ;;  %v1285_v30 = vmax.f32 %v1258_v26, 0.0 }
 0x17a   :  { %1686 = vst [vmem:[%s2613_s4 + $0x38] sm:$0xff] %v1653_v27   ;;  %v1648_v29 = vpack.c.bf16 %v1285_v30, %v1284_v28 }
 0x17c   :  { %1685 = vst [vmem:[%s2613_s4 + $0x30] sm:$0xff] %v1648_v29  }

// kernel: audio_encoder_forward.10
= control target key start
LH: loop header
LB: loop body
LE: loop exit
PB: predicated region body
PF: predicated region fallthrough
CT: control target
= control target key end

     0   :  { %s2697_s1 = inlined_call_operand.vmem [shape: bf16[1152,256], index: 1, kind: input, shape index: {}]   ;;  %s2698_s0 = inlined_call_operand.vmem [shape: bf16[54,1152], index: 0, kind: input, shape index: {}]   ;;  %s2699_s2 = inlined_call_operand.vmem [shape: f32[1,256], index: 2, kind: input, shape index: {}]   ;;  %s2700_s3 = inlined_call_operand.vmem [shape: f32[1,256], index: 3, kind: input, shape index: {}]   ;;  %s2701_s4 = inlined_call_operand.vmem [shape: bf16[54,256], index: 4, kind: output, shape index: {}]  }
   0x1   :  { %v1774_v0 = vld [vmem:[%s2697_s1 + $0x74] ss:$8 sps:$4 sm:$0xff]   ;;  %v1778_v2 = vld [vmem:[%s2697_s1 + $0x70] ss:$8 sps:$4 sm:$0xff]   ;;  %v1780_v4 = vld [vmem:[%s2697_s1 + $0x64] ss:$8 sps:$4 sm:$0xff]  }
   0x2   :  { %v1776_v1 = vld [vmem:[%s2697_s1 + $0x174] ss:$8 sps:$4 sm:$0xff]   ;;  %1087 = vmatprep.subr.bf16.mxu0 %v1774_v0  ;;  %v1779_v3 = vld [vmem:[%s2697_s1 + $0x170] ss:$8 sps:$4 sm:$0xff]   ;;  %v1782_v5 = vld [vmem:[%s2697_s1 + $0x164] ss:$8 sps:$4 sm:$0xff]  }
   0x3   :  { %1158 = vmatprep.subr.bf16.mxu1 %v1776_v1  ;;  %1088 = vmatpush1.bf16.msra.mxu0 %v1778_v2  ;;  %v1784_v6 = vld [vmem:[%s2697_s1 + $0x60] ss:$8 sps:$4 sm:$0xff]   ;;  %v1786_v8 = vld [vmem:[%s2697_s1 + $0x54] ss:$8 sps:$4 sm:$0xff]   ;;  %v1790_v10 = vld [vmem:[%s2697_s1 + $0x50] ss:$8 sps:$4 sm:$0xff]  }
   0x4   :  { %1159 = vmatpush1.bf16.msra.mxu1 %v1779_v3  ;;  %1089 = vmatprep.subr.bf16.mxu0 %v1780_v4  ;;  %v1785_v7 = vld [vmem:[%s2697_s1 + $0x160] ss:$8 sps:$4 sm:$0xff]   ;;  %v1788_v9 = vld [vmem:[%s2697_s1 + $0x154] ss:$8 sps:$4 sm:$0xff]   ;;  %v1791_v11 = vld [vmem:[%s2697_s1 + $0x150] ss:$8 sps:$4 sm:$0xff]  }
   0x5   :  { %1160 = vmatprep.subr.bf16.mxu1 %v1782_v5  ;;  %v1792_v12 = vld [vmem:[%s2697_s1 + $0x44] ss:$8 sps:$4 sm:$0xff]   ;;  %v1796_v14 = vld [vmem:[%s2697_s1 + $0x40] ss:$8 sps:$4 sm:$0xff]   ;;  %v1798_v16 = vld [vmem:[%s2697_s1 + $0x34] ss:$8 sps:$4 sm:$0xff]  }
   0x6   :  { %v1794_v13 = vld [vmem:[%s2697_s1 + $0x144] ss:$8 sps:$4 sm:$0xff]   ;;  %v1797_v15 = vld [vmem:[%s2697_s1 + $0x140] ss:$8 sps:$4 sm:$0xff]   ;;  %v1800_v17 = vld [vmem:[%s2697_s1 + $0x134] ss:$8 sps:$4 sm:$0xff]  }
   0x7   :  { %1090 = vmatpush1.bf16.msra.mxu0 %v1784_v6  ;;  %v1802_v18 = vld [vmem:[%s2697_s1 + $0x30] ss:$8 sps:$4 sm:$0xff]   ;;  %v1804_v20 = vld [vmem:[%s2697_s1 + $0x24] ss:$8 sps:$4 sm:$0xff]   ;;  %v1808_v22 = vld [vmem:[%s2697_s1 + $0x20] ss:$8 sps:$4 sm:$0xff]  }
   0x8   :  { %1161 = vmatpush1.bf16.msra.mxu1 %v1785_v7  ;;  %1091 = vmatprep.subr.bf16.mxu0 %v1786_v8  ;;  %v1803_v19 = vld [vmem:[%s2697_s1 + $0x130] ss:$8 sps:$4 sm:$0xff]   ;;  %v1806_v21 = vld [vmem:[%s2697_s1 + $0x124] ss:$8 sps:$4 sm:$0xff]   ;;  %v1809_v23 = vld [vmem:[%s2697_s1 + $0x120] ss:$8 sps:$4 sm:$0xff]  }
   0x9   :  { %1162 = vmatprep.subr.bf16.mxu1 %v1788_v9  ;;  %v1810_v24 = vld [vmem:[%s2697_s1 + $0x14] ss:$8 sps:$4 sm:$0xff]   ;;  %v1814_v26 = vld [vmem:[%s2697_s1 + $0x10] ss:$8 sps:$4 sm:$0xff]   ;;  %v1816_v28 = vld [vmem:[%s2697_s1 + $0x4] ss:$8 sps:$4 sm:$0xff]  }
   0xa   :  { %v1812_v25 = vld [vmem:[%s2697_s1 + $0x114] ss:$8 sps:$4 sm:$0xff]   ;;  %v1815_v27 = vld [vmem:[%s2697_s1 + $0x110] ss:$8 sps:$4 sm:$0xff]   ;;  %v1818_v29 = vld [vmem:[%s2697_s1 + $0x104] ss:$8 sps:$4 sm:$0xff]  }
   0xb   :  { %1092 = vmatpush1.bf16.msra.mxu0 %v1790_v10  ;;  %v1820_v30 = vld [vmem:[%s2697_s1] ss:$8 sps:$4 sm:$0xff]   ;;  %v1822_v32 = vld [vmem:[%s2697_s1 + $0xf4] ss:$8 sps:$4 sm:$0xff]   ;;  %v1826_v34 = vld [vmem:[%s2697_s1 + $0xf0] ss:$8 sps:$4 sm:$0xff]  }
   0xc   :  { %1163 = vmatpush1.bf16.msra.mxu1 %v1791_v11  ;;  %1093 = vmatprep.subr.bf16.mxu0 %v1792_v12  ;;  %v1821_v31 = vld [vmem:[%s2697_s1 + $0x100] ss:$8 sps:$4 sm:$0xff]   ;;  %v1824_v33 = vld [vmem:[%s2697_s1 + $0x1f4] ss:$8 sps:$4 sm:$0xff]   ;;  %v1827_v35 = vld [vmem:[%s2697_s1 + $0x1f0] ss:$8 sps:$4 sm:$0xff]  }
   0xd   :  { %1164 = vmatprep.subr.bf16.mxu1 %v1794_v13  ;;  %v1828_v36 = vld [vmem:[%s2697_s1 + $0xe4] ss:$8 sps:$4 sm:$0xff]   ;;  %v1832_v38 = vld [vmem:[%s2697_s1 + $0xe0] ss:$8 sps:$4 sm:$0xff]   ;;  %v1834_v40 = vld [vmem:[%s2697_s1 + $0xd4] ss:$8 sps:$4 sm:$0xff]  }
   0xe   :  { %v1830_v37 = vld [vmem:[%s2697_s1 + $0x1e4] ss:$8 sps:$4 sm:$0xff]   ;;  %v1833_v39 = vld [vmem:[%s2697_s1 + $0x1e0] ss:$8 sps:$4 sm:$0xff]   ;;  %v1836_v41 = vld [vmem:[%s2697_s1 + $0x1d4] ss:$8 sps:$4 sm:$0xff]  }
   0xf   :  { %1094 = vmatpush1.bf16.msra.mxu0 %v1796_v14  ;;  %v1838_v42 = vld [vmem:[%s2697_s1 + $0xd0] ss:$8 sps:$4 sm:$0xff]   ;;  %v1840_v44 = vld [vmem:[%s2697_s1 + $0xc4] ss:$8 sps:$4 sm:$0xff]   ;;  %v1844_v46 = vld [vmem:[%s2697_s1 + $0xc0] ss:$8 sps:$4 sm:$0xff]  }
  0x10   :  { %1165 = vmatpush1.bf16.msra.mxu1 %v1797_v15  ;;  %1095 = vmatprep.subr.bf16.mxu0 %v1798_v16  ;;  %v1839_v43 = vld [vmem:[%s2697_s1 + $0x1d0] ss:$8 sps:$4 sm:$0xff]   ;;  %v1842_v45 = vld [vmem:[%s2697_s1 + $0x1c4] ss:$8 sps:$4 sm:$0xff]   ;;  %v1845_v47 = vld [vmem:[%s2697_s1 + $0x1c0] ss:$8 sps:$4 sm:$0xff]  }
  0x11   :  { %1166 = vmatprep.subr.bf16.mxu1 %v1800_v17  ;;  %v1846_v48 = vld [vmem:[%s2697_s1 + $0xb4] ss:$8 sps:$4 sm:$0xff]   ;;  %v1872_v49 = vld [vmem:[%s2698_s0 + $0x4] ss:$36 sps:$4 sm:$0xff]   ;;  %v1875_v51 = vld [vmem:[%s2698_s0 + $0xc] ss:$36 sps:$4 sm:$0xff]  }
  0x12   :  { %v1848_v50 = vld [vmem:[%s2697_s1 + $0x1b4] ss:$8 sps:$4 sm:$0xff]   ;;  %1119 = vmatprep.mubr.bf16.mxu0 %v1872_v49  ;;  %v1850_v52 = vld [vmem:[%s2697_s1 + $0xb0] ss:$8 sps:$4 sm:$0xff]   ;;  %1190 = vmatprep.mubr.bf16.mxu1 %v1875_v51  ;;  %v1852_v54 = vld [vmem:[%s2697_s1 + $0xa4] ss:$8 sps:$4 sm:$0xff]  }
  0x13   :  { %1096 = vmatpush1.bf16.msra.mxu0 %v1802_v18  ;;  %v1851_v53 = vld [vmem:[%s2697_s1 + $0x1b0] ss:$8 sps:$4 sm:$0xff]   ;;  %v1854_v55 = vld [vmem:[%s2697_s1 + $0x1a4] ss:$8 sps:$4 sm:$0xff]   ;;  %v1856_v56 = vld [vmem:[%s2697_s1 + $0xa0] ss:$8 sps:$4 sm:$0xff]  }
  0x14   :  { %1167 = vmatpush1.bf16.msra.mxu1 %v1803_v19  ;;  %1097 = vmatprep.subr.bf16.mxu0 %v1804_v20  ;;  %v1857_v57 = vld [vmem:[%s2697_s1 + $0x1a0] ss:$8 sps:$4 sm:$0xff]   ;;  %v1858_v58 = vld [vmem:[%s2697_s1 + $0x94] ss:$8 sps:$4 sm:$0xff]   ;;  %v1862_v60 = vld [vmem:[%s2697_s1 + $0x90] ss:$8 sps:$4 sm:$0xff]  }
  0x15   :  { %1168 = vmatprep.subr.bf16.mxu1 %v1806_v21  ;;  %v1860_v59 = vld [vmem:[%s2697_s1 + $0x194] ss:$8 sps:$4 sm:$0xff]   ;;  %v1863_v61 = vld [vmem:[%s2697_s1 + $0x190] ss:$8 sps:$4 sm:$0xff]   ;;  %v1864_v62 = vld [vmem:[%s2697_s1 + $0x84] ss:$8 sps:$4 sm:$0xff]  }
  0x16   :  { %v1866_v63 = vld [vmem:[%s2697_s1 + $0x184] ss:$8 sps:$4 sm:$0xff]   ;;  %v1868_v0 = vld [vmem:[%s2697_s1 + $0x80] ss:$8 sps:$4 sm:$0xff]   ;;  %v1878_v2 = vld [vmem:[%s2697_s1 + $0x274] ss:$8 sps:$4 sm:$0xff]  }
  0x17   :  { %1098 = vmatpush1.bf16.msra.mxu0 %v1808_v22  ;;  %v1869_v1 = vld [vmem:[%s2697_s1 + $0x180] ss:$8 sps:$4 sm:$0xff]   ;;  %v1881_v3 = vld [vmem:[%s2697_s1 + $0x374] ss:$8 sps:$4 sm:$0xff]   ;;  %v1876_v6 = vld [vmem:[%s2697_s1 + $0x270] ss:$8 sps:$4 sm:$0xff]  }
  0x18   :  { %1169 = vmatpush1.bf16.msra.mxu1 %v1809_v23  ;;  %1099 = vmatprep.subr.bf16.mxu0 %v1810_v24  ;;  %v1870_v4 = vld [vmem:[%s2698_s0] ss:$36 sps:$4 sm:$0xff]   ;;  %v1873_v5 = vld [vmem:[%s2698_s0 + $0x8] ss:$36 sps:$4 sm:$0xff]   ;;  %v1879_v7 = vld [vmem:[%s2697_s1 + $0x370] ss:$8 sps:$4 sm:$0xff]  }
  0x19   :  { %1170 = vmatprep.subr.bf16.mxu1 %v1812_v25  ;;  %v1884_v8 = vld [vmem:[%s2697_s1 + $0x264] ss:$8 sps:$4 sm:$0xff]   ;;  %v1882_v10 = vld [vmem:[%s2697_s1 + $0x260] ss:$8 sps:$4 sm:$0xff]   ;;  %v1890_v12 = vld [vmem:[%s2697_s1 + $0x254] ss:$8 sps:$4 sm:$0xff]  }
  0x1a   :  { %v1887_v9 = vld [vmem:[%s2697_s1 + $0x364] ss:$8 sps:$4 sm:$0xff]   ;;  %v1885_v11 = vld [vmem:[%s2697_s1 + $0x360] ss:$8 sps:$4 sm:$0xff]   ;;  %v1893_v13 = vld [vmem:[%s2697_s1 + $0x354] ss:$8 sps:$4 sm:$0xff]  }
  0x1b   :  { %1100 = vmatpush1.bf16.msra.mxu0 %v1814_v26  ;;  %v1888_v14 = vld [vmem:[%s2697_s1 + $0x250] ss:$8 sps:$4 sm:$0xff]   ;;  %v1934_v18 = vld [vmem:[%s2698_s0 + $0x48] ss:$36 sps:$4 sm:$0xff]   ;;  %v1902_v24 = vld [vmem:[%s2697_s1 + $0x234] ss:$8 sps:$4 sm:$0xff]  }
  0x1c   :  { %1171 = vmatpush1.bf16.msra.mxu1 %v1815_v27  ;;  %1101 = vmatprep.subr.bf16.mxu0 %v1816_v28  ;;  %v1891_v15 = vld [vmem:[%s2697_s1 + $0x350] ss:$8 sps:$4 sm:$0xff]   ;;  %v1896_v20 = vld [vmem:[%s2697_s1 + $0x244] ss:$8 sps:$4 sm:$0xff]   ;;  %v1894_v22 = vld [vmem:[%s2697_s1 + $0x240] ss:$8 sps:$4 sm:$0xff]  }
  0x1d   :  { %1172 = vmatprep.subr.bf16.mxu1 %v1818_v29  ;;  %v1930_v16 = vld [vmem:[%s2698_s0 + $0x4c] ss:$36 sps:$4 sm:$0xff]   ;;  %v1932_v17 = vld [vmem:[%s2698_s0 + $0x54] ss:$36 sps:$4 sm:$0xff]   ;;  %v1897_v23 = vld [vmem:[%s2697_s1 + $0x340] ss:$8 sps:$4 sm:$0xff]  }
  0x1e   :  { %v1935_v19 = vld [vmem:[%s2698_s0 + $0x50] ss:$36 sps:$4 sm:$0xff]   ;;  %v1899_v21 = vld [vmem:[%s2697_s1 + $0x344] ss:$8 sps:$4 sm:$0xff]   ;;  %v1950_v29 = vld [vmem:[%s2698_s0 + $0x9c] ss:$36 sps:$4 sm:$0xff]  }
  0x1f   :  { %1102 = vmatpush1.bf16.msra.mxu0 %v1820_v30  ;;  %v1905_v25 = vld [vmem:[%s2697_s1 + $0x334] ss:$8 sps:$4 sm:$0xff]   ;;  %v1900_v26 = vld [vmem:[%s2697_s1 + $0x230] ss:$8 sps:$4 sm:$0xff]   ;;  %v1921_v49 = vld [vmem:[%s2697_s1 + $0x300] ss:$8 sps:$4 sm:$0xff]  }
  0x20   :  { %1173 = vmatpush1.bf16.msra.mxu1 %v1821_v31  ;;  %1103 = vmatprep.subr.bf16.mxu0 %v1822_v32  ;;  %v1903_v27 = vld [vmem:[%s2697_s1 + $0x330] ss:$8 sps:$4 sm:$0xff]   ;;  %v1908_v32 = vld [vmem:[%s2697_s1 + $0x224] ss:$8 sps:$4 sm:$0xff]   ;;  %v1929_v51 = vld [vmem:[%s2697_s1 + $0x3f4] ss:$8 sps:$4 sm:$0xff]  }
  0x21   :  { %1174 = vmatprep.subr.bf16.mxu1 %v1824_v33  ;;  %v1948_v28 = vld [vmem:[%s2698_s0 + $0x94] ss:$36 sps:$4 sm:$0xff]   ;;  %v1911_v33 = vld [vmem:[%s2697_s1 + $0x324] ss:$8 sps:$4 sm:$0xff]  }
  0x22   :  { %v1952_v30 = vld [vmem:[%s2698_s0 + $0x90] ss:$36 sps:$4 sm:$0xff]   ;;  %v1953_v31 = vld [vmem:[%s2698_s0 + $0x98] ss:$36 sps:$4 sm:$0xff]  }
  0x23   :  { %1104 = vmatpush2.bf16.msra.mxu0 %v1826_v34  ;;  %v1906_v34 = vld [vmem:[%s2697_s1 + $0x220] ss:$8 sps:$4 sm:$0xff]  }
  0x24   :  { %1175 = vmatpush2.bf16.msra.mxu1 %v1827_v35  ;;  %1105 = vmatprep.subr.bf16.mxu0 %v1828_v36  ;;  %v1909_v35 = vld [vmem:[%s2697_s1 + $0x320] ss:$8 sps:$4 sm:$0xff]   ;;  %v1914_v36 = vld [vmem:[%s2697_s1 + $0x214] ss:$8 sps:$4 sm:$0xff]  }
  0x25   :  { %1176 = vmatprep.subr.bf16.mxu1 %v1830_v37  ;;  %v1917_v37 = vld [vmem:[%s2697_s1 + $0x314] ss:$8 sps:$4 sm:$0xff]  }
  0x27   :  { %1106 = vmatpush2.bf16.msra.mxu0 %v1832_v38  ;;  %v48_v38 = vld [vmem:[%s2698_s0 + $0xd8] sm:$0x77] }
  0x28   :  { %1177 = vmatpush2.bf16.msra.mxu1 %v1833_v39  ;;  %1107 = vmatprep.subr.bf16.mxu0 %v1834_v40  ;;  %v1591_v39 = vcombine.high %v48_v38, %v48_v38  ;;  %v1912_v40 = vld [vmem:[%s2697_s1 + $0x210] ss:$8 sps:$4 sm:$0xff]  }
  0x29   :  { %1178 = vmatprep.subr.bf16.mxu1 %v1836_v41  ;;  %v1590_v41 = vcombine.low %v48_v38, %v48_v38  ;;  %v2017_v38 = vld [vmem:[%s2698_s0 + $0xa8] ss:$36 sps:$4 sm:$0xff]  }
  0x2b   :  { %1108 = vmatpush2.bf16.msra.mxu0 %v1838_v42  ;;  %v1915_v42 = vld [vmem:[%s2697_s1 + $0x310] ss:$8 sps:$4 sm:$0xff]  }
  0x2c   :  { %1179 = vmatpush2.bf16.msra.mxu1 %v1839_v43  ;;  %1109 = vmatprep.subr.bf16.mxu0 %v1840_v44  ;;  %v49_v43 = vld [vmem:[%s2698_s0 + $0xe0] sm:$0x77] }
  0x2d   :  { %1180 = vmatprep.subr.bf16.mxu1 %v1842_v45  ;;  %v1920_v44 = vld [vmem:[%s2697_s1 + $0x204] ss:$8 sps:$4 sm:$0xff]  }
  0x2e   :  { %v1923_v45 = vld [vmem:[%s2697_s1 + $0x304] ss:$8 sps:$4 sm:$0xff]  }
  0x2f   :  { %1110 = vmatpush2.bf16.msra.mxu0 %v1844_v46  ;;  %v1593_v46 = vcombine.high %v49_v43, %v49_v43 }
  0x30   :  { %1181 = vmatpush2.bf16.msra.mxu1 %v1845_v47  ;;  %1111 = vmatprep.subr.bf16.mxu0 %v1846_v48  ;;  %v1592_v47 = vcombine.low %v49_v43, %v49_v43  ;;  %v1918_v48 = vld [vmem:[%s2697_s1 + $0x200] ss:$8 sps:$4 sm:$0xff]  }
  0x31   :  { %1182 = vmatprep.subr.bf16.mxu1 %v1848_v50  ;;  %v1926_v50 = vld [vmem:[%s2697_s1 + $0x2f4] ss:$8 sps:$4 sm:$0xff]  }
  0x33   :  { %1112 = vmatpush2.bf16.msra.mxu0 %v1850_v52  ;;  %v1924_v52 = vld [vmem:[%s2697_s1 + $0x2f0] ss:$8 sps:$4 sm:$0xff]  }
  0x34   :  { %1183 = vmatpush2.bf16.msra.mxu1 %v1851_v53  ;;  %1113 = vmatprep.subr.bf16.mxu0 %v1852_v54  ;;  %v1990_v53 = vld [vmem:[%s2698_s0 + $0x14] ss:$36 sps:$4 sm:$0xff]  }
  0x35   :  { %1184 = vmatprep.subr.bf16.mxu1 %v1854_v55  ;;  %v1927_v54 = vld [vmem:[%s2697_s1 + $0x3f0] ss:$8 sps:$4 sm:$0xff]   ;;  %v1993_v55 = vld [vmem:[%s2698_s0 + $0x1c] ss:$36 sps:$4 sm:$0xff]  }
  0x37   :  { %1114 = vmatpush2.bf16.msra.mxu0 %v1856_v56  ;;  %v1938_v56 = vld [vmem:[%s2697_s1 + $0x2e4] ss:$8 sps:$4 sm:$0xff]  }
  0x38   :  { %1185 = vmatpush2.bf16.msra.mxu1 %v1857_v57  ;;  %1115 = vmatprep.subr.bf16.mxu0 %v1858_v58  ;;  %v1941_v57 = vld [vmem:[%s2697_s1 + $0x3e4] ss:$8 sps:$4 sm:$0xff]   ;;  %v1936_v58 = vld [vmem:[%s2697_s1 + $0x2e0] ss:$8 sps:$4 sm:$0xff]  }
  0x39   :  { %1186 = vmatprep.subr.bf16.mxu1 %v1860_v59  ;;  %v1939_v59 = vld [vmem:[%s2697_s1 + $0x3e0] ss:$8 sps:$4 sm:$0xff]  }
  0x3b   :  { %1116 = vmatpush2.bf16.msra.mxu0 %v1862_v60  ;;  %v1944_v60 = vld [vmem:[%s2697_s1 + $0x2d4] ss:$8 sps:$4 sm:$0xff]  }
  0x3c   :  { %1187 = vmatpush2.bf16.msra.mxu1 %v1863_v61  ;;  %1117 = vmatprep.subr.bf16.mxu0 %v1864_v62  ;;  %v1947_v61 = vld [vmem:[%s2697_s1 + $0x3d4] ss:$8 sps:$4 sm:$0xff]   ;;  %v1942_v62 = vld [vmem:[%s2697_s1 + $0x2d0] ss:$8 sps:$4 sm:$0xff]  }
  0x3d   :  { %1188 = vmatprep.subr.bf16.mxu1 %v1866_v63  ;;  %v1945_v63 = vld [vmem:[%s2697_s1 + $0x3d0] ss:$8 sps:$4 sm:$0xff]  }
  0x3f   :  { %1118 = vmatpush2.bf16.msra.mxu0 %v1868_v0  ;;  %v1956_v0 = vld [vmem:[%s2697_s1 + $0x2c4] ss:$8 sps:$4 sm:$0xff]  }
  0x40   :  { %1189 = vmatpush2.bf16.msra.mxu1 %v1869_v1  ;;  %1229 = vmatprep.subr.bf16.mxu0 %v1878_v2  ;;  %v1959_v1 = vld [vmem:[%s2697_s1 + $0x3c4] ss:$8 sps:$4 sm:$0xff]   ;;  %v1954_v2 = vld [vmem:[%s2697_s1 + $0x2c0] ss:$8 sps:$4 sm:$0xff]  }
  0x41   :  { %1300 = vmatprep.subr.bf16.mxu1 %v1881_v3  ;;  %v1957_v3 = vld [vmem:[%s2697_s1 + $0x3c0] ss:$8 sps:$4 sm:$0xff]  }
  0x42   :  { %1120 = vmatmul.mubr.bf16.vlgmr.msra.gmra.mxu0 %v1870_v4  ;;  %v1962_v4 = vld [vmem:[%s2697_s1 + $0x2b4] ss:$8 sps:$4 sm:$0xff]  }
  0x43   :  { %1191 = vmatmul.mubr.bf16.vlgmr.msra.gmra.mxu1 %v1873_v5  ;;  %1230 = vmatpush1.bf16.msra.mxu0 %v1876_v6  ;;  %v1965_v5 = vld [vmem:[%s2697_s1 + $0x3b4] ss:$8 sps:$4 sm:$0xff]   ;;  %v1960_v6 = vld [vmem:[%s2697_s1 + $0x2b0] ss:$8 sps:$4 sm:$0xff]  }
  0x44   :  { %1301 = vmatpush1.bf16.msra.mxu1 %v1879_v7  ;;  %1231 = vmatprep.subr.bf16.mxu0 %v1884_v8  ;;  %v1963_v7 = vld [vmem:[%s2697_s1 + $0x3b0] ss:$8 sps:$4 sm:$0xff]   ;;  %v1970_v8 = vld [vmem:[%s2697_s1 + $0x2a4] ss:$8 sps:$4 sm:$0xff]  }
  0x45   :  { %1302 = vmatprep.subr.bf16.mxu1 %v1887_v9  ;;  %1129 = vmatprep.mubr.bf16.mxu0 %v1930_v16  ;;  %v1973_v9 = vld [vmem:[%s2697_s1 + $0x3a4] ss:$8 sps:$4 sm:$0xff]  }
  0x46   :  { %1200 = vmatprep.mubr.bf16.mxu1 %v1932_v17  ;;  %v1984_v16 = vld [vmem:[%s2697_s1 + $0x284] ss:$8 sps:$4 sm:$0xff]  }
  0x47   :  { %1232 = vmatpush1.bf16.msra.mxu0 %v1882_v10  ;;  %v1968_v10 = vld [vmem:[%s2697_s1 + $0x2a0] ss:$8 sps:$4 sm:$0xff]   ;;  %v1987_v17 = vld [vmem:[%s2697_s1 + $0x384] ss:$8 sps:$4 sm:$0xff]  }
  0x48   :  { %1303 = vmatpush1.bf16.msra.mxu1 %v1885_v11  ;;  %1233 = vmatprep.subr.bf16.mxu0 %v1890_v12  ;;  %v1971_v11 = vld [vmem:[%s2697_s1 + $0x3a0] ss:$8 sps:$4 sm:$0xff]   ;;  %v1978_v12 = vld [vmem:[%s2697_s1 + $0x294] ss:$8 sps:$4 sm:$0xff]  }
  0x49   :  { %1304 = vmatprep.subr.bf16.mxu1 %v1893_v13  ;;  %v1981_v13 = vld [vmem:[%s2697_s1 + $0x394] ss:$8 sps:$4 sm:$0xff]  }
  0x4a   :  { %1130 = vmatmul.mubr.bf16.gmra.mxu0 %v1934_v18  ;;  %v1982_v18 = vld [vmem:[%s2697_s1 + $0x280] ss:$8 sps:$4 sm:$0xff]  }
  0x4b   :  { %1201 = vmatmul.mubr.bf16.gmra.mxu1 %v1935_v19  ;;  %1234 = vmatpush1.bf16.msra.mxu0 %v1888_v14  ;;  %v1976_v14 = vld [vmem:[%s2697_s1 + $0x290] ss:$8 sps:$4 sm:$0xff]   ;;  %v1985_v19 = vld [vmem:[%s2697_s1 + $0x380] ss:$8 sps:$4 sm:$0xff]  }
  0x4c   :  { %1305 = vmatpush1.bf16.msra.mxu1 %v1891_v15  ;;  %1235 = vmatprep.subr.bf16.mxu0 %v1896_v20  ;;  %v1979_v15 = vld [vmem:[%s2697_s1 + $0x390] ss:$8 sps:$4 sm:$0xff]   ;;  %v1996_v20 = vld [vmem:[%s2697_s1 + $0x474] ss:$8 sps:$4 sm:$0xff]  }
  0x4d   :  { %1306 = vmatprep.subr.bf16.mxu1 %v1899_v21  ;;  %1139 = vmatprep.mubr.bf16.mxu0 %v1948_v28  ;;  %v1988_v21 = vld [vmem:[%s2698_s0 + $0x10] ss:$36 sps:$4 sm:$0xff]  }
  0x4e   :  { %1210 = vmatprep.mubr.bf16.mxu1 %v1950_v29  ;;  %v2008_v28 = vld [vmem:[%s2697_s1 + $0x454] ss:$8 sps:$4 sm:$0xff]  }
  0x4f   :  { %1236 = vmatpush1.bf16.msra.mxu0 %v1894_v22  ;;  %v1991_v22 = vld [vmem:[%s2698_s0 + $0x18] ss:$36 sps:$4 sm:$0xff]  }
  0x50   :  { %1307 = vmatpush1.bf16.msra.mxu1 %v1897_v23  ;;  %1237 = vmatprep.subr.bf16.mxu0 %v1902_v24  ;;  %v1994_v23 = vld [vmem:[%s2697_s1 + $0x470] ss:$8 sps:$4 sm:$0xff]   ;;  %v1999_v24 = vld [vmem:[%s2697_s1 + $0x464] ss:$8 sps:$4 sm:$0xff]  }
  0x51   :  { %1308 = vmatprep.subr.bf16.mxu1 %v1905_v25  ;;  %v2000_v25 = vld [vmem:[%s2698_s0 + $0x5c] ss:$36 sps:$4 sm:$0xff]  }
  0x52   :  { %1140 = vmatmul.mubr.bf16.gmra.mxu0 %v1952_v30  ;;  %v2004_v29 = vld [vmem:[%s2698_s0 + $0x58] ss:$36 sps:$4 sm:$0xff]   ;;  %v2005_v30 = vld [vmem:[%s2698_s0 + $0x60] ss:$36 sps:$4 sm:$0xff]  }
  0x53   :  { %1211 = vmatmul.mubr.bf16.gmra.mxu1 %v1953_v31  ;;  %1238 = vmatpush1.bf16.msra.mxu0 %v1900_v26  ;;  %v2002_v26 = vld [vmem:[%s2698_s0 + $0x64] ss:$36 sps:$4 sm:$0xff]   ;;  %v2006_v31 = vld [vmem:[%s2697_s1 + $0x450] ss:$8 sps:$4 sm:$0xff]  }
  0x54   :  { %1309 = vmatpush1.bf16.msra.mxu1 %v1903_v27  ;;  %1239 = vmatprep.subr.bf16.mxu0 %v1908_v32  ;;  %v1997_v27 = vld [vmem:[%s2697_s1 + $0x460] ss:$8 sps:$4 sm:$0xff]   ;;  %v2011_v32 = vld [vmem:[%s2697_s1 + $0x444] ss:$8 sps:$4 sm:$0xff]  }
  0x55   :  { %1310 = vmatprep.subr.bf16.mxu1 %v1911_v33  ;;  %1149 = vmatprep.mubr.bf16.mxu0 %v1591_v39  ;;  %v2012_v33 = vld [vmem:[%s2698_s0 + $0xa4] ss:$36 sps:$4 sm:$0xff]  }
  0x56   :  { %1220 = vmatprep.mubr.bf16.mxu1 %v1593_v46  ;;  %v50_v39 = vld [vmem:[%s2698_s0 + $0xe8] sm:$0x77]  ;;  %v2030_v46 = vld [vmem:[%s2697_s1 + $0x414] ss:$8 sps:$4 sm:$0xff]  }
  0x57   :  { %1240 = vmatpush1.bf16.msra.mxu0 %v1906_v34  ;;  %v2014_v34 = vld [vmem:[%s2698_s0 + $0xac] ss:$36 sps:$4 sm:$0xff]   ;;  %v1595_v43 = vcombine.high %v50_v39, %v50_v39 }
  0x58   :  { %1311 = vmatpush1.bf16.msra.mxu1 %v1909_v35  ;;  %1241 = vmatprep.subr.bf16.mxu0 %v1914_v36  ;;  %v2009_v35 = vld [vmem:[%s2697_s1 + $0x440] ss:$8 sps:$4 sm:$0xff]   ;;  %v2020_v36 = vld [vmem:[%s2697_s1 + $0x434] ss:$8 sps:$4 sm:$0xff]  }
  0x59   :  { %1312 = vmatprep.subr.bf16.mxu1 %v1917_v37  ;;  %v2016_v37 = vld [vmem:[%s2698_s0 + $0xa0] ss:$36 sps:$4 sm:$0xff]  }
  0x5a   :  { %1150 = vmatmul.mubr.bf16.gmra.mxu0 %v1590_v41  ;;  %v2018_v41 = vld [vmem:[%s2697_s1 + $0x430] ss:$8 sps:$4 sm:$0xff]  }
  0x5b   :  { %1242 = vmatpush1.bf16.msra.mxu0 %v1912_v40  ;;  %1221 = vmatmul.mubr.bf16.gmra.mxu1 %v1592_v47  ;;  %v51_v40 = vld [vmem:[%s2698_s0 + $0xf0] sm:$0x77]  ;;  %v1594_v47 = vcombine.low %v50_v39, %v50_v39 }
  0x5c   :  { %1313 = vmatpush1.bf16.msra.mxu1 %v1915_v42  ;;  %1243 = vmatprep.subr.bf16.mxu0 %v1920_v44  ;;  %v2023_v42 = vld [vmem:[%s2697_s1 + $0x424] ss:$8 sps:$4 sm:$0xff]   ;;  %v1597_v44 = vcombine.high %v51_v40, %v51_v40 }
  0x5d   :  { %1314 = vmatprep.subr.bf16.mxu1 %v1923_v45  ;;  %1261 = vmatprep.mubr.bf16.mxu0 %v1990_v53  ;;  %v2021_v45 = vld [vmem:[%s2697_s1 + $0x420] ss:$8 sps:$4 sm:$0xff]  }
  0x5e   :  { %1332 = vmatprep.mubr.bf16.mxu1 %v1993_v55  ;;  %v2034_v53 = vld [vmem:[%s2698_s0 + $0x20] ss:$36 sps:$4 sm:$0xff]   ;;  %v2036_v55 = vld [vmem:[%s2698_s0 + $0x68] ss:$36 sps:$4 sm:$0xff]  }
  0x5f   :  { %1244 = vmatpush1.bf16.msra.mxu0 %v1918_v48  ;;  %v1596_v48 = vcombine.low %v51_v40, %v51_v40 }
  0x60   :  { %1315 = vmatpush1.bf16.msra.mxu1 %v1921_v49  ;;  %1245 = vmatprep.subr.bf16.mxu0 %v1926_v50  ;;  %v2028_v49 = vld [vmem:[%s2697_s1 + $0x410] ss:$8 sps:$4 sm:$0xff]   ;;  %v2033_v50 = vld [vmem:[%s2697_s1 + $0x404] ss:$8 sps:$4 sm:$0xff]  }
  0x61   :  { %1316 = vmatprep.subr.bf16.mxu1 %v1929_v51  ;;  %v2031_v51 = vld [vmem:[%s2697_s1 + $0x400] ss:$8 sps:$4 sm:$0xff]  }
  0x63   :  { %1246 = vmatpush2.bf16.msra.mxu0 %v1924_v52  ;;  %v2038_v52 = vmov 0  }
  0x64   :  { %1317 = vmatpush2.bf16.msra.mxu1 %v1927_v54  ;;  %1247 = vmatprep.subr.bf16.mxu0 %v1938_v56  ;;  %v2035_v54 = vld [vmem:[%s2698_s0 + $0xb0] ss:$36 sps:$4 sm:$0xff]   ;;  %v2037_v56 = vld [vmem:[%s2698_s0 + $0xf8] ss:$0 sps:$4 sm:$0x77]  }
  0x65   :  { %1318 = vmatprep.subr.bf16.mxu1 %v1941_v57 }
  0x67   :  { %1248 = vmatpush2.bf16.msra.mxu0 %v1936_v58 }
  0x68   :  { %1319 = vmatpush2.bf16.msra.mxu1 %v1939_v59  ;;  %1249 = vmatprep.subr.bf16.mxu0 %v1944_v60 }
  0x69   :  { %1320 = vmatprep.subr.bf16.mxu1 %v1947_v61 }
  0x6b   :  { %1250 = vmatpush2.bf16.msra.mxu0 %v1942_v62 }
  0x6c   :  { %1321 = vmatpush2.bf16.msra.mxu1 %v1945_v63  ;;  %1251 = vmatprep.subr.bf16.mxu0 %v1956_v0 }
  0x6d   :  { %1322 = vmatprep.subr.bf16.mxu1 %v1959_v1 }
  0x6f   :  { %1252 = vmatpush2.bf16.msra.mxu0 %v1954_v2 }
  0x70   :  { %1323 = vmatpush2.bf16.msra.mxu1 %v1957_v3  ;;  %1253 = vmatprep.subr.bf16.mxu0 %v1962_v4 }
  0x71   :  { %1324 = vmatprep.subr.bf16.mxu1 %v1965_v5 }
  0x73   :  { %1254 = vmatpush2.bf16.msra.mxu0 %v1960_v6 }
  0x74   :  { %1325 = vmatpush2.bf16.msra.mxu1 %v1963_v7  ;;  %1255 = vmatprep.subr.bf16.mxu0 %v1970_v8 }
  0x75   :  { %1326 = vmatprep.subr.bf16.mxu1 %v1973_v9 }
  0x77   :  { %1256 = vmatpush2.bf16.msra.mxu0 %v1968_v10 }
  0x78   :  { %1327 = vmatpush2.bf16.msra.mxu1 %v1971_v11  ;;  %1257 = vmatprep.subr.bf16.mxu0 %v1978_v12 }
  0x79   :  { %1328 = vmatprep.subr.bf16.mxu1 %v1981_v13 }
  0x7b   :  { %1258 = vmatpush2.bf16.msra.mxu0 %v1976_v14 }
  0x7c   :  { %1329 = vmatpush2.bf16.msra.mxu1 %v1979_v15  ;;  %1259 = vmatprep.subr.bf16.mxu0 %v1984_v16 }
  0x7d   :  { %1330 = vmatprep.subr.bf16.mxu1 %v1987_v17 }
  0x7f   :  { %1260 = vmatpush2.bf16.msra.mxu0 %v1982_v18 }
  0x80   :  { %1331 = vmatpush2.bf16.msra.mxu1 %v1985_v19  ;;  %1371 = vmatprep.subr.bf16.mxu0 %v1996_v20 }
  0x81   :  { %1757 = vmatprep.subr.bf16.mxu1 %v1996_v20 }
  0x82   :  { %1262 = vmatmul.mubr.bf16.vlgmr.msra.gmra.mxu0 %v1988_v21 }
  0x83   :  { %1333 = vmatmul.mubr.bf16.vlgmr.msra.gmra.mxu1 %v1991_v22  ;;  %1372 = vmatpush1.bf16.msra.mxu0 %v1994_v23 }
  0x84   :  { %1765 = vmatpush1.bf16.msra.mxu1 %v1994_v23  ;;  %1373 = vmatprep.subr.bf16.mxu0 %v1999_v24 }
  0x85   :  { %1758 = vmatprep.subr.bf16.mxu1 %v1999_v24  ;;  %1271 = vmatprep.mubr.bf16.mxu0 %v2000_v25 }
  0x86   :  { %1342 = vmatprep.mubr.bf16.mxu1 %v2002_v26 }
  0x87   :  { %1374 = vmatpush1.bf16.msra.mxu0 %v1997_v27 }
  0x88   :  { %1766 = vmatpush1.bf16.msra.mxu1 %v1997_v27  ;;  %1375 = vmatprep.subr.bf16.mxu0 %v2008_v28 }
  0x89   :  { %1759 = vmatprep.subr.bf16.mxu1 %v2008_v28 }
  0x8a   :  { %1272 = vmatmul.mubr.bf16.gmra.mxu0 %v2004_v29 }
  0x8b   :  { %1343 = vmatmul.mubr.bf16.gmra.mxu1 %v2005_v30  ;;  %1376 = vmatpush1.bf16.msra.mxu0 %v2006_v31 }
  0x8c   :  { %1767 = vmatpush1.bf16.msra.mxu1 %v2006_v31  ;;  %1377 = vmatprep.subr.bf16.mxu0 %v2011_v32 }
  0x8d   :  { %1760 = vmatprep.subr.bf16.mxu1 %v2011_v32  ;;  %1281 = vmatprep.mubr.bf16.mxu0 %v2012_v33 }
  0x8e   :  { %1352 = vmatprep.mubr.bf16.mxu1 %v2014_v34 }
  0x8f   :  { %1378 = vmatpush1.bf16.msra.mxu0 %v2009_v35 }
  0x90   :  { %1768 = vmatpush1.bf16.msra.mxu1 %v2009_v35  ;;  %1379 = vmatprep.subr.bf16.mxu0 %v2020_v36 }
  0x91   :  { %1761 = vmatprep.subr.bf16.mxu1 %v2020_v36 }
  0x92   :  { %1282 = vmatmul.mubr.bf16.gmra.mxu0 %v2016_v37 }
  0x93   :  { %1353 = vmatmul.mubr.bf16.gmra.mxu1 %v2017_v38  ;;  %1380 = vmatpush1.bf16.msra.mxu0 %v2018_v41 }
  0x94   :  { %1769 = vmatpush1.bf16.msra.mxu1 %v2018_v41  ;;  %1381 = vmatprep.subr.bf16.mxu0 %v2023_v42 }
  0x95   :  { %1762 = vmatprep.subr.bf16.mxu1 %v2023_v42  ;;  %1291 = vmatprep.mubr.bf16.mxu0 %v1595_v43 }
  0x96   :  { %1362 = vmatprep.mubr.bf16.mxu1 %v1597_v44 }
  0x97   :  { %1382 = vmatpush1.bf16.msra.mxu0 %v2021_v45 }
  0x98   :  { %1770 = vmatpush1.bf16.msra.mxu1 %v2021_v45  ;;  %1383 = vmatprep.subr.bf16.mxu0 %v2030_v46 }
  0x99   :  { %1763 = vmatprep.subr.bf16.mxu1 %v2030_v46 }
  0x9a   :  { %1292 = vmatmul.mubr.bf16.gmra.mxu0 %v1594_v47 }
  0x9b   :  { %1363 = vmatmul.mubr.bf16.gmra.mxu1 %v1596_v48  ;;  %1384 = vmatpush1.bf16.msra.mxu0 %v2028_v49 }
  0x9c   :  { %1771 = vmatpush1.bf16.msra.mxu1 %v2028_v49  ;;  %1385 = vmatprep.subr.bf16.mxu0 %v2033_v50 }
  0x9d   :  { %1764 = vmatprep.subr.bf16.mxu1 %v2033_v50  ;;  %1403 = vmatprep.mubr.bf16.mxu0 %v2038_v52 }
  0x9e   :  { %1423 = vmatprep.mubr.bf16.mxu1 %v2038_v52 }
  0x9f   :  { %1386 = vmatpush1.bf16.msra.mxu0 %v2031_v51 }
  0xa0   :  { %1772 = vmatpush1.bf16.msra.mxu1 %v2031_v51 }
  0xa2   :  { %1404 = vmatmul.mubr.bf16.vlgmr.msra.gmra.mxu0 %v2034_v53 }
  0xa3   :  { %1424 = vmatmul.mubr.bf16.vlgmr.msra.gmra.mxu1 %v2035_v54  ;;  %1413 = vmatprep.mubr.bf16.mxu0 %v2038_v52 }
  0xa4   :  { %1433 = vmatprep.mubr.bf16.mxu1 %v2038_v52 }
  0xaa   :  { %1414 = vmatmul.mubr.bf16.gmra.mxu0 %v2036_v55 }
  0xab   :  { %1434 = vmatmul.mubr.bf16.gmra.mxu1 %v2037_v56 }
 0x102   :  { %v1121_v57 = vpop.f32.mrf.mxu0 }
 0x103   :  { %v1192_v58 = vpop.f32.mrf.mxu1 }
 0x104   :  { %v2592_v59 = vadd.f32 %v1192_v58, %v1121_v57  ;;  %v1123_v60 = vpop.f32.mrf.mxu0 }
 0x105   :  { %v1194_v61 = vpop.f32.mrf.mxu1 }
 0x106   :  { %v2594_v62 = vadd.f32 %v1194_v61, %v1123_v60  ;;  %v1125_v63 = vpop.f32.mrf.mxu0  ;;  %v1444_v60 = vlaneseq }
 0x107   :  { %v1196_v0 = vpop.f32.mrf.mxu1 }
 0x108   :  { %v2596_v1 = vadd.f32 %v1196_v0, %v1125_v63  ;;  %v1127_v2 = vpop.f32.mrf.mxu0 }
 0x109   :  { %v1198_v3 = vpop.f32.mrf.mxu1 }
 0x10a   :  { %v2598_v4 = vadd.f32 %v1198_v3, %v1127_v2  ;;  %v1131_v5 = vpop.f32.mrf.mxu0  ;;  %v1445_v3 = vshrl.u32 %v1444_v60, 7 }
 0x10b   :  { %v1202_v6 = vpop.f32.mrf.mxu1 }
 0x10c   :  { %v2600_v7 = vadd.f32 %v1202_v6, %v1131_v5  ;;  %v1133_v8 = vpop.f32.mrf.mxu0 }
 0x10d   :  { %v1204_v9 = vpop.f32.mrf.mxu1 }
 0x10e   :  { %v2602_v10 = vadd.f32 %v1204_v9, %v1133_v8  ;;  %v1135_v11 = vpop.f32.mrf.mxu0 }
 0x10f   :  { %v1206_v12 = vpop.f32.mrf.mxu1 }
 0x110   :  { %v2604_v13 = vadd.f32 %v1206_v12, %v1135_v11  ;;  %v1137_v14 = vpop.f32.mrf.mxu0  ;;  %v1446_v11 = vsub.s32 0, %v1445_v3 }
 0x111   :  { %v1208_v15 = vpop.f32.mrf.mxu1 }
 0x112   :  { %v2606_v16 = vadd.f32 %v1208_v15, %v1137_v14  ;;  %v1141_v17 = vpop.f32.mrf.mxu0  ;;  %v1442_v15 = vld [vmem:[%s2699_s2] sm:$0x3] }
 0x113   :  { %v1212_v18 = vpop.f32.mrf.mxu1 }
 0x114   :  { %v1213_v19 = vadd.f32 %v1212_v18, %v1141_v17  ;;  %v1143_v20 = vpop.f32.mrf.mxu0  ;;  %v1468_v17 = vld [vmem:[%s2700_s3] sm:$0x3]  ;;  %v1450_v18 = vsub.s32 1, %v1445_v3 }
 0x115   :  { %v1214_v21 = vpop.f32.mrf.mxu1 }
 0x116   :  { %v1215_v22 = vadd.f32 %v1214_v21, %v1143_v20  ;;  %v1145_v23 = vpop.f32.mrf.mxu0 }
 0x117   :  { %v1216_v24 = vpop.f32.mrf.mxu1 }
 0x118   :  { %v2608_v25 = vadd.f32 %v1216_v24, %v1145_v23  ;;  %v1147_v26 = vpop.f32.mrf.mxu0 }
 0x119   :  { %v1218_v27 = vpop.f32.mrf.mxu1 }
 0x11a   :  { %v2610_v28 = vadd.f32 %v1218_v27, %v1147_v26  ;;  %v1151_v29 = vpop.f32.mrf.mxu0 }
 0x11b   :  { %v1222_v31 = vpop.f32.mrf.mxu1 }
 0x11c   :  { %v1153_v30 = vpop.f32.mrf.mxu0  ;;  %v2612_v33 = vadd.f32 %v1222_v31, %v1151_v29  ;;  %v2632_v31 = vrot.slane %v1442_v15, %v1446_v11 }
 0x11d   :  { %v1224_v34 = vpop.f32.mrf.mxu1 }
 0x11e   :  { %v1155_v32 = vpop.f32.mrf.mxu0  ;;  %v2614_v36 = vadd.f32 %v1224_v34, %v1153_v30 }
 0x11f   :  { %v1226_v37 = vpop.f32.mrf.mxu1  ;;  %v2634_v32 = vrot.slane %v1468_v17, %v1446_v11 }
 0x120   :  { %v1156_v35 = vpop.f32.mrf.mxu0 }
 0x121   :  { %v1227_v38 = vpop.f32.mrf.mxu1 }
 0x142   :  { %v1263_v39 = vpop.f32.mrf.mxu0 }
 0x143   :  { %v1334_v40 = vpop.f32.mrf.mxu1  ;;  %v1264_v12 = vadd.f32 %v1263_v39, %v2592_v59 }
 0x144   :  { %v1265_v41 = vpop.f32.mrf.mxu0 }
 0x145   :  { %v1336_v42 = vpop.f32.mrf.mxu1  ;;  %v1266_v20 = vadd.f32 %v1265_v41, %v2594_v62  ;;  %v1335_v34 = vadd.f32 %v1334_v40, %v1264_v12  ;;  %v2636_v62 = vrot.slane %v1442_v15, %v1450_v18 }
 0x146   :  { %v1267_v43 = vpop.f32.mrf.mxu0 }
 0x147   :  { %v1338_v44 = vpop.f32.mrf.mxu1  ;;  %v1268_v21 = vadd.f32 %v1267_v43, %v2596_v1  ;;  %v2638_v1 = vrot.slane %v1468_v17, %v1450_v18  ;;  %v1337_v37 = vadd.f32 %v1336_v42, %v1266_v20 }
 0x148   :  { %v1269_v45 = vpop.f32.mrf.mxu0 }
 0x149   :  { %v1340_v46 = vpop.f32.mrf.mxu1  ;;  %v1270_v26 = vadd.f32 %v1269_v45, %v2598_v4  ;;  %v1339_v38 = vadd.f32 %v1338_v44, %v1268_v21 }
 0x14a   :  { %v1273_v47 = vpop.f32.mrf.mxu0 }
 0x14b   :  { %v1344_v48 = vpop.f32.mrf.mxu1  ;;  %v1274_v59 = vadd.f32 %v1273_v47, %v2600_v7  ;;  %v1341_v39 = vadd.f32 %v1340_v46, %v1270_v26 }
 0x14c   :  { %v1275_v49 = vpop.f32.mrf.mxu0 }
 0x14d   :  { %v1346_v50 = vpop.f32.mrf.mxu1  ;;  %v1345_v47 = vadd.f32 %v1344_v48, %v1274_v59 }
 0x14e   :  { %v1277_v51 = vpop.f32.mrf.mxu0 }
 0x14f   :  { %v2616_v52 = vpop.f32.mrf.mxu1  ;;  %v1278_v60 = vadd.f32 %v1277_v51, %v2604_v13 }
 0x150   :  { %v1279_v53 = vpop.f32.mrf.mxu0 }
 0x151   :  { %v2618_v54 = vpop.f32.mrf.mxu1  ;;  %v1280_v46 = vadd.f32 %v1279_v53, %v2606_v16 }
 0x152   :  { %v1283_v55 = vpop.f32.mrf.mxu0 }
 0x153   :  { %v1354_v56 = vpop.f32.mrf.mxu1  ;;  %v1284_v14 = vadd.f32 %v1283_v55, %v1213_v19  ;;  %v1276_v19 = vadd.f32 %v1275_v49, %v2602_v10 }
 0x154   :  { %v1285_v57 = vpop.f32.mrf.mxu0 }
 0x155   :  { %v1356_v58 = vpop.f32.mrf.mxu1  ;;  %v1286_v27 = vadd.f32 %v1285_v57, %v1215_v22  ;;  %v1355_v35 = vadd.f32 %v1354_v56, %v1284_v14  ;;  %v1347_v49 = vadd.f32 %v1346_v50, %v1276_v19 }
 0x156   :  { %v1287_v61 = vpop.f32.mrf.mxu0 }
 0x157   :  { %v1358_v63 = vpop.f32.mrf.mxu1  ;;  %v1288_v4 = vadd.f32 %v1287_v61, %v2608_v25  ;;  %v1357_v41 = vadd.f32 %v1356_v58, %v1286_v27 }
 0x158   :  { %v1289_v0 = vpop.f32.mrf.mxu0 }
 0x159   :  { %v1360_v2 = vpop.f32.mrf.mxu1  ;;  %v1290_v7 = vadd.f32 %v1289_v0, %v2610_v28  ;;  %v1359_v58 = vadd.f32 %v1358_v63, %v1288_v4  ;;  %v1349_v4 = vadd.f32 %v2616_v52, %v1278_v60 }
 0x15a   :  { %v1293_v5 = vpop.f32.mrf.mxu0 }
 0x15b   :  { %v1364_v6 = vpop.f32.mrf.mxu1  ;;  %v1294_v40 = vadd.f32 %v1293_v5, %v2612_v33  ;;  %v1361_v61 = vadd.f32 %v1360_v2, %v1290_v7 }
 0x15c   :  { %v1295_v8 = vpop.f32.mrf.mxu0 }
 0x15d   :  { %v1366_v9 = vpop.f32.mrf.mxu1  ;;  %v1296_v55 = vadd.f32 %v1295_v8, %v2614_v36  ;;  %v1365_v5 = vadd.f32 %v1364_v6, %v1294_v40 }
 0x15e   :  { %v1297_v23 = vpop.f32.mrf.mxu0 }
 0x15f   :  { %v1368_v24 = vpop.f32.mrf.mxu1  ;;  %v1367_v8 = vadd.f32 %v1366_v9, %v1296_v55 }
 0x160   :  { %v1298_v29 = vpop.f32.mrf.mxu0 }
 0x161   :  { %v1369_v30 = vpop.f32.mrf.mxu1 }
 0x162   :  { %v1405_v22 = vpop.f32.mrf.mxu0 }
 0x163   :  { %v1425_v10 = vpop.f32.mrf.mxu1  ;;  %v1406_v43 = vadd.f32 %v1405_v22, %v1335_v34 }
 0x164   :  { %v1426_v45 = vadd.f32 %v1425_v10, %v1355_v35  ;;  %v1407_v56 = vpop.f32.mrf.mxu0 }
 0x165   :  { %v1427_v57 = vpop.f32.mrf.mxu1  ;;  %v1454_v42 = vmul.f32 %v2632_v31, %v1406_v43  ;;  %v1408_v44 = vadd.f32 %v1407_v56, %v1337_v37 }
 0x166   :  { %v1462_v25 = vmul.f32 %v2632_v31, %v1426_v45  ;;  %v1428_v28 = vadd.f32 %v1427_v57, %v1357_v41  ;;  %v1409_v48 = vpop.f32.mrf.mxu0  ;;  %v1351_v41 = vadd.f32 %v2618_v54, %v1280_v46 }
 0x167   :  { %v1429_v50 = vpop.f32.mrf.mxu1  ;;  %v1480_v33 = vadd.f32 %v2634_v32, %v1454_v42  ;;  %v1455_v0 = vmul.f32 %v2636_v62, %v1408_v44  ;;  %v1410_v11 = vadd.f32 %v1409_v48, %v1339_v38 }
 0x168   :  { %v1488_v36 = vadd.f32 %v2634_v32, %v1462_v25  ;;  %v1463_v3 = vmul.f32 %v2636_v62, %v1428_v28  ;;  %v1430_v12 = vadd.f32 %v1429_v50, %v1359_v58  ;;  %v1411_v14 = vpop.f32.mrf.mxu0 }
 0x169   :  { %v1431_v13 = vpop.f32.mrf.mxu1  ;;  %v1494_v51 = vmax.f32 %v1480_v33, 0.0  ;;  %v1481_v53 = vadd.f32 %v2638_v1, %v1455_v0  ;;  %v1456_v2 = vmul.f32 %v2632_v31, %v1410_v11  ;;  %v1412_v17 = vadd.f32 %v1411_v14, %v1341_v39 }
 0x16a   :  { %v1502_v16 = vmax.f32 %v1488_v36, 0.0  ;;  %v1489_v63 = vadd.f32 %v2638_v1, %v1463_v3  ;;  %v1464_v15 = vmul.f32 %v2632_v31, %v1430_v12  ;;  %v1432_v18 = vadd.f32 %v1431_v13, %v1361_v61  ;;  %v1415_v20 = vpop.f32.mrf.mxu0 }
 0x16b   :  { %v1435_v21 = vpop.f32.mrf.mxu1  ;;  %v1495_v6 = vmax.f32 %v1481_v53, 0.0  ;;  %v1416_v23 = vadd.f32 %v1415_v20, %v1345_v47  ;;  %v1482_v26 = vadd.f32 %v2634_v32, %v1456_v2  ;;  %v1457_v59 = vmul.f32 %v2636_v62, %v1412_v17 }
 0x16c   :  { %v1503_v9 = vmax.f32 %v1489_v63, 0.0  ;;  %v1436_v24 = vadd.f32 %v1435_v21, %v1365_v5  ;;  %v1490_v27 = vadd.f32 %v2634_v32, %v1464_v15  ;;  %v1465_v19 = vmul.f32 %v2636_v62, %v1432_v18  ;;  %v1417_v29 = vpop.f32.mrf.mxu0 }
 0x16d   :  { %v1437_v30 = vpop.f32.mrf.mxu1  ;;  %v1750_v34 = vpack.c.bf16 %v1495_v6, %v1494_v51  ;;  %v1458_v37 = vmul.f32 %v2632_v31, %v1416_v23  ;;  %v1483_v7 = vadd.f32 %v2638_v1, %v1457_v59  ;;  %v1496_v43 = vmax.f32 %v1482_v26, 0.0 }
 0x16e   :  { %v1754_v35 = vpack.c.bf16 %v1503_v9, %v1502_v16  ;;  %v1466_v38 = vmul.f32 %v2632_v31, %v1436_v24  ;;  %v1491_v22 = vadd.f32 %v2638_v1, %v1465_v19  ;;  %v1419_v10 = vpop.f32.mrf.mxu0  ;;  %v1418_v45 = vadd.f32 %v1417_v29, %v1347_v49 }
 0x16f   :  { %v1439_v39 = vpop.f32.mrf.mxu1  ;;  %1552 = vst [vmem:[%s2701_s4] sm:$0xff] %v1750_v34  ;;  %v1438_v47 = vadd.f32 %v1437_v30, %v1367_v8  ;;  %v1504_v52 = vmax.f32 %v1490_v27, 0.0  ;;  %v1497_v40 = vmax.f32 %v1483_v7, 0.0  ;;  %v1420_v56 = vadd.f32 %v1419_v10, %v1349_v4 }
 0x170   :  { %1556 = vst [vmem:[%s2701_s4 + $0x20] sm:$0xff] %v1754_v35  ;;  %v1505_v55 = vmax.f32 %v1491_v22, 0.0  ;;  %v1421_v57 = vpop.f32.mrf.mxu0  ;;  %v1484_v25 = vadd.f32 %v2634_v32, %v1458_v37  ;;  %v1492_v54 = vadd.f32 %v2634_v32, %v1466_v38  ;;  %v1459_v44 = vmul.f32 %v2636_v62, %v1418_v45 }
 0x171   :  { %v1440_v42 = vpop.f32.mrf.mxu1  ;;  %v1467_v28 = vmul.f32 %v2636_v62, %v1438_v47  ;;  %v1751_v60 = vpack.c.bf16 %v1497_v40, %v1496_v43  ;;  %v1460_v58 = vmul.f32 %v2632_v31, %v1420_v56  ;;  %v1422_v49 = vadd.f32 %v1421_v57, %v1351_v41 }
 0x172   :  { %v1755_v46 = vpack.c.bf16 %v1505_v55, %v1504_v52  ;;  %v1485_v61 = vadd.f32 %v2638_v1, %v1459_v44  ;;  %v1498_v36 = vmax.f32 %v1484_v25, 0.0  ;;  %v1506_v0 = vmax.f32 %v1492_v54, 0.0 }
 0x173   :  { %v1493_v48 = vadd.f32 %v2638_v1, %v1467_v28  ;;  %1553 = vst [vmem:[%s2701_s4 + $0x8] sm:$0xff] %v1751_v60  ;;  %v1486_v50 = vadd.f32 %v2634_v32, %v1460_v58  ;;  %v1461_v33 = vmul.f32 %v2636_v62, %v1422_v49 }
 0x174   :  { %1557 = vst [vmem:[%s2701_s4 + $0x28] sm:$0xff] %v1755_v46  ;;  %v1499_v31 = vmax.f32 %v1485_v61, 0.0 }
 0x175   :  { %v1507_v3 = vmax.f32 %v1493_v48, 0.0  ;;  %v1487_v5 = vadd.f32 %v2638_v1, %v1461_v33  ;;  %v1500_v12 = vmax.f32 %v1486_v50, 0.0 }
 0x176   :  { %v1752_v8 = vpack.c.bf16 %v1499_v31, %v1498_v36 }
 0x177   :  { %v1756_v11 = vpack.c.bf16 %v1507_v3, %v1506_v0  ;;  %v1501_v14 = vmax.f32 %v1487_v5, 0.0 }
 0x178   :  { %1554 = vst [vmem:[%s2701_s4 + $0x10] sm:$0xff] %v1752_v8 }
 0x179   :  { %1558 = vst [vmem:[%s2701_s4 + $0x30] sm:$0x77] %v1756_v11  ;;  %v1753_v32 = vpack.c.bf16 %v1501_v14, %v1500_v12 }
 0x17b   :  { %1555 = vst [vmem:[%s2701_s4 + $0x18] sm:$0xff] %v1753_v32 }

// kernel: audio_encoder_forward.11
= control target key start
LH: loop header
LB: loop body
LE: loop exit
PB: predicated region body
PF: predicated region fallthrough
CT: control target
= control target key end

     0   :  { %11 = vsyncpa [#allocation4], 0  ;;  %s6795_s21 = smov 0   ;;  %s7704_s0 = inlined_call_operand.vmem [shape: bf16[2,6912], index: 0, kind: input, shape index: {}]   ;;  %s7705_s1 = inlined_call_operand.vmem [shape: bf16[6912,512], index: 1, kind: input, shape index: {}]   ;;  %s7706_s2 = inlined_call_operand.vmem [shape: f32[1,512], index: 2, kind: input, shape index: {}]   ;;  %s7707_s3 = inlined_call_operand.vmem [shape: f32[1,512], index: 3, kind: input, shape index: {}]   ;;  %s7708_s4 = inlined_call_operand.vmem [shape: bf16[512,32], index: 4, kind: input, shape index: {}]   ;;  %s7709_s5 = inlined_call_operand.vmem [shape: f32[1,32], index: 5, kind: input, shape index: {}]   ;;  %s7710_s6 = inlined_call_operand.hbm [shape: f32[2,32], index: 6, kind: output, shape index: {}]  }
   0x1 LB: > { %s6801_s22 = sadd.s32 4294967295, %s6754_s21   ;;  %p5140_p0 = scmp.ge.s32.totalorder %s6754_s21, 1  ;;  %s6754_s21 = sphi %s6795_s21, %s17_s21  }
   0x2   : > { %p220_p1 = scmp.lt.s32.totalorder %s6754_s21, 4 }
   0x4   : > { %p221_p2 = pnand %p5140_p0, %p220_p1 }
   0x5   : > { %s250_s23 = smul.u32 (!%p221_p2), 18, %s6801_s22  ;;  %p5143_p5 = scmp.ne.s32.totalorder (!%p221_p2), %s6801_s22, 0 }
   0x6   : > { %224 = sbr.rel (%p221_p2) target bundleno = 1056 (0x420), region = 44 }
   0x7   : > { %s255_s24 = smul.u32 (!%p221_p2), 288, %s6801_s22  ;;  %p251_p3 = scmp.lt.s32.totalorder (!%p221_p2), %s250_s23, 53 }
   0x9   : > { %p256_p4 = scmp.lt.s32.totalorder (!%p221_p2), %s255_s24, 863 }
   0xb   : > { %s7712_s23 = smov (!%p251_p3, %s250_s23), 53  ;;  %s7714_s24 = smov (!%p256_p4, %s255_s24), 863 }
   0xc   : > { %s6810_s27 = scalar_lea.vmem %s7704_s0, %s7712_s23  ;;  %s5759_s28 = sshll.u32 %s7714_s24, 4 }
   0xd   : > { %s6815_s7 = scalar_lea.vmem %s7705_s1, %s5759_s28  ;;  %266 = sbr.rel (%p5143_p5) target bundleno = 20 (0x14), region = 48 }
  0x12   : > { %v6756_v0 = vmov 0.0  }
  0x13   : > { %267 = vst [vmem:[#allocation2] sm:$0xff] %v6756_v0 }
  0x14 PF: > { %v5822_v1 = vld [vmem:[%s6815_s7 + $0xe4] ss:$16 sps:$4 sm:$0xff]   ;;  %v5826_v3 = vld [vmem:[%s6815_s7 + $0xe0] ss:$16 sps:$4 sm:$0xff]   ;;  %v6757_v37 = vmov 1966171168   ;;  %v855_v39 = vlaneseq }
  0x15   : > { %v5824_v2 = vld [vmem:[%s6815_s7 + $0x2e4] ss:$16 sps:$4 sm:$0xff]   ;;  %3869 = vmatprep.subr.bf16.mxu0 %v5822_v1  ;;  %v5827_v4 = vld [vmem:[%s6815_s7 + $0x2e0] ss:$16 sps:$4 sm:$0xff]   ;;  %v853_v38 = vunpack.c.l.s4 %v6757_v37  ;;  %p5721_p6 = scmp.ne.s32.totalorder %s6801_s22, 2 }
  0x16   : > { %3910 = vmatprep.subr.bf16.mxu1 %v5824_v2  ;;  %v5828_v5 = vld [vmem:[%s6815_s7 + $0xc4] ss:$16 sps:$4 sm:$0xff]   ;;  %3870 = vmatpush1.bf16.msra.mxu0 %v5826_v3  ;;  %v5832_v7 = vld [vmem:[%s6815_s7 + $0xc0] ss:$16 sps:$4 sm:$0xff]   ;;  %v6857_v44 = vshrl.u32 %v855_v39, 7 }
  0x17   : > { %3911 = vmatpush1.bf16.msra.mxu1 %v5827_v4  ;;  %v5830_v6 = vld [vmem:[%s6815_s7 + $0x2c4] ss:$16 sps:$4 sm:$0xff]   ;;  %3871 = vmatprep.subr.bf16.mxu0 %v5828_v5  ;;  %v5833_v8 = vld [vmem:[%s6815_s7 + $0x2c0] ss:$16 sps:$4 sm:$0xff]   ;;  %v854_v43 = vunpack.c.0.s8 %v853_v38 }
  0x18   : > { %3912 = vmatprep.subr.bf16.mxu1 %v5830_v6  ;;  %v5834_v9 = vld [vmem:[%s6815_s7 + $0xa4] ss:$16 sps:$4 sm:$0xff]   ;;  %v5838_v11 = vld [vmem:[%s6815_s7 + $0xa0] ss:$16 sps:$4 sm:$0xff]  }
  0x19   : > { %v5836_v10 = vld [vmem:[%s6815_s7 + $0x2a4] ss:$16 sps:$4 sm:$0xff]   ;;  %v5839_v12 = vld [vmem:[%s6815_s7 + $0x2a0] ss:$16 sps:$4 sm:$0xff]   ;;  %v6865_v50 = vsub.s32 %v854_v43, %v6857_v44 }
  0x1a   : > { %3872 = vmatpush1.bf16.msra.mxu0 %v5832_v7  ;;  %v5840_v13 = vld [vmem:[%s6815_s7 + $0x84] ss:$16 sps:$4 sm:$0xff]   ;;  %v5844_v15 = vld [vmem:[%s6815_s7 + $0x80] ss:$16 sps:$4 sm:$0xff]  }
  0x1b   : > { %3913 = vmatpush1.bf16.msra.mxu1 %v5833_v8  ;;  %3873 = vmatprep.subr.bf16.mxu0 %v5834_v9  ;;  %v5842_v14 = vld [vmem:[%s6815_s7 + $0x284] ss:$16 sps:$4 sm:$0xff]   ;;  %v5845_v16 = vld [vmem:[%s6815_s7 + $0x280] ss:$16 sps:$4 sm:$0xff]  }
  0x1c   : > { %3914 = vmatprep.subr.bf16.mxu1 %v5836_v10  ;;  %v5846_v17 = vld [vmem:[%s6815_s7 + $0x64] ss:$16 sps:$4 sm:$0xff]   ;;  %v5850_v19 = vld [vmem:[%s6815_s7 + $0x60] ss:$16 sps:$4 sm:$0xff]  }
  0x1d   : > { %v5848_v18 = vld [vmem:[%s6815_s7 + $0x264] ss:$16 sps:$4 sm:$0xff]   ;;  %v5851_v20 = vld [vmem:[%s6815_s7 + $0x260] ss:$16 sps:$4 sm:$0xff]  }
  0x1e   : > { %3874 = vmatpush1.bf16.msra.mxu0 %v5838_v11  ;;  %v5852_v21 = vld [vmem:[%s6815_s7 + $0x44] ss:$16 sps:$4 sm:$0xff]   ;;  %v5856_v23 = vld [vmem:[%s6815_s7 + $0x40] ss:$16 sps:$4 sm:$0xff]  }
  0x1f   : > { %3915 = vmatpush1.bf16.msra.mxu1 %v5839_v12  ;;  %3875 = vmatprep.subr.bf16.mxu0 %v5840_v13  ;;  %v5854_v22 = vld [vmem:[%s6815_s7 + $0x244] ss:$16 sps:$4 sm:$0xff]   ;;  %v5857_v24 = vld [vmem:[%s6815_s7 + $0x240] ss:$16 sps:$4 sm:$0xff]  }
  0x20   : > { %3916 = vmatprep.subr.bf16.mxu1 %v5842_v14  ;;  %v5858_v25 = vld [vmem:[%s6815_s7 + $0x24] ss:$16 sps:$4 sm:$0xff]   ;;  %v5862_v27 = vld [vmem:[%s6815_s7 + $0x20] ss:$16 sps:$4 sm:$0xff]  }
  0x21   : > { %v5860_v26 = vld [vmem:[%s6815_s7 + $0x224] ss:$16 sps:$4 sm:$0xff]   ;;  %v5863_v28 = vld [vmem:[%s6815_s7 + $0x220] ss:$16 sps:$4 sm:$0xff]  }
  0x22   : > { %3876 = vmatpush1.bf16.msra.mxu0 %v5844_v15  ;;  %v5864_v29 = vld [vmem:[%s6815_s7 + $0x4] ss:$16 sps:$4 sm:$0xff]   ;;  %v5868_v31 = vld [vmem:[%s6815_s7] ss:$16 sps:$4 sm:$0xff]  }
  0x23   : > { %3917 = vmatpush1.bf16.msra.mxu1 %v5845_v16  ;;  %3877 = vmatprep.subr.bf16.mxu0 %v5846_v17  ;;  %v5866_v30 = vld [vmem:[%s6815_s7 + $0x204] ss:$16 sps:$4 sm:$0xff]   ;;  %v5869_v32 = vld [vmem:[%s6815_s7 + $0x200] ss:$16 sps:$4 sm:$0xff]  }
  0x24   : > { %3918 = vmatprep.subr.bf16.mxu1 %v5848_v18  ;;  %v5870_v33 = vld [vmem:[%s6815_s7 + $0x1e4] ss:$16 sps:$4 sm:$0xff]   ;;  %v5874_v35 = vld [vmem:[%s6815_s7 + $0x1e0] ss:$16 sps:$4 sm:$0xff]  }
  0x25   : > { %v5872_v34 = vld [vmem:[%s6815_s7 + $0x3e4] ss:$16 sps:$4 sm:$0xff]   ;;  %v5875_v36 = vld [vmem:[%s6815_s7 + $0x3e0] ss:$16 sps:$4 sm:$0xff]  }
  0x26   : > { %3878 = vmatpush1.bf16.msra.mxu0 %v5850_v19  ;;  %v5876_v40 = vld [vmem:[%s6815_s7 + $0x1c4] ss:$16 sps:$4 sm:$0xff]   ;;  %v5880_v42 = vld [vmem:[%s6815_s7 + $0x1c0] ss:$16 sps:$4 sm:$0xff]  }
  0x27   : > { %3919 = vmatpush1.bf16.msra.mxu1 %v5851_v20  ;;  %3879 = vmatprep.subr.bf16.mxu0 %v5852_v21  ;;  %v5878_v41 = vld [vmem:[%s6815_s7 + $0x3c4] ss:$16 sps:$4 sm:$0xff]   ;;  %v5881_v45 = vld [vmem:[%s6815_s7 + $0x3c0] ss:$16 sps:$4 sm:$0xff]  }
  0x28   : > { %3920 = vmatprep.subr.bf16.mxu1 %v5854_v22  ;;  %v5882_v46 = vld [vmem:[%s6815_s7 + $0x1a4] ss:$16 sps:$4 sm:$0xff]   ;;  %v5886_v48 = vld [vmem:[%s6815_s7 + $0x1a0] ss:$16 sps:$4 sm:$0xff]  }
  0x29   : > { %v5884_v47 = vld [vmem:[%s6815_s7 + $0x3a4] ss:$16 sps:$4 sm:$0xff]   ;;  %v5887_v49 = vld [vmem:[%s6815_s7 + $0x3a0] ss:$16 sps:$4 sm:$0xff]  }
  0x2a   : > { %3880 = vmatpush1.bf16.msra.mxu0 %v5856_v23  ;;  %v5888_v51 = vld [vmem:[%s6815_s7 + $0x184] ss:$16 sps:$4 sm:$0xff]   ;;  %v5892_v54 = vld [vmem:[%s6815_s7 + $0x180] ss:$16 sps:$4 sm:$0xff]  }
  0x2b   : > { %3921 = vmatpush1.bf16.msra.mxu1 %v5857_v24  ;;  %3881 = vmatprep.subr.bf16.mxu0 %v5858_v25  ;;  %v5890_v52 = vld [vmem:[%s6815_s7 + $0x384] ss:$16 sps:$4 sm:$0xff]   ;;  %v5893_v56 = vld [vmem:[%s6815_s7 + $0x380] ss:$16 sps:$4 sm:$0xff]  }
  0x2c   : > { %3922 = vmatprep.subr.bf16.mxu1 %v5860_v26  ;;  %v269_v53 = vld [vmem:[%s6810_s27] sm:$0xff] }
  0x2d   : > { %v858_v55 = vrot.slane %v269_v53, %v6865_v50  ;;  %v5894_v57 = vld [vmem:[%s6815_s7 + $0x164] ss:$16 sps:$4 sm:$0xff]   ;;  %v5898_v60 = vld [vmem:[%s6815_s7 + $0x160] ss:$16 sps:$4 sm:$0xff]   ;;  %v851_v2 = vcombine.high %v269_v53, %v269_v53 }
  0x2e   : > { %3882 = vmatpush1.bf16.msra.mxu0 %v5862_v27  ;;  %v5896_v58 = vld [vmem:[%s6815_s7 + $0x364] ss:$16 sps:$4 sm:$0xff]   ;;  %v5899_v62 = vld [vmem:[%s6815_s7 + $0x360] ss:$16 sps:$4 sm:$0xff]  }
  0x2f   : > { %3923 = vmatpush1.bf16.msra.mxu1 %v5863_v28  ;;  %3883 = vmatprep.subr.bf16.mxu0 %v5864_v29  ;;  %v866_v59 = vcombine.high %v858_v55, %v858_v55  ;;  %v5900_v63 = vld [vmem:[%s6815_s7 + $0x144] ss:$16 sps:$4 sm:$0xff]   ;;  %v5904_v3 = vld [vmem:[%s6815_s7 + $0x140] ss:$16 sps:$4 sm:$0xff]   ;;  %v6893_v7 = vrot.slane %v851_v2, %v6865_v50  ;;  %v6903_v14 = vrot.slane %v858_v55, %v6865_v50 }
  0x30   : > { %3924 = vmatprep.subr.bf16.mxu1 %v5866_v30  ;;  %v5902_v0 = vld [vmem:[%s6815_s7 + $0x344] ss:$16 sps:$4 sm:$0xff]   ;;  %v5905_v4 = vld [vmem:[%s6815_s7 + $0x340] ss:$16 sps:$4 sm:$0xff]  }
  0x31   : > { %v6877_v61 = vrot.slane %v866_v59, %v6865_v50  ;;  %v5906_v5 = vld [vmem:[%s6815_s7 + $0x124] ss:$16 sps:$4 sm:$0xff]   ;;  %v5910_v8 = vld [vmem:[%s6815_s7 + $0x120] ss:$16 sps:$4 sm:$0xff]   ;;  %v867_v12 = vcombine.high %v6893_v7, %v6893_v7  ;;  %v6913_v19 = vcombine.high %v6903_v14, %v6903_v14 }
  0x32   : > { %3884 = vmatpush1.bf16.msra.mxu0 %v5868_v31  ;;  %v5908_v6 = vld [vmem:[%s6815_s7 + $0x324] ss:$16 sps:$4 sm:$0xff]   ;;  %v5911_v9 = vld [vmem:[%s6815_s7 + $0x320] ss:$16 sps:$4 sm:$0xff]  }
  0x33   : > { %3925 = vmatpush1.bf16.msra.mxu1 %v5869_v32  ;;  %3885 = vmatprep.subr.bf16.mxu0 %v5870_v33  ;;  %v6884_v1 = vcombine.high %v6877_v61, %v6877_v61  ;;  %v5912_v10 = vld [vmem:[%s6815_s7 + $0x104] ss:$16 sps:$4 sm:$0xff]   ;;  %v5916_v13 = vld [vmem:[%s6815_s7 + $0x100] ss:$16 sps:$4 sm:$0xff]   ;;  %v6909_v18 = vrot.slane %v867_v12, %v6865_v50 }
  0x34   : > { %3926 = vmatprep.subr.bf16.mxu1 %v5872_v34  ;;  %3901 = vmatprep.mubr.bf16.mxu0 %v6877_v61  ;;  %v5914_v11 = vld [vmem:[%s6815_s7 + $0x304] ss:$16 sps:$4 sm:$0xff]   ;;  %v5917_v15 = vld [vmem:[%s6815_s7 + $0x300] ss:$16 sps:$4 sm:$0xff]  }
  0x35   : > { %3942 = vmatprep.mubr.bf16.mxu1 %v6884_v1  ;;  %v5920_v16 = vld [vmem:[%s6815_s7 + $0x4e4] ss:$16 sps:$4 sm:$0xff]   ;;  %v5918_v20 = vld [vmem:[%s6815_s7 + $0x4e0] ss:$16 sps:$4 sm:$0xff]   ;;  %v6921_v24 = vcombine.high %v6909_v18, %v6909_v18 }
  0x36   : > { %3886 = vmatpush2.bf16.msra.mxu0 %v5874_v35  ;;  %v5923_v17 = vld [vmem:[%s6815_s7 + $0x6e4] ss:$16 sps:$4 sm:$0xff]   ;;  %v5921_v21 = vld [vmem:[%s6815_s7 + $0x6e0] ss:$16 sps:$4 sm:$0xff]  }
  0x37   : > { %3927 = vmatpush2.bf16.msra.mxu1 %v5875_v36  ;;  %3887 = vmatprep.subr.bf16.mxu0 %v5876_v40  ;;  %v5926_v22 = vld [vmem:[%s6815_s7 + $0x4c4] ss:$16 sps:$4 sm:$0xff]   ;;  %v5924_v25 = vld [vmem:[%s6815_s7 + $0x4c0] ss:$16 sps:$4 sm:$0xff]  }
  0x38   : > { %3928 = vmatprep.subr.bf16.mxu1 %v5878_v41  ;;  %v5929_v23 = vld [vmem:[%s6815_s7 + $0x6c4] ss:$16 sps:$4 sm:$0xff]   ;;  %v5927_v26 = vld [vmem:[%s6815_s7 + $0x6c0] ss:$16 sps:$4 sm:$0xff]  }
  0x39   : > { %v5932_v27 = vld [vmem:[%s6815_s7 + $0x4a4] ss:$16 sps:$4 sm:$0xff]   ;;  %v5930_v29 = vld [vmem:[%s6815_s7 + $0x4a0] ss:$16 sps:$4 sm:$0xff]  }
  0x3a   : > { %3888 = vmatpush2.bf16.msra.mxu0 %v5880_v42  ;;  %v5935_v28 = vld [vmem:[%s6815_s7 + $0x6a4] ss:$16 sps:$4 sm:$0xff]   ;;  %v5933_v30 = vld [vmem:[%s6815_s7 + $0x6a0] ss:$16 sps:$4 sm:$0xff]  }
  0x3b   : > { %3929 = vmatpush2.bf16.msra.mxu1 %v5881_v45  ;;  %3889 = vmatprep.subr.bf16.mxu0 %v5882_v46  ;;  %v5938_v31 = vld [vmem:[%s6815_s7 + $0x484] ss:$16 sps:$4 sm:$0xff]   ;;  %v5936_v33 = vld [vmem:[%s6815_s7 + $0x480] ss:$16 sps:$4 sm:$0xff]  }
  0x3c   : > { %3930 = vmatprep.subr.bf16.mxu1 %v5884_v47  ;;  %v5941_v32 = vld [vmem:[%s6815_s7 + $0x684] ss:$16 sps:$4 sm:$0xff]   ;;  %v5939_v34 = vld [vmem:[%s6815_s7 + $0x680] ss:$16 sps:$4 sm:$0xff]  }
  0x3d   : > { %v5944_v35 = vld [vmem:[%s6815_s7 + $0x464] ss:$16 sps:$4 sm:$0xff]   ;;  %v5942_v37 = vld [vmem:[%s6815_s7 + $0x460] ss:$16 sps:$4 sm:$0xff]  }
  0x3e   : > { %3890 = vmatpush2.bf16.msra.mxu0 %v5886_v48  ;;  %v5947_v36 = vld [vmem:[%s6815_s7 + $0x664] ss:$16 sps:$4 sm:$0xff]   ;;  %v5945_v38 = vld [vmem:[%s6815_s7 + $0x660] ss:$16 sps:$4 sm:$0xff]  }
  0x3f   : > { %3931 = vmatpush2.bf16.msra.mxu1 %v5887_v49  ;;  %3891 = vmatprep.subr.bf16.mxu0 %v5888_v51  ;;  %v5950_v39 = vld [vmem:[%s6815_s7 + $0x444] ss:$16 sps:$4 sm:$0xff]   ;;  %v5948_v41 = vld [vmem:[%s6815_s7 + $0x440] ss:$16 sps:$4 sm:$0xff]  }
  0x40   : > { %3932 = vmatprep.subr.bf16.mxu1 %v5890_v52  ;;  %v5953_v40 = vld [vmem:[%s6815_s7 + $0x644] ss:$16 sps:$4 sm:$0xff]   ;;  %v5951_v42 = vld [vmem:[%s6815_s7 + $0x640] ss:$16 sps:$4 sm:$0xff]  }
  0x41   : > { %v5956_v43 = vld [vmem:[%s6815_s7 + $0x424] ss:$16 sps:$4 sm:$0xff]   ;;  %v5954_v46 = vld [vmem:[%s6815_s7 + $0x420] ss:$16 sps:$4 sm:$0xff]  }
  0x42   : > { %3892 = vmatpush2.bf16.msra.mxu0 %v5892_v54  ;;  %v5959_v45 = vld [vmem:[%s6815_s7 + $0x624] ss:$16 sps:$4 sm:$0xff]   ;;  %v5957_v47 = vld [vmem:[%s6815_s7 + $0x620] ss:$16 sps:$4 sm:$0xff]  }
  0x43   : > { %3933 = vmatpush2.bf16.msra.mxu1 %v5893_v56  ;;  %3893 = vmatprep.subr.bf16.mxu0 %v5894_v57  ;;  %v5962_v48 = vld [vmem:[%s6815_s7 + $0x404] ss:$16 sps:$4 sm:$0xff]   ;;  %v5960_v51 = vld [vmem:[%s6815_s7 + $0x400] ss:$16 sps:$4 sm:$0xff]  }
  0x44   : > { %3934 = vmatprep.subr.bf16.mxu1 %v5896_v58  ;;  %v5965_v49 = vld [vmem:[%s6815_s7 + $0x604] ss:$16 sps:$4 sm:$0xff]   ;;  %v5963_v52 = vld [vmem:[%s6815_s7 + $0x600] ss:$16 sps:$4 sm:$0xff]  }
  0x45   : > { %v5968_v53 = vld [vmem:[%s6815_s7 + $0x5e4] ss:$16 sps:$4 sm:$0xff]   ;;  %v5966_v55 = vld [vmem:[%s6815_s7 + $0x5e0] ss:$16 sps:$4 sm:$0xff]  }
  0x46   : > { %3894 = vmatpush2.bf16.msra.mxu0 %v5898_v60  ;;  %v5971_v54 = vld [vmem:[%s6815_s7 + $0x7e4] ss:$16 sps:$4 sm:$0xff]   ;;  %v5969_v56 = vld [vmem:[%s6815_s7 + $0x7e0] ss:$16 sps:$4 sm:$0xff]  }
  0x47   : > { %3935 = vmatpush2.bf16.msra.mxu1 %v5899_v62  ;;  %3895 = vmatprep.subr.bf16.mxu0 %v5900_v63  ;;  %v5974_v57 = vld [vmem:[%s6815_s7 + $0x5c4] ss:$16 sps:$4 sm:$0xff]   ;;  %v5972_v59 = vld [vmem:[%s6815_s7 + $0x5c0] ss:$16 sps:$4 sm:$0xff]  }
  0x48   : > { %3936 = vmatprep.subr.bf16.mxu1 %v5902_v0  ;;  %v5977_v58 = vld [vmem:[%s6815_s7 + $0x7c4] ss:$16 sps:$4 sm:$0xff]   ;;  %v5975_v60 = vld [vmem:[%s6815_s7 + $0x7c0] ss:$16 sps:$4 sm:$0xff]  }
  0x49   : > { %v5980_v62 = vld [vmem:[%s6815_s7 + $0x5a4] ss:$16 sps:$4 sm:$0xff]   ;;  %v5978_v0 = vld [vmem:[%s6815_s7 + $0x5a0] ss:$16 sps:$4 sm:$0xff]  }
  0x4a   : > { %3896 = vmatpush2.bf16.msra.mxu0 %v5904_v3  ;;  %v5983_v63 = vld [vmem:[%s6815_s7 + $0x7a4] ss:$16 sps:$4 sm:$0xff]   ;;  %v5981_v2 = vld [vmem:[%s6815_s7 + $0x7a0] ss:$16 sps:$4 sm:$0xff]  }
  0x4b   : > { %3937 = vmatpush2.bf16.msra.mxu1 %v5905_v4  ;;  %3897 = vmatprep.subr.bf16.mxu0 %v5906_v5  ;;  %v5986_v3 = vld [vmem:[%s6815_s7 + $0x584] ss:$16 sps:$4 sm:$0xff]   ;;  %v5984_v5 = vld [vmem:[%s6815_s7 + $0x580] ss:$16 sps:$4 sm:$0xff]  }
  0x4c   : > { %3938 = vmatprep.subr.bf16.mxu1 %v5908_v6  ;;  %v5989_v4 = vld [vmem:[%s6815_s7 + $0x784] ss:$16 sps:$4 sm:$0xff]   ;;  %v5987_v6 = vld [vmem:[%s6815_s7 + $0x780] ss:$16 sps:$4 sm:$0xff]  }
  0x4d   : > { %v5998_v12 = vld [vmem:[%s6815_s7 + $0x544] ss:$16 sps:$4 sm:$0xff]  }
  0x4e   : > { %3898 = vmatpush2.bf16.msra.mxu0 %v5910_v8  ;;  %v5992_v8 = vld [vmem:[%s6815_s7 + $0x564] ss:$16 sps:$4 sm:$0xff]  }
  0x4f   : > { %3939 = vmatpush2.bf16.msra.mxu1 %v5911_v9  ;;  %3899 = vmatprep.subr.bf16.mxu0 %v5912_v10  ;;  %v5995_v9 = vld [vmem:[%s6815_s7 + $0x764] ss:$16 sps:$4 sm:$0xff]   ;;  %v5990_v10 = vld [vmem:[%s6815_s7 + $0x560] ss:$16 sps:$4 sm:$0xff]  }
  0x50   : > { %3940 = vmatprep.subr.bf16.mxu1 %v5914_v11  ;;  %v5993_v11 = vld [vmem:[%s6815_s7 + $0x760] ss:$16 sps:$4 sm:$0xff]  }
  0x52   : > { %3900 = vmatpush2.bf16.msra.mxu0 %v5916_v13  ;;  %v6001_v13 = vld [vmem:[%s6815_s7 + $0x744] ss:$16 sps:$4 sm:$0xff]  }
  0x53   : > { %3941 = vmatpush2.bf16.msra.mxu1 %v5917_v15  ;;  %3951 = vmatprep.subr.bf16.mxu0 %v5920_v16  ;;  %v5996_v15 = vld [vmem:[%s6815_s7 + $0x540] ss:$16 sps:$4 sm:$0xff]  }
  0x54   : > { %3992 = vmatprep.subr.bf16.mxu1 %v5923_v17  ;;  %v5999_v16 = vld [vmem:[%s6815_s7 + $0x740] ss:$16 sps:$4 sm:$0xff]   ;;  %v6004_v17 = vld [vmem:[%s6815_s7 + $0x524] ss:$16 sps:$4 sm:$0xff]  }
  0x55   : > { %3902 = vmatmul.mubr.bf16.vlgmr.msra.gmra.mxu0 %v6903_v14 }
  0x56   : > { %3943 = vmatmul.mubr.bf16.vlgmr.msra.gmra.mxu1 %v6913_v19  ;;  %3952 = vmatpush1.bf16.msra.mxu0 %v5918_v20  ;;  %v6007_v20 = vld [vmem:[%s6815_s7 + $0x724] ss:$16 sps:$4 sm:$0xff]  }
  0x57   : > { %3993 = vmatpush1.bf16.msra.mxu1 %v5921_v21  ;;  %3953 = vmatprep.subr.bf16.mxu0 %v5926_v22  ;;  %v6002_v21 = vld [vmem:[%s6815_s7 + $0x520] ss:$16 sps:$4 sm:$0xff]  }
  0x58   : > { %3994 = vmatprep.subr.bf16.mxu1 %v5929_v23  ;;  %3983 = vmatprep.mubr.bf16.mxu0 %v6909_v18  ;;  %v6005_v22 = vld [vmem:[%s6815_s7 + $0x720] ss:$16 sps:$4 sm:$0xff]   ;;  %v6010_v23 = vld [vmem:[%s6815_s7 + $0x504] ss:$16 sps:$4 sm:$0xff]  }
  0x59   : > { %4024 = vmatprep.mubr.bf16.mxu1 %v6921_v24 }
  0x5a   : > { %3954 = vmatpush1.bf16.msra.mxu0 %v5924_v25  ;;  %v6013_v25 = vld [vmem:[%s6815_s7 + $0x704] ss:$16 sps:$4 sm:$0xff]  }
  0x5b   : > { %3995 = vmatpush1.bf16.msra.mxu1 %v5927_v26  ;;  %3955 = vmatprep.subr.bf16.mxu0 %v5932_v27  ;;  %v6008_v26 = vld [vmem:[%s6815_s7 + $0x500] ss:$16 sps:$4 sm:$0xff]   ;;  %v6986_v27 = vrot.slane %v6893_v7, %v6865_v50 }
  0x5c   : > { %3996 = vmatprep.subr.bf16.mxu1 %v5935_v28  ;;  %v6011_v28 = vld [vmem:[%s6815_s7 + $0x700] ss:$16 sps:$4 sm:$0xff]  }
  0x5d   : > { %v6018_v7 = vld [vmem:[%s6815_s7 + $0xae0] ss:$16 sps:$4 sm:$0xff]  }
  0x5e   : > { %3956 = vmatpush1.bf16.msra.mxu0 %v5930_v29  ;;  %v6017_v29 = vld [vmem:[%s6815_s7 + $0x8e4] ss:$16 sps:$4 sm:$0xff]  }
  0x5f   : > { %3997 = vmatpush1.bf16.msra.mxu1 %v5933_v30  ;;  %3957 = vmatprep.subr.bf16.mxu0 %v5938_v31  ;;  %v6020_v30 = vld [vmem:[%s6815_s7 + $0xae4] ss:$16 sps:$4 sm:$0xff]   ;;  %v6993_v31 = vcombine.high %v6986_v27, %v6986_v27 }
  0x60   : > { %3998 = vmatprep.subr.bf16.mxu1 %v5941_v32  ;;  %v6015_v32 = vld [vmem:[%s6815_s7 + $0x8e0] ss:$16 sps:$4 sm:$0xff]  }
  0x62   : > { %3958 = vmatpush1.bf16.msra.mxu0 %v5936_v33  ;;  %v6998_v33 = vld [vmem:[%s6810_s27 + $0x8] sm:$0xff] }
  0x63   : > { %3999 = vmatpush1.bf16.msra.mxu1 %v5939_v34  ;;  %3959 = vmatprep.subr.bf16.mxu0 %v5944_v35  ;;  %v6023_v34 = vld [vmem:[%s6815_s7 + $0x8c4] ss:$16 sps:$4 sm:$0xff]  }
  0x64   : > { %4000 = vmatprep.subr.bf16.mxu1 %v5947_v36  ;;  %v6026_v35 = vld [vmem:[%s6815_s7 + $0xac4] ss:$16 sps:$4 sm:$0xff]   ;;  %v7004_v36 = vrot.slane %v6998_v33, %v6865_v50 }
  0x66   : > { %3960 = vmatpush1.bf16.msra.mxu0 %v5942_v37  ;;  %v915_v37 = vcombine.high %v7004_v36, %v7004_v36 }
  0x67   : > { %4001 = vmatpush1.bf16.msra.mxu1 %v5945_v38  ;;  %3961 = vmatprep.subr.bf16.mxu0 %v5950_v39  ;;  %v6021_v38 = vld [vmem:[%s6815_s7 + $0x8c0] ss:$16 sps:$4 sm:$0xff]  }
  0x68   : > { %4002 = vmatprep.subr.bf16.mxu1 %v5953_v40  ;;  %v6024_v39 = vld [vmem:[%s6815_s7 + $0xac0] ss:$16 sps:$4 sm:$0xff]   ;;  %v6029_v40 = vld [vmem:[%s6815_s7 + $0x8a4] ss:$16 sps:$4 sm:$0xff]  }
  0x6a   : > { %3962 = vmatpush1.bf16.msra.mxu0 %v5948_v41  ;;  %v6032_v41 = vld [vmem:[%s6815_s7 + $0xaa4] ss:$16 sps:$4 sm:$0xff]  }
  0x6b   : > { %4003 = vmatpush1.bf16.msra.mxu1 %v5951_v42  ;;  %3963 = vmatprep.subr.bf16.mxu0 %v5956_v43  ;;  %v7015_v42 = vrot.slane %v915_v37, %v6865_v50  ;;  %v6093_v37 = vld [vmem:[%s6815_s7 + $0x940] ss:$16 sps:$4 sm:$0xff]  }
  0x6c   : > { %4004 = vmatprep.subr.bf16.mxu1 %v5959_v45  ;;  %v6027_v45 = vld [vmem:[%s6815_s7 + $0x8a0] ss:$16 sps:$4 sm:$0xff]  }
  0x6d   : > { %v7020_v43 = vcombine.high %v7015_v42, %v7015_v42 }
  0x6e   : > { %3964 = vmatpush1.bf16.msra.mxu0 %v5954_v46  ;;  %v6030_v46 = vld [vmem:[%s6815_s7 + $0xaa0] ss:$16 sps:$4 sm:$0xff]  }
  0x6f   : > { %4005 = vmatpush1.bf16.msra.mxu1 %v5957_v47  ;;  %3965 = vmatprep.subr.bf16.mxu0 %v5962_v48  ;;  %v6035_v47 = vld [vmem:[%s6815_s7 + $0x884] ss:$16 sps:$4 sm:$0xff]  }
  0x70   : > { %4006 = vmatprep.subr.bf16.mxu1 %v5965_v49  ;;  %v6038_v48 = vld [vmem:[%s6815_s7 + $0xa84] ss:$16 sps:$4 sm:$0xff]   ;;  %v6033_v49 = vld [vmem:[%s6815_s7 + $0x880] ss:$16 sps:$4 sm:$0xff]  }
  0x72   : > { %3966 = vmatpush1.bf16.msra.mxu0 %v5960_v51  ;;  %v6036_v51 = vld [vmem:[%s6815_s7 + $0xa80] ss:$16 sps:$4 sm:$0xff]  }
  0x73   : > { %4007 = vmatpush1.bf16.msra.mxu1 %v5963_v52  ;;  %3967 = vmatprep.subr.bf16.mxu0 %v5968_v53  ;;  %v6041_v52 = vld [vmem:[%s6815_s7 + $0x864] ss:$16 sps:$4 sm:$0xff]  }
  0x74   : > { %4008 = vmatprep.subr.bf16.mxu1 %v5971_v54  ;;  %v6044_v53 = vld [vmem:[%s6815_s7 + $0xa64] ss:$16 sps:$4 sm:$0xff]   ;;  %v6039_v54 = vld [vmem:[%s6815_s7 + $0x860] ss:$16 sps:$4 sm:$0xff]  }
  0x76   : > { %3968 = vmatpush2.bf16.msra.mxu0 %v5966_v55  ;;  %v6042_v55 = vld [vmem:[%s6815_s7 + $0xa60] ss:$16 sps:$4 sm:$0xff]  }
  0x77   : > { %4009 = vmatpush2.bf16.msra.mxu1 %v5969_v56  ;;  %3969 = vmatprep.subr.bf16.mxu0 %v5974_v57  ;;  %v6047_v56 = vld [vmem:[%s6815_s7 + $0x844] ss:$16 sps:$4 sm:$0xff]  }
  0x78   : > { %4010 = vmatprep.subr.bf16.mxu1 %v5977_v58  ;;  %v6050_v57 = vld [vmem:[%s6815_s7 + $0xa44] ss:$16 sps:$4 sm:$0xff]   ;;  %v6045_v58 = vld [vmem:[%s6815_s7 + $0x840] ss:$16 sps:$4 sm:$0xff]  }
  0x7a   : > { %3970 = vmatpush2.bf16.msra.mxu0 %v5972_v59  ;;  %v6048_v59 = vld [vmem:[%s6815_s7 + $0xa40] ss:$16 sps:$4 sm:$0xff]  }
  0x7b   : > { %4011 = vmatpush2.bf16.msra.mxu1 %v5975_v60  ;;  %3971 = vmatprep.subr.bf16.mxu0 %v5980_v62  ;;  %v6053_v60 = vld [vmem:[%s6815_s7 + $0x824] ss:$16 sps:$4 sm:$0xff]  }
  0x7c   : > { %4012 = vmatprep.subr.bf16.mxu1 %v5983_v63  ;;  %v6056_v62 = vld [vmem:[%s6815_s7 + $0xa24] ss:$16 sps:$4 sm:$0xff]   ;;  %v6051_v63 = vld [vmem:[%s6815_s7 + $0x820] ss:$16 sps:$4 sm:$0xff]  }
  0x7e   : > { %3972 = vmatpush2.bf16.msra.mxu0 %v5978_v0  ;;  %v6054_v0 = vld [vmem:[%s6815_s7 + $0xa20] ss:$16 sps:$4 sm:$0xff]  }
  0x7f   : > { %4013 = vmatpush2.bf16.msra.mxu1 %v5981_v2  ;;  %3973 = vmatprep.subr.bf16.mxu0 %v5986_v3  ;;  %v6059_v2 = vld [vmem:[%s6815_s7 + $0x804] ss:$16 sps:$4 sm:$0xff]  }
  0x80   : > { %4014 = vmatprep.subr.bf16.mxu1 %v5989_v4  ;;  %v6062_v3 = vld [vmem:[%s6815_s7 + $0xa04] ss:$16 sps:$4 sm:$0xff]   ;;  %v6057_v4 = vld [vmem:[%s6815_s7 + $0x800] ss:$16 sps:$4 sm:$0xff]  }
  0x82   : > { %3974 = vmatpush2.bf16.msra.mxu0 %v5984_v5  ;;  %v6060_v5 = vld [vmem:[%s6815_s7 + $0xa00] ss:$16 sps:$4 sm:$0xff]  }
  0x83   : > { %4015 = vmatpush2.bf16.msra.mxu1 %v5987_v6  ;;  %3975 = vmatprep.subr.bf16.mxu0 %v5992_v8  ;;  %v6065_v6 = vld [vmem:[%s6815_s7 + $0x9e4] ss:$16 sps:$4 sm:$0xff]  }
  0x84   : > { %4016 = vmatprep.subr.bf16.mxu1 %v5995_v9  ;;  %v6068_v8 = vld [vmem:[%s6815_s7 + $0xbe4] ss:$16 sps:$4 sm:$0xff]   ;;  %v6063_v9 = vld [vmem:[%s6815_s7 + $0x9e0] ss:$16 sps:$4 sm:$0xff]  }
  0x86   : > { %3976 = vmatpush2.bf16.msra.mxu0 %v5990_v10  ;;  %v6066_v10 = vld [vmem:[%s6815_s7 + $0xbe0] ss:$16 sps:$4 sm:$0xff]  }
  0x87   : > { %4017 = vmatpush2.bf16.msra.mxu1 %v5993_v11  ;;  %3977 = vmatprep.subr.bf16.mxu0 %v5998_v12  ;;  %v6071_v11 = vld [vmem:[%s6815_s7 + $0x9c4] ss:$16 sps:$4 sm:$0xff]  }
  0x88   : > { %4018 = vmatprep.subr.bf16.mxu1 %v6001_v13  ;;  %v6074_v12 = vld [vmem:[%s6815_s7 + $0xbc4] ss:$16 sps:$4 sm:$0xff]   ;;  %v6069_v13 = vld [vmem:[%s6815_s7 + $0x9c0] ss:$16 sps:$4 sm:$0xff]  }
  0x8a   : > { %3978 = vmatpush2.bf16.msra.mxu0 %v5996_v15  ;;  %v6072_v15 = vld [vmem:[%s6815_s7 + $0xbc0] ss:$16 sps:$4 sm:$0xff]  }
  0x8b   : > { %4019 = vmatpush2.bf16.msra.mxu1 %v5999_v16  ;;  %3979 = vmatprep.subr.bf16.mxu0 %v6004_v17  ;;  %v6077_v16 = vld [vmem:[%s6815_s7 + $0x9a4] ss:$16 sps:$4 sm:$0xff]  }
  0x8c   : > { %4020 = vmatprep.subr.bf16.mxu1 %v6007_v20  ;;  %v6080_v17 = vld [vmem:[%s6815_s7 + $0xba4] ss:$16 sps:$4 sm:$0xff]   ;;  %v6075_v20 = vld [vmem:[%s6815_s7 + $0x9a0] ss:$16 sps:$4 sm:$0xff]  }
  0x8e   : > { %3980 = vmatpush2.bf16.msra.mxu0 %v6002_v21  ;;  %v6078_v21 = vld [vmem:[%s6815_s7 + $0xba0] ss:$16 sps:$4 sm:$0xff]  }
  0x8f   : > { %4021 = vmatpush2.bf16.msra.mxu1 %v6005_v22  ;;  %3981 = vmatprep.subr.bf16.mxu0 %v6010_v23  ;;  %v6083_v22 = vld [vmem:[%s6815_s7 + $0x984] ss:$16 sps:$4 sm:$0xff]  }
  0x90   : > { %4022 = vmatprep.subr.bf16.mxu1 %v6013_v25  ;;  %v6086_v23 = vld [vmem:[%s6815_s7 + $0xb84] ss:$16 sps:$4 sm:$0xff]   ;;  %v6081_v25 = vld [vmem:[%s6815_s7 + $0x980] ss:$16 sps:$4 sm:$0xff]  }
  0x92   : > { %3982 = vmatpush2.bf16.msra.mxu0 %v6008_v26  ;;  %v6084_v26 = vld [vmem:[%s6815_s7 + $0xb80] ss:$16 sps:$4 sm:$0xff]  }
  0x93   : > { %4023 = vmatpush2.bf16.msra.mxu1 %v6011_v28  ;;  %4033 = vmatprep.subr.bf16.mxu0 %v6017_v29  ;;  %v6089_v28 = vld [vmem:[%s6815_s7 + $0x964] ss:$16 sps:$4 sm:$0xff]  }
  0x94   : > { %4074 = vmatprep.subr.bf16.mxu1 %v6020_v30  ;;  %v6092_v29 = vld [vmem:[%s6815_s7 + $0xb64] ss:$16 sps:$4 sm:$0xff]   ;;  %v6087_v30 = vld [vmem:[%s6815_s7 + $0x960] ss:$16 sps:$4 sm:$0xff]  }
  0x95   : > { %3984 = vmatmul.mubr.bf16.vlgmr.msra.gmra.mxu0 %v6986_v27 }
  0x96   : > { %4025 = vmatmul.mubr.bf16.vlgmr.msra.gmra.mxu1 %v6993_v31  ;;  %4034 = vmatpush1.bf16.msra.mxu0 %v6015_v32  ;;  %v6090_v32 = vld [vmem:[%s6815_s7 + $0xb60] ss:$16 sps:$4 sm:$0xff]  }
  0x97   : > { %4075 = vmatpush1.bf16.msra.mxu1 %v6018_v7  ;;  %4035 = vmatprep.subr.bf16.mxu0 %v6023_v34  ;;  %v6095_v7 = vld [vmem:[%s6815_s7 + $0x944] ss:$16 sps:$4 sm:$0xff]  }
  0x98   : > { %4076 = vmatprep.subr.bf16.mxu1 %v6026_v35  ;;  %4065 = vmatprep.mubr.bf16.mxu0 %v7015_v42  ;;  %v6098_v34 = vld [vmem:[%s6815_s7 + $0xb44] ss:$16 sps:$4 sm:$0xff]   ;;  %v900_v35 = vcombine.high %v6998_v33, %v6998_v33  ;;  %v6099_v33 = vld [vmem:[%s6815_s7 + $0x920] ss:$16 sps:$4 sm:$0xff]  }
  0x99   : > { %4106 = vmatprep.mubr.bf16.mxu1 %v7020_v43 }
  0x9a   : > { %4036 = vmatpush1.bf16.msra.mxu0 %v6021_v38  ;;  %v6096_v38 = vld [vmem:[%s6815_s7 + $0xb40] ss:$16 sps:$4 sm:$0xff]  }
  0x9b   : > { %4077 = vmatpush1.bf16.msra.mxu1 %v6024_v39  ;;  %4037 = vmatprep.subr.bf16.mxu0 %v6029_v40  ;;  %v6101_v39 = vld [vmem:[%s6815_s7 + $0x924] ss:$16 sps:$4 sm:$0xff]  }
  0x9c   : > { %4078 = vmatprep.subr.bf16.mxu1 %v6032_v41  ;;  %v6104_v40 = vld [vmem:[%s6815_s7 + $0xb24] ss:$16 sps:$4 sm:$0xff]   ;;  %v7074_v41 = vrot.slane %v900_v35, %v6865_v50  ;;  %v6162_v35 = vld [vmem:[%s6815_s7 + $0xfe0] ss:$16 sps:$4 sm:$0xff]  }
  0x9e   : > { %4038 = vmatpush1.bf16.msra.mxu0 %v6027_v45  ;;  %v6102_v45 = vld [vmem:[%s6815_s7 + $0xb20] ss:$16 sps:$4 sm:$0xff]  }
  0x9f   : > { %4079 = vmatpush1.bf16.msra.mxu1 %v6030_v46  ;;  %4039 = vmatprep.subr.bf16.mxu0 %v6035_v47  ;;  %v6107_v46 = vld [vmem:[%s6815_s7 + $0x904] ss:$16 sps:$4 sm:$0xff]  }
  0xa0   : > { %4080 = vmatprep.subr.bf16.mxu1 %v6038_v48  ;;  %v6110_v47 = vld [vmem:[%s6815_s7 + $0xb04] ss:$16 sps:$4 sm:$0xff]   ;;  %v916_v48 = vcombine.high %v7074_v41, %v7074_v41 }
  0xa2   : > { %4040 = vmatpush1.bf16.msra.mxu0 %v6033_v49  ;;  %v7084_v49 = vrot.slane %v7004_v36, %v6865_v50  ;;  %v6111_v36 = vld [vmem:[%s6815_s7 + $0xce0] ss:$16 sps:$4 sm:$0xff]  }
  0xa3   : > { %4081 = vmatpush1.bf16.msra.mxu1 %v6036_v51  ;;  %4041 = vmatprep.subr.bf16.mxu0 %v6041_v52  ;;  %v6105_v51 = vld [vmem:[%s6815_s7 + $0x900] ss:$16 sps:$4 sm:$0xff]  }
  0xa4   : > { %4082 = vmatprep.subr.bf16.mxu1 %v6044_v53  ;;  %v6108_v52 = vld [vmem:[%s6815_s7 + $0xb00] ss:$16 sps:$4 sm:$0xff]   ;;  %v6113_v53 = vld [vmem:[%s6815_s7 + $0xce4] ss:$16 sps:$4 sm:$0xff]  }
  0xa6   : > { %4042 = vmatpush1.bf16.msra.mxu0 %v6039_v54  ;;  %v6116_v54 = vld [vmem:[%s6815_s7 + $0xee4] ss:$16 sps:$4 sm:$0xff]  }
  0xa7   : > { %4083 = vmatpush1.bf16.msra.mxu1 %v6042_v55  ;;  %4043 = vmatprep.subr.bf16.mxu0 %v6047_v56  ;;  %v7091_v55 = vrot.slane %v916_v48, %v6865_v50  ;;  %v7095_v56 = vcombine.high %v7084_v49, %v7084_v49  ;;  %v6179_v48 = vld [vmem:[%s6815_s7 + $0xd84] ss:$16 sps:$4 sm:$0xff]  }
  0xa8   : > { %4084 = vmatprep.subr.bf16.mxu1 %v6050_v57  ;;  %v6114_v57 = vld [vmem:[%s6815_s7 + $0xee0] ss:$16 sps:$4 sm:$0xff]  }
  0xaa   : > { %4044 = vmatpush1.bf16.msra.mxu0 %v6045_v58  ;;  %v6119_v58 = vld [vmem:[%s6815_s7 + $0xcc4] ss:$16 sps:$4 sm:$0xff]  }
  0xab   : > { %4085 = vmatpush1.bf16.msra.mxu1 %v6048_v59  ;;  %4045 = vmatprep.subr.bf16.mxu0 %v6053_v60  ;;  %v6122_v59 = vld [vmem:[%s6815_s7 + $0xec4] ss:$16 sps:$4 sm:$0xff]   ;;  %v7103_v60 = vcombine.high %v7091_v55, %v7091_v55 }
  0xac   : > { %4086 = vmatprep.subr.bf16.mxu1 %v6056_v62  ;;  %v6117_v62 = vld [vmem:[%s6815_s7 + $0xcc0] ss:$16 sps:$4 sm:$0xff]  }
  0xae   : > { %4046 = vmatpush1.bf16.msra.mxu0 %v6051_v63  ;;  %v6120_v63 = vld [vmem:[%s6815_s7 + $0xec0] ss:$16 sps:$4 sm:$0xff]  }
  0xaf   : > { %4087 = vmatpush1.bf16.msra.mxu1 %v6054_v0  ;;  %4047 = vmatprep.subr.bf16.mxu0 %v6059_v2  ;;  %v6125_v0 = vld [vmem:[%s6815_s7 + $0xca4] ss:$16 sps:$4 sm:$0xff]  }
  0xb0   : > { %4088 = vmatprep.subr.bf16.mxu1 %v6062_v3  ;;  %v6128_v2 = vld [vmem:[%s6815_s7 + $0xea4] ss:$16 sps:$4 sm:$0xff]   ;;  %v6123_v3 = vld [vmem:[%s6815_s7 + $0xca0] ss:$16 sps:$4 sm:$0xff]  }
  0xb2   : > { %4048 = vmatpush1.bf16.msra.mxu0 %v6057_v4  ;;  %v6126_v4 = vld [vmem:[%s6815_s7 + $0xea0] ss:$16 sps:$4 sm:$0xff]  }
  0xb3   : > { %4089 = vmatpush1.bf16.msra.mxu1 %v6060_v5  ;;  %4049 = vmatprep.subr.bf16.mxu0 %v6065_v6  ;;  %v6131_v5 = vld [vmem:[%s6815_s7 + $0xc84] ss:$16 sps:$4 sm:$0xff]  }
  0xb4   : > { %4090 = vmatprep.subr.bf16.mxu1 %v6068_v8  ;;  %v6134_v6 = vld [vmem:[%s6815_s7 + $0xe84] ss:$16 sps:$4 sm:$0xff]   ;;  %v6129_v8 = vld [vmem:[%s6815_s7 + $0xc80] ss:$16 sps:$4 sm:$0xff]  }
  0xb6   : > { %4050 = vmatpush2.bf16.msra.mxu0 %v6063_v9  ;;  %v6132_v9 = vld [vmem:[%s6815_s7 + $0xe80] ss:$16 sps:$4 sm:$0xff]  }
  0xb7   : > { %4091 = vmatpush2.bf16.msra.mxu1 %v6066_v10  ;;  %4051 = vmatprep.subr.bf16.mxu0 %v6071_v11  ;;  %v6137_v10 = vld [vmem:[%s6815_s7 + $0xc64] ss:$16 sps:$4 sm:$0xff]  }
  0xb8   : > { %4092 = vmatprep.subr.bf16.mxu1 %v6074_v12  ;;  %v6140_v11 = vld [vmem:[%s6815_s7 + $0xe64] ss:$16 sps:$4 sm:$0xff]   ;;  %v6135_v12 = vld [vmem:[%s6815_s7 + $0xc60] ss:$16 sps:$4 sm:$0xff]  }
  0xba   : > { %4052 = vmatpush2.bf16.msra.mxu0 %v6069_v13  ;;  %v6138_v13 = vld [vmem:[%s6815_s7 + $0xe60] ss:$16 sps:$4 sm:$0xff]  }
  0xbb   : > { %4093 = vmatpush2.bf16.msra.mxu1 %v6072_v15  ;;  %4053 = vmatprep.subr.bf16.mxu0 %v6077_v16  ;;  %v6143_v15 = vld [vmem:[%s6815_s7 + $0xc44] ss:$16 sps:$4 sm:$0xff]  }
  0xbc   : > { %4094 = vmatprep.subr.bf16.mxu1 %v6080_v17  ;;  %v6146_v16 = vld [vmem:[%s6815_s7 + $0xe44] ss:$16 sps:$4 sm:$0xff]   ;;  %v6141_v17 = vld [vmem:[%s6815_s7 + $0xc40] ss:$16 sps:$4 sm:$0xff]  }
  0xbe   : > { %4054 = vmatpush2.bf16.msra.mxu0 %v6075_v20  ;;  %v6144_v20 = vld [vmem:[%s6815_s7 + $0xe40] ss:$16 sps:$4 sm:$0xff]  }
  0xbf   : > { %4095 = vmatpush2.bf16.msra.mxu1 %v6078_v21  ;;  %4055 = vmatprep.subr.bf16.mxu0 %v6083_v22  ;;  %v6149_v21 = vld [vmem:[%s6815_s7 + $0xc24] ss:$16 sps:$4 sm:$0xff]  }
  0xc0   : > { %4096 = vmatprep.subr.bf16.mxu1 %v6086_v23  ;;  %v6152_v22 = vld [vmem:[%s6815_s7 + $0xe24] ss:$16 sps:$4 sm:$0xff]   ;;  %v6147_v23 = vld [vmem:[%s6815_s7 + $0xc20] ss:$16 sps:$4 sm:$0xff]  }
  0xc2   : > { %4056 = vmatpush2.bf16.msra.mxu0 %v6081_v25  ;;  %v6150_v25 = vld [vmem:[%s6815_s7 + $0xe20] ss:$16 sps:$4 sm:$0xff]  }
  0xc3   : > { %4097 = vmatpush2.bf16.msra.mxu1 %v6084_v26  ;;  %4057 = vmatprep.subr.bf16.mxu0 %v6089_v28  ;;  %v6155_v26 = vld [vmem:[%s6815_s7 + $0xc04] ss:$16 sps:$4 sm:$0xff]  }
  0xc4   : > { %4098 = vmatprep.subr.bf16.mxu1 %v6092_v29  ;;  %v6158_v28 = vld [vmem:[%s6815_s7 + $0xe04] ss:$16 sps:$4 sm:$0xff]   ;;  %v6153_v29 = vld [vmem:[%s6815_s7 + $0xc00] ss:$16 sps:$4 sm:$0xff]  }
  0xc6   : > { %4058 = vmatpush2.bf16.msra.mxu0 %v6087_v30  ;;  %v6156_v30 = vld [vmem:[%s6815_s7 + $0xe00] ss:$16 sps:$4 sm:$0xff]  }
  0xc7   : > { %4099 = vmatpush2.bf16.msra.mxu1 %v6090_v32  ;;  %4059 = vmatprep.subr.bf16.mxu0 %v6095_v7  ;;  %v6161_v32 = vld [vmem:[%s6815_s7 + $0xde4] ss:$16 sps:$4 sm:$0xff]  }
  0xc8   : > { %4100 = vmatprep.subr.bf16.mxu1 %v6098_v34  ;;  %v6164_v7 = vld [vmem:[%s6815_s7 + $0xfe4] ss:$16 sps:$4 sm:$0xff]   ;;  %v6159_v34 = vld [vmem:[%s6815_s7 + $0xde0] ss:$16 sps:$4 sm:$0xff]  }
  0xca   : > { %4060 = vmatpush2.bf16.msra.mxu0 %v6093_v37  ;;  %v6167_v37 = vld [vmem:[%s6815_s7 + $0xdc4] ss:$16 sps:$4 sm:$0xff]  }
  0xcb   : > { %4101 = vmatpush2.bf16.msra.mxu1 %v6096_v38  ;;  %4061 = vmatprep.subr.bf16.mxu0 %v6101_v39  ;;  %v6170_v38 = vld [vmem:[%s6815_s7 + $0xfc4] ss:$16 sps:$4 sm:$0xff]   ;;  %v6165_v39 = vld [vmem:[%s6815_s7 + $0xdc0] ss:$16 sps:$4 sm:$0xff]  }
  0xcc   : > { %4102 = vmatprep.subr.bf16.mxu1 %v6104_v40  ;;  %v6168_v40 = vld [vmem:[%s6815_s7 + $0xfc0] ss:$16 sps:$4 sm:$0xff]  }
  0xce   : > { %4062 = vmatpush2.bf16.msra.mxu0 %v6099_v33  ;;  %v6173_v33 = vld [vmem:[%s6815_s7 + $0xda4] ss:$16 sps:$4 sm:$0xff]  }
  0xcf   : > { %4103 = vmatpush2.bf16.msra.mxu1 %v6102_v45  ;;  %4063 = vmatprep.subr.bf16.mxu0 %v6107_v46  ;;  %v6176_v45 = vld [vmem:[%s6815_s7 + $0xfa4] ss:$16 sps:$4 sm:$0xff]   ;;  %v6171_v46 = vld [vmem:[%s6815_s7 + $0xda0] ss:$16 sps:$4 sm:$0xff]  }
  0xd0   : > { %4104 = vmatprep.subr.bf16.mxu1 %v6110_v47  ;;  %v6174_v47 = vld [vmem:[%s6815_s7 + $0xfa0] ss:$16 sps:$4 sm:$0xff]  }
  0xd2   : > { %4064 = vmatpush2.bf16.msra.mxu0 %v6105_v51  ;;  %v6182_v51 = vld [vmem:[%s6815_s7 + $0xf84] ss:$16 sps:$4 sm:$0xff]  }
  0xd3   : > { %4105 = vmatpush2.bf16.msra.mxu1 %v6108_v52  ;;  %4115 = vmatprep.subr.bf16.mxu0 %v6113_v53  ;;  %v6177_v52 = vld [vmem:[%s6815_s7 + $0xd80] ss:$16 sps:$4 sm:$0xff]  }
  0xd4   : > { %4156 = vmatprep.subr.bf16.mxu1 %v6116_v54  ;;  %v6180_v53 = vld [vmem:[%s6815_s7 + $0xf80] ss:$16 sps:$4 sm:$0xff]   ;;  %v6185_v54 = vld [vmem:[%s6815_s7 + $0xd64] ss:$16 sps:$4 sm:$0xff]  }
  0xd5   : > { %4066 = vmatmul.mubr.bf16.vlgmr.msra.gmra.mxu0 %v7084_v49 }
  0xd6   : > { %4107 = vmatmul.mubr.bf16.vlgmr.msra.gmra.mxu1 %v7095_v56  ;;  %4116 = vmatpush1.bf16.msra.mxu0 %v6111_v36  ;;  %v6188_v36 = vld [vmem:[%s6815_s7 + $0xf64] ss:$16 sps:$4 sm:$0xff]  }
  0xd7   : > { %4157 = vmatpush1.bf16.msra.mxu1 %v6114_v57  ;;  %4117 = vmatprep.subr.bf16.mxu0 %v6119_v58  ;;  %v6183_v57 = vld [vmem:[%s6815_s7 + $0xd60] ss:$16 sps:$4 sm:$0xff]  }
  0xd8   : > { %4158 = vmatprep.subr.bf16.mxu1 %v6122_v59  ;;  %4147 = vmatprep.mubr.bf16.mxu0 %v7091_v55  ;;  %v6186_v58 = vld [vmem:[%s6815_s7 + $0xf60] ss:$16 sps:$4 sm:$0xff]   ;;  %v6191_v59 = vld [vmem:[%s6815_s7 + $0xd44] ss:$16 sps:$4 sm:$0xff]  }
  0xd9   : > { %4188 = vmatprep.mubr.bf16.mxu1 %v7103_v60 }
  0xda   : > { %4118 = vmatpush1.bf16.msra.mxu0 %v6117_v62  ;;  %v6194_v62 = vld [vmem:[%s6815_s7 + $0xf44] ss:$16 sps:$4 sm:$0xff]  }
  0xdb   : > { %4159 = vmatpush1.bf16.msra.mxu1 %v6120_v63  ;;  %4119 = vmatprep.subr.bf16.mxu0 %v6125_v0  ;;  %v6189_v63 = vld [vmem:[%s6815_s7 + $0xd40] ss:$16 sps:$4 sm:$0xff]  }
  0xdc   : > { %4160 = vmatprep.subr.bf16.mxu1 %v6128_v2  ;;  %v6192_v0 = vld [vmem:[%s6815_s7 + $0xf40] ss:$16 sps:$4 sm:$0xff]   ;;  %v6197_v2 = vld [vmem:[%s6815_s7 + $0xd24] ss:$16 sps:$4 sm:$0xff]  }
  0xde   : > { %4120 = vmatpush1.bf16.msra.mxu0 %v6123_v3  ;;  %v6200_v3 = vld [vmem:[%s6815_s7 + $0xf24] ss:$16 sps:$4 sm:$0xff]  }
  0xdf   : > { %4161 = vmatpush1.bf16.msra.mxu1 %v6126_v4  ;;  %4121 = vmatprep.subr.bf16.mxu0 %v6131_v5  ;;  %v6195_v4 = vld [vmem:[%s6815_s7 + $0xd20] ss:$16 sps:$4 sm:$0xff]  }
  0xe0   : > { %4162 = vmatprep.subr.bf16.mxu1 %v6134_v6  ;;  %v6198_v5 = vld [vmem:[%s6815_s7 + $0xf20] ss:$16 sps:$4 sm:$0xff]   ;;  %v6203_v6 = vld [vmem:[%s6815_s7 + $0xd04] ss:$16 sps:$4 sm:$0xff]  }
  0xe2   : > { %4122 = vmatpush1.bf16.msra.mxu0 %v6129_v8  ;;  %v6206_v8 = vld [vmem:[%s6815_s7 + $0xf04] ss:$16 sps:$4 sm:$0xff]  }
  0xe3   : > { %4163 = vmatpush1.bf16.msra.mxu1 %v6132_v9  ;;  %4123 = vmatprep.subr.bf16.mxu0 %v6137_v10  ;;  %v6201_v9 = vld [vmem:[%s6815_s7 + $0xd00] ss:$16 sps:$4 sm:$0xff]   ;;  %v7168_v10 = vrot.slane %v7074_v41, %v6865_v50 }
  0xe4   : > { %4164 = vmatprep.subr.bf16.mxu1 %v6140_v11  ;;  %v7171_v11 = vld.sshfl [vmem:[%s6810_s27 + $0x10] sm:$0x11 pattern:$0x75316420] }
  0xe5   : > { %v6208_v41 = vld [vmem:[%s6815_s7 + $0x10e0] ss:$16 sps:$4 sm:$0xff]  }
  0xe6   : > { %4124 = vmatpush1.bf16.msra.mxu0 %v6135_v12  ;;  %v6204_v12 = vld [vmem:[%s6815_s7 + $0xf00] ss:$16 sps:$4 sm:$0xff]  }
  0xe7   : > { %4165 = vmatpush1.bf16.msra.mxu1 %v6138_v13  ;;  %4125 = vmatprep.subr.bf16.mxu0 %v6143_v15  ;;  %v6210_v13 = vld [vmem:[%s6815_s7 + $0x10e4] ss:$16 sps:$4 sm:$0xff]   ;;  %v6213_v15 = vld [vmem:[%s6815_s7 + $0xec] ss:$16 sps:$4 sm:$0xff]  }
  0xe8   : > { %4166 = vmatprep.subr.bf16.mxu1 %v6146_v16  ;;  %v956_v16 = vcombine.high %v7171_v11, %v7171_v11 }
  0xea   : > { %4126 = vmatpush1.bf16.msra.mxu0 %v6141_v17  ;;  %v7180_v17 = vcombine.high %v7168_v10, %v7168_v10 }
  0xeb   : > { %4167 = vmatpush1.bf16.msra.mxu1 %v6144_v20  ;;  %4127 = vmatprep.subr.bf16.mxu0 %v6149_v21  ;;  %v6211_v20 = vld [vmem:[%s6815_s7 + $0xe8] ss:$16 sps:$4 sm:$0xff]   ;;  %v6216_v21 = vld [vmem:[%s6815_s7 + $0x10c4] ss:$16 sps:$4 sm:$0xff]  }
  0xec   : > { %4168 = vmatprep.subr.bf16.mxu1 %v6152_v22  ;;  %v6219_v22 = vld [vmem:[%s6815_s7 + $0xcc] ss:$16 sps:$4 sm:$0xff]  }
  0xee   : > { %4128 = vmatpush1.bf16.msra.mxu0 %v6147_v23  ;;  %v7187_v23 = vrot.slane %v956_v16, %v6865_v50  ;;  %v6264_v16 = vld [vmem:[%s6815_s7 + $0x11c4] ss:$16 sps:$4 sm:$0xff]  }
  0xef   : > { %4169 = vmatpush1.bf16.msra.mxu1 %v6150_v25  ;;  %4129 = vmatprep.subr.bf16.mxu0 %v6155_v26 }
  0xf0   : > { %4170 = vmatprep.subr.bf16.mxu1 %v6158_v28  ;;  %v6214_v28 = vld [vmem:[%s6815_s7 + $0x10c0] ss:$16 sps:$4 sm:$0xff]  }
  0xf2   : > { %4130 = vmatpush1.bf16.msra.mxu0 %v6153_v29  ;;  %v6217_v29 = vld [vmem:[%s6815_s7 + $0xc8] ss:$16 sps:$4 sm:$0xff]  }
  0xf3   : > { %4171 = vmatpush1.bf16.msra.mxu1 %v6156_v30  ;;  %4131 = vmatprep.subr.bf16.mxu0 %v6161_v32 }
  0xf4   : > { %4172 = vmatprep.subr.bf16.mxu1 %v6164_v7 }
  0xf6   : > { %4132 = vmatpush2.bf16.msra.mxu0 %v6159_v34  ;;  %v6222_v34 = vld [vmem:[%s6815_s7 + $0x10a4] ss:$16 sps:$4 sm:$0xff]  }
  0xf7   : > { %4173 = vmatpush2.bf16.msra.mxu1 %v6162_v35  ;;  %4133 = vmatprep.subr.bf16.mxu0 %v6167_v37  ;;  %v6225_v35 = vld [vmem:[%s6815_s7 + $0xac] ss:$16 sps:$4 sm:$0xff]  }
  0xf8   : > { %4174 = vmatprep.subr.bf16.mxu1 %v6170_v38  ;;  %v6220_v38 = vld [vmem:[%s6815_s7 + $0x10a0] ss:$16 sps:$4 sm:$0xff]  }
  0xfa   : > { %4134 = vmatpush2.bf16.msra.mxu0 %v6165_v39  ;;  %v6223_v39 = vld [vmem:[%s6815_s7 + $0xa8] ss:$16 sps:$4 sm:$0xff]  }
  0xfb   : > { %4175 = vmatpush2.bf16.msra.mxu1 %v6168_v40  ;;  %4135 = vmatprep.subr.bf16.mxu0 %v6173_v33 }
  0xfc   : > { %4176 = vmatprep.subr.bf16.mxu1 %v6176_v45 }
  0xfe   : > { %4136 = vmatpush2.bf16.msra.mxu0 %v6171_v46 }
  0xff   : > { %4177 = vmatpush2.bf16.msra.mxu1 %v6174_v47  ;;  %4137 = vmatprep.subr.bf16.mxu0 %v6179_v48  ;;  %v6228_v47 = vld [vmem:[%s6815_s7 + $0x1084] ss:$16 sps:$4 sm:$0xff]   ;;  %v6231_v48 = vld [vmem:[%s6815_s7 + $0x8c] ss:$16 sps:$4 sm:$0xff]  }
 0x100   : > { %4178 = vmatprep.subr.bf16.mxu1 %v6182_v51  ;;  %v6226_v51 = vld [vmem:[%s6815_s7 + $0x1080] ss:$16 sps:$4 sm:$0xff]  }
 0x102   : > { %4138 = vmatpush2.bf16.msra.mxu0 %v6177_v52  ;;  %v6234_v52 = vld [vmem:[%s6815_s7 + $0x1064] ss:$16 sps:$4 sm:$0xff]  }
 0x103   : > { %4179 = vmatpush2.bf16.msra.mxu1 %v6180_v53  ;;  %4139 = vmatprep.subr.bf16.mxu0 %v6185_v54  ;;  %v6237_v53 = vld [vmem:[%s6815_s7 + $0x6c] ss:$16 sps:$4 sm:$0xff]   ;;  %v6232_v54 = vld [vmem:[%s6815_s7 + $0x1060] ss:$16 sps:$4 sm:$0xff]  }
 0x104   : > { %4180 = vmatprep.subr.bf16.mxu1 %v6188_v36  ;;  %v6235_v36 = vld [vmem:[%s6815_s7 + $0x68] ss:$16 sps:$4 sm:$0xff]  }
 0x106   : > { %4140 = vmatpush2.bf16.msra.mxu0 %v6183_v57  ;;  %v6240_v57 = vld [vmem:[%s6815_s7 + $0x1044] ss:$16 sps:$4 sm:$0xff]  }
 0x107   : > { %4181 = vmatpush2.bf16.msra.mxu1 %v6186_v58  ;;  %4141 = vmatprep.subr.bf16.mxu0 %v6191_v59  ;;  %v6243_v58 = vld [vmem:[%s6815_s7 + $0x4c] ss:$16 sps:$4 sm:$0xff]   ;;  %v6238_v59 = vld [vmem:[%s6815_s7 + $0x1040] ss:$16 sps:$4 sm:$0xff]  }
 0x108   : > { %4182 = vmatprep.subr.bf16.mxu1 %v6194_v62  ;;  %v6241_v62 = vld [vmem:[%s6815_s7 + $0x48] ss:$16 sps:$4 sm:$0xff]  }
 0x10a   : > { %4142 = vmatpush2.bf16.msra.mxu0 %v6189_v63  ;;  %v6246_v63 = vld [vmem:[%s6815_s7 + $0x1024] ss:$16 sps:$4 sm:$0xff]  }
 0x10b   : > { %4183 = vmatpush2.bf16.msra.mxu1 %v6192_v0  ;;  %4143 = vmatprep.subr.bf16.mxu0 %v6197_v2  ;;  %v6249_v0 = vld [vmem:[%s6815_s7 + $0x2c] ss:$16 sps:$4 sm:$0xff]   ;;  %v6244_v2 = vld [vmem:[%s6815_s7 + $0x1020] ss:$16 sps:$4 sm:$0xff]  }
 0x10c   : > { %4184 = vmatprep.subr.bf16.mxu1 %v6200_v3  ;;  %v6247_v3 = vld [vmem:[%s6815_s7 + $0x28] ss:$16 sps:$4 sm:$0xff]  }
 0x10e   : > { %4144 = vmatpush2.bf16.msra.mxu0 %v6195_v4  ;;  %v6252_v4 = vld [vmem:[%s6815_s7 + $0x1004] ss:$16 sps:$4 sm:$0xff]  }
 0x10f   : > { %4185 = vmatpush2.bf16.msra.mxu1 %v6198_v5  ;;  %4145 = vmatprep.subr.bf16.mxu0 %v6203_v6  ;;  %v6255_v5 = vld [vmem:[%s6815_s7 + $0xc] ss:$16 sps:$4 sm:$0xff]   ;;  %v6250_v6 = vld [vmem:[%s6815_s7 + $0x1000] ss:$16 sps:$4 sm:$0xff]  }
 0x110   : > { %4186 = vmatprep.subr.bf16.mxu1 %v6206_v8  ;;  %v6253_v8 = vld [vmem:[%s6815_s7 + $0x8] ss:$16 sps:$4 sm:$0xff]  }
 0x112   : > { %4146 = vmatpush2.bf16.msra.mxu0 %v6201_v9  ;;  %v6258_v9 = vld [vmem:[%s6815_s7 + $0x11e4] ss:$16 sps:$4 sm:$0xff]  }
 0x113   : > { %4187 = vmatpush2.bf16.msra.mxu1 %v6204_v12  ;;  %4197 = vmatprep.subr.bf16.mxu0 %v6210_v13  ;;  %v6261_v12 = vld [vmem:[%s6815_s7 + $0x1ec] ss:$16 sps:$4 sm:$0xff]   ;;  %v6256_v13 = vld [vmem:[%s6815_s7 + $0x11e0] ss:$16 sps:$4 sm:$0xff]  }
 0x114   : > { %4238 = vmatprep.subr.bf16.mxu1 %v6213_v15  ;;  %v6259_v15 = vld [vmem:[%s6815_s7 + $0x1e8] ss:$16 sps:$4 sm:$0xff]  }
 0x115   : > { %v3903_v25 = vpop.f32.mrf.mxu0  ;;  %4148 = vmatmul.mubr.bf16.vlgmr.msra.gmra.mxu0 %v7168_v10 }
 0x116   : > { %v3944_v26 = vpop.f32.mrf.mxu1  ;;  %4189 = vmatmul.mubr.bf16.vlgmr.msra.gmra.mxu1 %v7180_v17  ;;  %4198 = vmatpush1.bf16.msra.mxu0 %v6208_v41  ;;  %v6267_v41 = vld [vmem:[%s6815_s7 + $0x1cc] ss:$16 sps:$4 sm:$0xff]  }
 0x117   : > { %v7193_v30 = vadd.f32 %v3944_v26, %v3903_v25  ;;  %4239 = vmatpush1.bf16.msra.mxu1 %v6211_v20  ;;  %v3905_v32 = vpop.f32.mrf.mxu0  ;;  %4199 = vmatprep.subr.bf16.mxu0 %v6216_v21  ;;  %v6262_v20 = vld [vmem:[%s6815_s7 + $0x11c0] ss:$16 sps:$4 sm:$0xff]   ;;  %v6265_v21 = vld [vmem:[%s6815_s7 + $0x1c8] ss:$16 sps:$4 sm:$0xff]   ;;  %v6273_v25 = vld [vmem:[%s6815_s7 + $0x1ac] ss:$16 sps:$4 sm:$0xff]  }
 0x118   : > { %v3946_v7 = vpop.f32.mrf.mxu1  ;;  %4240 = vmatprep.subr.bf16.mxu1 %v6219_v22  ;;  %4229 = vmatprep.mubr.bf16.mxu0 %v7187_v23  ;;  %v6270_v22 = vld [vmem:[%s6815_s7 + $0x11a4] ss:$16 sps:$4 sm:$0xff]   ;;  %v6268_v26 = vld [vmem:[%s6815_s7 + $0x11a0] ss:$16 sps:$4 sm:$0xff]  }
 0x119   : > { %v7197_v37 = vadd.f32 %v3946_v7, %v3905_v32  ;;  %4270 = vmatprep.mubr.bf16.mxu1 %v6877_v61  ;;  %v3907_v40 = vpop.f32.mrf.mxu0  ;;  %v6229_v61 = vld [vmem:[%s6815_s7 + $0x88] ss:$16 sps:$4 sm:$0xff]   ;;  %v6279_v32 = vld [vmem:[%s6815_s7 + $0x18c] ss:$16 sps:$4 sm:$0xff]   ;;  %v6274_v7 = vld [vmem:[%s6815_s7 + $0x1180] ss:$16 sps:$4 sm:$0xff]  }
 0x11a   : > { %v3948_v33 = vpop.f32.mrf.mxu1  ;;  %4200 = vmatpush1.bf16.msra.mxu0 %v6214_v28  ;;  %v6271_v28 = vld [vmem:[%s6815_s7 + $0x1a8] ss:$16 sps:$4 sm:$0xff]  }
 0x11b   : > { %4241 = vmatpush1.bf16.msra.mxu1 %v6217_v29  ;;  %v3908_v45 = vpop.f32.mrf.mxu0  ;;  %4201 = vmatprep.subr.bf16.mxu0 %v6222_v34  ;;  %v6276_v29 = vld [vmem:[%s6815_s7 + $0x1184] ss:$16 sps:$4 sm:$0xff]   ;;  %v6277_v34 = vld [vmem:[%s6815_s7 + $0x188] ss:$16 sps:$4 sm:$0xff]  }
 0x11c   : > { %v3949_v46 = vpop.f32.mrf.mxu1  ;;  %4242 = vmatprep.subr.bf16.mxu1 %v6225_v35  ;;  %v6282_v35 = vld [vmem:[%s6815_s7 + $0x1164] ss:$16 sps:$4 sm:$0xff]   ;;  %v6283_v40 = vld [vmem:[%s6815_s7 + $0x168] ss:$16 sps:$4 sm:$0xff]   ;;  %v6291_v45 = vld [vmem:[%s6815_s7 + $0x14c] ss:$16 sps:$4 sm:$0xff]  }
 0x11d   : > { %v6288_v33 = vld [vmem:[%s6815_s7 + $0x1144] ss:$16 sps:$4 sm:$0xff]   ;;  %v6286_v46 = vld [vmem:[%s6815_s7 + $0x1140] ss:$16 sps:$4 sm:$0xff]  }
 0x11e   : > { %4202 = vmatpush1.bf16.msra.mxu0 %v6220_v38  ;;  %v6285_v38 = vld [vmem:[%s6815_s7 + $0x16c] ss:$16 sps:$4 sm:$0xff]  }
 0x11f   : > { %4243 = vmatpush1.bf16.msra.mxu1 %v6223_v39  ;;  %4203 = vmatprep.subr.bf16.mxu0 %v6228_v47  ;;  %v6280_v39 = vld [vmem:[%s6815_s7 + $0x1160] ss:$16 sps:$4 sm:$0xff]   ;;  %v6289_v47 = vld [vmem:[%s6815_s7 + $0x148] ss:$16 sps:$4 sm:$0xff]  }
 0x120   : > { %4244 = vmatprep.subr.bf16.mxu1 %v6231_v48  ;;  %v6294_v48 = vld [vmem:[%s6815_s7 + $0x1124] ss:$16 sps:$4 sm:$0xff]  }
 0x122   : > { %4204 = vmatpush1.bf16.msra.mxu0 %v6226_v51  ;;  %v6297_v51 = vld [vmem:[%s6815_s7 + $0x12c] ss:$16 sps:$4 sm:$0xff]  }
 0x123   : > { %4245 = vmatpush1.bf16.msra.mxu1 %v6229_v61  ;;  %4205 = vmatprep.subr.bf16.mxu0 %v6234_v52  ;;  %v6292_v61 = vld [vmem:[%s6815_s7 + $0x1120] ss:$16 sps:$4 sm:$0xff]   ;;  %v6295_v52 = vld [vmem:[%s6815_s7 + $0x128] ss:$16 sps:$4 sm:$0xff]  }
 0x124   : > { %4246 = vmatprep.subr.bf16.mxu1 %v6237_v53  ;;  %v6300_v53 = vld [vmem:[%s6815_s7 + $0x1104] ss:$16 sps:$4 sm:$0xff]  }
 0x126   : > { %4206 = vmatpush1.bf16.msra.mxu0 %v6232_v54  ;;  %v6303_v54 = vld [vmem:[%s6815_s7 + $0x10c] ss:$16 sps:$4 sm:$0xff]  }
 0x127   : > { %4247 = vmatpush1.bf16.msra.mxu1 %v6235_v36  ;;  %4207 = vmatprep.subr.bf16.mxu0 %v6240_v57  ;;  %v6298_v36 = vld [vmem:[%s6815_s7 + $0x1100] ss:$16 sps:$4 sm:$0xff]   ;;  %v6301_v57 = vld [vmem:[%s6815_s7 + $0x108] ss:$16 sps:$4 sm:$0xff]  }
 0x128   : > { %4248 = vmatprep.subr.bf16.mxu1 %v6243_v58  ;;  %v6306_v58 = vld [vmem:[%s6815_s7 + $0x2ec] ss:$16 sps:$4 sm:$0xff]  }
 0x12a   : > { %4208 = vmatpush1.bf16.msra.mxu0 %v6238_v59  ;;  %v6309_v59 = vld [vmem:[%s6815_s7 + $0x4ec] ss:$16 sps:$4 sm:$0xff]  }
 0x12b   : > { %4249 = vmatpush1.bf16.msra.mxu1 %v6241_v62  ;;  %4209 = vmatprep.subr.bf16.mxu0 %v6246_v63  ;;  %v6304_v62 = vld [vmem:[%s6815_s7 + $0x2e8] ss:$16 sps:$4 sm:$0xff]  }
 0x12c   : > { %4250 = vmatprep.subr.bf16.mxu1 %v6249_v0  ;;  %v6307_v63 = vld [vmem:[%s6815_s7 + $0x4e8] ss:$16 sps:$4 sm:$0xff]   ;;  %v7261_v0 = vrot.slane %v7171_v11, %v6865_v50 }
 0x12e   : > { %4210 = vmatpush1.bf16.msra.mxu0 %v6244_v2  ;;  %v6312_v2 = vld [vmem:[%s6815_s7 + $0x2cc] ss:$16 sps:$4 sm:$0xff]  }
 0x12f   : > { %4251 = vmatpush1.bf16.msra.mxu1 %v6247_v3  ;;  %4211 = vmatprep.subr.bf16.mxu0 %v6252_v4  ;;  %v6315_v3 = vld [vmem:[%s6815_s7 + $0x4cc] ss:$16 sps:$4 sm:$0xff]   ;;  %v6310_v4 = vld [vmem:[%s6815_s7 + $0x2c8] ss:$16 sps:$4 sm:$0xff]  }
 0x130   : > { %4252 = vmatprep.subr.bf16.mxu1 %v6255_v5  ;;  %v6313_v5 = vld [vmem:[%s6815_s7 + $0x4c8] ss:$16 sps:$4 sm:$0xff]  }
 0x132   : > { %4212 = vmatpush1.bf16.msra.mxu0 %v6250_v6 }
 0x133   : > { %4253 = vmatpush1.bf16.msra.mxu1 %v6253_v8  ;;  %4213 = vmatprep.subr.bf16.mxu0 %v6258_v9 }
 0x134   : > { %4254 = vmatprep.subr.bf16.mxu1 %v6261_v12  ;;  %v6318_v12 = vld [vmem:[%s6815_s7 + $0x2ac] ss:$16 sps:$4 sm:$0xff]  }
 0x136   : > { %4214 = vmatpush2.bf16.msra.mxu0 %v6256_v13  ;;  %v6321_v13 = vld [vmem:[%s6815_s7 + $0x4ac] ss:$16 sps:$4 sm:$0xff]  }
 0x137   : > { %4255 = vmatpush2.bf16.msra.mxu1 %v6259_v15  ;;  %4215 = vmatprep.subr.bf16.mxu0 %v6264_v16 }
 0x138   : > { %4256 = vmatprep.subr.bf16.mxu1 %v6267_v41  ;;  %v6316_v41 = vld [vmem:[%s6815_s7 + $0x2a8] ss:$16 sps:$4 sm:$0xff]  }
 0x13a   : > { %4216 = vmatpush2.bf16.msra.mxu0 %v6262_v20  ;;  %v6319_v20 = vld [vmem:[%s6815_s7 + $0x4a8] ss:$16 sps:$4 sm:$0xff]  }
 0x13b   : > { %4257 = vmatpush2.bf16.msra.mxu1 %v6265_v21  ;;  %4217 = vmatprep.subr.bf16.mxu0 %v6270_v22 }
 0x13c   : > { %4258 = vmatprep.subr.bf16.mxu1 %v6273_v25 }
 0x13e   : > { %4218 = vmatpush2.bf16.msra.mxu0 %v6268_v26  ;;  %v6325_v26 = vld [vmem:[%s6815_s7 + $0x488] ss:$16 sps:$4 sm:$0xff]  }
 0x13f   : > { %4259 = vmatpush2.bf16.msra.mxu1 %v6271_v28  ;;  %4219 = vmatprep.subr.bf16.mxu0 %v6276_v29  ;;  %v6330_v28 = vld [vmem:[%s6815_s7 + $0x26c] ss:$16 sps:$4 sm:$0xff]  }
 0x140   : > { %4260 = vmatprep.subr.bf16.mxu1 %v6279_v32  ;;  %v6333_v29 = vld [vmem:[%s6815_s7 + $0x46c] ss:$16 sps:$4 sm:$0xff]   ;;  %v6328_v32 = vld [vmem:[%s6815_s7 + $0x268] ss:$16 sps:$4 sm:$0xff]  }
 0x142   : > { %4220 = vmatpush2.bf16.msra.mxu0 %v6274_v7  ;;  %v6331_v7 = vld [vmem:[%s6815_s7 + $0x468] ss:$16 sps:$4 sm:$0xff]  }
 0x143   : > { %4261 = vmatpush2.bf16.msra.mxu1 %v6277_v34  ;;  %4221 = vmatprep.subr.bf16.mxu0 %v6282_v35  ;;  %v6336_v34 = vld [vmem:[%s6815_s7 + $0x24c] ss:$16 sps:$4 sm:$0xff]  }
 0x144   : > { %4262 = vmatprep.subr.bf16.mxu1 %v6285_v38  ;;  %v6339_v35 = vld [vmem:[%s6815_s7 + $0x44c] ss:$16 sps:$4 sm:$0xff]   ;;  %v6334_v38 = vld [vmem:[%s6815_s7 + $0x248] ss:$16 sps:$4 sm:$0xff]  }
 0x146   : > { %4222 = vmatpush2.bf16.msra.mxu0 %v6280_v39  ;;  %v6337_v39 = vld [vmem:[%s6815_s7 + $0x448] ss:$16 sps:$4 sm:$0xff]  }
 0x147   : > { %4263 = vmatpush2.bf16.msra.mxu1 %v6283_v40  ;;  %4223 = vmatprep.subr.bf16.mxu0 %v6288_v33  ;;  %v6342_v40 = vld [vmem:[%s6815_s7 + $0x22c] ss:$16 sps:$4 sm:$0xff]  }
 0x148   : > { %4264 = vmatprep.subr.bf16.mxu1 %v6291_v45  ;;  %v6345_v33 = vld [vmem:[%s6815_s7 + $0x42c] ss:$16 sps:$4 sm:$0xff]   ;;  %v6340_v45 = vld [vmem:[%s6815_s7 + $0x228] ss:$16 sps:$4 sm:$0xff]  }
 0x14a   : > { %4224 = vmatpush2.bf16.msra.mxu0 %v6286_v46  ;;  %v6343_v46 = vld [vmem:[%s6815_s7 + $0x428] ss:$16 sps:$4 sm:$0xff]  }
 0x14b   : > { %4265 = vmatpush2.bf16.msra.mxu1 %v6289_v47  ;;  %4225 = vmatprep.subr.bf16.mxu0 %v6294_v48  ;;  %v6348_v47 = vld [vmem:[%s6815_s7 + $0x20c] ss:$16 sps:$4 sm:$0xff]  }
 0x14c   : > { %4266 = vmatprep.subr.bf16.mxu1 %v6297_v51  ;;  %v6351_v48 = vld [vmem:[%s6815_s7 + $0x40c] ss:$16 sps:$4 sm:$0xff]   ;;  %v6346_v51 = vld [vmem:[%s6815_s7 + $0x208] ss:$16 sps:$4 sm:$0xff]  }
 0x14e   : > { %4226 = vmatpush2.bf16.msra.mxu0 %v6292_v61  ;;  %v6349_v61 = vld [vmem:[%s6815_s7 + $0x408] ss:$16 sps:$4 sm:$0xff]  }
 0x14f   : > { %4267 = vmatpush2.bf16.msra.mxu1 %v6295_v52  ;;  %4227 = vmatprep.subr.bf16.mxu0 %v6300_v53  ;;  %v6354_v52 = vld [vmem:[%s6815_s7 + $0x3ec] ss:$16 sps:$4 sm:$0xff]  }
 0x150   : > { %4268 = vmatprep.subr.bf16.mxu1 %v6303_v54  ;;  %v6357_v53 = vld [vmem:[%s6815_s7 + $0x5ec] ss:$16 sps:$4 sm:$0xff]   ;;  %v6352_v54 = vld [vmem:[%s6815_s7 + $0x3e8] ss:$16 sps:$4 sm:$0xff]  }
 0x152   : > { %4228 = vmatpush2.bf16.msra.mxu0 %v6298_v36  ;;  %v6355_v36 = vld [vmem:[%s6815_s7 + $0x5e8] ss:$16 sps:$4 sm:$0xff]  }
 0x153   : > { %4269 = vmatpush2.bf16.msra.mxu1 %v6301_v57  ;;  %4279 = vmatprep.subr.bf16.mxu0 %v6306_v58  ;;  %v6360_v57 = vld [vmem:[%s6815_s7 + $0x3cc] ss:$16 sps:$4 sm:$0xff]  }
 0x154   : > { %4320 = vmatprep.subr.bf16.mxu1 %v6309_v59  ;;  %v6363_v58 = vld [vmem:[%s6815_s7 + $0x5cc] ss:$16 sps:$4 sm:$0xff]   ;;  %v6358_v59 = vld [vmem:[%s6815_s7 + $0x3c8] ss:$16 sps:$4 sm:$0xff]  }
 0x155   : > { %v3985_v6 = vpop.f32.mrf.mxu0  ;;  %4230 = vmatmul.mubr.bf16.vlgmr.msra.gmra.mxu0 %v7261_v0 }
 0x156   : > { %v4026_v8 = vpop.f32.mrf.mxu1  ;;  %4271 = vmatmul.mubr.bf16.vlgmr.msra.gmra.mxu1 %v6903_v14  ;;  %v3986_v50 = vadd.f32 %v3985_v6, %v7193_v30  ;;  %4280 = vmatpush1.bf16.msra.mxu0 %v6304_v62  ;;  %v6361_v62 = vld [vmem:[%s6815_s7 + $0x5c8] ss:$16 sps:$4 sm:$0xff]   ;;  %v6375_v6 = vld [vmem:[%s6815_s7 + $0x58c] ss:$16 sps:$4 sm:$0xff]  }
 0x157   : > { %4321 = vmatpush1.bf16.msra.mxu1 %v6307_v63  ;;  %v3987_v11 = vpop.f32.mrf.mxu0  ;;  %4281 = vmatprep.subr.bf16.mxu0 %v6312_v2  ;;  %v6366_v63 = vld [vmem:[%s6815_s7 + $0x3ac] ss:$16 sps:$4 sm:$0xff]  }
 0x158   : > { %v4028_v9 = vpop.f32.mrf.mxu1  ;;  %4322 = vmatprep.subr.bf16.mxu1 %v6315_v3  ;;  %v7272_v15 = vadd.f32 %v4026_v8, %v3986_v50  ;;  %v3988_v16 = vadd.f32 %v3987_v11, %v7197_v37  ;;  %4311 = vmatprep.mubr.bf16.mxu0 %v6884_v1  ;;  %v6324_v37 = vld [vmem:[%s6815_s7 + $0x28c] ss:$16 sps:$4 sm:$0xff]   ;;  %v6364_v3 = vld [vmem:[%s6815_s7 + $0x3a8] ss:$16 sps:$4 sm:$0xff]  }
 0x159   : > { %4352 = vmatprep.mubr.bf16.mxu1 %v6909_v18  ;;  %v3989_v14 = vpop.f32.mrf.mxu0  ;;  %v6327_v1 = vld [vmem:[%s6815_s7 + $0x48c] ss:$16 sps:$4 sm:$0xff]   ;;  %v6322_v18 = vld [vmem:[%s6815_s7 + $0x288] ss:$16 sps:$4 sm:$0xff]  }
 0x15a   : > { %v4030_v30 = vpop.f32.mrf.mxu1  ;;  %v7279_v21 = vadd.f32 %v4028_v9, %v3988_v16  ;;  %4282 = vmatpush1.bf16.msra.mxu0 %v6310_v4  ;;  %v6369_v2 = vld [vmem:[%s6815_s7 + $0x5ac] ss:$16 sps:$4 sm:$0xff]   ;;  %v6367_v4 = vld [vmem:[%s6815_s7 + $0x5a8] ss:$16 sps:$4 sm:$0xff]  }
 0x15b   : > { %4323 = vmatpush1.bf16.msra.mxu1 %v6313_v5  ;;  %v3990_v22 = vpop.f32.mrf.mxu0  ;;  %4283 = vmatprep.subr.bf16.mxu0 %v6318_v12  ;;  %v6372_v5 = vld [vmem:[%s6815_s7 + $0x38c] ss:$16 sps:$4 sm:$0xff]   ;;  %v6370_v8 = vld [vmem:[%s6815_s7 + $0x388] ss:$16 sps:$4 sm:$0xff]  }
 0x15c   : > { %v4031_v25 = vpop.f32.mrf.mxu1  ;;  %4324 = vmatprep.subr.bf16.mxu1 %v6321_v13  ;;  %v6373_v50 = vld [vmem:[%s6815_s7 + $0x588] ss:$16 sps:$4 sm:$0xff]   ;;  %v6378_v11 = vld [vmem:[%s6815_s7 + $0x36c] ss:$16 sps:$4 sm:$0xff]  }
 0x15d   : > { %v6381_v9 = vld [vmem:[%s6815_s7 + $0x56c] ss:$16 sps:$4 sm:$0xff]   ;;  %v6376_v12 = vld [vmem:[%s6815_s7 + $0x368] ss:$16 sps:$4 sm:$0xff]  }
 0x15e   : > { %4284 = vmatpush1.bf16.msra.mxu0 %v6316_v41  ;;  %v6379_v13 = vld [vmem:[%s6815_s7 + $0x568] ss:$16 sps:$4 sm:$0xff]   ;;  %v6384_v16 = vld [vmem:[%s6815_s7 + $0x34c] ss:$16 sps:$4 sm:$0xff]  }
 0x15f   : > { %4325 = vmatpush1.bf16.msra.mxu1 %v6319_v20  ;;  %4285 = vmatprep.subr.bf16.mxu0 %v6324_v37  ;;  %v6387_v41 = vld [vmem:[%s6815_s7 + $0x54c] ss:$16 sps:$4 sm:$0xff]   ;;  %v6382_v20 = vld [vmem:[%s6815_s7 + $0x348] ss:$16 sps:$4 sm:$0xff]  }
 0x160   : > { %4326 = vmatprep.subr.bf16.mxu1 %v6327_v1  ;;  %v6385_v14 = vld [vmem:[%s6815_s7 + $0x548] ss:$16 sps:$4 sm:$0xff]   ;;  %v6390_v30 = vld [vmem:[%s6815_s7 + $0x32c] ss:$16 sps:$4 sm:$0xff]  }
 0x161   : > { %v6393_v22 = vld [vmem:[%s6815_s7 + $0x52c] ss:$16 sps:$4 sm:$0xff]   ;;  %v6388_v25 = vld [vmem:[%s6815_s7 + $0x328] ss:$16 sps:$4 sm:$0xff]  }
 0x162   : > { %4286 = vmatpush1.bf16.msra.mxu0 %v6322_v18  ;;  %v6391_v37 = vld [vmem:[%s6815_s7 + $0x528] ss:$16 sps:$4 sm:$0xff]   ;;  %v6396_v1 = vld [vmem:[%s6815_s7 + $0x30c] ss:$16 sps:$4 sm:$0xff]  }
 0x163   : > { %4327 = vmatpush1.bf16.msra.mxu1 %v6325_v26  ;;  %4287 = vmatprep.subr.bf16.mxu0 %v6330_v28  ;;  %v6399_v18 = vld [vmem:[%s6815_s7 + $0x50c] ss:$16 sps:$4 sm:$0xff]   ;;  %v6394_v26 = vld [vmem:[%s6815_s7 + $0x308] ss:$16 sps:$4 sm:$0xff]  }
 0x164   : > { %4328 = vmatprep.subr.bf16.mxu1 %v6333_v29  ;;  %v6397_v28 = vld [vmem:[%s6815_s7 + $0x508] ss:$16 sps:$4 sm:$0xff]   ;;  %v6402_v29 = vld [vmem:[%s6815_s7 + $0x6ec] ss:$16 sps:$4 sm:$0xff]  }
 0x166   : > { %4288 = vmatpush1.bf16.msra.mxu0 %v6328_v32  ;;  %v6405_v32 = vld [vmem:[%s6815_s7 + $0x8ec] ss:$16 sps:$4 sm:$0xff]  }
 0x167   : > { %4329 = vmatpush1.bf16.msra.mxu1 %v6331_v7  ;;  %4289 = vmatprep.subr.bf16.mxu0 %v6336_v34  ;;  %v6400_v7 = vld [vmem:[%s6815_s7 + $0x6e8] ss:$16 sps:$4 sm:$0xff]  }
 0x168   : > { %4330 = vmatprep.subr.bf16.mxu1 %v6339_v35  ;;  %v6403_v34 = vld [vmem:[%s6815_s7 + $0x8e8] ss:$16 sps:$4 sm:$0xff]   ;;  %v6408_v35 = vld [vmem:[%s6815_s7 + $0x6cc] ss:$16 sps:$4 sm:$0xff]  }
 0x16a   : > { %4290 = vmatpush1.bf16.msra.mxu0 %v6334_v38  ;;  %v6411_v38 = vld [vmem:[%s6815_s7 + $0x8cc] ss:$16 sps:$4 sm:$0xff]  }
 0x16b   : > { %4331 = vmatpush1.bf16.msra.mxu1 %v6337_v39  ;;  %4291 = vmatprep.subr.bf16.mxu0 %v6342_v40 }
 0x16c   : > { %4332 = vmatprep.subr.bf16.mxu1 %v6345_v33 }
 0x16e   : > { %4292 = vmatpush1.bf16.msra.mxu0 %v6340_v45  ;;  %v6406_v45 = vld [vmem:[%s6815_s7 + $0x6c8] ss:$16 sps:$4 sm:$0xff]  }
 0x16f   : > { %4333 = vmatpush1.bf16.msra.mxu1 %v6343_v46  ;;  %4293 = vmatprep.subr.bf16.mxu0 %v6348_v47  ;;  %v6409_v46 = vld [vmem:[%s6815_s7 + $0x8c8] ss:$16 sps:$4 sm:$0xff]  }
 0x170   : > { %4334 = vmatprep.subr.bf16.mxu1 %v6351_v48 }
 0x172   : > { %4294 = vmatpush1.bf16.msra.mxu0 %v6346_v51  ;;  %v6414_v51 = vld [vmem:[%s6815_s7 + $0x6ac] ss:$16 sps:$4 sm:$0xff]  }
 0x173   : > { %4335 = vmatpush1.bf16.msra.mxu1 %v6349_v61  ;;  %4295 = vmatprep.subr.bf16.mxu0 %v6354_v52  ;;  %v6417_v61 = vld [vmem:[%s6815_s7 + $0x8ac] ss:$16 sps:$4 sm:$0xff]  }
 0x174   : > { %4336 = vmatprep.subr.bf16.mxu1 %v6357_v53 }
 0x176   : > { %4296 = vmatpush2.bf16.msra.mxu0 %v6352_v54  ;;  %v6412_v54 = vld [vmem:[%s6815_s7 + $0x6a8] ss:$16 sps:$4 sm:$0xff]  }
 0x177   : > { %4337 = vmatpush2.bf16.msra.mxu1 %v6355_v36  ;;  %4297 = vmatprep.subr.bf16.mxu0 %v6360_v57  ;;  %v6415_v36 = vld [vmem:[%s6815_s7 + $0x8a8] ss:$16 sps:$4 sm:$0xff]  }
 0x178   : > { %4338 = vmatprep.subr.bf16.mxu1 %v6363_v58 }
 0x17a   : > { %4298 = vmatpush2.bf16.msra.mxu0 %v6358_v59  ;;  %v6421_v59 = vld [vmem:[%s6815_s7 + $0x888] ss:$16 sps:$4 sm:$0xff]  }
 0x17b   : > { %4339 = vmatpush2.bf16.msra.mxu1 %v6361_v62  ;;  %4299 = vmatprep.subr.bf16.mxu0 %v6366_v63  ;;  %v6426_v62 = vld [vmem:[%s6815_s7 + $0x66c] ss:$16 sps:$4 sm:$0xff]  }
 0x17c   : > { %4340 = vmatprep.subr.bf16.mxu1 %v6369_v2  ;;  %v6429_v63 = vld [vmem:[%s6815_s7 + $0x86c] ss:$16 sps:$4 sm:$0xff]   ;;  %v6424_v2 = vld [vmem:[%s6815_s7 + $0x668] ss:$16 sps:$4 sm:$0xff]  }
 0x17e   : > { %4300 = vmatpush2.bf16.msra.mxu0 %v6364_v3  ;;  %v6427_v3 = vld [vmem:[%s6815_s7 + $0x868] ss:$16 sps:$4 sm:$0xff]  }
 0x17f   : > { %4341 = vmatpush2.bf16.msra.mxu1 %v6367_v4  ;;  %4301 = vmatprep.subr.bf16.mxu0 %v6372_v5  ;;  %v6432_v4 = vld [vmem:[%s6815_s7 + $0x64c] ss:$16 sps:$4 sm:$0xff]  }
 0x180   : > { %4342 = vmatprep.subr.bf16.mxu1 %v6375_v6  ;;  %v6435_v5 = vld [vmem:[%s6815_s7 + $0x84c] ss:$16 sps:$4 sm:$0xff]   ;;  %v6430_v6 = vld [vmem:[%s6815_s7 + $0x648] ss:$16 sps:$4 sm:$0xff]  }
 0x182   : > { %4302 = vmatpush2.bf16.msra.mxu0 %v6370_v8  ;;  %v6433_v8 = vld [vmem:[%s6815_s7 + $0x848] ss:$16 sps:$4 sm:$0xff]  }
 0x183   : > { %4343 = vmatpush2.bf16.msra.mxu1 %v6373_v50  ;;  %4303 = vmatprep.subr.bf16.mxu0 %v6378_v11  ;;  %v6438_v50 = vld [vmem:[%s6815_s7 + $0x62c] ss:$16 sps:$4 sm:$0xff]  }
 0x184   : > { %4344 = vmatprep.subr.bf16.mxu1 %v6381_v9  ;;  %v6441_v11 = vld [vmem:[%s6815_s7 + $0x82c] ss:$16 sps:$4 sm:$0xff]   ;;  %v6436_v9 = vld [vmem:[%s6815_s7 + $0x628] ss:$16 sps:$4 sm:$0xff]  }
 0x186   : > { %4304 = vmatpush2.bf16.msra.mxu0 %v6376_v12  ;;  %v6439_v12 = vld [vmem:[%s6815_s7 + $0x828] ss:$16 sps:$4 sm:$0xff]  }
 0x187   : > { %4345 = vmatpush2.bf16.msra.mxu1 %v6379_v13  ;;  %4305 = vmatprep.subr.bf16.mxu0 %v6384_v16  ;;  %v6444_v13 = vld [vmem:[%s6815_s7 + $0x60c] ss:$16 sps:$4 sm:$0xff]  }
 0x188   : > { %4346 = vmatprep.subr.bf16.mxu1 %v6387_v41  ;;  %v6447_v16 = vld [vmem:[%s6815_s7 + $0x80c] ss:$16 sps:$4 sm:$0xff]   ;;  %v6442_v41 = vld [vmem:[%s6815_s7 + $0x608] ss:$16 sps:$4 sm:$0xff]  }
 0x18a   : > { %4306 = vmatpush2.bf16.msra.mxu0 %v6382_v20  ;;  %v6445_v20 = vld [vmem:[%s6815_s7 + $0x808] ss:$16 sps:$4 sm:$0xff]  }
 0x18b   : > { %4347 = vmatpush2.bf16.msra.mxu1 %v6385_v14  ;;  %4307 = vmatprep.subr.bf16.mxu0 %v6390_v30  ;;  %v6450_v14 = vld [vmem:[%s6815_s7 + $0x7ec] ss:$16 sps:$4 sm:$0xff]  }
 0x18c   : > { %4348 = vmatprep.subr.bf16.mxu1 %v6393_v22  ;;  %v6453_v30 = vld [vmem:[%s6815_s7 + $0x9ec] ss:$16 sps:$4 sm:$0xff]   ;;  %v6448_v22 = vld [vmem:[%s6815_s7 + $0x7e8] ss:$16 sps:$4 sm:$0xff]  }
 0x18e   : > { %4308 = vmatpush2.bf16.msra.mxu0 %v6388_v25  ;;  %v6451_v25 = vld [vmem:[%s6815_s7 + $0x9e8] ss:$16 sps:$4 sm:$0xff]  }
 0x18f   : > { %4349 = vmatpush2.bf16.msra.mxu1 %v6391_v37  ;;  %4309 = vmatprep.subr.bf16.mxu0 %v6396_v1  ;;  %v6456_v37 = vld [vmem:[%s6815_s7 + $0x7cc] ss:$16 sps:$4 sm:$0xff]  }
 0x190   : > { %4350 = vmatprep.subr.bf16.mxu1 %v6399_v18  ;;  %v6459_v1 = vld [vmem:[%s6815_s7 + $0x9cc] ss:$16 sps:$4 sm:$0xff]   ;;  %v6454_v18 = vld [vmem:[%s6815_s7 + $0x7c8] ss:$16 sps:$4 sm:$0xff]  }
 0x192   : > { %4310 = vmatpush2.bf16.msra.mxu0 %v6394_v26  ;;  %v6457_v26 = vld [vmem:[%s6815_s7 + $0x9c8] ss:$16 sps:$4 sm:$0xff]  }
 0x193   : > { %4351 = vmatpush2.bf16.msra.mxu1 %v6397_v28  ;;  %4361 = vmatprep.subr.bf16.mxu0 %v6402_v29  ;;  %v6462_v28 = vld [vmem:[%s6815_s7 + $0x7ac] ss:$16 sps:$4 sm:$0xff]  }
 0x194   : > { %4402 = vmatprep.subr.bf16.mxu1 %v6405_v32  ;;  %v6465_v29 = vld [vmem:[%s6815_s7 + $0x9ac] ss:$16 sps:$4 sm:$0xff]   ;;  %v6460_v32 = vld [vmem:[%s6815_s7 + $0x7a8] ss:$16 sps:$4 sm:$0xff]  }
 0x195   : > { %v4067_v39 = vpop.f32.mrf.mxu0  ;;  %4312 = vmatmul.mubr.bf16.vlgmr.msra.gmra.mxu0 %v6913_v19 }
 0x196   : > { %v4108_v40 = vpop.f32.mrf.mxu1  ;;  %4353 = vmatmul.mubr.bf16.vlgmr.msra.gmra.mxu1 %v6986_v27  ;;  %v4068_v33 = vadd.f32 %v4067_v39, %v7272_v15  ;;  %4362 = vmatpush1.bf16.msra.mxu0 %v6400_v7  ;;  %v6463_v7 = vld [vmem:[%s6815_s7 + $0x9a8] ss:$16 sps:$4 sm:$0xff]  }
 0x197   : > { %4403 = vmatpush1.bf16.msra.mxu1 %v6403_v34  ;;  %v4069_v47 = vpop.f32.mrf.mxu0  ;;  %4363 = vmatprep.subr.bf16.mxu0 %v6408_v35  ;;  %v6468_v34 = vld [vmem:[%s6815_s7 + $0x78c] ss:$16 sps:$4 sm:$0xff]   ;;  %v6469_v39 = vld [vmem:[%s6815_s7 + $0x988] ss:$16 sps:$4 sm:$0xff]  }
 0x198   : > { %v4110_v48 = vpop.f32.mrf.mxu1  ;;  %4404 = vmatprep.subr.bf16.mxu1 %v6411_v38  ;;  %v7346_v52 = vadd.f32 %v4108_v40, %v4068_v33  ;;  %v4070_v19 = vadd.f32 %v4069_v47, %v7279_v21  ;;  %4393 = vmatprep.mubr.bf16.mxu0 %v6921_v24  ;;  %v6420_v24 = vld [vmem:[%s6815_s7 + $0x68c] ss:$16 sps:$4 sm:$0xff]   ;;  %v6418_v21 = vld [vmem:[%s6815_s7 + $0x688] ss:$16 sps:$4 sm:$0xff]  }
 0x199   : > { %4434 = vmatprep.mubr.bf16.mxu1 %v7015_v42  ;;  %v4071_v27 = vpop.f32.mrf.mxu0  ;;  %v6423_v42 = vld [vmem:[%s6815_s7 + $0x88c] ss:$16 sps:$4 sm:$0xff]   ;;  %v6466_v38 = vld [vmem:[%s6815_s7 + $0x788] ss:$16 sps:$4 sm:$0xff]  }
 0x19a   : > { %v4112_v15 = vpop.f32.mrf.mxu1  ;;  %v7351_v53 = vadd.f32 %v4110_v48, %v4070_v19  ;;  %4364 = vmatpush1.bf16.msra.mxu0 %v6406_v45  ;;  %v6471_v35 = vld [vmem:[%s6815_s7 + $0x98c] ss:$16 sps:$4 sm:$0xff]   ;;  %v6472_v45 = vld [vmem:[%s6815_s7 + $0x768] ss:$16 sps:$4 sm:$0xff]  }
 0x19b   : > { %4405 = vmatpush1.bf16.msra.mxu1 %v6409_v46  ;;  %v4072_v57 = vpop.f32.mrf.mxu0  ;;  %4365 = vmatprep.subr.bf16.mxu0 %v6414_v51  ;;  %v6474_v40 = vld [vmem:[%s6815_s7 + $0x76c] ss:$16 sps:$4 sm:$0xff]   ;;  %v6475_v46 = vld [vmem:[%s6815_s7 + $0x968] ss:$16 sps:$4 sm:$0xff]  }
 0x19c   : > { %v4113_v58 = vpop.f32.mrf.mxu1  ;;  %4406 = vmatprep.subr.bf16.mxu1 %v6417_v61  ;;  %v6477_v33 = vld [vmem:[%s6815_s7 + $0x96c] ss:$16 sps:$4 sm:$0xff]   ;;  %v6478_v51 = vld [vmem:[%s6815_s7 + $0x748] ss:$16 sps:$4 sm:$0xff]  }
 0x19d   : > { %v6480_v47 = vld [vmem:[%s6815_s7 + $0x74c] ss:$16 sps:$4 sm:$0xff]   ;;  %v6481_v61 = vld [vmem:[%s6815_s7 + $0x948] ss:$16 sps:$4 sm:$0xff]  }
 0x19e   : > { %4366 = vmatpush1.bf16.msra.mxu0 %v6412_v54  ;;  %v6483_v48 = vld [vmem:[%s6815_s7 + $0x94c] ss:$16 sps:$4 sm:$0xff]   ;;  %v6484_v15 = vld [vmem:[%s6815_s7 + $0x728] ss:$16 sps:$4 sm:$0xff]  }
 0x19f   : > { %4407 = vmatpush1.bf16.msra.mxu1 %v6415_v36  ;;  %4367 = vmatprep.subr.bf16.mxu0 %v6420_v24  ;;  %v6486_v19 = vld [vmem:[%s6815_s7 + $0x72c] ss:$16 sps:$4 sm:$0xff]   ;;  %v6487_v54 = vld [vmem:[%s6815_s7 + $0x928] ss:$16 sps:$4 sm:$0xff]  }
 0x1a0   : > { %4408 = vmatprep.subr.bf16.mxu1 %v6423_v42  ;;  %v6489_v27 = vld [vmem:[%s6815_s7 + $0x92c] ss:$16 sps:$4 sm:$0xff]   ;;  %v6490_v58 = vld [vmem:[%s6815_s7 + $0x708] ss:$16 sps:$4 sm:$0xff]  }
 0x1a1   : > { %v6492_v36 = vld [vmem:[%s6815_s7 + $0x70c] ss:$16 sps:$4 sm:$0xff]   ;;  %v6493_v24 = vld [vmem:[%s6815_s7 + $0x908] ss:$16 sps:$4 sm:$0xff]  }
 0x1a2   : > { %4368 = vmatpush1.bf16.msra.mxu0 %v6418_v21  ;;  %v6495_v57 = vld [vmem:[%s6815_s7 + $0x90c] ss:$16 sps:$4 sm:$0xff]  }
 0x1a3   : > { %4409 = vmatpush1.bf16.msra.mxu1 %v6421_v59  ;;  %4369 = vmatprep.subr.bf16.mxu0 %v6426_v62  ;;  %v6498_v42 = vld [vmem:[%s6815_s7 + $0xaec] ss:$16 sps:$4 sm:$0xff]   ;;  %v6496_v59 = vld [vmem:[%s6815_s7 + $0xae8] ss:$16 sps:$4 sm:$0xff]  }
 0x1a4   : > { %4410 = vmatprep.subr.bf16.mxu1 %v6429_v63  ;;  %v6501_v21 = vld [vmem:[%s6815_s7 + $0xcec] ss:$16 sps:$4 sm:$0xff]   ;;  %v6499_v62 = vld [vmem:[%s6815_s7 + $0xce8] ss:$16 sps:$4 sm:$0xff]  }
 0x1a5   : > { %v6504_v63 = vld [vmem:[%s6815_s7 + $0xacc] ss:$16 sps:$4 sm:$0xff]  }
 0x1a6   : > { %4370 = vmatpush1.bf16.msra.mxu0 %v6424_v2  ;;  %v6507_v2 = vld [vmem:[%s6815_s7 + $0xccc] ss:$16 sps:$4 sm:$0xff]  }
 0x1a7   : > { %4411 = vmatpush1.bf16.msra.mxu1 %v6427_v3  ;;  %4371 = vmatprep.subr.bf16.mxu0 %v6432_v4 }
 0x1a8   : > { %4412 = vmatprep.subr.bf16.mxu1 %v6435_v5 }
 0x1aa   : > { %4372 = vmatpush1.bf16.msra.mxu0 %v6430_v6  ;;  %v6502_v6 = vld [vmem:[%s6815_s7 + $0xac8] ss:$16 sps:$4 sm:$0xff]  }
 0x1ab   : > { %4413 = vmatpush1.bf16.msra.mxu1 %v6433_v8  ;;  %4373 = vmatprep.subr.bf16.mxu0 %v6438_v50  ;;  %v6505_v8 = vld [vmem:[%s6815_s7 + $0xcc8] ss:$16 sps:$4 sm:$0xff]  }
 0x1ac   : > { %4414 = vmatprep.subr.bf16.mxu1 %v6441_v11 }
 0x1ae   : > { %4374 = vmatpush1.bf16.msra.mxu0 %v6436_v9  ;;  %v6510_v9 = vld [vmem:[%s6815_s7 + $0xaac] ss:$16 sps:$4 sm:$0xff]  }
 0x1af   : > { %4415 = vmatpush1.bf16.msra.mxu1 %v6439_v12  ;;  %4375 = vmatprep.subr.bf16.mxu0 %v6444_v13  ;;  %v6513_v12 = vld [vmem:[%s6815_s7 + $0xcac] ss:$16 sps:$4 sm:$0xff]  }
 0x1b0   : > { %4416 = vmatprep.subr.bf16.mxu1 %v6447_v16 }
 0x1b2   : > { %4376 = vmatpush1.bf16.msra.mxu0 %v6442_v41  ;;  %v6508_v41 = vld [vmem:[%s6815_s7 + $0xaa8] ss:$16 sps:$4 sm:$0xff]  }
 0x1b3   : > { %4417 = vmatpush1.bf16.msra.mxu1 %v6445_v20  ;;  %4377 = vmatprep.subr.bf16.mxu0 %v6450_v14  ;;  %v6511_v20 = vld [vmem:[%s6815_s7 + $0xca8] ss:$16 sps:$4 sm:$0xff]  }
 0x1b4   : > { %4418 = vmatprep.subr.bf16.mxu1 %v6453_v30 }
 0x1b6   : > { %4378 = vmatpush2.bf16.msra.mxu0 %v6448_v22  ;;  %v6517_v22 = vld [vmem:[%s6815_s7 + $0xc88] ss:$16 sps:$4 sm:$0xff]  }
 0x1b7   : > { %4419 = vmatpush2.bf16.msra.mxu1 %v6451_v25  ;;  %4379 = vmatprep.subr.bf16.mxu0 %v6456_v37  ;;  %v6522_v25 = vld [vmem:[%s6815_s7 + $0xa6c] ss:$16 sps:$4 sm:$0xff]  }
 0x1b8   : > { %4420 = vmatprep.subr.bf16.mxu1 %v6459_v1  ;;  %v6525_v37 = vld [vmem:[%s6815_s7 + $0xc6c] ss:$16 sps:$4 sm:$0xff]   ;;  %v6520_v1 = vld [vmem:[%s6815_s7 + $0xa68] ss:$16 sps:$4 sm:$0xff]  }
 0x1ba   : > { %4380 = vmatpush2.bf16.msra.mxu0 %v6454_v18  ;;  %v6523_v18 = vld [vmem:[%s6815_s7 + $0xc68] ss:$16 sps:$4 sm:$0xff]  }
 0x1bb   : > { %4421 = vmatpush2.bf16.msra.mxu1 %v6457_v26  ;;  %4381 = vmatprep.subr.bf16.mxu0 %v6462_v28  ;;  %v6528_v26 = vld [vmem:[%s6815_s7 + $0xa4c] ss:$16 sps:$4 sm:$0xff]  }
 0x1bc   : > { %4422 = vmatprep.subr.bf16.mxu1 %v6465_v29  ;;  %v6531_v28 = vld [vmem:[%s6815_s7 + $0xc4c] ss:$16 sps:$4 sm:$0xff]   ;;  %v6526_v29 = vld [vmem:[%s6815_s7 + $0xa48] ss:$16 sps:$4 sm:$0xff]  }
 0x1be   : > { %4382 = vmatpush2.bf16.msra.mxu0 %v6460_v32  ;;  %v6529_v32 = vld [vmem:[%s6815_s7 + $0xc48] ss:$16 sps:$4 sm:$0xff]  }
 0x1bf   : > { %4423 = vmatpush2.bf16.msra.mxu1 %v6463_v7  ;;  %4383 = vmatprep.subr.bf16.mxu0 %v6468_v34  ;;  %v6534_v7 = vld [vmem:[%s6815_s7 + $0xa2c] ss:$16 sps:$4 sm:$0xff]  }
 0x1c0   : > { %4424 = vmatprep.subr.bf16.mxu1 %v6471_v35  ;;  %v6537_v34 = vld [vmem:[%s6815_s7 + $0xc2c] ss:$16 sps:$4 sm:$0xff]   ;;  %v6532_v35 = vld [vmem:[%s6815_s7 + $0xa28] ss:$16 sps:$4 sm:$0xff]  }
 0x1c2   : > { %4384 = vmatpush2.bf16.msra.mxu0 %v6466_v38  ;;  %v6535_v38 = vld [vmem:[%s6815_s7 + $0xc28] ss:$16 sps:$4 sm:$0xff]  }
 0x1c3   : > { %4425 = vmatpush2.bf16.msra.mxu1 %v6469_v39  ;;  %4385 = vmatprep.subr.bf16.mxu0 %v6474_v40  ;;  %v6540_v39 = vld [vmem:[%s6815_s7 + $0xa0c] ss:$16 sps:$4 sm:$0xff]  }
 0x1c4   : > { %4426 = vmatprep.subr.bf16.mxu1 %v6477_v33  ;;  %v6543_v40 = vld [vmem:[%s6815_s7 + $0xc0c] ss:$16 sps:$4 sm:$0xff]   ;;  %v6538_v33 = vld [vmem:[%s6815_s7 + $0xa08] ss:$16 sps:$4 sm:$0xff]  }
 0x1c6   : > { %4386 = vmatpush2.bf16.msra.mxu0 %v6472_v45  ;;  %v6541_v45 = vld [vmem:[%s6815_s7 + $0xc08] ss:$16 sps:$4 sm:$0xff]  }
 0x1c7   : > { %4427 = vmatpush2.bf16.msra.mxu1 %v6475_v46  ;;  %4387 = vmatprep.subr.bf16.mxu0 %v6480_v47  ;;  %v6546_v46 = vld [vmem:[%s6815_s7 + $0xbec] ss:$16 sps:$4 sm:$0xff]  }
 0x1c8   : > { %4428 = vmatprep.subr.bf16.mxu1 %v6483_v48  ;;  %v6549_v47 = vld [vmem:[%s6815_s7 + $0xdec] ss:$16 sps:$4 sm:$0xff]   ;;  %v6544_v48 = vld [vmem:[%s6815_s7 + $0xbe8] ss:$16 sps:$4 sm:$0xff]  }
 0x1ca   : > { %4388 = vmatpush2.bf16.msra.mxu0 %v6478_v51  ;;  %v6547_v51 = vld [vmem:[%s6815_s7 + $0xde8] ss:$16 sps:$4 sm:$0xff]  }
 0x1cb   : > { %4429 = vmatpush2.bf16.msra.mxu1 %v6481_v61  ;;  %4389 = vmatprep.subr.bf16.mxu0 %v6486_v19  ;;  %v6552_v61 = vld [vmem:[%s6815_s7 + $0xbcc] ss:$16 sps:$4 sm:$0xff]  }
 0x1cc   : > { %4430 = vmatprep.subr.bf16.mxu1 %v6489_v27  ;;  %v6555_v19 = vld [vmem:[%s6815_s7 + $0xdcc] ss:$16 sps:$4 sm:$0xff]   ;;  %v6550_v27 = vld [vmem:[%s6815_s7 + $0xbc8] ss:$16 sps:$4 sm:$0xff]  }
 0x1ce   : > { %4390 = vmatpush2.bf16.msra.mxu0 %v6484_v15  ;;  %v6553_v15 = vld [vmem:[%s6815_s7 + $0xdc8] ss:$16 sps:$4 sm:$0xff]  }
 0x1cf   : > { %4431 = vmatpush2.bf16.msra.mxu1 %v6487_v54  ;;  %4391 = vmatprep.subr.bf16.mxu0 %v6492_v36  ;;  %v6558_v54 = vld [vmem:[%s6815_s7 + $0xbac] ss:$16 sps:$4 sm:$0xff]  }
 0x1d0   : > { %4432 = vmatprep.subr.bf16.mxu1 %v6495_v57  ;;  %v6561_v36 = vld [vmem:[%s6815_s7 + $0xdac] ss:$16 sps:$4 sm:$0xff]   ;;  %v6556_v57 = vld [vmem:[%s6815_s7 + $0xba8] ss:$16 sps:$4 sm:$0xff]  }
 0x1d2   : > { %4392 = vmatpush2.bf16.msra.mxu0 %v6490_v58  ;;  %v6559_v58 = vld [vmem:[%s6815_s7 + $0xda8] ss:$16 sps:$4 sm:$0xff]  }
 0x1d3   : > { %4433 = vmatpush2.bf16.msra.mxu1 %v6493_v24  ;;  %4443 = vmatprep.subr.bf16.mxu0 %v6498_v42  ;;  %v6564_v24 = vld [vmem:[%s6815_s7 + $0xb8c] ss:$16 sps:$4 sm:$0xff]  }
 0x1d4   : > { %4484 = vmatprep.subr.bf16.mxu1 %v6501_v21  ;;  %v6567_v42 = vld [vmem:[%s6815_s7 + $0xd8c] ss:$16 sps:$4 sm:$0xff]   ;;  %v6562_v21 = vld [vmem:[%s6815_s7 + $0xb88] ss:$16 sps:$4 sm:$0xff]  }
 0x1d5   : > { %v4149_v3 = vpop.f32.mrf.mxu0  ;;  %4394 = vmatmul.mubr.bf16.vlgmr.msra.gmra.mxu0 %v6993_v31 }
 0x1d6   : > { %v4190_v4 = vpop.f32.mrf.mxu1  ;;  %4435 = vmatmul.mubr.bf16.vlgmr.msra.gmra.mxu1 %v7084_v49  ;;  %v4150_v5 = vadd.f32 %v4149_v3, %v7346_v52  ;;  %4444 = vmatpush1.bf16.msra.mxu0 %v6496_v59  ;;  %v6565_v59 = vld [vmem:[%s6815_s7 + $0xd88] ss:$16 sps:$4 sm:$0xff]  }
 0x1d7   : > { %4485 = vmatpush1.bf16.msra.mxu1 %v6499_v62  ;;  %v4151_v50 = vpop.f32.mrf.mxu0  ;;  %4445 = vmatprep.subr.bf16.mxu0 %v6504_v63  ;;  %v6570_v62 = vld [vmem:[%s6815_s7 + $0xb6c] ss:$16 sps:$4 sm:$0xff]   ;;  %v6571_v3 = vld [vmem:[%s6815_s7 + $0xd68] ss:$16 sps:$4 sm:$0xff]  }
 0x1d8   : > { %v4192_v11 = vpop.f32.mrf.mxu1  ;;  %4486 = vmatprep.subr.bf16.mxu1 %v6507_v2  ;;  %v7420_v13 = vadd.f32 %v4190_v4, %v4150_v5  ;;  %v4152_v31 = vadd.f32 %v4151_v50, %v7351_v53  ;;  %4475 = vmatprep.mubr.bf16.mxu0 %v7020_v43  ;;  %v6516_v43 = vld [vmem:[%s6815_s7 + $0xa8c] ss:$16 sps:$4 sm:$0xff]   ;;  %v6514_v53 = vld [vmem:[%s6815_s7 + $0xa88] ss:$16 sps:$4 sm:$0xff]  }
 0x1d9   : > { %4516 = vmatprep.mubr.bf16.mxu1 %v7091_v55  ;;  %v4153_v49 = vpop.f32.mrf.mxu0  ;;  %v6519_v55 = vld [vmem:[%s6815_s7 + $0xc8c] ss:$16 sps:$4 sm:$0xff]   ;;  %v6568_v2 = vld [vmem:[%s6815_s7 + $0xb68] ss:$16 sps:$4 sm:$0xff]  }
 0x1da   : > { %v4194_v52 = vpop.f32.mrf.mxu1  ;;  %v7425_v16 = vadd.f32 %v4192_v11, %v4152_v31  ;;  %4446 = vmatpush1.bf16.msra.mxu0 %v6502_v6  ;;  %v6573_v63 = vld [vmem:[%s6815_s7 + $0xd6c] ss:$16 sps:$4 sm:$0xff]   ;;  %v6574_v6 = vld [vmem:[%s6815_s7 + $0xb48] ss:$16 sps:$4 sm:$0xff]  }
 0x1db   : > { %4487 = vmatpush1.bf16.msra.mxu1 %v6505_v8  ;;  %v4154_v14 = vpop.f32.mrf.mxu0  ;;  %4447 = vmatprep.subr.bf16.mxu0 %v6510_v9  ;;  %v6576_v4 = vld [vmem:[%s6815_s7 + $0xb4c] ss:$16 sps:$4 sm:$0xff]   ;;  %v6577_v8 = vld [vmem:[%s6815_s7 + $0xd48] ss:$16 sps:$4 sm:$0xff]  }
 0x1dc   : > { %v4195_v30 = vpop.f32.mrf.mxu1  ;;  %4488 = vmatprep.subr.bf16.mxu1 %v6513_v12  ;;  %v6579_v5 = vld [vmem:[%s6815_s7 + $0xd4c] ss:$16 sps:$4 sm:$0xff]   ;;  %v6580_v9 = vld [vmem:[%s6815_s7 + $0xb28] ss:$16 sps:$4 sm:$0xff]  }
 0x1dd   : > { %v6582_v50 = vld [vmem:[%s6815_s7 + $0xb2c] ss:$16 sps:$4 sm:$0xff]   ;;  %v6583_v12 = vld [vmem:[%s6815_s7 + $0xd28] ss:$16 sps:$4 sm:$0xff]  }
 0x1de   : > { %4448 = vmatpush1.bf16.msra.mxu0 %v6508_v41  ;;  %v6585_v11 = vld [vmem:[%s6815_s7 + $0xd2c] ss:$16 sps:$4 sm:$0xff]   ;;  %v6586_v52 = vld [vmem:[%s6815_s7 + $0xb08] ss:$16 sps:$4 sm:$0xff]  }
 0x1df   : > { %4489 = vmatpush1.bf16.msra.mxu1 %v6511_v20  ;;  %4449 = vmatprep.subr.bf16.mxu0 %v6516_v43  ;;  %v6588_v31 = vld [vmem:[%s6815_s7 + $0xb0c] ss:$16 sps:$4 sm:$0xff]   ;;  %v6589_v41 = vld [vmem:[%s6815_s7 + $0xd08] ss:$16 sps:$4 sm:$0xff]  }
 0x1e0   : > { %4490 = vmatprep.subr.bf16.mxu1 %v6519_v55  ;;  %v6591_v49 = vld [vmem:[%s6815_s7 + $0xd0c] ss:$16 sps:$4 sm:$0xff]   ;;  %v6592_v30 = vld [vmem:[%s6815_s7 + $0xee8] ss:$16 sps:$4 sm:$0xff]  }
 0x1e1   : > { %v6594_v20 = vld [vmem:[%s6815_s7 + $0xeec] ss:$16 sps:$4 sm:$0xff]   ;;  %v6595_v43 = vld [vmem:[%s6815_s7 + $0x10e8] ss:$16 sps:$4 sm:$0xff]  }
 0x1e2   : > { %4450 = vmatpush1.bf16.msra.mxu0 %v6514_v53  ;;  %v6597_v14 = vld [vmem:[%s6815_s7 + $0x10ec] ss:$16 sps:$4 sm:$0xff]  }
 0x1e3   : > { %4491 = vmatpush1.bf16.msra.mxu1 %v6517_v22  ;;  %4451 = vmatprep.subr.bf16.mxu0 %v6522_v25  ;;  %v6600_v55 = vld [vmem:[%s6815_s7 + $0xecc] ss:$16 sps:$4 sm:$0xff]  }
 0x1e4   : > { %4492 = vmatprep.subr.bf16.mxu1 %v6525_v37  ;;  %v6603_v53 = vld [vmem:[%s6815_s7 + $0x10cc] ss:$16 sps:$4 sm:$0xff]  }
 0x1e6   : > { %4452 = vmatpush1.bf16.msra.mxu0 %v6520_v1  ;;  %v6598_v1 = vld [vmem:[%s6815_s7 + $0xec8] ss:$16 sps:$4 sm:$0xff]  }
 0x1e7   : > { %4493 = vmatpush1.bf16.msra.mxu1 %v6523_v18  ;;  %4453 = vmatprep.subr.bf16.mxu0 %v6528_v26  ;;  %v6601_v18 = vld [vmem:[%s6815_s7 + $0x10c8] ss:$16 sps:$4 sm:$0xff]  }
 0x1e8   : > { %4494 = vmatprep.subr.bf16.mxu1 %v6531_v28 }
 0x1ea   : > { %4454 = vmatpush1.bf16.msra.mxu0 %v6526_v29  ;;  %v6606_v29 = vld [vmem:[%s6815_s7 + $0xeac] ss:$16 sps:$4 sm:$0xff]  }
 0x1eb   : > { %4495 = vmatpush1.bf16.msra.mxu1 %v6529_v32  ;;  %4455 = vmatprep.subr.bf16.mxu0 %v6534_v7  ;;  %v6609_v32 = vld [vmem:[%s6815_s7 + $0x10ac] ss:$16 sps:$4 sm:$0xff]  }
 0x1ec   : > { %4496 = vmatprep.subr.bf16.mxu1 %v6537_v34  ;;  %v6604_v34 = vld [vmem:[%s6815_s7 + $0xea8] ss:$16 sps:$4 sm:$0xff]  }
 0x1ee   : > { %4456 = vmatpush1.bf16.msra.mxu0 %v6532_v35  ;;  %v6607_v35 = vld [vmem:[%s6815_s7 + $0x10a8] ss:$16 sps:$4 sm:$0xff]  }
 0x1ef   : > { %4497 = vmatpush1.bf16.msra.mxu1 %v6535_v38  ;;  %4457 = vmatprep.subr.bf16.mxu0 %v6540_v39  ;;  %v6610_v39 = vld [vmem:[%s6815_s7 + $0xe88] ss:$16 sps:$4 sm:$0xff]  }
 0x1f0   : > { %4498 = vmatprep.subr.bf16.mxu1 %v6543_v40  ;;  %v6613_v40 = vld [vmem:[%s6815_s7 + $0x1088] ss:$16 sps:$4 sm:$0xff]  }
 0x1f2   : > { %4458 = vmatpush1.bf16.msra.mxu0 %v6538_v33  ;;  %v6618_v33 = vld [vmem:[%s6815_s7 + $0xe6c] ss:$16 sps:$4 sm:$0xff]  }
 0x1f3   : > { %4499 = vmatpush1.bf16.msra.mxu1 %v6541_v45  ;;  %4459 = vmatprep.subr.bf16.mxu0 %v6546_v46  ;;  %v6621_v45 = vld [vmem:[%s6815_s7 + $0x106c] ss:$16 sps:$4 sm:$0xff]   ;;  %v6616_v46 = vld [vmem:[%s6815_s7 + $0xe68] ss:$16 sps:$4 sm:$0xff]  }
 0x1f4   : > { %4500 = vmatprep.subr.bf16.mxu1 %v6549_v47  ;;  %v6619_v47 = vld [vmem:[%s6815_s7 + $0x1068] ss:$16 sps:$4 sm:$0xff]  }
 0x1f6   : > { %4460 = vmatpush2.bf16.msra.mxu0 %v6544_v48  ;;  %v6624_v48 = vld [vmem:[%s6815_s7 + $0xe4c] ss:$16 sps:$4 sm:$0xff]  }
 0x1f7   : > { %4501 = vmatpush2.bf16.msra.mxu1 %v6547_v51  ;;  %4461 = vmatprep.subr.bf16.mxu0 %v6552_v61  ;;  %v6627_v51 = vld [vmem:[%s6815_s7 + $0x104c] ss:$16 sps:$4 sm:$0xff]   ;;  %v6622_v61 = vld [vmem:[%s6815_s7 + $0xe48] ss:$16 sps:$4 sm:$0xff]  }
 0x1f8   : > { %4502 = vmatprep.subr.bf16.mxu1 %v6555_v19  ;;  %v6625_v19 = vld [vmem:[%s6815_s7 + $0x1048] ss:$16 sps:$4 sm:$0xff]  }
 0x1fa   : > { %4462 = vmatpush2.bf16.msra.mxu0 %v6550_v27  ;;  %v6630_v27 = vld [vmem:[%s6815_s7 + $0xe2c] ss:$16 sps:$4 sm:$0xff]  }
 0x1fb   : > { %4503 = vmatpush2.bf16.msra.mxu1 %v6553_v15  ;;  %4463 = vmatprep.subr.bf16.mxu0 %v6558_v54  ;;  %v6633_v15 = vld [vmem:[%s6815_s7 + $0x102c] ss:$16 sps:$4 sm:$0xff]   ;;  %v6628_v54 = vld [vmem:[%s6815_s7 + $0xe28] ss:$16 sps:$4 sm:$0xff]  }
 0x1fc   : > { %4504 = vmatprep.subr.bf16.mxu1 %v6561_v36  ;;  %v6631_v36 = vld [vmem:[%s6815_s7 + $0x1028] ss:$16 sps:$4 sm:$0xff]  }
 0x1fe   : > { %4464 = vmatpush2.bf16.msra.mxu0 %v6556_v57  ;;  %v6636_v57 = vld [vmem:[%s6815_s7 + $0xe0c] ss:$16 sps:$4 sm:$0xff]  }
 0x1ff   : > { %4505 = vmatpush2.bf16.msra.mxu1 %v6559_v58  ;;  %4465 = vmatprep.subr.bf16.mxu0 %v6564_v24  ;;  %v6639_v58 = vld [vmem:[%s6815_s7 + $0x100c] ss:$16 sps:$4 sm:$0xff]   ;;  %v6634_v24 = vld [vmem:[%s6815_s7 + $0xe08] ss:$16 sps:$4 sm:$0xff]  }
 0x200   : > { %4506 = vmatprep.subr.bf16.mxu1 %v6567_v42  ;;  %v6637_v42 = vld [vmem:[%s6815_s7 + $0x1008] ss:$16 sps:$4 sm:$0xff]  }
 0x202   : > { %4466 = vmatpush2.bf16.msra.mxu0 %v6562_v21  ;;  %v6642_v21 = vld [vmem:[%s6815_s7 + $0xfec] ss:$16 sps:$4 sm:$0xff]  }
 0x203   : > { %4507 = vmatpush2.bf16.msra.mxu1 %v6565_v59  ;;  %4467 = vmatprep.subr.bf16.mxu0 %v6570_v62  ;;  %v6645_v59 = vld [vmem:[%s6815_s7 + $0x11ec] ss:$16 sps:$4 sm:$0xff]   ;;  %v6640_v62 = vld [vmem:[%s6815_s7 + $0xfe8] ss:$16 sps:$4 sm:$0xff]  }
 0x204   : > { %4508 = vmatprep.subr.bf16.mxu1 %v6573_v63  ;;  %v6643_v63 = vld [vmem:[%s6815_s7 + $0x11e8] ss:$16 sps:$4 sm:$0xff]  }
 0x206   : > { %4468 = vmatpush2.bf16.msra.mxu0 %v6568_v2  ;;  %v6648_v2 = vld [vmem:[%s6815_s7 + $0xfcc] ss:$16 sps:$4 sm:$0xff]  }
 0x207   : > { %4509 = vmatpush2.bf16.msra.mxu1 %v6571_v3  ;;  %4469 = vmatprep.subr.bf16.mxu0 %v6576_v4  ;;  %v6651_v3 = vld [vmem:[%s6815_s7 + $0x11cc] ss:$16 sps:$4 sm:$0xff]   ;;  %v6646_v4 = vld [vmem:[%s6815_s7 + $0xfc8] ss:$16 sps:$4 sm:$0xff]  }
 0x208   : > { %4510 = vmatprep.subr.bf16.mxu1 %v6579_v5  ;;  %v6649_v5 = vld [vmem:[%s6815_s7 + $0x11c8] ss:$16 sps:$4 sm:$0xff]  }
 0x20a   : > { %4470 = vmatpush2.bf16.msra.mxu0 %v6574_v6  ;;  %v6654_v6 = vld [vmem:[%s6815_s7 + $0xfac] ss:$16 sps:$4 sm:$0xff]  }
 0x20b   : > { %4511 = vmatpush2.bf16.msra.mxu1 %v6577_v8  ;;  %4471 = vmatprep.subr.bf16.mxu0 %v6582_v50  ;;  %v6657_v8 = vld [vmem:[%s6815_s7 + $0x11ac] ss:$16 sps:$4 sm:$0xff]   ;;  %v6652_v50 = vld [vmem:[%s6815_s7 + $0xfa8] ss:$16 sps:$4 sm:$0xff]  }
 0x20c   : > { %4512 = vmatprep.subr.bf16.mxu1 %v6585_v11  ;;  %v6655_v11 = vld [vmem:[%s6815_s7 + $0x11a8] ss:$16 sps:$4 sm:$0xff]  }
 0x20e   : > { %4472 = vmatpush2.bf16.msra.mxu0 %v6580_v9  ;;  %v6660_v9 = vld [vmem:[%s6815_s7 + $0xf8c] ss:$16 sps:$4 sm:$0xff]  }
 0x20f   : > { %4513 = vmatpush2.bf16.msra.mxu1 %v6583_v12  ;;  %4473 = vmatprep.subr.bf16.mxu0 %v6588_v31  ;;  %v6663_v12 = vld [vmem:[%s6815_s7 + $0x118c] ss:$16 sps:$4 sm:$0xff]   ;;  %v6658_v31 = vld [vmem:[%s6815_s7 + $0xf88] ss:$16 sps:$4 sm:$0xff]  }
 0x210   : > { %4514 = vmatprep.subr.bf16.mxu1 %v6591_v49  ;;  %v6661_v49 = vld [vmem:[%s6815_s7 + $0x1188] ss:$16 sps:$4 sm:$0xff]  }
 0x212   : > { %4474 = vmatpush2.bf16.msra.mxu0 %v6586_v52  ;;  %v6666_v52 = vld [vmem:[%s6815_s7 + $0xf6c] ss:$16 sps:$4 sm:$0xff]  }
 0x213   : > { %4515 = vmatpush2.bf16.msra.mxu1 %v6589_v41  ;;  %4525 = vmatprep.subr.bf16.mxu0 %v6594_v20  ;;  %v6669_v41 = vld [vmem:[%s6815_s7 + $0x116c] ss:$16 sps:$4 sm:$0xff]   ;;  %v6664_v20 = vld [vmem:[%s6815_s7 + $0xf68] ss:$16 sps:$4 sm:$0xff]  }
 0x214   : > { %4566 = vmatprep.subr.bf16.mxu1 %v6597_v14  ;;  %v6667_v14 = vld [vmem:[%s6815_s7 + $0x1168] ss:$16 sps:$4 sm:$0xff]  }
 0x215   : > { %v4231_v22 = vpop.f32.mrf.mxu0  ;;  %4476 = vmatmul.mubr.bf16.vlgmr.msra.gmra.mxu0 %v7095_v56 }
 0x216   : > { %v7487_v25 = vpop.f32.mrf.mxu1  ;;  %4517 = vmatmul.mubr.bf16.vlgmr.msra.gmra.mxu1 %v7168_v10  ;;  %v7492_v37 = vadd.f32 %v4231_v22, %v7420_v13  ;;  %4526 = vmatpush1.bf16.msra.mxu0 %v6592_v30  ;;  %v6672_v30 = vld [vmem:[%s6815_s7 + $0xf4c] ss:$16 sps:$4 sm:$0xff]  }
 0x217   : > { %4567 = vmatpush1.bf16.msra.mxu1 %v6595_v43  ;;  %v4233_v26 = vpop.f32.mrf.mxu0  ;;  %4527 = vmatprep.subr.bf16.mxu0 %v6600_v55  ;;  %v6675_v43 = vld [vmem:[%s6815_s7 + $0x114c] ss:$16 sps:$4 sm:$0xff]   ;;  %v6670_v55 = vld [vmem:[%s6815_s7 + $0xf48] ss:$16 sps:$4 sm:$0xff]  }
 0x218   : > { %v7496_v28 = vpop.f32.mrf.mxu1  ;;  %4568 = vmatprep.subr.bf16.mxu1 %v6603_v53  ;;  %v7501_v56 = vadd.f32 %v4233_v26, %v7425_v16  ;;  %4557 = vmatprep.mubr.bf16.mxu0 %v7103_v60  ;;  %v6612_v60 = vld [vmem:[%s6815_s7 + $0xe8c] ss:$16 sps:$4 sm:$0xff]   ;;  %v6673_v53 = vld [vmem:[%s6815_s7 + $0x1148] ss:$16 sps:$4 sm:$0xff]  }
 0x219   : > { %4598 = vmatprep.mubr.bf16.mxu1 %v7187_v23  ;;  %v4235_v10 = vpop.f32.mrf.mxu0  ;;  %v6615_v23 = vld [vmem:[%s6815_s7 + $0x108c] ss:$16 sps:$4 sm:$0xff]   ;;  %v6679_v26 = vld [vmem:[%s6815_s7 + $0x1128] ss:$16 sps:$4 sm:$0xff]  }
 0x21a   : > { %v4276_v13 = vpop.f32.mrf.mxu1  ;;  %v4611_v7 = vcombine.low %v7492_v37, %v7501_v56  ;;  %4528 = vmatpush1.bf16.msra.mxu0 %v6598_v1  ;;  %v6678_v22 = vld [vmem:[%s6815_s7 + $0xf2c] ss:$16 sps:$4 sm:$0xff]   ;;  %v6682_v10 = vld [vmem:[%s6815_s7 + $0xf08] ss:$16 sps:$4 sm:$0xff]  }
 0x21b   : > { %4569 = vmatpush1.bf16.msra.mxu1 %v6601_v18  ;;  %v4236_v38 = vpop.f32.mrf.mxu0  ;;  %4529 = vmatprep.subr.bf16.mxu0 %v6606_v29  ;;  %v6681_v1 = vld [vmem:[%s6815_s7 + $0x112c] ss:$16 sps:$4 sm:$0xff]   ;;  %v6676_v18 = vld [vmem:[%s6815_s7 + $0xf28] ss:$16 sps:$4 sm:$0xff]  }
 0x21c   : > { %v4277_v16 = vpop.f32.mrf.mxu1  ;;  %4570 = vmatprep.subr.bf16.mxu1 %v6609_v32  ;;  %v6684_v29 = vld [vmem:[%s6815_s7 + $0xf0c] ss:$16 sps:$4 sm:$0xff]   ;;  %v6685_v13 = vld [vmem:[%s6815_s7 + $0x1108] ss:$16 sps:$4 sm:$0xff]  }
 0x21d   : > { %v6687_v32 = vld [vmem:[%s6815_s7 + $0x110c] ss:$16 sps:$4 sm:$0xff]  }
 0x21e   : > { %4530 = vmatpush1.bf16.msra.mxu0 %v6604_v34 }
 0x21f   : > { %4571 = vmatpush1.bf16.msra.mxu1 %v6607_v35  ;;  %4531 = vmatprep.subr.bf16.mxu0 %v6612_v60 }
 0x220   : > { %4572 = vmatprep.subr.bf16.mxu1 %v6615_v23 }
 0x222   : > { %4532 = vmatpush1.bf16.msra.mxu0 %v6610_v39 }
 0x223   : > { %4573 = vmatpush1.bf16.msra.mxu1 %v6613_v40  ;;  %4533 = vmatprep.subr.bf16.mxu0 %v6618_v33 }
 0x224   : > { %4574 = vmatprep.subr.bf16.mxu1 %v6621_v45 }
 0x226   : > { %4534 = vmatpush1.bf16.msra.mxu0 %v6616_v46 }
 0x227   : > { %4575 = vmatpush1.bf16.msra.mxu1 %v6619_v47  ;;  %4535 = vmatprep.subr.bf16.mxu0 %v6624_v48 }
 0x228   : > { %4576 = vmatprep.subr.bf16.mxu1 %v6627_v51 }
 0x22a   : > { %4536 = vmatpush1.bf16.msra.mxu0 %v6622_v61 }
 0x22b   : > { %4577 = vmatpush1.bf16.msra.mxu1 %v6625_v19  ;;  %4537 = vmatprep.subr.bf16.mxu0 %v6630_v27 }
 0x22c   : > { %4578 = vmatprep.subr.bf16.mxu1 %v6633_v15 }
 0x22e   : > { %4538 = vmatpush1.bf16.msra.mxu0 %v6628_v54 }
 0x22f   : > { %4579 = vmatpush1.bf16.msra.mxu1 %v6631_v36  ;;  %4539 = vmatprep.subr.bf16.mxu0 %v6636_v57 }
 0x230   : > { %4580 = vmatprep.subr.bf16.mxu1 %v6639_v58 }
 0x232   : > { %4540 = vmatpush1.bf16.msra.mxu0 %v6634_v24 }
 0x233   : > { %4581 = vmatpush1.bf16.msra.mxu1 %v6637_v42  ;;  %4541 = vmatprep.subr.bf16.mxu0 %v6642_v21 }
 0x234   : > { %4582 = vmatprep.subr.bf16.mxu1 %v6645_v59 }
 0x236   : > { %4542 = vmatpush2.bf16.msra.mxu0 %v6640_v62 }
 0x237   : > { %4583 = vmatpush2.bf16.msra.mxu1 %v6643_v63  ;;  %4543 = vmatprep.subr.bf16.mxu0 %v6648_v2 }
 0x238   : > { %4584 = vmatprep.subr.bf16.mxu1 %v6651_v3 }
 0x23a   : > { %4544 = vmatpush2.bf16.msra.mxu0 %v6646_v4  ;;  %v6758_v4 = vmov 1983009808  }
 0x23b   : > { %4585 = vmatpush2.bf16.msra.mxu1 %v6649_v5  ;;  %4545 = vmatprep.subr.bf16.mxu0 %v6654_v6  ;;  %v4614_v5 = vunpack.c.l.s4 %v6758_v4 }
 0x23c   : > { %4586 = vmatprep.subr.bf16.mxu1 %v6657_v8 }
 0x23e   : > { %4546 = vmatpush2.bf16.msra.mxu0 %v6652_v50 }
 0x23f   : > { %4587 = vmatpush2.bf16.msra.mxu1 %v6655_v11  ;;  %4547 = vmatprep.subr.bf16.mxu0 %v6660_v9  ;;  %v4615_v11 = vunpack.c.0.s8 %v4614_v5 }
 0x240   : > { %4588 = vmatprep.subr.bf16.mxu1 %v6663_v12 }
 0x242   : > { %4548 = vmatpush2.bf16.msra.mxu0 %v6658_v31 }
 0x243   : > { %4589 = vmatpush2.bf16.msra.mxu1 %v6661_v49  ;;  %4549 = vmatprep.subr.bf16.mxu0 %v6666_v52 }
 0x244   : > { %4590 = vmatprep.subr.bf16.mxu1 %v6669_v41 }
 0x246   : > { %4550 = vmatpush2.bf16.msra.mxu0 %v6664_v20 }
 0x247   : > { %4591 = vmatpush2.bf16.msra.mxu1 %v6667_v14  ;;  %4551 = vmatprep.subr.bf16.mxu0 %v6672_v30  ;;  %v7566_v14 = vsub.s32 %v4615_v11, %v6857_v44 }
 0x248   : > { %4592 = vmatprep.subr.bf16.mxu1 %v6675_v43 }
 0x24a   : > { %4552 = vmatpush2.bf16.msra.mxu0 %v6670_v55 }
 0x24b   : > { %4593 = vmatpush2.bf16.msra.mxu1 %v6673_v53  ;;  %4553 = vmatprep.subr.bf16.mxu0 %v6678_v22 }
 0x24c   : > { %4594 = vmatprep.subr.bf16.mxu1 %v6681_v1  ;;  %v4619_v1 = vrot.slane %v4611_v7, %v7566_v14 }
 0x24e   : > { %4554 = vmatpush2.bf16.msra.mxu0 %v6676_v18 }
 0x24f   : > { %4595 = vmatpush2.bf16.msra.mxu1 %v6679_v26  ;;  %4555 = vmatprep.subr.bf16.mxu0 %v6684_v29  ;;  %v268_v26 = vld [vmem:[#allocation2] sm:$0xff] }
 0x250   : > { %4596 = vmatprep.subr.bf16.mxu1 %v6687_v32 }
 0x252   : > { %4556 = vmatpush2.bf16.msra.mxu0 %v6682_v10 }
 0x253   : > { %4597 = vmatpush2.bf16.msra.mxu1 %v6685_v13 }
 0x255   : > { %v4313_v34 = vpop.f32.mrf.mxu0  ;;  %4558 = vmatmul.mubr.bf16.vlgmr.msra.gmra.mxu0 %v7180_v17 }
 0x256   : > { %v4354_v35 = vpop.f32.mrf.mxu1  ;;  %4599 = vmatmul.mubr.bf16.vlgmr.msra.gmra.mxu1 %v7261_v0  ;;  %v4314_v38 = vadd.f32 %v4313_v34, %v7487_v25 }
 0x257   : > { %v4315_v16 = vpop.f32.mrf.mxu0 }
 0x258   : > { %v4356_v60 = vpop.f32.mrf.mxu1  ;;  %v4355_v23 = vadd.f32 %v4354_v35, %v4314_v38  ;;  %v4316_v39 = vadd.f32 %v4315_v16, %v7496_v28 }
 0x259   : > { %v4317_v40 = vpop.f32.mrf.mxu0 }
 0x25a   : > { %v4358_v33 = vpop.f32.mrf.mxu1  ;;  %v4357_v45 = vadd.f32 %v4356_v60, %v4316_v39 }
 0x25b   : > { %v4318_v46 = vpop.f32.mrf.mxu0 }
 0x25c   : > { %v4359_v47 = vpop.f32.mrf.mxu1 }
 0x295   : > { %v4395_v48 = vpop.f32.mrf.mxu0 }
 0x296   : > { %v4436_v51 = vpop.f32.mrf.mxu1  ;;  %v4396_v61 = vadd.f32 %v4395_v48, %v4355_v23 }
 0x297   : > { %v4397_v19 = vpop.f32.mrf.mxu0 }
 0x298   : > { %v4438_v27 = vpop.f32.mrf.mxu1  ;;  %v4437_v17 = vadd.f32 %v4436_v51, %v4396_v61  ;;  %v4398_v15 = vadd.f32 %v4397_v19, %v4357_v45 }
 0x299   : > { %v4399_v0 = vpop.f32.mrf.mxu0 }
 0x29a   : > { %v4440_v54 = vpop.f32.mrf.mxu1  ;;  %v4439_v25 = vadd.f32 %v4438_v27, %v4398_v15 }
 0x29b   : > { %v4400_v36 = vpop.f32.mrf.mxu0 }
 0x29c   : > { %v4441_v57 = vpop.f32.mrf.mxu1 }
 0x2d5   : > { %v4477_v58 = vpop.f32.mrf.mxu0 }
 0x2d6   : > { %v4518_v24 = vpop.f32.mrf.mxu1  ;;  %v4478_v28 = vadd.f32 %v4477_v58, %v4437_v17 }
 0x2d7   : > { %v4479_v42 = vpop.f32.mrf.mxu0 }
 0x2d8   : > { %v4520_v21 = vpop.f32.mrf.mxu1  ;;  %v4519_v59 = vadd.f32 %v4518_v24, %v4478_v28  ;;  %v4480_v6 = vadd.f32 %v4479_v42, %v4439_v25 }
 0x2d9   : > { %v4481_v62 = vpop.f32.mrf.mxu0 }
 0x2da   : > { %v4522_v63 = vpop.f32.mrf.mxu1  ;;  %v4521_v9 = vadd.f32 %v4520_v21, %v4480_v6 }
 0x2db   : > { %v4482_v2 = vpop.f32.mrf.mxu0 }
 0x2dc   : > { %v4523_v3 = vpop.f32.mrf.mxu1 }
 0x315   : > { %v4559_v8 = vpop.f32.mrf.mxu0 }
 0x316   : > { %v4600_v50 = vpop.f32.mrf.mxu1  ;;  %v4560_v12 = vadd.f32 %v4559_v8, %v4519_v59 }
 0x317   : > { %v4561_v31 = vpop.f32.mrf.mxu0 }
 0x318   : > { %v4602_v49 = vpop.f32.mrf.mxu1  ;;  %v4562_v52 = vadd.f32 %v4561_v31, %v4521_v9  ;;  %v4601_v30 = vadd.f32 %v4600_v50, %v4560_v12 }
 0x319   : > { %v4563_v41 = vpop.f32.mrf.mxu0 }
 0x31a   : > { %v4604_v20 = vpop.f32.mrf.mxu1  ;;  %v4603_v43 = vadd.f32 %v4602_v49, %v4562_v52 }
 0x31b   : > { %v4564_v55 = vpop.f32.mrf.mxu0 }
 0x31c   : > { %v4605_v53 = vpop.f32.mrf.mxu1  ;;  %v4612_v22 = vcombine.low %v4601_v30, %v4603_v43 }
 0x31e   : > { %v4626_v18 = vrot.slane %v4612_v22, %v7566_v14 }
 0x320   : > { %v4627_v29 = vcombine.low %v4619_v1, %v4626_v18  ;;  %4634 = sbr.rel (%p5721_p6) target bundleno = 1041 (0x411), region = 52 }
 0x322   : > { %v4629_v32 = vadd.f32 %v4627_v29, %v268_v26 }
 0x324   : > { %4630 = vst [vmem:[#allocation2] sm:$0xff] %v4629_v32 }
 0x325   : > { %v6688_v10 = vld [vmem:[%s7708_s4 + $0x78] sm:$0xff]   ;;  %v6692_v7 = vld [vmem:[%s7708_s4 + $0x70] sm:$0xff]   ;;  %v6696_v16 = vld [vmem:[%s7708_s4 + $0x68] sm:$0xff]   ;;  %v4640_v36 = vsub.s32 0, %v6857_v44  ;;  %v4644_v58 = vsub.s32 1, %v6857_v44  ;;  %v4648_v28 = vsub.s32 2, %v6857_v44 }
 0x326   : > { %v6689_v13 = vld [vmem:[%s7708_s4 + $0xf8] sm:$0xff]   ;;  %5760 = vmatprep.subr.bf16.mxu0 %v6688_v10  ;;  %v6693_v34 = vld [vmem:[%s7708_s4 + $0xf0] sm:$0xff]   ;;  %v6697_v60 = vld [vmem:[%s7708_s4 + $0xe8] sm:$0xff]   ;;  %v4652_v21 = vsub.s32 3, %v6857_v44  ;;  %vm5080_vm0 = vcmask 254976  }
 0x327   : > { %v6690_v37 = vld [vmem:[%s7708_s4 + $0x38] sm:$0xff]   ;;  %5782 = vmatprep.subr.bf16.mxu1 %v6689_v13  ;;  %v6694_v35 = vld [vmem:[%s7708_s4 + $0x30] sm:$0xff]   ;;  %v6698_v23 = vld [vmem:[%s7708_s4 + $0x28] sm:$0xff]  }
 0x328   : > { %v6691_v56 = vld [vmem:[%s7708_s4 + $0xb8] sm:$0xff]   ;;  %5761 = vmatpush3.bf16.msra.mxu0 %v6690_v37  ;;  %v6695_v38 = vld [vmem:[%s7708_s4 + $0xb0] sm:$0xff]   ;;  %v6699_v39 = vld [vmem:[%s7708_s4 + $0xa8] sm:$0xff]  }
 0x329   : > { %5783 = vmatpush3.bf16.msra.mxu1 %v6691_v56  ;;  %5762 = vmatprep.subr.bf16.mxu0 %v6692_v7  ;;  %v6700_v40 = vld [vmem:[%s7708_s4 + $0x60] sm:$0xff]   ;;  %v6704_v47 = vld [vmem:[%s7708_s4 + $0x58] sm:$0xff]   ;;  %v6708_v19 = vld [vmem:[%s7708_s4 + $0x50] sm:$0xff]  }
 0x32a   : > { %5784 = vmatprep.subr.bf16.mxu1 %v6693_v34  ;;  %v6701_v33 = vld [vmem:[%s7708_s4 + $0xe0] sm:$0xff]   ;;  %v6705_v48 = vld [vmem:[%s7708_s4 + $0xd8] sm:$0xff]   ;;  %v6709_v27 = vld [vmem:[%s7708_s4 + $0xd0] sm:$0xff]  }
 0x32b   : > { %v6702_v45 = vld [vmem:[%s7708_s4 + $0x20] sm:$0xff]   ;;  %v6706_v51 = vld [vmem:[%s7708_s4 + $0x18] sm:$0xff]   ;;  %v6710_v17 = vld [vmem:[%s7708_s4 + $0x10] sm:$0xff]  }
 0x32c   : > { %5763 = vmatpush3.bf16.msra.mxu0 %v6694_v35  ;;  %v6703_v46 = vld [vmem:[%s7708_s4 + $0xa0] sm:$0xff]   ;;  %v6707_v61 = vld [vmem:[%s7708_s4 + $0x98] sm:$0xff]   ;;  %v6711_v15 = vld [vmem:[%s7708_s4 + $0x90] sm:$0xff]  }
 0x32d   : > { %5785 = vmatpush3.bf16.msra.mxu1 %v6695_v38  ;;  %5764 = vmatprep.subr.bf16.mxu0 %v6696_v16  ;;  %v6712_v0 = vld [vmem:[%s7708_s4 + $0x48] sm:$0xff]   ;;  %v6716_v24 = vld [vmem:[%s7708_s4 + $0x40] sm:$0xff]  }
 0x32e   : > { %5786 = vmatprep.subr.bf16.mxu1 %v6697_v60  ;;  %v6713_v54 = vld [vmem:[%s7708_s4 + $0xc8] sm:$0xff]   ;;  %v6717_v42 = vld [vmem:[%s7708_s4 + $0xc0] sm:$0xff]  }
 0x32f   : > { %v6714_v25 = vld [vmem:[%s7708_s4 + $0x8] sm:$0xff]   ;;  %v6718_v59 = vld [vmem:[%s7708_s4] sm:$0xff]  }
 0x330   : > { %5765 = vmatpush3.bf16.msra.mxu0 %v6698_v23  ;;  %v6715_v57 = vld [vmem:[%s7708_s4 + $0x88] sm:$0xff]   ;;  %v6719_v62 = vld [vmem:[%s7708_s4 + $0x80] sm:$0xff]  }
 0x331   : > { %5787 = vmatpush3.bf16.msra.mxu1 %v6699_v39  ;;  %5766 = vmatprep.subr.bf16.mxu0 %v6700_v40  ;;  %v4636_v63 = vld [vmem:[%s7706_s2] sm:$0xf] }
 0x332   : > { %5788 = vmatprep.subr.bf16.mxu1 %v6701_v33  ;;  %v4673_v2 = vld [vmem:[%s7707_s3] sm:$0xf]  ;;  %v4641_v44 = vrot.slane %v4636_v63, %v4640_v36  ;;  %v4645_v3 = vrot.slane %v4636_v63, %v4644_v58  ;;  %v4649_v4 = vrot.slane %v4636_v63, %v4648_v28  ;;  %v4653_v5 = vrot.slane %v4636_v63, %v4652_v21 }
 0x333   : > { %v4678_v6 = vrot.slane %v4673_v2, %v4640_v36  ;;  %v4682_v8 = vrot.slane %v4673_v2, %v4644_v58  ;;  %v4686_v50 = vrot.slane %v4673_v2, %v4648_v28  ;;  %v4690_v11 = vrot.slane %v4673_v2, %v4652_v21  ;;  %v4635_v20 = vld [vmem:[#allocation2] sm:$0xff] }
 0x334   : > { %5767 = vmatpush3.bf16.msra.mxu0 %v6702_v45  ;;  %v4654_v9 = vcombine.low %v4641_v44, %v4645_v3  ;;  %v4655_v12 = vcombine.low %v4649_v4, %v4653_v5  ;;  %v5722_v16 = vld [vmem:[%s7709_s5] ss:$0 sm:$0xff] }
 0x335   : > { %5789 = vmatpush3.bf16.msra.mxu1 %v6703_v46  ;;  %5768 = vmatprep.subr.bf16.mxu0 %v6704_v47  ;;  %v4691_v31 = vcombine.low %v4678_v6, %v4682_v8  ;;  %v4692_v49 = vcombine.low %v4686_v50, %v4690_v11 }
 0x336   : > { %5790 = vmatprep.subr.bf16.mxu1 %v6705_v48  ;;  %v4662_v52 = vrot.slane %v4654_v9, %v7566_v14  ;;  %v4669_v41 = vrot.slane %v4655_v12, %v7566_v14 }
 0x337   : > { %v4699_v30 = vrot.slane %v4691_v31, %v7566_v14  ;;  %v4706_v43 = vrot.slane %v4692_v49, %v7566_v14 }
 0x338   : > { %5769 = vmatpush3.bf16.msra.mxu0 %v6706_v51  ;;  %v4670_v55 = vcombine.low %v4662_v52, %v4669_v41 }
 0x339   : > { %5791 = vmatpush3.bf16.msra.mxu1 %v6707_v61  ;;  %5770 = vmatprep.subr.bf16.mxu0 %v6708_v19  ;;  %v4707_v53 = vcombine.low %v4699_v30, %v4706_v43 }
 0x33a   : > { %5792 = vmatprep.subr.bf16.mxu1 %v6709_v27  ;;  %v4672_v22 = vmul.f32 %v4670_v55, %v4635_v20 }
 0x33c   : > { %5771 = vmatpush3.bf16.msra.mxu0 %v6710_v17  ;;  %v4709_v1 = vadd.f32 %v4707_v53, %v4672_v22 }
 0x33d   : > { %5793 = vmatpush3.bf16.msra.mxu1 %v6711_v15  ;;  %5772 = vmatprep.subr.bf16.mxu0 %v6712_v0 }
 0x33e   : > { %5794 = vmatprep.subr.bf16.mxu1 %v6713_v54  ;;  %v4710_v18 = vmax.f32 %v4709_v1, 0.0 }
 0x340   : > { %5773 = vmatpush3.bf16.msra.mxu0 %v6714_v25  ;;  %v4719_v26 = vrot.slane %v4710_v18, %v7566_v14  ;;  %v4712_v29 = vcombine.high %v4710_v18, %v4710_v18 }
 0x341   : > { %5795 = vmatpush3.bf16.msra.mxu1 %v6715_v57  ;;  %5774 = vmatprep.subr.bf16.mxu0 %v6716_v24 }
 0x342   : > { %5796 = vmatprep.subr.bf16.mxu1 %v6717_v42  ;;  %v4727_v32 = vcombine.high %v4719_v26, %v4719_v26  ;;  %v4726_v10 = vrot.slane %v4712_v29, %v7566_v14  ;;  %v4733_v13 = vpack.c.bf16 %v4719_v26, %v4719_v26 }
 0x344   : > { %5775 = vmatpush3.bf16.msra.mxu0 %v6718_v59  ;;  %v4734_v37 = vpack.c.bf16 %v4727_v32, %v4727_v32  ;;  %v4728_v56 = vcombine.high %v4726_v10, %v4726_v10  ;;  %v4735_v7 = vpack.c.bf16 %v4726_v10, %v4726_v10 }
 0x345   : > { %5797 = vmatpush3.bf16.msra.mxu1 %v6719_v62 }
 0x346   : > { %5032 = vmatprep.mubr.bf16.mxu0 %v4734_v37  ;;  %v4736_v34 = vpack.c.bf16 %v4728_v56, %v4728_v56 }
 0x347   : > { %5033 = vmatmul.mubr.bf16.vlgmr.msra.gmra.mxu0 %v4733_v13 }
 0x348   : > { %5072 = vmatprep.mubr.bf16.mxu1 %v4736_v34 }
 0x349   : > { %5073 = vmatmul.mubr.bf16.vlgmr.msra.gmra.mxu1 %v4735_v7 }
 0x407   : > { %v5776_v35 = vpop.f32.mrf.mxu0 }
 0x409   : > { %v5798_v38 = vpop.f32.mrf.mxu1  ;;  %v5777_v60 = vpop.f32.mrf.mxu0 }
 0x40a   : > { %v5778_v23 = vadd.f32 %v5777_v60, %v5776_v35 }
 0x40b   : > { %v5799_v39 = vpop.f32.mrf.mxu1  ;;  %v5779_v40 = vpop.f32.mrf.mxu0 }
 0x40c   : > { %v5035_v14 = vadd.f32 %v5778_v23, %v5722_v16  ;;  %v5800_v33 = vadd.f32 %v5799_v39, %v5798_v38 }
 0x40d   : > { %v5801_v45 = vpop.f32.mrf.mxu1  ;;  %v5780_v46 = vpop.f32.mrf.mxu0 }
 0x40e   : > { %v5075_v47 = vadd.f32 %v5800_v33, %v5035_v14 }
 0x40f   : > { %v5802_v48 = vpop.f32.mrf.mxu1 }
 0x410   : > { %5081 = vst.msk [vmem:[#allocation3] sm:$0x3] %vm5080_vm0, %v5075_v47 }
 0x411 PF: > { %p5808_p7 = scmp.eq.s32.totalorder %s6801_s22, 2  ;;  %s6759_s12 = smov [#allocation3]  }
 0x412   : > { %s5089_s13 = sshll.u32 %s6759_s12, 4  ;;  %s5090_s13 = int_to_ptr.vmem [resolvable:$true] %s5089_s13 }
 0x413   : > { %s6720_s14 = scalar_lea.vmem %s5090_s13, 32  ;;  %p6727_p11 = scmp.lt.s32.totalorder %s5090_s13, %s5090_s13 }
 0x414   : > { %p6721_p8 = scmp.ne.s32.totalorder %s5090_s13, %s6720_s14  ;;  %p6728_p12 = scmp.lt.s32.totalorder %s6720_s14, %s6720_s14 }
 0x416   : > { %p6722_p9 = pnand %p6721_p8, %p5808_p7  ;;  %p6729_p13 = por %p6728_p12, %p6727_p11 }
 0x418   : > { %p6723_p10 = pneg %p6722_p9 }
 0x41a   : > { %p6730_p0 = pnand %p6729_p13, %p6723_p10 }
 0x41c   : > { %6733 = shalt.err (!%p6730_p0)
}
 0x41d   : > { %5805 = dma.vmem_to_hbm [thread:$0]  (%p5808_p7), %s5090_s13, 32, %s7710_s6, [#allocation4]  }
 0x41e   : > { %6749 = dma.done.wait (%p5808_p7), [#allocation4], 32  }
 0x41f   : > { %6751 = vsyncadd (%p5808_p7), [#allocation4], 4294967264 }
 0x420 PF: > { %s17_s21 = sadd.s32 1, %s6754_s21  }
 0x421   : > { %p14_p1 = scmp.ge.s32.totalorder %s17_s21, 5  }
 0x423   :  { %16 = sbr.rel (!%p14_p1) target bundleno = 1 (0x1), region = 82 }
 0x428   :  { %5102 = vsyncpa [#allocation4], 1 }
 0x429   :  { %5104 = vsyncpa [#allocation4 + $0x1], 1 }

</bundles_post_ra>
